<compile_context>
chip_gen: v7x
topology: tpu7x:2x2x1
jax: 0.10.0
libtpu: 0.0.40
codegen_flags: <defaults>
</compile_context>

<pallas_src>
import functools

import jax
import jax.numpy as jnp
from jax import lax
from jax.experimental import pallas as pl
from jax.experimental.pallas import tpu as pltpu


def _pick_row_block(H, target):
    """Largest divisor of H that is <= target (rows of the image per dot)."""
    rb = max(1, min(target, H))
    while H % rb:
        rb -= 1
    return rb


def _pick_vmem_limit():
    """Budget VMEM below physical capacity (v7x: 64 MiB/TC, v5e/v6e: 128 MiB)."""
    cap = 128 * 1024 * 1024
    try:
        cap = int(pltpu.get_tpu_info().vmem_capacity_bytes)
    except Exception:
        pass
    try:
        if "v7" in jax.devices()[0].device_kind.lower():
            cap = min(cap, 64 * 1024 * 1024)
    except Exception:
        pass
    # ~80% of physical for headroom, and never more than ~100 MiB on 128 MiB parts.
    return max(32 * 1024 * 1024, min(int(cap * 0.8), 100 * 1024 * 1024))


def _make_fused_kernel(H, W, C, rb, eps, conv_dtype):
    """Kernel computing the full residual block for one batch element."""
    n_blocks = H // rb
    inv_n = 1.0 / float(H * W)
    # Full-precision MXU passes only for the exact f32 path; bf16 operands use
    # the default single-pass path.
    mxu_prec = lax.Precision.HIGHEST if conv_dtype == jnp.float32 else None

    def kernel(x_ref, w1_ref, w2_ref, aff_ref, out_ref, pad_ref, col_ref, acc_ref):

        def fill_borders():
            # Reflection pad=1: borders read the already-written interior
            # (padded row 2 == original row 1, etc.).  Columns are filled last so
            # the corners reflect in both dims, matching torch.nn.ReflectionPad2d.
            pad_ref[0:1, 1:W + 1, :] = pad_ref[2:3, 1:W + 1, :]
            pad_ref[H + 1:H + 2, 1:W + 1, :] = pad_ref[H - 1:H, 1:W + 1, :]
            pad_ref[:, 0:1, :] = pad_ref[:, 2:3, :]
            pad_ref[:, W + 1:W + 2, :] = pad_ref[:, W - 1:W, :]

        def conv_stage(w_ref, bias):
            """Row-blocked im2col + fused (rb*W, 9C) x (9C, C) MXU dots.

            InstanceNorm partial sums are accumulated in the dot epilogue (one
            traversal).  Returns (mean, inv_std), each of shape (1, C), f32.
            """
            s = jnp.zeros((1, C), jnp.float32)
            sq = jnp.zeros((1, C), jnp.float32)
            w = w_ref[...]                                   # hoisted weight load
            for blk in range(n_blocks):
                r0 = blk * rb
                slot = blk % 2          # rotating im2col buffer: next block's
                                        # stores overlap this block's MXU pushes
                # im2col column order (dy, dx, c_in) matches the packed-weight
                # row order.  TODO(synk): dx=+/-1 shifts are sublane-misaligned
                # slices; pltpu.roll on the XLU slot would be cheaper.
                for dy in range(3):
                    for dx in range(3):
                        tap = dy * 3 + dx
                        patch = pad_ref[r0 + dy:r0 + dy + rb, dx:dx + W, :]
                        col_ref[slot, :, tap * C:(tap + 1) * C] = (
                            patch.reshape(rb * W, C))
                y = jnp.dot(col_ref[slot], w,
                            preferred_element_type=jnp.float32,
                            precision=mxu_prec)              # (rb*W, C) f32
                y = y + bias
                acc_ref[r0 * W:(r0 + rb) * W, :] = y
                # single-traversal statistics while y is still hot in vregs
                s = s + jnp.sum(y, axis=0, keepdims=True)
                sq = sq + jnp.sum(y * y, axis=0, keepdims=True)
            mean = s * inv_n
            var = sq * inv_n - mean * mean
            return mean, lax.rsqrt(var + eps)

        aff = aff_ref[...].astype(jnp.float32)               # (6, C)
        b1, g1, be1 = aff[0:1, :], aff[1:2, :], aff[2:3, :]
        b2, g2, be2 = aff[3:4, :], aff[4:5, :], aff[5:6, :]

        # ---- stage 1: pad(x) -> conv1 -> IN1 -> ReLU, written straight back
        #      into pad_ref's interior (no separate y1 round-trip) ------------
        pad_ref[1:H + 1, 1:W + 1, :] = x_ref[0].astype(conv_dtype)
        fill_borders()
        mean1, inv1 = conv_stage(w1_ref, b1)
        y1 = (acc_ref[...] - mean1) * (inv1 * g1) + be1
        y1 = jnp.maximum(y1, 0.0)
        pad_ref[1:H + 1, 1:W + 1, :] = y1.reshape(H, W, C).astype(conv_dtype)

        # ---- stage 2: pad(y1) -> conv2 -> IN2 -> + residual ------------------
        fill_borders()
        mean2, inv2 = conv_stage(w2_ref, b2)
        y2 = (acc_ref[...] - mean2) * (inv2 * g2) + be2
        out = y2.reshape(H, W, C) + x_ref[0].astype(jnp.float32)  # residual re-read
        out_ref[0] = out.astype(out_ref.dtype)

    return kernel


def residual_block(x_nchw, params, *, conv_dtype=jnp.bfloat16, eps=1e-5,
                   rows_per_block=8):
    """Pallas implementation of ResidualBlock.forward (NCHW in / NCHW out)."""
    N, C, H, W = x_nchw.shape
    x = jnp.transpose(x_nchw, (0, 2, 3, 1))                  # NHWC: C on lanes
    rb = _pick_row_block(H, rows_per_block)

    # Pack HWIO (3, 3, C, C) weights to (9C, C); row order (dy, dx, c_in) matches
    # the in-kernel im2col column order.  Cast once on the host so the weight DMA
    # is already in the MXU operand dtype.
    w1p = params["w1"].reshape(9 * C, C).astype(conv_dtype)
    w2p = params["w2"].reshape(9 * C, C).astype(conv_dtype)
    # Stack the small per-channel vectors: [b1, g1, be1, b2, g2, be2].
    affine = jnp.stack([params["b1"], params["g1"], params["be1"],
                        params["b2"], params["g2"], params["be2"]]).astype(jnp.float32)

    kernel = _make_fused_kernel(H, W, C, rb, eps, conv_dtype)

    # TODO(synk): for small C (like this C=4 demo) fold W into the lane axis so
    # the output store is lane-dense; the current layout only fills C lanes.
    out = pl.pallas_call(
        kernel,
        out_shape=jax.ShapeDtypeStruct((N, H, W, C), x.dtype),
        grid_spec=pltpu.PrefetchScalarGridSpec(
            num_scalar_prefetch=0,
            grid=(N,),
            in_specs=[
                pl.BlockSpec((1, H, W, C), lambda n: (n, 0, 0, 0)),   # x (unpadded)
                pl.BlockSpec((9 * C, C), lambda n: (0, 0)),           # packed w1
                pl.BlockSpec((9 * C, C), lambda n: (0, 0)),           # packed w2
                pl.BlockSpec((6, C), lambda n: (0, 0)),               # bias/gamma/beta
            ],
            out_specs=pl.BlockSpec((1, H, W, C), lambda n: (n, 0, 0, 0)),
            scratch_shapes=[
                pltpu.VMEM((H + 2, W + 2, C), conv_dtype),    # reflection-padded img
                pltpu.VMEM((2, rb * W, 9 * C), conv_dtype),   # rotating im2col tile
                pltpu.VMEM((H * W, C), jnp.float32),          # conv accumulator
            ],
        ),
        compiler_params=pltpu.CompilerParams(
            dimension_semantics=("parallel",),
            vmem_limit_bytes=_pick_vmem_limit(),
        ),
    )(x, w1p, w2p, affine)

    return jnp.transpose(out, (0, 3, 1, 2))                  # back to NCHW


# ----------------------------- pure-JAX reference -----------------------------
def _conv3x3_reflect_ref(x_nhwc, w_hwio, b):
    xpad = jnp.pad(x_nhwc, ((0, 0), (1, 1), (1, 1), (0, 0)), mode="reflect")
    y = lax.conv_general_dilated(
        xpad, w_hwio, window_strides=(1, 1), padding="VALID",
        dimension_numbers=("NHWC", "HWIO", "NHWC"),
        precision=lax.Precision.HIGHEST)
    return y + b[None, None, None, :]


def _instance_norm_ref(x_nhwc, gamma, beta, eps=1e-5):
    mean = jnp.mean(x_nhwc, axis=(1, 2), keepdims=True)
    var = jnp.mean((x_nhwc - mean) ** 2, axis=(1, 2), keepdims=True)
    return (x_nhwc - mean) * lax.rsqrt(var + eps) * gamma + beta


def residual_block_ref(x_nchw, p):
    x = jnp.transpose(x_nchw, (0, 2, 3, 1))
    out = _conv3x3_reflect_ref(x, p["w1"], p["b1"])
    out = jnp.maximum(_instance_norm_ref(out, p["g1"], p["be1"]), 0.0)
    out = _conv3x3_reflect_ref(out, p["w2"], p["b2"])
    out = _instance_norm_ref(out, p["g2"], p["be2"])
    out = out + x
    return jnp.transpose(out, (0, 3, 1, 2))


# ----------------------------------- main -------------------------------------
if __name__ == "__main__":
    N, C, H, W = 2, 4, 16, 16
    key = jax.random.PRNGKey(0)
    kx, k1, k2, k3, k4, k5, k6, k7, k8 = jax.random.split(key, 9)

    x = jax.random.normal(kx, (N, C, H, W), jnp.float32)

    params = {
        # conv weights stored as HWIO (3, 3, C_in, C_out)
        "w1": 0.1 * jax.random.normal(k1, (3, 3, C, C), jnp.float32),
        "b1": 0.1 * jax.random.normal(k2, (C,), jnp.float32),
        "g1": 1.0 + 0.1 * jax.random.normal(k3, (C,), jnp.float32),
        "be1": 0.1 * jax.random.normal(k4, (C,), jnp.float32),
        "w2": 0.1 * jax.random.normal(k5, (3, 3, C, C), jnp.float32),
        "b2": 0.1 * jax.random.normal(k6, (C,), jnp.float32),
        "g2": 1.0 + 0.1 * jax.random.normal(k7, (C,), jnp.float32),
        "be2": 0.1 * jax.random.normal(k8, (C,), jnp.float32),
    }

    ref = residual_block_ref(x, params)

    # Exact-precision path (f32 MXU operands at HIGHEST precision): tight check.
    run_f32 = jax.jit(functools.partial(residual_block, conv_dtype=jnp.float32))
    out_f32 = jax.block_until_ready(run_f32(x, params))
    assert out_f32.shape == (N, C, H, W), out_f32.shape
    err_f32 = float(jnp.max(jnp.abs(out_f32 - ref)))
    assert jnp.allclose(out_f32, ref, atol=2e-3, rtol=2e-3), err_f32

    # Default fast path (bf16 MXU operands, f32 accumulation / norm): loose check.
    run_bf16 = jax.jit(functools.partial(residual_block, conv_dtype=jnp.bfloat16))
    out_bf16 = jax.block_until_ready(run_bf16(x, params))
    assert out_bf16.shape == (N, C, H, W), out_bf16.shape
    err_bf16 = float(jnp.max(jnp.abs(out_bf16 - ref)))
    assert jnp.allclose(out_bf16, ref, atol=1e-1, rtol=1e-1), err_bf16

    print("KERNEL_OK")
</pallas_src>

<mosaic_0001>
module attributes {stable_mosaic.version = 11 : i64} {
  func.func @kernel(%arg0: i32, %arg1: memref<1x16x16x4xf32, #tpu.memory_space<vmem>>, %arg2: memref<36x4xf32, #tpu.memory_space<vmem>>, %arg3: memref<36x4xf32, #tpu.memory_space<vmem>>, %arg4: memref<6x4xf32, #tpu.memory_space<vmem>>, %arg5: memref<1x16x16x4xf32, #tpu.memory_space<vmem>>, %arg6: memref<18x18x4xf32, #tpu.memory_space<vmem>>, %arg7: memref<2x128x36xf32, #tpu.memory_space<vmem>>, %arg8: memref<256x4xf32, #tpu.memory_space<vmem>>) attributes {dimension_semantics = [#tpu.dimension_semantics<parallel>], iteration_bounds = array<i64: 2>, scalar_prefetch = 0 : i64, scratch_operands = 3 : i64, tpu.core_type = #tpu.core_type<tc>, window_params = [{transform_indices = @transform_0, window_bounds = array<i64: 1, 16, 16, 4>}, {pipeline_mode = #tpu.pipeline_mode<synchronous>, transform_indices = @transform_1, window_bounds = array<i64: 36, 4>}, {pipeline_mode = #tpu.pipeline_mode<synchronous>, transform_indices = @transform_2, window_bounds = array<i64: 36, 4>}, {pipeline_mode = #tpu.pipeline_mode<synchronous>, transform_indices = @transform_3, window_bounds = array<i64: 6, 4>}, {transform_indices = @transform_4, window_bounds = array<i64: 1, 16, 16, 4>}]} {
    %c0 = arith.constant 0 : index
    %c0_0 = arith.constant 0 : index
    %0 = vector.load %arg4[%c0, %c0_0] : memref<6x4xf32, #tpu.memory_space<vmem>>, vector<6x4xf32>
    %1 = vector.extract_strided_slice %0 {offsets = [0, 0], sizes = [1, 4], strides = [1, 1]} : vector<6x4xf32> to vector<1x4xf32>
    %2 = vector.extract_strided_slice %0 {offsets = [1, 0], sizes = [1, 4], strides = [1, 1]} : vector<6x4xf32> to vector<1x4xf32>
    %3 = vector.extract_strided_slice %0 {offsets = [2, 0], sizes = [1, 4], strides = [1, 1]} : vector<6x4xf32> to vector<1x4xf32>
    %4 = vector.extract_strided_slice %0 {offsets = [3, 0], sizes = [1, 4], strides = [1, 1]} : vector<6x4xf32> to vector<1x4xf32>
    %5 = vector.extract_strided_slice %0 {offsets = [4, 0], sizes = [1, 4], strides = [1, 1]} : vector<6x4xf32> to vector<1x4xf32>
    %6 = vector.extract_strided_slice %0 {offsets = [5, 0], sizes = [1, 4], strides = [1, 1]} : vector<6x4xf32> to vector<1x4xf32>
    %c0_1 = arith.constant 0 : index
    %c0_2 = arith.constant 0 : index
    %c0_3 = arith.constant 0 : index
    %c0_4 = arith.constant 0 : index
    %7 = vector.load %arg1[%c0_1, %c0_2, %c0_3, %c0_4] : memref<1x16x16x4xf32, #tpu.memory_space<vmem>>, vector<1x16x16x4xf32>
    %8 = vector.shape_cast %7 : vector<1x16x16x4xf32> to vector<16x16x4xf32>
    %c1 = arith.constant 1 : index
    %c1_5 = arith.constant 1 : index
    %c0_6 = arith.constant 0 : index
    %9 = vector.load %arg6[%c1, %c1_5, %c0_6] : memref<18x18x4xf32, #tpu.memory_space<vmem>>, vector<16x16x4xf32>
    tpu.vector_store %arg6[%c1, %c1_5, %c0_6], %8 {strides = array<i32>} : memref<18x18x4xf32, #tpu.memory_space<vmem>>, vector<16x16x4xf32>,
    %c2 = arith.constant 2 : index
    %c1_7 = arith.constant 1 : index
    %c0_8 = arith.constant 0 : index
    %10 = vector.load %arg6[%c2, %c1_7, %c0_8] : memref<18x18x4xf32, #tpu.memory_space<vmem>>, vector<1x16x4xf32>
    %c0_9 = arith.constant 0 : index
    %c1_10 = arith.constant 1 : index
    %c0_11 = arith.constant 0 : index
    %11 = vector.load %arg6[%c0_9, %c1_10, %c0_11] : memref<18x18x4xf32, #tpu.memory_space<vmem>>, vector<1x16x4xf32>
    tpu.vector_store %arg6[%c0_9, %c1_10, %c0_11], %10 {strides = array<i32>} : memref<18x18x4xf32, #tpu.memory_space<vmem>>, vector<1x16x4xf32>,
    %c15 = arith.constant 15 : index
    %c1_12 = arith.constant 1 : index
    %c0_13 = arith.constant 0 : index
    %12 = vector.load %arg6[%c15, %c1_12, %c0_13] : memref<18x18x4xf32, #tpu.memory_space<vmem>>, vector<1x16x4xf32>
    %c17 = arith.constant 17 : index
    %c1_14 = arith.constant 1 : index
    %c0_15 = arith.constant 0 : index
    %13 = vector.load %arg6[%c17, %c1_14, %c0_15] : memref<18x18x4xf32, #tpu.memory_space<vmem>>, vector<1x16x4xf32>
    tpu.vector_store %arg6[%c17, %c1_14, %c0_15], %12 {strides = array<i32>} : memref<18x18x4xf32, #tpu.memory_space<vmem>>, vector<1x16x4xf32>,
    %c0_16 = arith.constant 0 : index
    %c2_17 = arith.constant 2 : index
    %c0_18 = arith.constant 0 : index
    %14 = vector.load %arg6[%c0_16, %c2_17, %c0_18] : memref<18x18x4xf32, #tpu.memory_space<vmem>>, vector<18x1x4xf32>
    %c0_19 = arith.constant 0 : index
    %c0_20 = arith.constant 0 : index
    %c0_21 = arith.constant 0 : index
    %15 = vector.load %arg6[%c0_19, %c0_20, %c0_21] : memref<18x18x4xf32, #tpu.memory_space<vmem>>, vector<18x1x4xf32>
    tpu.vector_store %arg6[%c0_19, %c0_20, %c0_21], %14 {strides = array<i32>} : memref<18x18x4xf32, #tpu.memory_space<vmem>>, vector<18x1x4xf32>,
    %c0_22 = arith.constant 0 : index
    %c15_23 = arith.constant 15 : index
    %c0_24 = arith.constant 0 : index
    %16 = vector.load %arg6[%c0_22, %c15_23, %c0_24] : memref<18x18x4xf32, #tpu.memory_space<vmem>>, vector<18x1x4xf32>
    %c0_25 = arith.constant 0 : index
    %c17_26 = arith.constant 17 : index
    %c0_27 = arith.constant 0 : index
    %17 = vector.load %arg6[%c0_25, %c17_26, %c0_27] : memref<18x18x4xf32, #tpu.memory_space<vmem>>, vector<18x1x4xf32>
    tpu.vector_store %arg6[%c0_25, %c17_26, %c0_27], %16 {strides = array<i32>} : memref<18x18x4xf32, #tpu.memory_space<vmem>>, vector<18x1x4xf32>,
    %cst = arith.constant 0.000000e+00 : f32
    %18 = vector.broadcast %cst : f32 to vector<1x4xf32>
    %cst_28 = arith.constant 0.000000e+00 : f32
    %19 = vector.broadcast %cst_28 : f32 to vector<1x4xf32>
    %c0_29 = arith.constant 0 : index
    %c0_30 = arith.constant 0 : index
    %20 = vector.load %arg2[%c0_29, %c0_30] : memref<36x4xf32, #tpu.memory_space<vmem>>, vector<36x4xf32>
    %c0_31 = arith.constant 0 : index
    %c0_32 = arith.constant 0 : index
    %c0_33 = arith.constant 0 : index
    %21 = vector.load %arg6[%c0_31, %c0_32, %c0_33] : memref<18x18x4xf32, #tpu.memory_space<vmem>>, vector<8x16x4xf32>
    %22 = vector.shape_cast %21 : vector<8x16x4xf32> to vector<128x4xf32>
    %c0_34 = arith.constant 0 : index
    %c0_35 = arith.constant 0 : index
    %c0_36 = arith.constant 0 : index
    %23 = vector.load %arg7[%c0_34, %c0_35, %c0_36] : memref<2x128x36xf32, #tpu.memory_space<vmem>>, vector<1x128x4xf32>
    %24 = vector.shape_cast %23 : vector<1x128x4xf32> to vector<128x4xf32>
    %25 = vector.shape_cast %22 : vector<128x4xf32> to vector<1x128x4xf32>
    tpu.vector_store %arg7[%c0_34, %c0_35, %c0_36], %25 {strides = array<i32>} : memref<2x128x36xf32, #tpu.memory_space<vmem>>, vector<1x128x4xf32>,
    %c0_37 = arith.constant 0 : index
    %c1_38 = arith.constant 1 : index
    %c0_39 = arith.constant 0 : index
    %26 = vector.load %arg6[%c0_37, %c1_38, %c0_39] : memref<18x18x4xf32, #tpu.memory_space<vmem>>, vector<8x16x4xf32>
    %27 = vector.shape_cast %26 : vector<8x16x4xf32> to vector<128x4xf32>
    %c0_40 = arith.constant 0 : index
    %c0_41 = arith.constant 0 : index
    %c4 = arith.constant 4 : index
    %28 = vector.load %arg7[%c0_40, %c0_41, %c4] : memref<2x128x36xf32, #tpu.memory_space<vmem>>, vector<1x128x4xf32>
    %29 = vector.shape_cast %28 : vector<1x128x4xf32> to vector<128x4xf32>
    %30 = vector.shape_cast %27 : vector<128x4xf32> to vector<1x128x4xf32>
    tpu.vector_store %arg7[%c0_40, %c0_41, %c4], %30 {strides = array<i32>} : memref<2x128x36xf32, #tpu.memory_space<vmem>>, vector<1x128x4xf32>,
    %c0_42 = arith.constant 0 : index
    %c2_43 = arith.constant 2 : index
    %c0_44 = arith.constant 0 : index
    %31 = vector.load %arg6[%c0_42, %c2_43, %c0_44] : memref<18x18x4xf32, #tpu.memory_space<vmem>>, vector<8x16x4xf32>
    %32 = vector.shape_cast %31 : vector<8x16x4xf32> to vector<128x4xf32>
    %c0_45 = arith.constant 0 : index
    %c0_46 = arith.constant 0 : index
    %c8 = arith.constant 8 : index
    %33 = vector.load %arg7[%c0_45, %c0_46, %c8] : memref<2x128x36xf32, #tpu.memory_space<vmem>>, vector<1x128x4xf32>
    %34 = vector.shape_cast %33 : vector<1x128x4xf32> to vector<128x4xf32>
    %35 = vector.shape_cast %32 : vector<128x4xf32> to vector<1x128x4xf32>
    tpu.vector_store %arg7[%c0_45, %c0_46, %c8], %35 {strides = array<i32>} : memref<2x128x36xf32, #tpu.memory_space<vmem>>, vector<1x128x4xf32>,
    %c1_47 = arith.constant 1 : index
    %c0_48 = arith.constant 0 : index
    %c0_49 = arith.constant 0 : index
    %36 = vector.load %arg6[%c1_47, %c0_48, %c0_49] : memref<18x18x4xf32, #tpu.memory_space<vmem>>, vector<8x16x4xf32>
    %37 = vector.shape_cast %36 : vector<8x16x4xf32> to vector<128x4xf32>
    %c0_50 = arith.constant 0 : index
    %c0_51 = arith.constant 0 : index
    %c12 = arith.constant 12 : index
    %38 = vector.load %arg7[%c0_50, %c0_51, %c12] : memref<2x128x36xf32, #tpu.memory_space<vmem>>, vector<1x128x4xf32>
    %39 = vector.shape_cast %38 : vector<1x128x4xf32> to vector<128x4xf32>
    %40 = vector.shape_cast %37 : vector<128x4xf32> to vector<1x128x4xf32>
    tpu.vector_store %arg7[%c0_50, %c0_51, %c12], %40 {strides = array<i32>} : memref<2x128x36xf32, #tpu.memory_space<vmem>>, vector<1x128x4xf32>,
    %c1_52 = arith.constant 1 : index
    %c1_53 = arith.constant 1 : index
    %c0_54 = arith.constant 0 : index
    %41 = vector.load %arg6[%c1_52, %c1_53, %c0_54] : memref<18x18x4xf32, #tpu.memory_space<vmem>>, vector<8x16x4xf32>
    %42 = vector.shape_cast %41 : vector<8x16x4xf32> to vector<128x4xf32>
    %c0_55 = arith.constant 0 : index
    %c0_56 = arith.constant 0 : index
    %c16 = arith.constant 16 : index
    %43 = vector.load %arg7[%c0_55, %c0_56, %c16] : memref<2x128x36xf32, #tpu.memory_space<vmem>>, vector<1x128x4xf32>
    %44 = vector.shape_cast %43 : vector<1x128x4xf32> to vector<128x4xf32>
    %45 = vector.shape_cast %42 : vector<128x4xf32> to vector<1x128x4xf32>
    tpu.vector_store %arg7[%c0_55, %c0_56, %c16], %45 {strides = array<i32>} : memref<2x128x36xf32, #tpu.memory_space<vmem>>, vector<1x128x4xf32>,
    %c1_57 = arith.constant 1 : index
    %c2_58 = arith.constant 2 : index
    %c0_59 = arith.constant 0 : index
    %46 = vector.load %arg6[%c1_57, %c2_58, %c0_59] : memref<18x18x4xf32, #tpu.memory_space<vmem>>, vector<8x16x4xf32>
    %47 = vector.shape_cast %46 : vector<8x16x4xf32> to vector<128x4xf32>
    %c0_60 = arith.constant 0 : index
    %c0_61 = arith.constant 0 : index
    %c20 = arith.constant 20 : index
    %48 = vector.load %arg7[%c0_60, %c0_61, %c20] : memref<2x128x36xf32, #tpu.memory_space<vmem>>, vector<1x128x4xf32>
    %49 = vector.shape_cast %48 : vector<1x128x4xf32> to vector<128x4xf32>
    %50 = vector.shape_cast %47 : vector<128x4xf32> to vector<1x128x4xf32>
    tpu.vector_store %arg7[%c0_60, %c0_61, %c20], %50 {strides = array<i32>} : memref<2x128x36xf32, #tpu.memory_space<vmem>>, vector<1x128x4xf32>,
    %c2_62 = arith.constant 2 : index
    %c0_63 = arith.constant 0 : index
    %c0_64 = arith.constant 0 : index
    %51 = vector.load %arg6[%c2_62, %c0_63, %c0_64] : memref<18x18x4xf32, #tpu.memory_space<vmem>>, vector<8x16x4xf32>
    %52 = vector.shape_cast %51 : vector<8x16x4xf32> to vector<128x4xf32>
    %c0_65 = arith.constant 0 : index
    %c0_66 = arith.constant 0 : index
    %c24 = arith.constant 24 : index
    %53 = vector.load %arg7[%c0_65, %c0_66, %c24] : memref<2x128x36xf32, #tpu.memory_space<vmem>>, vector<1x128x4xf32>
    %54 = vector.shape_cast %53 : vector<1x128x4xf32> to vector<128x4xf32>
    %55 = vector.shape_cast %52 : vector<128x4xf32> to vector<1x128x4xf32>
    tpu.vector_store %arg7[%c0_65, %c0_66, %c24], %55 {strides = array<i32>} : memref<2x128x36xf32, #tpu.memory_space<vmem>>, vector<1x128x4xf32>,
    %c2_67 = arith.constant 2 : index
    %c1_68 = arith.constant 1 : index
    %c0_69 = arith.constant 0 : index
    %56 = vector.load %arg6[%c2_67, %c1_68, %c0_69] : memref<18x18x4xf32, #tpu.memory_space<vmem>>, vector<8x16x4xf32>
    %57 = vector.shape_cast %56 : vector<8x16x4xf32> to vector<128x4xf32>
    %c0_70 = arith.constant 0 : index
    %c0_71 = arith.constant 0 : index
    %c28 = arith.constant 28 : index
    %58 = vector.load %arg7[%c0_70, %c0_71, %c28] : memref<2x128x36xf32, #tpu.memory_space<vmem>>, vector<1x128x4xf32>
    %59 = vector.shape_cast %58 : vector<1x128x4xf32> to vector<128x4xf32>
    %60 = vector.shape_cast %57 : vector<128x4xf32> to vector<1x128x4xf32>
    tpu.vector_store %arg7[%c0_70, %c0_71, %c28], %60 {strides = array<i32>} : memref<2x128x36xf32, #tpu.memory_space<vmem>>, vector<1x128x4xf32>,
    %c2_72 = arith.constant 2 : index
    %c2_73 = arith.constant 2 : index
    %c0_74 = arith.constant 0 : index
    %61 = vector.load %arg6[%c2_72, %c2_73, %c0_74] : memref<18x18x4xf32, #tpu.memory_space<vmem>>, vector<8x16x4xf32>
    %62 = vector.shape_cast %61 : vector<8x16x4xf32> to vector<128x4xf32>
    %c0_75 = arith.constant 0 : index
    %c0_76 = arith.constant 0 : index
    %c32 = arith.constant 32 : index
    %63 = vector.load %arg7[%c0_75, %c0_76, %c32] : memref<2x128x36xf32, #tpu.memory_space<vmem>>, vector<1x128x4xf32>
    %64 = vector.shape_cast %63 : vector<1x128x4xf32> to vector<128x4xf32>
    %65 = vector.shape_cast %62 : vector<128x4xf32> to vector<1x128x4xf32>
    tpu.vector_store %arg7[%c0_75, %c0_76, %c32], %65 {strides = array<i32>} : memref<2x128x36xf32, #tpu.memory_space<vmem>>, vector<1x128x4xf32>,
    %c0_77 = arith.constant 0 : index
    %c0_78 = arith.constant 0 : index
    %c0_79 = arith.constant 0 : index
    %66 = vector.load %arg7[%c0_77, %c0_78, %c0_79] : memref<2x128x36xf32, #tpu.memory_space<vmem>>, vector<1x128x36xf32>
    %67 = vector.shape_cast %66 : vector<1x128x36xf32> to vector<128x36xf32>
    %cst_80 = arith.constant dense<0.000000e+00> : vector<128x4xf32>
    %68 = tpu.matmul %67, %20, %cst_80 {dimension_numbers = #tpu.dot_dimension_numbers<[1], [0], [0], [1], [0, 0, 1, 1], [], []>, precision = #tpu.contract_precision<fp32>} : vector<128x36xf32>, vector<36x4xf32>, vector<128x4xf32> -> vector<128x4xf32>
    %69 = vector.broadcast %1 : vector<1x4xf32> to vector<128x4xf32>
    %70 = arith.addf %68, %69 : vector<128x4xf32>
    %c0_81 = arith.constant 0 : index
    %c0_82 = arith.constant 0 : index
    %71 = vector.load %arg8[%c0_81, %c0_82] : memref<256x4xf32, #tpu.memory_space<vmem>>, vector<128x4xf32>
    tpu.vector_store %arg8[%c0_81, %c0_82], %70 {strides = array<i32>} : memref<256x4xf32, #tpu.memory_space<vmem>>, vector<128x4xf32>,
    %cst_83 = arith.constant dense<0.000000e+00> : vector<4xf32>
    %72 = vector.multi_reduction <add>, %70, %cst_83 [0] : vector<128x4xf32> to vector<4xf32>
    %73 = vector.shape_cast %72 : vector<4xf32> to vector<1x4xf32>
    %74 = arith.addf %18, %73 : vector<1x4xf32>
    %75 = arith.mulf %70, %70 : vector<128x4xf32>
    %cst_84 = arith.constant dense<0.000000e+00> : vector<4xf32>
    %76 = vector.multi_reduction <add>, %75, %cst_84 [0] : vector<128x4xf32> to vector<4xf32>
    %77 = vector.shape_cast %76 : vector<4xf32> to vector<1x4xf32>
    %78 = arith.addf %19, %77 : vector<1x4xf32>
    %c8_85 = arith.constant 8 : index
    %c0_86 = arith.constant 0 : index
    %c0_87 = arith.constant 0 : index
    %79 = vector.load %arg6[%c8_85, %c0_86, %c0_87] : memref<18x18x4xf32, #tpu.memory_space<vmem>>, vector<8x16x4xf32>
    %80 = vector.shape_cast %79 : vector<8x16x4xf32> to vector<128x4xf32>
    %c1_88 = arith.constant 1 : index
    %c0_89 = arith.constant 0 : index
    %c0_90 = arith.constant 0 : index
    %81 = vector.load %arg7[%c1_88, %c0_89, %c0_90] : memref<2x128x36xf32, #tpu.memory_space<vmem>>, vector<1x128x4xf32>
    %82 = vector.shape_cast %81 : vector<1x128x4xf32> to vector<128x4xf32>
    %83 = vector.shape_cast %80 : vector<128x4xf32> to vector<1x128x4xf32>
    tpu.vector_store %arg7[%c1_88, %c0_89, %c0_90], %83 {strides = array<i32>} : memref<2x128x36xf32, #tpu.memory_space<vmem>>, vector<1x128x4xf32>,
    %c8_91 = arith.constant 8 : index
    %c1_92 = arith.constant 1 : index
    %c0_93 = arith.constant 0 : index
    %84 = vector.load %arg6[%c8_91, %c1_92, %c0_93] : memref<18x18x4xf32, #tpu.memory_space<vmem>>, vector<8x16x4xf32>
    %85 = vector.shape_cast %84 : vector<8x16x4xf32> to vector<128x4xf32>
    %c1_94 = arith.constant 1 : index
    %c0_95 = arith.constant 0 : index
    %c4_96 = arith.constant 4 : index
    %86 = vector.load %arg7[%c1_94, %c0_95, %c4_96] : memref<2x128x36xf32, #tpu.memory_space<vmem>>, vector<1x128x4xf32>
    %87 = vector.shape_cast %86 : vector<1x128x4xf32> to vector<128x4xf32>
    %88 = vector.shape_cast %85 : vector<128x4xf32> to vector<1x128x4xf32>
    tpu.vector_store %arg7[%c1_94, %c0_95, %c4_96], %88 {strides = array<i32>} : memref<2x128x36xf32, #tpu.memory_space<vmem>>, vector<1x128x4xf32>,
    %c8_97 = arith.constant 8 : index
    %c2_98 = arith.constant 2 : index
    %c0_99 = arith.constant 0 : index
    %89 = vector.load %arg6[%c8_97, %c2_98, %c0_99] : memref<18x18x4xf32, #tpu.memory_space<vmem>>, vector<8x16x4xf32>
    %90 = vector.shape_cast %89 : vector<8x16x4xf32> to vector<128x4xf32>
    %c1_100 = arith.constant 1 : index
    %c0_101 = arith.constant 0 : index
    %c8_102 = arith.constant 8 : index
    %91 = vector.load %arg7[%c1_100, %c0_101, %c8_102] : memref<2x128x36xf32, #tpu.memory_space<vmem>>, vector<1x128x4xf32>
    %92 = vector.shape_cast %91 : vector<1x128x4xf32> to vector<128x4xf32>
    %93 = vector.shape_cast %90 : vector<128x4xf32> to vector<1x128x4xf32>
    tpu.vector_store %arg7[%c1_100, %c0_101, %c8_102], %93 {strides = array<i32>} : memref<2x128x36xf32, #tpu.memory_space<vmem>>, vector<1x128x4xf32>,
    %c9 = arith.constant 9 : index
    %c0_103 = arith.constant 0 : index
    %c0_104 = arith.constant 0 : index
    %94 = vector.load %arg6[%c9, %c0_103, %c0_104] : memref<18x18x4xf32, #tpu.memory_space<vmem>>, vector<8x16x4xf32>
    %95 = vector.shape_cast %94 : vector<8x16x4xf32> to vector<128x4xf32>
    %c1_105 = arith.constant 1 : index
    %c0_106 = arith.constant 0 : index
    %c12_107 = arith.constant 12 : index
    %96 = vector.load %arg7[%c1_105, %c0_106, %c12_107] : memref<2x128x36xf32, #tpu.memory_space<vmem>>, vector<1x128x4xf32>
    %97 = vector.shape_cast %96 : vector<1x128x4xf32> to vector<128x4xf32>
    %98 = vector.shape_cast %95 : vector<128x4xf32> to vector<1x128x4xf32>
    tpu.vector_store %arg7[%c1_105, %c0_106, %c12_107], %98 {strides = array<i32>} : memref<2x128x36xf32, #tpu.memory_space<vmem>>, vector<1x128x4xf32>,
    %c9_108 = arith.constant 9 : index
    %c1_109 = arith.constant 1 : index
    %c0_110 = arith.constant 0 : index
    %99 = vector.load %arg6[%c9_108, %c1_109, %c0_110] : memref<18x18x4xf32, #tpu.memory_space<vmem>>, vector<8x16x4xf32>
    %100 = vector.shape_cast %99 : vector<8x16x4xf32> to vector<128x4xf32>
    %c1_111 = arith.constant 1 : index
    %c0_112 = arith.constant 0 : index
    %c16_113 = arith.constant 16 : index
    %101 = vector.load %arg7[%c1_111, %c0_112, %c16_113] : memref<2x128x36xf32, #tpu.memory_space<vmem>>, vector<1x128x4xf32>
    %102 = vector.shape_cast %101 : vector<1x128x4xf32> to vector<128x4xf32>
    %103 = vector.shape_cast %100 : vector<128x4xf32> to vector<1x128x4xf32>
    tpu.vector_store %arg7[%c1_111, %c0_112, %c16_113], %103 {strides = array<i32>} : memref<2x128x36xf32, #tpu.memory_space<vmem>>, vector<1x128x4xf32>,
    %c9_114 = arith.constant 9 : index
    %c2_115 = arith.constant 2 : index
    %c0_116 = arith.constant 0 : index
    %104 = vector.load %arg6[%c9_114, %c2_115, %c0_116] : memref<18x18x4xf32, #tpu.memory_space<vmem>>, vector<8x16x4xf32>
    %105 = vector.shape_cast %104 : vector<8x16x4xf32> to vector<128x4xf32>
    %c1_117 = arith.constant 1 : index
    %c0_118 = arith.constant 0 : index
    %c20_119 = arith.constant 20 : index
    %106 = vector.load %arg7[%c1_117, %c0_118, %c20_119] : memref<2x128x36xf32, #tpu.memory_space<vmem>>, vector<1x128x4xf32>
    %107 = vector.shape_cast %106 : vector<1x128x4xf32> to vector<128x4xf32>
    %108 = vector.shape_cast %105 : vector<128x4xf32> to vector<1x128x4xf32>
    tpu.vector_store %arg7[%c1_117, %c0_118, %c20_119], %108 {strides = array<i32>} : memref<2x128x36xf32, #tpu.memory_space<vmem>>, vector<1x128x4xf32>,
    %c10 = arith.constant 10 : index
    %c0_120 = arith.constant 0 : index
    %c0_121 = arith.constant 0 : index
    %109 = vector.load %arg6[%c10, %c0_120, %c0_121] : memref<18x18x4xf32, #tpu.memory_space<vmem>>, vector<8x16x4xf32>
    %110 = vector.shape_cast %109 : vector<8x16x4xf32> to vector<128x4xf32>
    %c1_122 = arith.constant 1 : index
    %c0_123 = arith.constant 0 : index
    %c24_124 = arith.constant 24 : index
    %111 = vector.load %arg7[%c1_122, %c0_123, %c24_124] : memref<2x128x36xf32, #tpu.memory_space<vmem>>, vector<1x128x4xf32>
    %112 = vector.shape_cast %111 : vector<1x128x4xf32> to vector<128x4xf32>
    %113 = vector.shape_cast %110 : vector<128x4xf32> to vector<1x128x4xf32>
    tpu.vector_store %arg7[%c1_122, %c0_123, %c24_124], %113 {strides = array<i32>} : memref<2x128x36xf32, #tpu.memory_space<vmem>>, vector<1x128x4xf32>,
    %c10_125 = arith.constant 10 : index
    %c1_126 = arith.constant 1 : index
    %c0_127 = arith.constant 0 : index
    %114 = vector.load %arg6[%c10_125, %c1_126, %c0_127] : memref<18x18x4xf32, #tpu.memory_space<vmem>>, vector<8x16x4xf32>
    %115 = vector.shape_cast %114 : vector<8x16x4xf32> to vector<128x4xf32>
    %c1_128 = arith.constant 1 : index
    %c0_129 = arith.constant 0 : index
    %c28_130 = arith.constant 28 : index
    %116 = vector.load %arg7[%c1_128, %c0_129, %c28_130] : memref<2x128x36xf32, #tpu.memory_space<vmem>>, vector<1x128x4xf32>
    %117 = vector.shape_cast %116 : vector<1x128x4xf32> to vector<128x4xf32>
    %118 = vector.shape_cast %115 : vector<128x4xf32> to vector<1x128x4xf32>
    tpu.vector_store %arg7[%c1_128, %c0_129, %c28_130], %118 {strides = array<i32>} : memref<2x128x36xf32, #tpu.memory_space<vmem>>, vector<1x128x4xf32>,
    %c10_131 = arith.constant 10 : index
    %c2_132 = arith.constant 2 : index
    %c0_133 = arith.constant 0 : index
    %119 = vector.load %arg6[%c10_131, %c2_132, %c0_133] : memref<18x18x4xf32, #tpu.memory_space<vmem>>, vector<8x16x4xf32>
    %120 = vector.shape_cast %119 : vector<8x16x4xf32> to vector<128x4xf32>
    %c1_134 = arith.constant 1 : index
    %c0_135 = arith.constant 0 : index
    %c32_136 = arith.constant 32 : index
    %121 = vector.load %arg7[%c1_134, %c0_135, %c32_136] : memref<2x128x36xf32, #tpu.memory_space<vmem>>, vector<1x128x4xf32>
    %122 = vector.shape_cast %121 : vector<1x128x4xf32> to vector<128x4xf32>
    %123 = vector.shape_cast %120 : vector<128x4xf32> to vector<1x128x4xf32>
    tpu.vector_store %arg7[%c1_134, %c0_135, %c32_136], %123 {strides = array<i32>} : memref<2x128x36xf32, #tpu.memory_space<vmem>>, vector<1x128x4xf32>,
    %c1_137 = arith.constant 1 : index
    %c0_138 = arith.constant 0 : index
    %c0_139 = arith.constant 0 : index
    %124 = vector.load %arg7[%c1_137, %c0_138, %c0_139] : memref<2x128x36xf32, #tpu.memory_space<vmem>>, vector<1x128x36xf32>
    %125 = vector.shape_cast %124 : vector<1x128x36xf32> to vector<128x36xf32>
    %cst_140 = arith.constant dense<0.000000e+00> : vector<128x4xf32>
    %126 = tpu.matmul %125, %20, %cst_140 {dimension_numbers = #tpu.dot_dimension_numbers<[1], [0], [0], [1], [0, 0, 1, 1], [], []>, precision = #tpu.contract_precision<fp32>} : vector<128x36xf32>, vector<36x4xf32>, vector<128x4xf32> -> vector<128x4xf32>
    %127 = vector.broadcast %1 : vector<1x4xf32> to vector<128x4xf32>
    %128 = arith.addf %126, %127 : vector<128x4xf32>
    %c128 = arith.constant 128 : index
    %c0_141 = arith.constant 0 : index
    %129 = vector.load %arg8[%c128, %c0_141] : memref<256x4xf32, #tpu.memory_space<vmem>>, vector<128x4xf32>
    tpu.vector_store %arg8[%c128, %c0_141], %128 {strides = array<i32>} : memref<256x4xf32, #tpu.memory_space<vmem>>, vector<128x4xf32>,
    %cst_142 = arith.constant dense<0.000000e+00> : vector<4xf32>
    %130 = vector.multi_reduction <add>, %128, %cst_142 [0] : vector<128x4xf32> to vector<4xf32>
    %131 = vector.shape_cast %130 : vector<4xf32> to vector<1x4xf32>
    %132 = arith.addf %74, %131 : vector<1x4xf32>
    %133 = arith.mulf %128, %128 : vector<128x4xf32>
    %cst_143 = arith.constant dense<0.000000e+00> : vector<4xf32>
    %134 = vector.multi_reduction <add>, %133, %cst_143 [0] : vector<128x4xf32> to vector<4xf32>
    %135 = vector.shape_cast %134 : vector<4xf32> to vector<1x4xf32>
    %136 = arith.addf %78, %135 : vector<1x4xf32>
    %cst_144 = arith.constant 3.906250e-03 : f32
    %137 = vector.broadcast %cst_144 : f32 to vector<1x4xf32>
    %138 = arith.mulf %132, %137 : vector<1x4xf32>
    %cst_145 = arith.constant 3.906250e-03 : f32
    %139 = vector.broadcast %cst_145 : f32 to vector<1x4xf32>
    %140 = arith.mulf %136, %139 : vector<1x4xf32>
    %141 = arith.mulf %138, %138 : vector<1x4xf32>
    %142 = arith.subf %140, %141 : vector<1x4xf32>
    %cst_146 = arith.constant 9.99999974E-6 : f32
    %143 = vector.broadcast %cst_146 : f32 to vector<1x4xf32>
    %144 = arith.addf %142, %143 : vector<1x4xf32>
    %145 = math.rsqrt %144 : vector<1x4xf32>
    %c0_147 = arith.constant 0 : index
    %c0_148 = arith.constant 0 : index
    %146 = vector.load %arg8[%c0_147, %c0_148] : memref<256x4xf32, #tpu.memory_space<vmem>>, vector<256x4xf32>
    %147 = vector.broadcast %138 : vector<1x4xf32> to vector<256x4xf32>
    %148 = arith.subf %146, %147 : vector<256x4xf32>
    %149 = arith.mulf %145, %2 : vector<1x4xf32>
    %150 = vector.broadcast %149 : vector<1x4xf32> to vector<256x4xf32>
    %151 = arith.mulf %148, %150 : vector<256x4xf32>
    %152 = vector.broadcast %3 : vector<1x4xf32> to vector<256x4xf32>
    %153 = arith.addf %151, %152 : vector<256x4xf32>
    %cst_149 = arith.constant 0.000000e+00 : f32
    %154 = vector.broadcast %cst_149 : f32 to vector<256x4xf32>
    %155 = arith.maximumf %153, %154 : vector<256x4xf32>
    %156 = vector.shape_cast %155 : vector<256x4xf32> to vector<16x16x4xf32>
    %c1_150 = arith.constant 1 : index
    %c1_151 = arith.constant 1 : index
    %c0_152 = arith.constant 0 : index
    %157 = vector.load %arg6[%c1_150, %c1_151, %c0_152] : memref<18x18x4xf32, #tpu.memory_space<vmem>>, vector<16x16x4xf32>
    tpu.vector_store %arg6[%c1_150, %c1_151, %c0_152], %156 {strides = array<i32>} : memref<18x18x4xf32, #tpu.memory_space<vmem>>, vector<16x16x4xf32>,
    %c2_153 = arith.constant 2 : index
    %c1_154 = arith.constant 1 : index
    %c0_155 = arith.constant 0 : index
    %158 = vector.load %arg6[%c2_153, %c1_154, %c0_155] : memref<18x18x4xf32, #tpu.memory_space<vmem>>, vector<1x16x4xf32>
    %c0_156 = arith.constant 0 : index
    %c1_157 = arith.constant 1 : index
    %c0_158 = arith.constant 0 : index
    %159 = vector.load %arg6[%c0_156, %c1_157, %c0_158] : memref<18x18x4xf32, #tpu.memory_space<vmem>>, vector<1x16x4xf32>
    tpu.vector_store %arg6[%c0_156, %c1_157, %c0_158], %158 {strides = array<i32>} : memref<18x18x4xf32, #tpu.memory_space<vmem>>, vector<1x16x4xf32>,
    %c15_159 = arith.constant 15 : index
    %c1_160 = arith.constant 1 : index
    %c0_161 = arith.constant 0 : index
    %160 = vector.load %arg6[%c15_159, %c1_160, %c0_161] : memref<18x18x4xf32, #tpu.memory_space<vmem>>, vector<1x16x4xf32>
    %c17_162 = arith.constant 17 : index
    %c1_163 = arith.constant 1 : index
    %c0_164 = arith.constant 0 : index
    %161 = vector.load %arg6[%c17_162, %c1_163, %c0_164] : memref<18x18x4xf32, #tpu.memory_space<vmem>>, vector<1x16x4xf32>
    tpu.vector_store %arg6[%c17_162, %c1_163, %c0_164], %160 {strides = array<i32>} : memref<18x18x4xf32, #tpu.memory_space<vmem>>, vector<1x16x4xf32>,
    %c0_165 = arith.constant 0 : index
    %c2_166 = arith.constant 2 : index
    %c0_167 = arith.constant 0 : index
    %162 = vector.load %arg6[%c0_165, %c2_166, %c0_167] : memref<18x18x4xf32, #tpu.memory_space<vmem>>, vector<18x1x4xf32>
    %c0_168 = arith.constant 0 : index
    %c0_169 = arith.constant 0 : index
    %c0_170 = arith.constant 0 : index
    %163 = vector.load %arg6[%c0_168, %c0_169, %c0_170] : memref<18x18x4xf32, #tpu.memory_space<vmem>>, vector<18x1x4xf32>
    tpu.vector_store %arg6[%c0_168, %c0_169, %c0_170], %162 {strides = array<i32>} : memref<18x18x4xf32, #tpu.memory_space<vmem>>, vector<18x1x4xf32>,
    %c0_171 = arith.constant 0 : index
    %c15_172 = arith.constant 15 : index
    %c0_173 = arith.constant 0 : index
    %164 = vector.load %arg6[%c0_171, %c15_172, %c0_173] : memref<18x18x4xf32, #tpu.memory_space<vmem>>, vector<18x1x4xf32>
    %c0_174 = arith.constant 0 : index
    %c17_175 = arith.constant 17 : index
    %c0_176 = arith.constant 0 : index
    %165 = vector.load %arg6[%c0_174, %c17_175, %c0_176] : memref<18x18x4xf32, #tpu.memory_space<vmem>>, vector<18x1x4xf32>
    tpu.vector_store %arg6[%c0_174, %c17_175, %c0_176], %164 {strides = array<i32>} : memref<18x18x4xf32, #tpu.memory_space<vmem>>, vector<18x1x4xf32>,
    %cst_177 = arith.constant 0.000000e+00 : f32
    %166 = vector.broadcast %cst_177 : f32 to vector<1x4xf32>
    %cst_178 = arith.constant 0.000000e+00 : f32
    %167 = vector.broadcast %cst_178 : f32 to vector<1x4xf32>
    %c0_179 = arith.constant 0 : index
    %c0_180 = arith.constant 0 : index
    %168 = vector.load %arg3[%c0_179, %c0_180] : memref<36x4xf32, #tpu.memory_space<vmem>>, vector<36x4xf32>
    %c0_181 = arith.constant 0 : index
    %c0_182 = arith.constant 0 : index
    %c0_183 = arith.constant 0 : index
    %169 = vector.load %arg6[%c0_181, %c0_182, %c0_183] : memref<18x18x4xf32, #tpu.memory_space<vmem>>, vector<8x16x4xf32>
    %170 = vector.shape_cast %169 : vector<8x16x4xf32> to vector<128x4xf32>
    %c0_184 = arith.constant 0 : index
    %c0_185 = arith.constant 0 : index
    %c0_186 = arith.constant 0 : index
    %171 = vector.load %arg7[%c0_184, %c0_185, %c0_186] : memref<2x128x36xf32, #tpu.memory_space<vmem>>, vector<1x128x4xf32>
    %172 = vector.shape_cast %171 : vector<1x128x4xf32> to vector<128x4xf32>
    %173 = vector.shape_cast %170 : vector<128x4xf32> to vector<1x128x4xf32>
    tpu.vector_store %arg7[%c0_184, %c0_185, %c0_186], %173 {strides = array<i32>} : memref<2x128x36xf32, #tpu.memory_space<vmem>>, vector<1x128x4xf32>,
    %c0_187 = arith.constant 0 : index
    %c1_188 = arith.constant 1 : index
    %c0_189 = arith.constant 0 : index
    %174 = vector.load %arg6[%c0_187, %c1_188, %c0_189] : memref<18x18x4xf32, #tpu.memory_space<vmem>>, vector<8x16x4xf32>
    %175 = vector.shape_cast %174 : vector<8x16x4xf32> to vector<128x4xf32>
    %c0_190 = arith.constant 0 : index
    %c0_191 = arith.constant 0 : index
    %c4_192 = arith.constant 4 : index
    %176 = vector.load %arg7[%c0_190, %c0_191, %c4_192] : memref<2x128x36xf32, #tpu.memory_space<vmem>>, vector<1x128x4xf32>
    %177 = vector.shape_cast %176 : vector<1x128x4xf32> to vector<128x4xf32>
    %178 = vector.shape_cast %175 : vector<128x4xf32> to vector<1x128x4xf32>
    tpu.vector_store %arg7[%c0_190, %c0_191, %c4_192], %178 {strides = array<i32>} : memref<2x128x36xf32, #tpu.memory_space<vmem>>, vector<1x128x4xf32>,
    %c0_193 = arith.constant 0 : index
    %c2_194 = arith.constant 2 : index
    %c0_195 = arith.constant 0 : index
    %179 = vector.load %arg6[%c0_193, %c2_194, %c0_195] : memref<18x18x4xf32, #tpu.memory_space<vmem>>, vector<8x16x4xf32>
    %180 = vector.shape_cast %179 : vector<8x16x4xf32> to vector<128x4xf32>
    %c0_196 = arith.constant 0 : index
    %c0_197 = arith.constant 0 : index
    %c8_198 = arith.constant 8 : index
    %181 = vector.load %arg7[%c0_196, %c0_197, %c8_198] : memref<2x128x36xf32, #tpu.memory_space<vmem>>, vector<1x128x4xf32>
    %182 = vector.shape_cast %181 : vector<1x128x4xf32> to vector<128x4xf32>
    %183 = vector.shape_cast %180 : vector<128x4xf32> to vector<1x128x4xf32>
    tpu.vector_store %arg7[%c0_196, %c0_197, %c8_198], %183 {strides = array<i32>} : memref<2x128x36xf32, #tpu.memory_space<vmem>>, vector<1x128x4xf32>,
    %c1_199 = arith.constant 1 : index
    %c0_200 = arith.constant 0 : index
    %c0_201 = arith.constant 0 : index
    %184 = vector.load %arg6[%c1_199, %c0_200, %c0_201] : memref<18x18x4xf32, #tpu.memory_space<vmem>>, vector<8x16x4xf32>
    %185 = vector.shape_cast %184 : vector<8x16x4xf32> to vector<128x4xf32>
    %c0_202 = arith.constant 0 : index
    %c0_203 = arith.constant 0 : index
    %c12_204 = arith.constant 12 : index
    %186 = vector.load %arg7[%c0_202, %c0_203, %c12_204] : memref<2x128x36xf32, #tpu.memory_space<vmem>>, vector<1x128x4xf32>
    %187 = vector.shape_cast %186 : vector<1x128x4xf32> to vector<128x4xf32>
    %188 = vector.shape_cast %185 : vector<128x4xf32> to vector<1x128x4xf32>
    tpu.vector_store %arg7[%c0_202, %c0_203, %c12_204], %188 {strides = array<i32>} : memref<2x128x36xf32, #tpu.memory_space<vmem>>, vector<1x128x4xf32>,
    %c1_205 = arith.constant 1 : index
    %c1_206 = arith.constant 1 : index
    %c0_207 = arith.constant 0 : index
    %189 = vector.load %arg6[%c1_205, %c1_206, %c0_207] : memref<18x18x4xf32, #tpu.memory_space<vmem>>, vector<8x16x4xf32>
    %190 = vector.shape_cast %189 : vector<8x16x4xf32> to vector<128x4xf32>
    %c0_208 = arith.constant 0 : index
    %c0_209 = arith.constant 0 : index
    %c16_210 = arith.constant 16 : index
    %191 = vector.load %arg7[%c0_208, %c0_209, %c16_210] : memref<2x128x36xf32, #tpu.memory_space<vmem>>, vector<1x128x4xf32>
    %192 = vector.shape_cast %191 : vector<1x128x4xf32> to vector<128x4xf32>
    %193 = vector.shape_cast %190 : vector<128x4xf32> to vector<1x128x4xf32>
    tpu.vector_store %arg7[%c0_208, %c0_209, %c16_210], %193 {strides = array<i32>} : memref<2x128x36xf32, #tpu.memory_space<vmem>>, vector<1x128x4xf32>,
    %c1_211 = arith.constant 1 : index
    %c2_212 = arith.constant 2 : index
    %c0_213 = arith.constant 0 : index
    %194 = vector.load %arg6[%c1_211, %c2_212, %c0_213] : memref<18x18x4xf32, #tpu.memory_space<vmem>>, vector<8x16x4xf32>
    %195 = vector.shape_cast %194 : vector<8x16x4xf32> to vector<128x4xf32>
    %c0_214 = arith.constant 0 : index
    %c0_215 = arith.constant 0 : index
    %c20_216 = arith.constant 20 : index
    %196 = vector.load %arg7[%c0_214, %c0_215, %c20_216] : memref<2x128x36xf32, #tpu.memory_space<vmem>>, vector<1x128x4xf32>
    %197 = vector.shape_cast %196 : vector<1x128x4xf32> to vector<128x4xf32>
    %198 = vector.shape_cast %195 : vector<128x4xf32> to vector<1x128x4xf32>
    tpu.vector_store %arg7[%c0_214, %c0_215, %c20_216], %198 {strides = array<i32>} : memref<2x128x36xf32, #tpu.memory_space<vmem>>, vector<1x128x4xf32>,
    %c2_217 = arith.constant 2 : index
    %c0_218 = arith.constant 0 : index
    %c0_219 = arith.constant 0 : index
    %199 = vector.load %arg6[%c2_217, %c0_218, %c0_219] : memref<18x18x4xf32, #tpu.memory_space<vmem>>, vector<8x16x4xf32>
    %200 = vector.shape_cast %199 : vector<8x16x4xf32> to vector<128x4xf32>
    %c0_220 = arith.constant 0 : index
    %c0_221 = arith.constant 0 : index
    %c24_222 = arith.constant 24 : index
    %201 = vector.load %arg7[%c0_220, %c0_221, %c24_222] : memref<2x128x36xf32, #tpu.memory_space<vmem>>, vector<1x128x4xf32>
    %202 = vector.shape_cast %201 : vector<1x128x4xf32> to vector<128x4xf32>
    %203 = vector.shape_cast %200 : vector<128x4xf32> to vector<1x128x4xf32>
    tpu.vector_store %arg7[%c0_220, %c0_221, %c24_222], %203 {strides = array<i32>} : memref<2x128x36xf32, #tpu.memory_space<vmem>>, vector<1x128x4xf32>,
    %c2_223 = arith.constant 2 : index
    %c1_224 = arith.constant 1 : index
    %c0_225 = arith.constant 0 : index
    %204 = vector.load %arg6[%c2_223, %c1_224, %c0_225] : memref<18x18x4xf32, #tpu.memory_space<vmem>>, vector<8x16x4xf32>
    %205 = vector.shape_cast %204 : vector<8x16x4xf32> to vector<128x4xf32>
    %c0_226 = arith.constant 0 : index
    %c0_227 = arith.constant 0 : index
    %c28_228 = arith.constant 28 : index
    %206 = vector.load %arg7[%c0_226, %c0_227, %c28_228] : memref<2x128x36xf32, #tpu.memory_space<vmem>>, vector<1x128x4xf32>
    %207 = vector.shape_cast %206 : vector<1x128x4xf32> to vector<128x4xf32>
    %208 = vector.shape_cast %205 : vector<128x4xf32> to vector<1x128x4xf32>
    tpu.vector_store %arg7[%c0_226, %c0_227, %c28_228], %208 {strides = array<i32>} : memref<2x128x36xf32, #tpu.memory_space<vmem>>, vector<1x128x4xf32>,
    %c2_229 = arith.constant 2 : index
    %c2_230 = arith.constant 2 : index
    %c0_231 = arith.constant 0 : index
    %209 = vector.load %arg6[%c2_229, %c2_230, %c0_231] : memref<18x18x4xf32, #tpu.memory_space<vmem>>, vector<8x16x4xf32>
    %210 = vector.shape_cast %209 : vector<8x16x4xf32> to vector<128x4xf32>
    %c0_232 = arith.constant 0 : index
    %c0_233 = arith.constant 0 : index
    %c32_234 = arith.constant 32 : index
    %211 = vector.load %arg7[%c0_232, %c0_233, %c32_234] : memref<2x128x36xf32, #tpu.memory_space<vmem>>, vector<1x128x4xf32>
    %212 = vector.shape_cast %211 : vector<1x128x4xf32> to vector<128x4xf32>
    %213 = vector.shape_cast %210 : vector<128x4xf32> to vector<1x128x4xf32>
    tpu.vector_store %arg7[%c0_232, %c0_233, %c32_234], %213 {strides = array<i32>} : memref<2x128x36xf32, #tpu.memory_space<vmem>>, vector<1x128x4xf32>,
    %c0_235 = arith.constant 0 : index
    %c0_236 = arith.constant 0 : index
    %c0_237 = arith.constant 0 : index
    %214 = vector.load %arg7[%c0_235, %c0_236, %c0_237] : memref<2x128x36xf32, #tpu.memory_space<vmem>>, vector<1x128x36xf32>
    %215 = vector.shape_cast %214 : vector<1x128x36xf32> to vector<128x36xf32>
    %cst_238 = arith.constant dense<0.000000e+00> : vector<128x4xf32>
    %216 = tpu.matmul %215, %168, %cst_238 {dimension_numbers = #tpu.dot_dimension_numbers<[1], [0], [0], [1], [0, 0, 1, 1], [], []>, precision = #tpu.contract_precision<fp32>} : vector<128x36xf32>, vector<36x4xf32>, vector<128x4xf32> -> vector<128x4xf32>
    %217 = vector.broadcast %4 : vector<1x4xf32> to vector<128x4xf32>
    %218 = arith.addf %216, %217 : vector<128x4xf32>
    %c0_239 = arith.constant 0 : index
    %c0_240 = arith.constant 0 : index
    %219 = vector.load %arg8[%c0_239, %c0_240] : memref<256x4xf32, #tpu.memory_space<vmem>>, vector<128x4xf32>
    tpu.vector_store %arg8[%c0_239, %c0_240], %218 {strides = array<i32>} : memref<256x4xf32, #tpu.memory_space<vmem>>, vector<128x4xf32>,
    %cst_241 = arith.constant dense<0.000000e+00> : vector<4xf32>
    %220 = vector.multi_reduction <add>, %218, %cst_241 [0] : vector<128x4xf32> to vector<4xf32>
    %221 = vector.shape_cast %220 : vector<4xf32> to vector<1x4xf32>
    %222 = arith.addf %166, %221 : vector<1x4xf32>
    %223 = arith.mulf %218, %218 : vector<128x4xf32>
    %cst_242 = arith.constant dense<0.000000e+00> : vector<4xf32>
    %224 = vector.multi_reduction <add>, %223, %cst_242 [0] : vector<128x4xf32> to vector<4xf32>
    %225 = vector.shape_cast %224 : vector<4xf32> to vector<1x4xf32>
    %226 = arith.addf %167, %225 : vector<1x4xf32>
    %c8_243 = arith.constant 8 : index
    %c0_244 = arith.constant 0 : index
    %c0_245 = arith.constant 0 : index
    %227 = vector.load %arg6[%c8_243, %c0_244, %c0_245] : memref<18x18x4xf32, #tpu.memory_space<vmem>>, vector<8x16x4xf32>
    %228 = vector.shape_cast %227 : vector<8x16x4xf32> to vector<128x4xf32>
    %c1_246 = arith.constant 1 : index
    %c0_247 = arith.constant 0 : index
    %c0_248 = arith.constant 0 : index
    %229 = vector.load %arg7[%c1_246, %c0_247, %c0_248] : memref<2x128x36xf32, #tpu.memory_space<vmem>>, vector<1x128x4xf32>
    %230 = vector.shape_cast %229 : vector<1x128x4xf32> to vector<128x4xf32>
    %231 = vector.shape_cast %228 : vector<128x4xf32> to vector<1x128x4xf32>
    tpu.vector_store %arg7[%c1_246, %c0_247, %c0_248], %231 {strides = array<i32>} : memref<2x128x36xf32, #tpu.memory_space<vmem>>, vector<1x128x4xf32>,
    %c8_249 = arith.constant 8 : index
    %c1_250 = arith.constant 1 : index
    %c0_251 = arith.constant 0 : index
    %232 = vector.load %arg6[%c8_249, %c1_250, %c0_251] : memref<18x18x4xf32, #tpu.memory_space<vmem>>, vector<8x16x4xf32>
    %233 = vector.shape_cast %232 : vector<8x16x4xf32> to vector<128x4xf32>
    %c1_252 = arith.constant 1 : index
    %c0_253 = arith.constant 0 : index
    %c4_254 = arith.constant 4 : index
    %234 = vector.load %arg7[%c1_252, %c0_253, %c4_254] : memref<2x128x36xf32, #tpu.memory_space<vmem>>, vector<1x128x4xf32>
    %235 = vector.shape_cast %234 : vector<1x128x4xf32> to vector<128x4xf32>
    %236 = vector.shape_cast %233 : vector<128x4xf32> to vector<1x128x4xf32>
    tpu.vector_store %arg7[%c1_252, %c0_253, %c4_254], %236 {strides = array<i32>} : memref<2x128x36xf32, #tpu.memory_space<vmem>>, vector<1x128x4xf32>,
    %c8_255 = arith.constant 8 : index
    %c2_256 = arith.constant 2 : index
    %c0_257 = arith.constant 0 : index
    %237 = vector.load %arg6[%c8_255, %c2_256, %c0_257] : memref<18x18x4xf32, #tpu.memory_space<vmem>>, vector<8x16x4xf32>
    %238 = vector.shape_cast %237 : vector<8x16x4xf32> to vector<128x4xf32>
    %c1_258 = arith.constant 1 : index
    %c0_259 = arith.constant 0 : index
    %c8_260 = arith.constant 8 : index
    %239 = vector.load %arg7[%c1_258, %c0_259, %c8_260] : memref<2x128x36xf32, #tpu.memory_space<vmem>>, vector<1x128x4xf32>
    %240 = vector.shape_cast %239 : vector<1x128x4xf32> to vector<128x4xf32>
    %241 = vector.shape_cast %238 : vector<128x4xf32> to vector<1x128x4xf32>
    tpu.vector_store %arg7[%c1_258, %c0_259, %c8_260], %241 {strides = array<i32>} : memref<2x128x36xf32, #tpu.memory_space<vmem>>, vector<1x128x4xf32>,
    %c9_261 = arith.constant 9 : index
    %c0_262 = arith.constant 0 : index
    %c0_263 = arith.constant 0 : index
    %242 = vector.load %arg6[%c9_261, %c0_262, %c0_263] : memref<18x18x4xf32, #tpu.memory_space<vmem>>, vector<8x16x4xf32>
    %243 = vector.shape_cast %242 : vector<8x16x4xf32> to vector<128x4xf32>
    %c1_264 = arith.constant 1 : index
    %c0_265 = arith.constant 0 : index
    %c12_266 = arith.constant 12 : index
    %244 = vector.load %arg7[%c1_264, %c0_265, %c12_266] : memref<2x128x36xf32, #tpu.memory_space<vmem>>, vector<1x128x4xf32>
    %245 = vector.shape_cast %244 : vector<1x128x4xf32> to vector<128x4xf32>
    %246 = vector.shape_cast %243 : vector<128x4xf32> to vector<1x128x4xf32>
    tpu.vector_store %arg7[%c1_264, %c0_265, %c12_266], %246 {strides = array<i32>} : memref<2x128x36xf32, #tpu.memory_space<vmem>>, vector<1x128x4xf32>,
    %c9_267 = arith.constant 9 : index
    %c1_268 = arith.constant 1 : index
    %c0_269 = arith.constant 0 : index
    %247 = vector.load %arg6[%c9_267, %c1_268, %c0_269] : memref<18x18x4xf32, #tpu.memory_space<vmem>>, vector<8x16x4xf32>
    %248 = vector.shape_cast %247 : vector<8x16x4xf32> to vector<128x4xf32>
    %c1_270 = arith.constant 1 : index
    %c0_271 = arith.constant 0 : index
    %c16_272 = arith.constant 16 : index
    %249 = vector.load %arg7[%c1_270, %c0_271, %c16_272] : memref<2x128x36xf32, #tpu.memory_space<vmem>>, vector<1x128x4xf32>
    %250 = vector.shape_cast %249 : vector<1x128x4xf32> to vector<128x4xf32>
    %251 = vector.shape_cast %248 : vector<128x4xf32> to vector<1x128x4xf32>
    tpu.vector_store %arg7[%c1_270, %c0_271, %c16_272], %251 {strides = array<i32>} : memref<2x128x36xf32, #tpu.memory_space<vmem>>, vector<1x128x4xf32>,
    %c9_273 = arith.constant 9 : index
    %c2_274 = arith.constant 2 : index
    %c0_275 = arith.constant 0 : index
    %252 = vector.load %arg6[%c9_273, %c2_274, %c0_275] : memref<18x18x4xf32, #tpu.memory_space<vmem>>, vector<8x16x4xf32>
    %253 = vector.shape_cast %252 : vector<8x16x4xf32> to vector<128x4xf32>
    %c1_276 = arith.constant 1 : index
    %c0_277 = arith.constant 0 : index
    %c20_278 = arith.constant 20 : index
    %254 = vector.load %arg7[%c1_276, %c0_277, %c20_278] : memref<2x128x36xf32, #tpu.memory_space<vmem>>, vector<1x128x4xf32>
    %255 = vector.shape_cast %254 : vector<1x128x4xf32> to vector<128x4xf32>
    %256 = vector.shape_cast %253 : vector<128x4xf32> to vector<1x128x4xf32>
    tpu.vector_store %arg7[%c1_276, %c0_277, %c20_278], %256 {strides = array<i32>} : memref<2x128x36xf32, #tpu.memory_space<vmem>>, vector<1x128x4xf32>,
    %c10_279 = arith.constant 10 : index
    %c0_280 = arith.constant 0 : index
    %c0_281 = arith.constant 0 : index
    %257 = vector.load %arg6[%c10_279, %c0_280, %c0_281] : memref<18x18x4xf32, #tpu.memory_space<vmem>>, vector<8x16x4xf32>
    %258 = vector.shape_cast %257 : vector<8x16x4xf32> to vector<128x4xf32>
    %c1_282 = arith.constant 1 : index
    %c0_283 = arith.constant 0 : index
    %c24_284 = arith.constant 24 : index
    %259 = vector.load %arg7[%c1_282, %c0_283, %c24_284] : memref<2x128x36xf32, #tpu.memory_space<vmem>>, vector<1x128x4xf32>
    %260 = vector.shape_cast %259 : vector<1x128x4xf32> to vector<128x4xf32>
    %261 = vector.shape_cast %258 : vector<128x4xf32> to vector<1x128x4xf32>
    tpu.vector_store %arg7[%c1_282, %c0_283, %c24_284], %261 {strides = array<i32>} : memref<2x128x36xf32, #tpu.memory_space<vmem>>, vector<1x128x4xf32>,
    %c10_285 = arith.constant 10 : index
    %c1_286 = arith.constant 1 : index
    %c0_287 = arith.constant 0 : index
    %262 = vector.load %arg6[%c10_285, %c1_286, %c0_287] : memref<18x18x4xf32, #tpu.memory_space<vmem>>, vector<8x16x4xf32>
    %263 = vector.shape_cast %262 : vector<8x16x4xf32> to vector<128x4xf32>
    %c1_288 = arith.constant 1 : index
    %c0_289 = arith.constant 0 : index
    %c28_290 = arith.constant 28 : index
    %264 = vector.load %arg7[%c1_288, %c0_289, %c28_290] : memref<2x128x36xf32, #tpu.memory_space<vmem>>, vector<1x128x4xf32>
    %265 = vector.shape_cast %264 : vector<1x128x4xf32> to vector<128x4xf32>
    %266 = vector.shape_cast %263 : vector<128x4xf32> to vector<1x128x4xf32>
    tpu.vector_store %arg7[%c1_288, %c0_289, %c28_290], %266 {strides = array<i32>} : memref<2x128x36xf32, #tpu.memory_space<vmem>>, vector<1x128x4xf32>,
    %c10_291 = arith.constant 10 : index
    %c2_292 = arith.constant 2 : index
    %c0_293 = arith.constant 0 : index
    %267 = vector.load %arg6[%c10_291, %c2_292, %c0_293] : memref<18x18x4xf32, #tpu.memory_space<vmem>>, vector<8x16x4xf32>
    %268 = vector.shape_cast %267 : vector<8x16x4xf32> to vector<128x4xf32>
    %c1_294 = arith.constant 1 : index
    %c0_295 = arith.constant 0 : index
    %c32_296 = arith.constant 32 : index
    %269 = vector.load %arg7[%c1_294, %c0_295, %c32_296] : memref<2x128x36xf32, #tpu.memory_space<vmem>>, vector<1x128x4xf32>
    %270 = vector.shape_cast %269 : vector<1x128x4xf32> to vector<128x4xf32>
    %271 = vector.shape_cast %268 : vector<128x4xf32> to vector<1x128x4xf32>
    tpu.vector_store %arg7[%c1_294, %c0_295, %c32_296], %271 {strides = array<i32>} : memref<2x128x36xf32, #tpu.memory_space<vmem>>, vector<1x128x4xf32>,
    %c1_297 = arith.constant 1 : index
    %c0_298 = arith.constant 0 : index
    %c0_299 = arith.constant 0 : index
    %272 = vector.load %arg7[%c1_297, %c0_298, %c0_299] : memref<2x128x36xf32, #tpu.memory_space<vmem>>, vector<1x128x36xf32>
    %273 = vector.shape_cast %272 : vector<1x128x36xf32> to vector<128x36xf32>
    %cst_300 = arith.constant dense<0.000000e+00> : vector<128x4xf32>
    %274 = tpu.matmul %273, %168, %cst_300 {dimension_numbers = #tpu.dot_dimension_numbers<[1], [0], [0], [1], [0, 0, 1, 1], [], []>, precision = #tpu.contract_precision<fp32>} : vector<128x36xf32>, vector<36x4xf32>, vector<128x4xf32> -> vector<128x4xf32>
    %275 = vector.broadcast %4 : vector<1x4xf32> to vector<128x4xf32>
    %276 = arith.addf %274, %275 : vector<128x4xf32>
    %c128_301 = arith.constant 128 : index
    %c0_302 = arith.constant 0 : index
    %277 = vector.load %arg8[%c128_301, %c0_302] : memref<256x4xf32, #tpu.memory_space<vmem>>, vector<128x4xf32>
    tpu.vector_store %arg8[%c128_301, %c0_302], %276 {strides = array<i32>} : memref<256x4xf32, #tpu.memory_space<vmem>>, vector<128x4xf32>,
    %cst_303 = arith.constant dense<0.000000e+00> : vector<4xf32>
    %278 = vector.multi_reduction <add>, %276, %cst_303 [0] : vector<128x4xf32> to vector<4xf32>
    %279 = vector.shape_cast %278 : vector<4xf32> to vector<1x4xf32>
    %280 = arith.addf %222, %279 : vector<1x4xf32>
    %281 = arith.mulf %276, %276 : vector<128x4xf32>
    %cst_304 = arith.constant dense<0.000000e+00> : vector<4xf32>
    %282 = vector.multi_reduction <add>, %281, %cst_304 [0] : vector<128x4xf32> to vector<4xf32>
    %283 = vector.shape_cast %282 : vector<4xf32> to vector<1x4xf32>
    %284 = arith.addf %226, %283 : vector<1x4xf32>
    %cst_305 = arith.constant 3.906250e-03 : f32
    %285 = vector.broadcast %cst_305 : f32 to vector<1x4xf32>
    %286 = arith.mulf %280, %285 : vector<1x4xf32>
    %cst_306 = arith.constant 3.906250e-03 : f32
    %287 = vector.broadcast %cst_306 : f32 to vector<1x4xf32>
    %288 = arith.mulf %284, %287 : vector<1x4xf32>
    %289 = arith.mulf %286, %286 : vector<1x4xf32>
    %290 = arith.subf %288, %289 : vector<1x4xf32>
    %cst_307 = arith.constant 9.99999974E-6 : f32
    %291 = vector.broadcast %cst_307 : f32 to vector<1x4xf32>
    %292 = arith.addf %290, %291 : vector<1x4xf32>
    %293 = math.rsqrt %292 : vector<1x4xf32>
    %c0_308 = arith.constant 0 : index
    %c0_309 = arith.constant 0 : index
    %294 = vector.load %arg8[%c0_308, %c0_309] : memref<256x4xf32, #tpu.memory_space<vmem>>, vector<256x4xf32>
    %295 = vector.broadcast %286 : vector<1x4xf32> to vector<256x4xf32>
    %296 = arith.subf %294, %295 : vector<256x4xf32>
    %297 = arith.mulf %293, %5 : vector<1x4xf32>
    %298 = vector.broadcast %297 : vector<1x4xf32> to vector<256x4xf32>
    %299 = arith.mulf %296, %298 : vector<256x4xf32>
    %300 = vector.broadcast %6 : vector<1x4xf32> to vector<256x4xf32>
    %301 = arith.addf %299, %300 : vector<256x4xf32>
    %302 = vector.shape_cast %301 : vector<256x4xf32> to vector<16x16x4xf32>
    %c0_310 = arith.constant 0 : index
    %c0_311 = arith.constant 0 : index
    %c0_312 = arith.constant 0 : index
    %c0_313 = arith.constant 0 : index
    %303 = vector.load %arg1[%c0_310, %c0_311, %c0_312, %c0_313] : memref<1x16x16x4xf32, #tpu.memory_space<vmem>>, vector<1x16x16x4xf32>
    %304 = vector.shape_cast %303 : vector<1x16x16x4xf32> to vector<16x16x4xf32>
    %305 = arith.addf %302, %304 : vector<16x16x4xf32>
    %c0_314 = arith.constant 0 : index
    %c0_315 = arith.constant 0 : index
    %c0_316 = arith.constant 0 : index
    %c0_317 = arith.constant 0 : index
    %306 = vector.load %arg5[%c0_314, %c0_315, %c0_316, %c0_317] : memref<1x16x16x4xf32, #tpu.memory_space<vmem>>, vector<1x16x16x4xf32>
    %307 = vector.shape_cast %306 : vector<1x16x16x4xf32> to vector<16x16x4xf32>
    %308 = vector.shape_cast %305 : vector<16x16x4xf32> to vector<1x16x16x4xf32>
    tpu.vector_store %arg5[%c0_314, %c0_315, %c0_316, %c0_317], %308 {strides = array<i32>} : memref<1x16x16x4xf32, #tpu.memory_space<vmem>>, vector<1x16x16x4xf32>,
    return
  }
  func.func @transform_0(%arg0: i32) -> (i32, i32, i32, i32) {
    %c0_i32 = arith.constant 0 : i32
    %c0_i32_0 = arith.constant 0 : i32
    %c0_i32_1 = arith.constant 0 : i32
    %c0_i32_2 = arith.constant 0 : i32
    return %arg0, %c0_i32, %c0_i32_0, %c0_i32_1 : i32, i32, i32, i32
  }
  func.func @transform_1(%arg0: i32) -> (i32, i32) {
    %c0_i32 = arith.constant 0 : i32
    %c0_i32_0 = arith.constant 0 : i32
    %c0_i32_1 = arith.constant 0 : i32
    return %c0_i32, %c0_i32_0 : i32, i32
  }
  func.func @transform_2(%arg0: i32) -> (i32, i32) {
    %c0_i32 = arith.constant 0 : i32
    %c0_i32_0 = arith.constant 0 : i32
    %c0_i32_1 = arith.constant 0 : i32
    return %c0_i32, %c0_i32_0 : i32, i32
  }
  func.func @transform_3(%arg0: i32) -> (i32, i32) {
    %c0_i32 = arith.constant 0 : i32
    %c0_i32_0 = arith.constant 0 : i32
    %c0_i32_1 = arith.constant 0 : i32
    return %c0_i32, %c0_i32_0 : i32, i32
  }
  func.func @transform_4(%arg0: i32) -> (i32, i32, i32, i32) {
    %c0_i32 = arith.constant 0 : i32
    %c0_i32_0 = arith.constant 0 : i32
    %c0_i32_1 = arith.constant 0 : i32
    %c0_i32_2 = arith.constant 0 : i32
    return %arg0, %c0_i32, %c0_i32_0, %c0_i32_1 : i32, i32, i32, i32
  }
}

</mosaic_0001>

<bundles_post_ra>
// kernel: residual_block.1
= control target key start
LH: loop header
LB: loop body
LE: loop exit
PB: predicated region body
PF: predicated region fallthrough
CT: control target
= control target key end

     0   :  { %9 = vsyncpa [#allocation6], 0  ;;  %s16045_s0 = inlined_call_operand.hbm [shape: f32[2,16,16,4], index: 0, kind: input, shape index: {}]   ;;  %s16046_s1 = inlined_call_operand.hbm [shape: f32[36,4], index: 1, kind: input, shape index: {}]   ;;  %s16047_s2 = inlined_call_operand.hbm [shape: f32[36,4], index: 2, kind: input, shape index: {}]   ;;  %s16048_s3 = inlined_call_operand.hbm [shape: f32[6,4], index: 3, kind: input, shape index: {}]   ;;  %s16049_s4 = inlined_call_operand.hbm [shape: f32[2,16,16,4], index: 4, kind: output, shape index: {}]  }
   0x1   :  { %11 = vsyncpa [#allocation6 + $0x1], 0 }
   0x2   :  { %12 = vsyncpa [#allocation9], 0 }
   0x3   :  { %13 = vsyncpa [#allocation12], 0 }
   0x4   :  { %14 = vsyncpa [#allocation7], 0 }
   0x5   :  { %16 = vsyncpa [#allocation7 + $0x1], 0  ;;  %s11799_s15 = smov 0   ;;  %s11801_s16 = smov 0  }
   0x6   :  { %s11803_s17 = smov 0   ;;  %s11805_s18 = smov 0  }
   0x7 LB: > { %s11820_s19 = sadd.s32 4294967295, %s11756_s18   ;;  %s9549_s20 = sadd.s32 4294967294, %s11756_s18   ;;  %s11756_s18 = sphi %s11805_s18, %s16484_s18   ;;  %s11752_s17 = sphi %s11803_s17, %s16483_s17   ;;  %s11748_s16 = sphi %s11801_s16, %s16482_s16   ;;  %s11744_s15 = sphi %s11799_s15, %s16481_s15  }
   0x8   : > { %p42_p0 = scmp.ne.s32.totalorder %s11748_s16, %s11744_s15  ;;  %p16050_p1 = scmp.eq.s32.totalorder %s11820_s19, 0 }
   0x9   : > { %p135_p3 = scmp.eq.s32.totalorder %s9549_s20, 1  ;;  %p9550_p5 = scmp.ge.s32.totalorder %s11756_s18, 1 }
   0xa   : > { %p11829_p4 = por %p16050_p1, %p42_p0  ;;  %p142_p7 = scmp.lt.s32.totalorder %s11756_s18, 3 }
   0xb   : > { %p11834_p6 = por %p135_p3, %p42_p0  ;;  %s11758_s24 = smov [#allocation8]  }
   0xc   : > { %s16257_s21 = scalar_select %p11829_p4, 1, 0 }
   0xd   : > { %s16258_s22 = scalar_select %p11834_p6, 1, 0 }
   0xe   : > { %p11839_p8 = pnand %p9550_p5, %p142_p7  ;;  %s154_s25 = sshll.u32 %s11758_s24, 4  ;;  %s11843_s25 = int_to_ptr.vmem [resolvable:$true] %s154_s25 }
   0xf   : > { %s11759_s27 = smov [#allocation10]   ;;  %s11760_s29 = smov [#allocation11]  }
  0x10   : > { %s16259_s23 = scalar_select %p11839_p8, 1, 0 }
  0x11   : > { %p11483_p9 = pneg %p11839_p8  ;;  %s167_s28 = sshll.u32 %s11759_s27, 4  ;;  %s11854_s28 = int_to_ptr.vmem [resolvable:$true] %s167_s28 }
  0x12   : > { %s11856_s30 = sshll.u32 %s11760_s29, 4  ;;  %s11568_s7 = scalar_lea.hbm %s16046_s1, 640  ;;  %s182_s30 = int_to_ptr.vmem [resolvable:$true] %s11856_s30 }
  0x13   : > { %p11850_p11 = pnand %p11483_p9, %p16050_p1  ;;  %p11569_p12 = scmp.ne.s32.totalorder %s16046_s1, %s11568_s7 }
  0x14   : > { %p11575_p5 = scmp.lt.u32.totalorder %s11568_s7, %s16046_s1 }
  0x15   : > { %p11866_p13 = pneg %p11850_p11 }
  0x17   : > { %p11571_p0 = pnand %p11866_p13, %p11569_p12 }
  0x19   : > { %p11572_p3 = pneg %p11571_p0 }
  0x1b   : > { %p11577_p7 = pnand %p11575_p5, %p11572_p3 }
  0x1d   : > { %11580 = shalt.err (!%p11577_p7)
}
  0x1e   : > { %s11581_s13 = scalar_lea.vmem %s11843_s25, 640  ;;  %p11589_p2 = scmp.lt.s32.totalorder %s11843_s25, %s11843_s25 }
  0x1f   : > { %p11582_p9 = scmp.ne.s32.totalorder %s11843_s25, %s11581_s13  ;;  %p11590_p6 = scmp.lt.s32.totalorder %s11581_s13, %s11581_s13 }
  0x21   : > { %p11584_p10 = pnand %p11582_p9, %p11866_p13  ;;  %p11591_p12 = por %p11590_p6, %p11589_p2 }
  0x23   : > { %p11585_p1 = pneg %p11584_p10 }
  0x25   : > { %p11592_p0 = pnand %p11591_p12, %p11585_p1 }
  0x27   : > { %11595 = shalt.err (!%p11592_p0)
}
  0x28   : > { %s11761_s14 = smov 128   ;;  %s11762_s20 = smov 8  }
  0x29   : > { %11486 = dma.hbm_to_vmem [thread:$0]  (!%p11850_p11), %s16046_s1, 640, %s11843_s25, [#allocation9], %s11761_s14, %s11761_s14, %s11762_s20  }
  0x2a   : > { %s11596_s6 = scalar_lea.hbm %s16047_s2, 640 }
  0x2b   : > { %p11597_p1 = scmp.ne.s32.totalorder %s16047_s2, %s11596_s6  ;;  %p11603_p10 = scmp.lt.u32.totalorder %s11596_s6, %s16047_s2 }
  0x2d   : > { %p11599_p2 = pnand %p11597_p1, %p11866_p13 }
  0x2f   : > { %p11600_p6 = pneg %p11599_p2 }
  0x31   : > { %p11605_p3 = pnand %p11603_p10, %p11600_p6 }
  0x33   : > { %11608 = shalt.err (!%p11605_p3)
}
  0x34   : > { %s11609_s25 = scalar_lea.vmem %s11854_s28, 640  ;;  %p11617_p12 = scmp.lt.s32.totalorder %s11854_s28, %s11854_s28 }
  0x35   : > { %p11610_p5 = scmp.ne.s32.totalorder %s11854_s28, %s11609_s25  ;;  %p11618_p0 = scmp.lt.s32.totalorder %s11609_s25, %s11609_s25 }
  0x37   : > { %p11612_p7 = pnand %p11610_p5, %p11866_p13  ;;  %p11619_p1 = por %p11618_p0, %p11617_p12 }
  0x39   : > { %p11613_p9 = pneg %p11612_p7 }
  0x3b   : > { %p11620_p2 = pnand %p11619_p1, %p11613_p9 }
  0x3d   : > { %11623 = shalt.err (!%p11620_p2)
}
  0x3e   : > { %11489 = dma.hbm_to_vmem [thread:$0]  (!%p11850_p11), %s16047_s2, 640, %s11854_s28, [#allocation9], %s11761_s14, %s11761_s14, %s11762_s20  }
  0x3f   : > { %s11624_s29 = scalar_lea.hbm %s16048_s3, 128 }
  0x40   : > { %p11625_p6 = scmp.ne.s32.totalorder %s16048_s3, %s11624_s29  ;;  %p11631_p5 = scmp.lt.u32.totalorder %s11624_s29, %s16048_s3 }
  0x42   : > { %p11627_p10 = pnand %p11625_p6, %p11866_p13 }
  0x44   : > { %p11628_p3 = pneg %p11627_p10 }
  0x46   : > { %p11633_p7 = pnand %p11631_p5, %p11628_p3 }
  0x48   : > { %11636 = shalt.err (!%p11633_p7)
}
  0x49   : > { %s11637_s9 = scalar_lea.vmem %s182_s30, 128  ;;  %p11645_p1 = scmp.lt.s32.totalorder %s182_s30, %s182_s30 }
  0x4a   : > { %p11638_p9 = scmp.ne.s32.totalorder %s182_s30, %s11637_s9  ;;  %p11646_p2 = scmp.lt.s32.totalorder %s11637_s9, %s11637_s9 }
  0x4c   : > { %p11640_p12 = pnand %p11638_p9, %p11866_p13  ;;  %p11647_p4 = por %p11646_p2, %p11645_p1 }
  0x4e   : > { %p11641_p0 = pneg %p11640_p12 }
  0x50   : > { %p11648_p8 = pnand %p11647_p4, %p11641_p0 }
  0x52   : > { %11651 = shalt.err (!%p11648_p8)
}
  0x53   : > { %11492 = dma.hbm_to_vmem [thread:$0]  (!%p11850_p11), %s16048_s3, 128, %s182_s30, [#allocation12]  }
  0x54   : > { %s11936_s10 = sadd.s32 1, %s11756_s18   ;;  %s29_s26 = sadd.s32 1, %s11752_s17 }
  0x55   : > { %s26_s25 = ssub.s32 %s11756_s18, %s11936_s10  ;;  %p36_p8 = scmp.ne.s32.totalorder %s11752_s17, %s11748_s16 }
  0x56   : > { %p27_p4 = scmp.eq.s32.totalorder %s26_s25, 0  ;;  %p37_p13 = scmp.eq.s32.totalorder %s11756_s18, 0 }
  0x57   : > { %p11504_p6 = scmp.lt.s32.totalorder %s11756_s18, 2  ;;  %p16262_p3 = scmp.eq.s32.totalorder %s11820_s19, 1 }
  0x58   : > { %s11946_s12 = scalar_select %p27_p4, %s11752_s17, %s29_s26  }
  0x59   : > { %p38_p10 = por %p37_p13, %p36_p8  ;;  %p11950_p5 = por %p16262_p3, %p36_p8 }
  0x5a   : > { %s192_s24 = sand.u32 1, %s11752_s17   ;;  %s9569_s27 = sshll.u32 %s11756_s18, 12 }
  0x5b   : > { %s9555_s30 = sshll.u32 %s192_s24, 8  ;;  %s11959_s6 = scalar_lea.hbm %s16045_s0, %s9569_s27 }
  0x5c   : > { %s196_s7 = scalar_lea.vmem [#allocation5], %s9555_s30  ;;  %p11961_p11 = pnand %p11504_p6, %p38_p10 }
  0x5d   : > { %s203_s8 = sshll.u32 %s196_s7, 4  ;;  %s11967_s28 = scalar_lea.sflag [#allocation6], %s192_s24  ;;  %s11965_s8 = int_to_ptr.vmem [resolvable:$true] %s203_s8 }
  0x5e   : > { %s11652_s11 = scalar_lea.hbm %s11959_s6, 4096  ;;  %p11654_p9 = pneg %p11961_p11 }
  0x5f   : > { %p11653_p7 = scmp.ne.s32.totalorder %s11959_s6, %s11652_s11  ;;  %s11657_s27 = scalar_lea.hbm %s16045_s0, 8192 }
  0x60   : > { %p11658_p1 = scmp.lt.u32.totalorder %s11959_s6, %s16045_s0  ;;  %p11659_p2 = scmp.lt.u32.totalorder %s11657_s27, %s11652_s11 }
  0x61   : > { %p11655_p12 = pnand %p11654_p9, %p11653_p7  ;;  %p11661_p8 = scmp.lt.u32.totalorder %s11652_s11, %s11959_s6 }
  0x62   : > { %p11660_p4 = por %p11659_p2, %p11658_p1 }
  0x63   : > { %p11656_p0 = pneg %p11655_p12 }
  0x64   : > { %p11662_p13 = por %p11661_p8, %p11660_p4 }
  0x66   : > { %p11663_p6 = pnand %p11662_p13, %p11656_p0 }
  0x68   : > { %11666 = shalt.err (!%p11663_p6)
}
  0x69   : > { %s11667_s24 = scalar_lea.vmem %s11965_s8, 4096  ;;  %s11763_s5 = smov [#allocation5]  }
  0x6a   : > { %p11668_p10 = scmp.ne.s32.totalorder %s11965_s8, %s11667_s24  ;;  %s11672_s7 = sshll.u32 %s11763_s5, 4  ;;  %s11673_s7 = int_to_ptr.vmem [resolvable:$false] %s11672_s7 }
  0x6b   : > { %s11674_s25 = scalar_lea.vmem %s11673_s7, 8192  ;;  %p11675_p12 = scmp.lt.s32.totalorder %s11965_s8, %s11673_s7 }
  0x6c   : > { %p11670_p3 = pnand %p11668_p10, %p11654_p9  ;;  %p11676_p1 = scmp.lt.s32.totalorder %s11674_s25, %s11667_s24 }
  0x6e   : > { %p11671_p7 = pneg %p11670_p3  ;;  %p11677_p2 = por %p11676_p1, %p11675_p12 }
  0x70   : > { %p11678_p4 = pnand %p11677_p2, %p11671_p7 }
  0x72   : > { %11681 = shalt.err (!%p11678_p4)
}
  0x73   : > { %11496 = dma.hbm_to_vmem [thread:$0]  (!%p11961_p11), %s11959_s6, 4096, %s11965_s8, %s11967_s28, %s11761_s14, %s11761_s14, %s11762_s20  }
  0x74   : > { %p16265_p9 = scmp.ne.s32.totalorder %s16259_s23, 0 }
  0x76   : > { %215 = sbr.rel (%p16265_p9) target bundleno = 2364 (0x93c), region = 36 }
  0x7d   : > { %s12001_s11 = sand.u32 1, %s11748_s16   ;;  %p16266_p0 = scmp.ne.s32.totalorder %s16257_s21, 0 }
  0x7e   : > { %s9559_s26 = sshll.u32 %s12001_s11, 8  ;;  %s218_s27 = scalar_lea.sflag [#allocation6], %s12001_s11 }
  0x7f   : > { %s12007_s9 = scalar_lea.vmem [#allocation5], %s9559_s26 }
  0x80   : > { %11727 = dma.done.wait (%p16266_p0), %s218_s27, 4096  }
  0x81   : > { %11729 = vsyncadd (%p16266_p0), %s218_s27, 4294963200  ;;  %p16267_p11 = scmp.eq.s32.totalorder %s11820_s19, 0 }
  0x83   : > { %11731 = dma.done.wait (%p16267_p11), [#allocation9], 1280   ;;  %p16268_p8 = pmov %p16267_p11 }
  0x85   : > { %11733 = vsyncadd (%p16268_p8), [#allocation9], 4294966016  ;;  %p16269_p13 = pmov %p16268_p8 }
  0x86   : > { %p16270_p6 = pmov %p16268_p8 }
  0x87   : > { %11735 = dma.done.wait (%p16269_p13), [#allocation12], 128  }
  0x88   : > { %11737 = vsyncadd (%p16270_p6), [#allocation12], 4294967168  ;;  %vm292_vm0 = vcmask 31744   ;;  %v273_v0 = vld [vmem:[%s12007_s9 + $0x70] sm:$0xff]  ;;  %v274_v1 = vld [vmem:[%s12007_s9 + $0x78] sm:$0xff]  ;;  %s11764_s21 = smov 8  }
  0x89   : > { %v259_v2 = vld [vmem:[%s12007_s9] sm:$0xff]  ;;  %307 = vst.msk [vmem:[#allocation2 + $0xc1] sm:$0xff] %vm292_vm0, %v273_v0  ;;  %308 = vst.msk [vmem:[#allocation2 + $0xc9] sm:$0xff] %vm292_vm0, %v274_v1  ;;  %v260_v4 = vld [vmem:[%s12007_s9 + $0x8] sm:$0xff]  ;;  %s11765_s23 = smov 4   ;;  %vm354_vm1 = vcmask 24576  }
  0x8a   : > { %293 = vst.msk [vmem:[#allocation2 + $0x19] sm:$0xff] %vm292_vm0, %v259_v2  ;;  %v275_v3 = vld [vmem:[%s12007_s9 + $0x80] sm:$0xff]  ;;  %v262_v5 = vld [vmem:[%s12007_s9 + $0x18] sm:$0xff]  ;;  %294 = vst.msk [vmem:[#allocation2 + $0x21] sm:$0xff] %vm292_vm0, %v260_v4  ;;  %s11766_s14 = smov 16   ;;  %s11767_s20 = smov 12  }
  0x8b   : > { %309 = vst.msk [vmem:[#allocation2 + $0xd9] sm:$0xff] %vm292_vm0, %v275_v3  ;;  %296 = vst.msk [vmem:[#allocation2 + $0x39] sm:$0xff] %vm292_vm0, %v262_v5  ;;  %v276_v6 = vld [vmem:[%s12007_s9 + $0x88] sm:$0xff]  ;;  %v261_v7 = vld [vmem:[%s12007_s9 + $0x10] sm:$0xff]  ;;  %s11768_s6 = smov 20   ;;  %s11769_s8 = smov 24  }
  0x8c   : > { %v277_v8 = vld [vmem:[%s12007_s9 + $0x90] sm:$0xff]  ;;  %310 = vst.msk [vmem:[#allocation2 + $0xe1] sm:$0xff] %vm292_vm0, %v276_v6  ;;  %295 = vst.msk [vmem:[#allocation2 + $0x31] sm:$0xff] %vm292_vm0, %v261_v7  ;;  %v278_v9 = vld [vmem:[%s12007_s9 + $0x98] sm:$0xff]  ;;  %s11770_s28 = smov 28   ;;  %s11771_s30 = smov 32  }
  0x8d   : > { %311 = vst.msk [vmem:[#allocation2 + $0xf1] sm:$0xff] %vm292_vm0, %v277_v8  ;;  %v263_v10 = vld [vmem:[%s12007_s9 + $0x20] sm:$0xff]  ;;  %312 = vst.msk [vmem:[#allocation2 + $0xf9] sm:$0xff] %vm292_vm0, %v278_v9  ;;  %v264_v12 = vld [vmem:[%s12007_s9 + $0x28] sm:$0xff]  ;;  %vm1291_vm2 = vcmask 1043456   ;;  %vm526_vm3 = vcmask 64544  }
  0x8e   : > { %v279_v11 = vld [vmem:[%s12007_s9 + $0xa0] sm:$0xff]  ;;  %297 = vst.msk [vmem:[#allocation2 + $0x49] sm:$0xff] %vm292_vm0, %v263_v10  ;;  %v280_v13 = vld [vmem:[%s12007_s9 + $0xa8] sm:$0xff]  ;;  %298 = vst.msk [vmem:[#allocation2 + $0x51] sm:$0xff] %vm292_vm0, %v264_v12  ;;  %vm623_vm4 = vcmask 97344   ;;  %vm720_vm5 = vcmask 130144  }
  0x8f   : > { %313 = vst.msk [vmem:[#allocation2 + $0x109] sm:$0xff] %vm292_vm0, %v279_v11  ;;  %314 = vst.msk [vmem:[#allocation2 + $0x111] sm:$0xff] %vm292_vm0, %v280_v13  ;;  %v265_v59 = vld [vmem:[%s12007_s9 + $0x30] sm:$0xff]  ;;  %v266_v6 = vld [vmem:[%s12007_s9 + $0x38] sm:$0xff]  ;;  %vm817_vm6 = vcmask 162944   ;;  %vm914_vm7 = vcmask 195744  }
  0x90   : > { %v2676_v14 = vld [vmem:[#allocation2 + $0xc2] sm:$0xff]  ;;  %v381_v23 = vld [vmem:[#allocation2 + $0xcf] sm:$0x1]  ;;  %299 = vst.msk [vmem:[#allocation2 + $0x61] sm:$0xff] %vm292_vm0, %v265_v59  ;;  %300 = vst.msk [vmem:[#allocation2 + $0x69] sm:$0xff] %vm292_vm0, %v266_v6  ;;  %vm1011_vm8 = vcmask 228544  }
  0x91   : > { %v2580_v15 = vld [vmem:[#allocation2 + $0xc1] sm:$0xff]  ;;  %2708 = vrot.lane.b32.xlu1 %v2676_v14, %s11764_s21  ;;  %v2581_v16 = vld [vmem:[#allocation2 + $0xc9] sm:$0xff]  ;;  %v12051_v17 = vld [vmem:[#allocation2 + $0x19] sm:$0xff]  ;;  %399 = vst.msk [vmem:[#allocation2 + $0xd1] sm:$0x1] %vm354_vm1, %v381_v23  ;;  %vm1108_vm9 = vcmask 261344  }
  0x92   : > { %2612 = vrot.lane.b32.xlu0 %v2580_v15, %s11765_s23  ;;  %v641_v18 = vld [vmem:[#allocation2 + $0x20] sm:$0xff]  ;;  %v337_v22 = vld [vmem:[#allocation2 + $0x1a] sm:$0x1]  ;;  %v375_v32 = vld [vmem:[#allocation2 + $0x3f] sm:$0x1]  ;;  %vm1205_vm10 = vcmask 294144  }
  0x93   : > { %v12053_v19 = vld [vmem:[#allocation2 + $0x39] sm:$0xff]  ;;  %v12055_v21 = vld [vmem:[#allocation2 + $0x31] sm:$0xff]  ;;  %433 = vst.msk [vmem:[#allocation3 + $0x18] sm:$0xff] %vm292_vm0, %v641_v18  ;;  %v374_v26 = vld [vmem:[#allocation2 + $0x27] sm:$0x1]  ;;  %vm1242_vm11 = vcmask 293888  }
  0x94   : > { %v2774_v20 = vld [vmem:[#allocation2 + $0xe0] sm:$0xff]  ;;  %329 = vst.msk [vmem:[#allocation2 + $0x9] sm:$0xff] %vm292_vm0, %v12053_v19  ;;  %328 = vst.msk [vmem:[#allocation2 + $0x1] sm:$0xff] %vm292_vm0, %v12055_v21  ;;  %v345_v24 = vld [vmem:[#allocation2 + $0xda] sm:$0x1]  ;;  %s15815_s29 = scalar_lea.vmem [#allocation13], %s9559_s26 }
  0x95   : > { %2567 = vst.msk [vmem:[#allocation3 + $0x98] sm:$0xff] %vm292_vm0, %v2774_v20  ;;  %769 = vrot.lane.b32.xlu1 %v12051_v17, %s11766_s14  ;;  %v12069_v25 = vld [vmem:[#allocation2 + $0xd9] sm:$0xff]  ;;  %v338_v27 = vld [vmem:[#allocation2 + $0x32] sm:$0x1]  ;;  %v382_v28 = vld [vmem:[#allocation2 + $0xe7] sm:$0x1] }
  0x96   : > { %356 = vst.msk [vmem:[#allocation2 + $0x18] sm:$0x1] %vm354_vm1, %v337_v22  ;;  %364 = vst.msk [vmem:[#allocation2 + $0xd8] sm:$0x1] %vm354_vm1, %v345_v24  ;;  %2614 = vrot.lane.b32.xlu0 %v2581_v16, %s11765_s23  ;;  %v346_v29 = vld [vmem:[#allocation2 + $0xf2] sm:$0x1] }
  0x97   : > { %392 = vst.msk [vmem:[#allocation2 + $0x29] sm:$0x1] %vm354_vm1, %v374_v26  ;;  %357 = vst.msk [vmem:[#allocation2 + $0x30] sm:$0x1] %vm354_vm1, %v338_v27  ;;  %v12073_v30 = vld [vmem:[#allocation2 + $0x38] sm:$0xff]  ;;  %v2548_v41 = vld [vmem:[#allocation2 + $0xc8] sm:$0xff] }
  0x98   : > { %400 = vst.msk [vmem:[#allocation2 + $0xe9] sm:$0x1] %vm354_vm1, %v382_v28  ;;  %365 = vst.msk [vmem:[#allocation2 + $0xf0] sm:$0x1] %vm354_vm1, %v346_v29  ;;  %v12077_v31 = vld [vmem:[#allocation2 + $0xf8] sm:$0xff]  ;;  %v12099_v43 = vld [vmem:[#allocation2 + $0x50] sm:$0xff] }
  0x99   : > { %435 = vst.msk [vmem:[#allocation3 + $0x28] sm:$0xff] %vm292_vm0, %v12073_v30  ;;  %2569 = vst.msk [vmem:[#allocation3 + $0xa8] sm:$0xff] %vm292_vm0, %v12077_v31  ;;  %2901 = vrot.lane.b32.xlu1 %v12069_v25, %s11766_s14  ;;  %v383_v33 = vld [vmem:[#allocation2 + $0xff] sm:$0x1]  ;;  %v339_v34 = vld [vmem:[#allocation2 + $0x4a] sm:$0x1] }
  0x9a   : > { %674 = vrot.lane.b32.xlu0 %v641_v18, %s11767_s20  ;;  %393 = vst.msk [vmem:[#allocation2 + $0x41] sm:$0x1] %vm354_vm1, %v375_v32  ;;  %v344_v35 = vld [vmem:[#allocation2 + $0xc2] sm:$0x1]  ;;  %401 = vst.msk [vmem:[#allocation2 + $0x101] sm:$0x1] %vm354_vm1, %v383_v33 }
  0x9b   : > { %v447_v36 = vld [vmem:[#allocation2 + $0x9] sm:$0xff]  ;;  %358 = vst.msk [vmem:[#allocation2 + $0x48] sm:$0x1] %vm354_vm1, %v339_v34  ;;  %363 = vst.msk [vmem:[#allocation2 + $0xc0] sm:$0x1] %vm354_vm1, %v344_v35  ;;  %v446_v51 = vld [vmem:[#allocation2 + $0x1] sm:$0xff] }
  0x9c   : > { %v373_v39 = vld [vmem:[#allocation2 + $0xf] sm:$0x1]  ;;  %v347_v40 = vld [vmem:[#allocation2 + $0x10a] sm:$0x1]  ;;  %2565 = vst.msk [vmem:[#allocation3 + $0x88] sm:$0xff] %vm292_vm0, %v2548_v41  ;;  %v543_v44 = vld [vmem:[#allocation2 + $0x2] sm:$0xff] }
  0x9d   : > { %v640_v37 = vld [vmem:[#allocation2 + $0x18] sm:$0xff]  ;;  %480 = vrot.lane.b32.xlu1 %v447_v36, %s11765_s23  ;;  %391 = vst.msk [vmem:[#allocation2 + $0x11] sm:$0x1] %vm354_vm1, %v373_v39  ;;  %366 = vst.msk [vmem:[#allocation2 + $0x108] sm:$0x1] %vm354_vm1, %v347_v40  ;;  %v415_v46 = vld [vmem:[#allocation2 + $0x8] sm:$0xff] }
  0x9e   : > { %v2773_v38 = vld [vmem:[#allocation2 + $0xd8] sm:$0xff]  ;;  %432 = vst.msk [vmem:[#allocation3 + $0x10] sm:$0xff] %vm292_vm0, %v640_v37  ;;  %2807 = vrot.lane.b32.xlu0 %v2774_v20, %s11767_s20  ;;  %v12095_v42 = vld [vmem:[#allocation2 + $0x30] sm:$0xff]  ;;  %437 = vst.msk [vmem:[#allocation3 + $0x38] sm:$0xff] %vm292_vm0, %v12099_v43  ;;  %s9570_s24 = sshll.u32 %s11820_s19, 12  ;;  %s9447_s5 = sshll.u32 %s15815_s29, 4  ;;  %s15984_s5 = int_to_ptr.vmem [resolvable:$true] %s9447_s5 }
  0x9f   : > { %2566 = vst.msk [vmem:[#allocation3 + $0x90] sm:$0xff] %vm292_vm0, %v2773_v38  ;;  %v12101_v45 = vld [vmem:[#allocation2 + $0xf0] sm:$0xff]  ;;  %434 = vst.msk [vmem:[#allocation3 + $0x20] sm:$0xff] %vm292_vm0, %v12095_v42  ;;  %v336_v48 = vld [vmem:[#allocation2 + $0x2] sm:$0x1]  ;;  %s15970_s26 = scalar_lea.hbm %s16049_s4, %s9570_s24  ;;  %s9434_s19 = scalar_lea.sflag [#allocation7], %s12001_s11 }
  0xa0   : > { %v12107_v47 = vld [vmem:[#allocation2 + $0x110] sm:$0xff]  ;;  %2568 = vst.msk [vmem:[#allocation3 + $0xa0] sm:$0xff] %vm292_vm0, %v12101_v45  ;;  %431 = vst.msk [vmem:[#allocation3 + $0x8] sm:$0xff] %vm292_vm0, %v415_v46  ;;  %v834_v56 = vld [vmem:[#allocation2 + $0x1a] sm:$0xff]  ;;  %s11682_s27 = scalar_lea.vmem %s15984_s5, 4096 }
  0xa1   : > { %2571 = vst.msk [vmem:[#allocation3 + $0xb8] sm:$0xff] %vm292_vm0, %v12107_v47  ;;  %575 = vrot.lane.b32.xlu1 %v543_v44, %s11764_s21  ;;  %v376_v53 = vld [vmem:[#allocation2 + $0x57] sm:$0x1]  ;;  %v2677_v54 = vld [vmem:[#allocation2 + $0xca] sm:$0xff]  ;;  %v738_v57 = vld [vmem:[#allocation2 + $0x21] sm:$0xff]  ;;  %p11683_p10 = scmp.ne.s32.totalorder %s15984_s5, %s11682_s27 }
  0xa2   : > { %482 = vrot.lane.b32.xlu0 %v12051_v17, %s11765_s23  ;;  %v12117_v49 = vld [vmem:[#allocation2 + $0x48] sm:$0xff]  ;;  %v2547_v50 = vld [vmem:[#allocation2 + $0xc0] sm:$0xff]  ;;  %355 = vst.msk [vmem:[#allocation2] sm:$0x1] %vm354_vm1, %v336_v48  ;;  %394 = vst.msk [vmem:[#allocation2 + $0x59] sm:$0x1] %vm354_vm1, %v376_v53 }
  0xa3   : > { %2564 = vst.msk [vmem:[#allocation3 + $0x80] sm:$0xff] %vm292_vm0, %v2547_v50  ;;  %436 = vst.msk [vmem:[#allocation3 + $0x30] sm:$0xff] %vm292_vm0, %v12117_v49  ;;  %v384_v58 = vld [vmem:[#allocation2 + $0x117] sm:$0x1]  ;;  %v2870_v61 = vld [vmem:[#allocation2 + $0xe1] sm:$0xff]  ;;  %p11684_p3 = pnand %p11683_p10, %p11950_p5 }
  0xa4   : > { %v12123_v52 = vld [vmem:[#allocation2 + $0x108] sm:$0xff]  ;;  %402 = vst.msk [vmem:[#allocation2 + $0x119] sm:$0x1] %vm354_vm1, %v384_v58  ;;  %v2965_v62 = vld [vmem:[#allocation2 + $0xda] sm:$0xff]  ;;  %v340_v63 = vld [vmem:[#allocation2 + $0x62] sm:$0x1] }
  0xa5   : > { %672 = vrot.lane.b32.xlu1 %v640_v37, %s11767_s20  ;;  %2570 = vst.msk [vmem:[#allocation3 + $0xb0] sm:$0xff] %vm292_vm0, %v12123_v52  ;;  %v544_v60 = vld [vmem:[#allocation2 + $0xa] sm:$0xff]  ;;  %v281_v0 = vld [vmem:[%s12007_s9 + $0xb0] sm:$0xff]  ;;  %v1125_v11 = vld [vmem:[#allocation2 + $0x32] sm:$0xff]  ;;  %p11685_p7 = pneg %p11684_p3 }
  0xa6   : > { %478 = vrot.lane.b32.xlu0 %v446_v51, %s11765_s23  ;;  %359 = vst.msk [vmem:[#allocation2 + $0x60] sm:$0x1] %vm354_vm1, %v340_v63  ;;  %v835_v1 = vld [vmem:[#allocation2 + $0x22] sm:$0xff]  ;;  %v3158_v9 = vld [vmem:[#allocation2 + $0xf1] sm:$0xff]  ;;  %v3159_v12 = vld [vmem:[#allocation2 + $0xf9] sm:$0xff] }
  0xa7   : > { %315 = vst.msk [vmem:[#allocation2 + $0x121] sm:$0xff] %vm292_vm0, %v281_v0  ;;  %v2966_v4 = vld [vmem:[#allocation2 + $0xe2] sm:$0xff]  ;;  %v3254_v13 = vld [vmem:[#allocation2 + $0xf2] sm:$0xff]  ;;  %v377_v17 = vld [vmem:[#allocation2 + $0x6f] sm:$0x1] }
  0xa8   : > { %v12170_v7 = vld [vmem:[#allocation2 + $0x68] sm:$0xff]  ;;  %v12200_v14 = vld [vmem:[#allocation8] sm:$0xff]  ;;  %v12204_v15 = vld [vmem:[#allocation8 + $0x8] sm:$0xff]  ;;  %395 = vst.msk [vmem:[#allocation2 + $0x71] sm:$0x1] %vm354_vm1, %v377_v17 }
  0xa9   : > { %v414_v55 = vld [vmem:[#allocation2] sm:$0xff]  ;;  %2805 = vrot.lane.b32.xlu1 %v2773_v38, %s11767_s20  ;;  %v282_v8 = vld [vmem:[%s12007_s9 + $0xb8] sm:$0xff]  ;;  %439 = vst.msk [vmem:[#allocation3 + $0x48] sm:$0xff] %vm292_vm0, %v12170_v7  ;;  %v1296_v16 = vand.u32 4294901760, %v12200_v14  ;;  %v1299_v18 = vand.u32 4294901760, %v12204_v15  ;;  %v267_v28 = vld [vmem:[%s12007_s9 + $0x40] sm:$0xff] }
  0xaa   : > { %2710 = vrot.lane.b32.xlu0 %v2677_v54, %s11764_s21  ;;  %430 = vst.msk [vmem:[#allocation3] sm:$0xff] %vm292_vm0, %v414_v55  ;;  %316 = vst.msk [vmem:[#allocation2 + $0x129] sm:$0xff] %vm292_vm0, %v282_v8  ;;  %v12215_v22 = vld [vmem:[#allocation8 + $0x10] sm:$0xff]  ;;  %v12217_v23 = vld [vmem:[#allocation8 + $0x18] sm:$0xff] }
  0xab   : > { %v12213_v20 = vpack.c.bf16 %v1299_v18, %v1296_v16  ;;  %v1302_v24 = vand.u32 4294901760, %v12215_v22  ;;  %v1126_v26 = vld [vmem:[#allocation2 + $0x3a] sm:$0xff]  ;;  %v413_v29 = vld [vmem:[#allocation8 + $0x20] sm:$0xf]  ;;  %301 = vst.msk [vmem:[#allocation2 + $0x79] sm:$0xff] %vm292_vm0, %v267_v28 }
  0xac   : > { %v3255_v32 = vld [vmem:[#allocation2 + $0xfa] sm:$0xff]  ;;  %v283_v34 = vld [vmem:[%s12007_s9 + $0xc0] sm:$0xff] }
  0xad   : > { %771 = vrot.lane.b32.xlu1 %v738_v57, %s11766_s14  ;;  %v12148_v2 = vld [vmem:[#allocation2 + $0x60] sm:$0xff]  ;;  %10892 = vmatprep.subr.bf16.mxu0 %v12213_v20  ;;  %317 = vst.msk [vmem:[#allocation2 + $0x139] sm:$0xff] %vm292_vm0, %v283_v34  ;;  %v268_v39 = vld [vmem:[%s12007_s9 + $0x48] sm:$0xff]  ;;  %v12305_v51 = vld [vmem:[#allocation2 + $0x109] sm:$0xff] }
  0xae   : > { %866 = vrot.lane.b32.xlu0 %v834_v56, %s11768_s6  ;;  %v348_v3 = vld [vmem:[#allocation2 + $0x122] sm:$0x1]  ;;  %438 = vst.msk [vmem:[#allocation3 + $0x40] sm:$0xff] %vm292_vm0, %v12148_v2  ;;  %10940 = vmatprep.subr.bf16.mxu1 %v12213_v20  ;;  %302 = vst.msk [vmem:[#allocation2 + $0x81] sm:$0xff] %vm292_vm0, %v268_v39  ;;  %v284_v48 = vld [vmem:[%s12007_s9 + $0xc8] sm:$0xff] }
  0xaf   : > { %367 = vst.msk [vmem:[#allocation2 + $0x120] sm:$0x1] %vm354_vm1, %v348_v3  ;;  %10894 = vmatpush3.bf16.msra.mxu0 %v12213_v20  ;;  %10942 = vmatpush3.bf16.msra.mxu1 %v12213_v20  ;;  %v12325_v58 = vld [vmem:[#allocation2 + $0x4a] sm:$0xff]  ;;  %v12360_v6 = vld [vmem:[#allocation2 + $0x52] sm:$0xff] }
  0xb0   : > { %318 = vst.msk [vmem:[#allocation2 + $0x141] sm:$0xff] %vm292_vm0, %v284_v48  ;;  %v12343_v63 = vld [vmem:[#allocation2 + $0x10a] sm:$0xff] }
  0xb1   : > { %2616 = vrot.lane.b32.xlu1 %v12069_v25, %s11765_s23  ;;  %v12183_v10 = vld [vmem:[#allocation2 + $0x128] sm:$0xff]  ;;  %v1305_v25 = vand.u32 4294901760, %v12217_v23 }
  0xb2   : > { %577 = vrot.lane.b32.xlu0 %v544_v60, %s11764_s21  ;;  %2573 = vst.msk [vmem:[#allocation3 + $0xc8] sm:$0xff] %vm292_vm0, %v12183_v10  ;;  %v341_v33 = vld [vmem:[#allocation2 + $0x7a] sm:$0x1]  ;;  %v270_v48 = vld [vmem:[%s12007_s9 + $0x58] sm:$0xff] }
  0xb3   : > { %v12232_v27 = vpack.c.bf16 %v1305_v25, %v1302_v24  ;;  %360 = vst.msk [vmem:[#allocation2 + $0x78] sm:$0x1] %vm354_vm1, %v341_v33 }
  0xb4   : > { %v349_v36 = vld [vmem:[#allocation2 + $0x13a] sm:$0x1]  ;;  %304 = vst.msk [vmem:[#allocation2 + $0x99] sm:$0xff] %vm292_vm0, %v270_v48  ;;  %v12523_v48 = vld [vmem:[#allocation2 + $0x6a] sm:$0xff] }
  0xb5   : > { %2997 = vrot.lane.b32.xlu1 %v2965_v62, %s11768_s6  ;;  %10896 = vmatprep.subr.bf16.mxu0 %v12232_v27  ;;  %368 = vst.msk [vmem:[#allocation2 + $0x138] sm:$0x1] %vm354_vm1, %v349_v36  ;;  %v12291_v46 = vld [vmem:[#allocation2 + $0x80] sm:$0xff] }
  0xb6   : > { %2903 = vrot.lane.b32.xlu0 %v2870_v61, %s11766_s14  ;;  %v12158_v5 = vld [vmem:[#allocation2 + $0x120] sm:$0xff]  ;;  %10944 = vmatprep.subr.bf16.mxu1 %v12232_v27  ;;  %441 = vst.msk [vmem:[#allocation3 + $0x58] sm:$0xff] %vm292_vm0, %v12291_v46 }
  0xb7   : > { %2572 = vst.msk [vmem:[#allocation3 + $0xc0] sm:$0xff] %vm292_vm0, %v12158_v5  ;;  %10898 = vmatpush3.bf16.msra.mxu0 %v12232_v27  ;;  %10946 = vmatpush3.bf16.msra.mxu1 %v12232_v27  ;;  %v12308_v55 = vld [vmem:[#allocation2 + $0x140] sm:$0xff] }
  0xb8   : > { %2575 = vst.msk [vmem:[#allocation3 + $0xd8] sm:$0xff] %vm292_vm0, %v12308_v55  ;;  %v378_v3 = vld [vmem:[#allocation2 + $0x87] sm:$0x1] }
  0xb9   : > { %579 = vrot.lane.b32.xlu1 %v834_v56, %s11764_s21  ;;  %396 = vst.msk [vmem:[#allocation2 + $0x89] sm:$0x1] %vm354_vm1, %v378_v3  ;;  %v12472_v3 = vld [vmem:[#allocation2 + $0x62] sm:$0xff] }
  0xba   : > { %484 = vrot.lane.b32.xlu0 %v738_v57, %s11765_s23  ;;  %v12264_v35 = vld [vmem:[#allocation2 + $0x78] sm:$0xff] }
  0xbb   : > { %440 = vst.msk [vmem:[#allocation3 + $0x50] sm:$0xff] %vm292_vm0, %v12264_v35  ;;  %v12323_v57 = vld [vmem:[#allocation2 + $0x51] sm:$0xff] }
  0xbc   : > { %v12275_v38 = vld [vmem:[#allocation2 + $0x138] sm:$0xff] }
  0xbd   : > { %963 = vrot.lane.b32.xlu1 %v12095_v42, %s11769_s8  ;;  %2574 = vst.msk [vmem:[#allocation3 + $0xd0] sm:$0xff] %vm292_vm0, %v12275_v38 }
  0xbe   : > { %868 = vrot.lane.b32.xlu0 %v835_v1, %s11768_s6 }
  0xc1   : > { %2712 = vrot.lane.b32.xlu1 %v2965_v62, %s11764_s21  ;;  %v12341_v62 = vld [vmem:[#allocation2 + $0x111] sm:$0xff] }
  0xc2   : > { %2618 = vrot.lane.b32.xlu0 %v2870_v61, %s11765_s23 }
  0xc5   : > { %3094 = vrot.lane.b32.xlu1 %v12101_v45, %s11769_s8 }
  0xc6   : > { %2999 = vrot.lane.b32.xlu0 %v2966_v4, %s11768_s6 }
  0xc9   : > { %676 = vrot.lane.b32.xlu1 %v12095_v42, %s11767_s20  ;;  %v12289_v42 = vld [vmem:[#allocation2 + $0x49] sm:$0xff] }
  0xca   : > { %581 = vrot.lane.b32.xlu0 %v835_v1, %s11764_s21 }
  0xcd   : > { %1060 = vrot.lane.b32.xlu1 %v12055_v21, %s11770_s28 }
  0xce   : > { %965 = vrot.lane.b32.xlu0 %v12073_v30, %s11769_s8 }
  0xd1   : > { %2809 = vrot.lane.b32.xlu1 %v12101_v45, %s11767_s20 }
  0xd2   : > { %2714 = vrot.lane.b32.xlu0 %v2966_v4, %s11764_s21 }
  0xd5   : > { %3190 = vrot.lane.b32.xlu1 %v3158_v9, %s11770_s28 }
  0xd6   : > { %3096 = vrot.lane.b32.xlu0 %v12077_v31, %s11769_s8 }
  0xd9   : > { %773 = vrot.lane.b32.xlu1 %v12055_v21, %s11766_s14 }
  0xda   : > { %678 = vrot.lane.b32.xlu0 %v12073_v30, %s11767_s20  ;;  %v12242_v30 = vsel %vm1291_vm2, %v413_v29, 0 }
  0xdd   : > { %1157 = vrot.lane.b32.xlu1 %v1125_v11, %s11771_s30 }
  0xde   : > { %1062 = vrot.lane.b32.xlu0 %v12053_v19, %s11770_s28 }
  0xe1   : > { %2905 = vrot.lane.b32.xlu1 %v3158_v9, %s11766_s14 }
  0xe2   : > { %2811 = vrot.lane.b32.xlu0 %v12077_v31, %s11767_s20  ;;  %v12247_v31 = vand.u32 4294901760, %v12242_v30 }
  0xe4   : > { %10083 = vmatprep.subr.mxu0 %v12247_v31  ;;  %10287 = vmatprep.subr.mxu1 %v12247_v31 }
  0xe5   : > { %3286 = vrot.lane.b32.xlu1 %v3254_v13, %s11771_s30  ;;  %10084 = vmatpush3.msra.mxu0 %v12247_v31 }
  0xe6   : > { %3192 = vrot.lane.b32.xlu0 %v3159_v12, %s11770_s28  ;;  %10288 = vmatpush3.msra.mxu1 %v12247_v31 }
  0xe9   : > { %775 = vrot.lane.b32.xlu1 %v12053_v19, %s11766_s14 }
  0xea   : > { %486 = vrot.lane.b32.xlu0 %v12055_v21, %s11765_s23  ;;  %v385_v21 = vld [vmem:[#allocation2 + $0x12f] sm:$0x1] }
  0xeb   : > { %403 = vst.msk [vmem:[#allocation2 + $0x131] sm:$0x1] %vm354_vm1, %v385_v21 }
  0xed   : > { %1159 = vrot.lane.b32.xlu1 %v1126_v26, %s11771_s30 }
  0xee   : > { %870 = vrot.lane.b32.xlu0 %v1125_v11, %s11768_s6 }
  0xf1   : > { %2907 = vrot.lane.b32.xlu1 %v3159_v12, %s11766_s14 }
  0xf2   : > { %2620 = vrot.lane.b32.xlu0 %v3158_v9, %s11765_s23 }
  0xf5   : > { %3288 = vrot.lane.b32.xlu1 %v3255_v32, %s11771_s30 }
  0xf6   : > { %3001 = vrot.lane.b32.xlu0 %v3254_v13, %s11768_s6 }
  0xf9   : > { %583 = vrot.lane.b32.xlu1 %v1125_v11, %s11764_s21  ;;  %v386_v11 = vld [vmem:[#allocation2 + $0x147] sm:$0x1] }
  0xfa   : > { %488 = vrot.lane.b32.xlu0 %v12053_v19, %s11765_s23  ;;  %404 = vst.msk [vmem:[#allocation2 + $0x149] sm:$0x1] %vm354_vm1, %v386_v11 }
  0xfd   : > { %967 = vrot.lane.b32.xlu1 %v12117_v49, %s11769_s8 }
  0xfe   : > { %872 = vrot.lane.b32.xlu0 %v1126_v26, %s11768_s6 }
 0x101   : > { %2716 = vrot.lane.b32.xlu1 %v3254_v13, %s11764_s21 }
 0x102   : > { %2622 = vrot.lane.b32.xlu0 %v3159_v12, %s11765_s23  ;;  %v269_v12 = vld [vmem:[%s12007_s9 + $0x50] sm:$0xff] }
 0x103   : > { %v2709_v19 = vpop.permute.xlu1 %2708  ;;  %303 = vst.msk [vmem:[#allocation2 + $0x91] sm:$0xff] %vm292_vm0, %v269_v12 }
 0x104   : > { %v2613_v37 = vpop.permute.xlu0 %2612 }
 0x105   : > { %2660 = vst.msk [vmem:[#allocation3 + $0x80] sm:$0xff] %vm526_vm3, %v2613_v37  ;;  %3098 = vrot.lane.b32.xlu1 %v12123_v52, %s11769_s8 }
 0x106   : > { %3003 = vrot.lane.b32.xlu0 %v3255_v32, %s11768_s6  ;;  %2756 = vst.msk [vmem:[#allocation3 + $0x80] sm:$0xff] %vm623_vm4, %v2709_v19 }
 0x107   : > { %v770_v41 = vpop.permute.xlu1 %769 }
 0x108   : > { %v2615_v40 = vpop.permute.xlu0 %2614 }
 0x109   : > { %2661 = vst.msk [vmem:[#allocation3 + $0x88] sm:$0xff] %vm526_vm3, %v2615_v40  ;;  %680 = vrot.lane.b32.xlu1 %v12117_v49, %s11767_s20 }
 0x10a   : > { %585 = vrot.lane.b32.xlu0 %v1126_v26, %s11764_s21  ;;  %v12377_v26 = vld [vmem:[#allocation2 + $0x112] sm:$0xff] }
 0x10b   : > { %v2902_v44 = vpop.permute.xlu1 %2901  ;;  %v342_v29 = vld [vmem:[#allocation2 + $0x92] sm:$0x1] }
 0x10c   : > { %v675_v45 = vpop.permute.xlu0 %674  ;;  %361 = vst.msk [vmem:[#allocation2 + $0x90] sm:$0x1] %vm354_vm1, %v342_v29 }
 0x10d   : > { %1064 = vrot.lane.b32.xlu1 %v12289_v42, %s11770_s28 }
 0x10e   : > { %969 = vrot.lane.b32.xlu0 %v12099_v43, %s11769_s8 }
 0x10f   : > { %v481_v50 = vpop.permute.xlu1 %480 }
 0x110   : > { %v2808_v49 = vpop.permute.xlu0 %2807  ;;  %528 = vst.msk [vmem:[#allocation3 + $0x8] sm:$0xff] %vm526_vm3, %v481_v50 }
 0x111   : > { %2813 = vrot.lane.b32.xlu1 %v12123_v52, %s11767_s20 }
 0x112   : > { %2718 = vrot.lane.b32.xlu0 %v3255_v32, %s11764_s21  ;;  %v285_v32 = vld [vmem:[%s12007_s9 + $0xd0] sm:$0xff] }
 0x113   : > { %v576_v53 = vpop.permute.xlu1 %575  ;;  %319 = vst.msk [vmem:[#allocation2 + $0x151] sm:$0xff] %vm292_vm0, %v285_v32  ;;  %v12396_v37 = vld [vmem:[#allocation2 + $0x90] sm:$0xff] }
 0x114   : > { %v483_v54 = vpop.permute.xlu0 %482  ;;  %442 = vst.msk [vmem:[#allocation3 + $0x60] sm:$0xff] %vm292_vm0, %v12396_v37 }
 0x115   : > { %529 = vst.msk [vmem:[#allocation3 + $0x10] sm:$0xff] %vm526_vm3, %v483_v54  ;;  %3194 = vrot.lane.b32.xlu1 %v12305_v51, %s11770_s28 }
 0x116   : > { %3100 = vrot.lane.b32.xlu0 %v12107_v47, %s11769_s8 }
 0x117   : > { %v673_v52 = vpop.permute.xlu1 %672 }
 0x118   : > { %v479_v56 = vpop.permute.xlu0 %478 }
 0x119   : > { %527 = vst.msk [vmem:[#allocation3] sm:$0xff] %vm526_vm3, %v479_v56  ;;  %777 = vrot.lane.b32.xlu1 %v12289_v42, %s11766_s14  ;;  %v12433_v56 = vld [vmem:[#allocation2 + $0x98] sm:$0xff] }
 0x11a   : > { %624 = vst.msk [vmem:[#allocation3] sm:$0xff] %vm623_vm4, %v576_v53  ;;  %682 = vrot.lane.b32.xlu0 %v12099_v43, %s11767_s20  ;;  %v350_v39 = vld [vmem:[#allocation2 + $0x152] sm:$0x1] }
 0x11b   : > { %721 = vst.msk [vmem:[#allocation3] sm:$0xff] %vm720_vm5, %v673_v52  ;;  %v2806_v60 = vpop.permute.xlu1 %2805  ;;  %v286_v52 = vld [vmem:[%s12007_s9 + $0xd8] sm:$0xff] }
 0x11c   : > { %v2711_v59 = vpop.permute.xlu0 %2710  ;;  %818 = vst.msk [vmem:[#allocation3] sm:$0xff] %vm817_vm6, %v770_v41 }
 0x11d   : > { %2757 = vst.msk [vmem:[#allocation3 + $0x88] sm:$0xff] %vm623_vm4, %v2711_v59  ;;  %1161 = vrot.lane.b32.xlu1 %v12325_v58, %s11771_s30 }
 0x11e   : > { %2853 = vst.msk [vmem:[#allocation3 + $0x80] sm:$0xff] %vm720_vm5, %v2806_v60  ;;  %2854 = vst.msk [vmem:[#allocation3 + $0x88] sm:$0xff] %vm720_vm5, %v2808_v49  ;;  %1066 = vrot.lane.b32.xlu0 %v12323_v57, %s11770_s28 }
 0x11f   : > { %2949 = vst.msk [vmem:[#allocation3 + $0x80] sm:$0xff] %vm817_vm6, %v2902_v44  ;;  %v772_v61 = vpop.permute.xlu1 %771 }
 0x120   : > { %v867_v43 = vpop.permute.xlu0 %866  ;;  %369 = vst.msk [vmem:[#allocation2 + $0x150] sm:$0x1] %vm354_vm1, %v350_v39 }
 0x121   : > { %915 = vst.msk [vmem:[#allocation3] sm:$0xff] %vm914_vm7, %v867_v43  ;;  %2909 = vrot.lane.b32.xlu1 %v12305_v51, %s11766_s14 }
 0x122   : > { %2815 = vrot.lane.b32.xlu0 %v12107_v47, %s11767_s20  ;;  %320 = vst.msk [vmem:[#allocation2 + $0x159] sm:$0xff] %vm292_vm0, %v286_v52  ;;  %443 = vst.msk [vmem:[#allocation3 + $0x68] sm:$0xff] %vm292_vm0, %v12433_v56 }
 0x123   : > { %v2617_v1 = vpop.permute.xlu1 %2616 }
 0x124   : > { %v578_v0 = vpop.permute.xlu0 %577  ;;  %2662 = vst.msk [vmem:[#allocation3 + $0x90] sm:$0xff] %vm526_vm3, %v2617_v1  ;;  %v12470_v1 = vld [vmem:[#allocation2 + $0x69] sm:$0xff] }
 0x125   : > { %625 = vst.msk [vmem:[#allocation3 + $0x8] sm:$0xff] %vm623_vm4, %v578_v0  ;;  %3290 = vrot.lane.b32.xlu1 %v12343_v63, %s11771_s30 }
 0x126   : > { %722 = vst.msk [vmem:[#allocation3 + $0x8] sm:$0xff] %vm720_vm5, %v675_v45  ;;  %3196 = vrot.lane.b32.xlu0 %v12341_v62, %s11770_s28 }
 0x127   : > { %819 = vst.msk [vmem:[#allocation3 + $0x8] sm:$0xff] %vm817_vm6, %v772_v61  ;;  %v2998_v4 = vpop.permute.xlu1 %2997  ;;  %v12413_v45 = vld [vmem:[#allocation2 + $0x150] sm:$0xff] }
 0x128   : > { %v2904_v47 = vpop.permute.xlu0 %2903  ;;  %3045 = vst.msk [vmem:[#allocation3 + $0x80] sm:$0xff] %vm914_vm7, %v2998_v4 }
 0x129   : > { %2950 = vst.msk [vmem:[#allocation3 + $0x88] sm:$0xff] %vm817_vm6, %v2904_v47  ;;  %779 = vrot.lane.b32.xlu1 %v12323_v57, %s11766_s14  ;;  %v12453_v43 = vld [vmem:[#allocation2 + $0x158] sm:$0xff] }
 0x12a   : > { %490 = vrot.lane.b32.xlu0 %v12289_v42, %s11765_s23  ;;  %2576 = vst.msk [vmem:[#allocation3 + $0xe0] sm:$0xff] %vm292_vm0, %v12413_v45  ;;  %2577 = vst.msk [vmem:[#allocation3 + $0xe8] sm:$0xff] %vm292_vm0, %v12453_v43 }
 0x12b   : > { %v580_v9 = vpop.permute.xlu1 %579 }
 0x12c   : > { %v485_v8 = vpop.permute.xlu0 %484  ;;  %626 = vst.msk [vmem:[#allocation3 + $0x10] sm:$0xff] %vm623_vm4, %v580_v9 }
 0x12d   : > { %530 = vst.msk [vmem:[#allocation3 + $0x18] sm:$0xff] %vm526_vm3, %v485_v8  ;;  %1163 = vrot.lane.b32.xlu1 %v12360_v6, %s11771_s30 }
 0x12e   : > { %874 = vrot.lane.b32.xlu0 %v12325_v58, %s11768_s6 }
 0x12f   : > { %v964_v17 = vpop.permute.xlu1 %963 }
 0x130   : > { %v869_v13 = vpop.permute.xlu0 %868  ;;  %1012 = vst.msk [vmem:[#allocation3] sm:$0xff] %vm1011_vm8, %v964_v17 }
 0x131   : > { %916 = vst.msk [vmem:[#allocation3 + $0x8] sm:$0xff] %vm914_vm7, %v869_v13  ;;  %2911 = vrot.lane.b32.xlu1 %v12341_v62, %s11766_s14 }
 0x132   : > { %2624 = vrot.lane.b32.xlu0 %v12305_v51, %s11765_s23  ;;  %v12429_v51 = vld [vmem:[#allocation2 + $0x61] sm:$0xff] }
 0x133   : > { %v2713_v28 = vpop.permute.xlu1 %2712 }
 0x134   : > { %v2619_v21 = vpop.permute.xlu0 %2618  ;;  %2758 = vst.msk [vmem:[#allocation3 + $0x90] sm:$0xff] %vm623_vm4, %v2713_v28  ;;  %v12498_v28 = vld [vmem:[#allocation2 + $0x122] sm:$0xff] }
 0x135   : > { %2663 = vst.msk [vmem:[#allocation3 + $0x98] sm:$0xff] %vm526_vm3, %v2619_v21  ;;  %3292 = vrot.lane.b32.xlu1 %v12377_v26, %s11771_s30  ;;  %v12496_v21 = vld [vmem:[#allocation2 + $0x129] sm:$0xff] }
 0x136   : > { %3005 = vrot.lane.b32.xlu0 %v12343_v63, %s11768_s6 }
 0x137   : > { %v3095_v34 = vpop.permute.xlu1 %3094 }
 0x138   : > { %v3000_v33 = vpop.permute.xlu0 %2999  ;;  %3142 = vst.msk [vmem:[#allocation3 + $0x80] sm:$0xff] %vm1011_vm8, %v3095_v34 }
 0x139   : > { %3046 = vst.msk [vmem:[#allocation3 + $0x88] sm:$0xff] %vm914_vm7, %v3000_v33  ;;  %587 = vrot.lane.b32.xlu1 %v12325_v58, %s11764_s21  ;;  %v12449_v58 = vld [vmem:[#allocation2 + $0x121] sm:$0xff] }
 0x13a   : > { %492 = vrot.lane.b32.xlu0 %v12323_v57, %s11765_s23 }
 0x13b   : > { %v677_v19 = vpop.permute.xlu1 %676 }
 0x13c   : > { %v582_v36 = vpop.permute.xlu0 %581  ;;  %723 = vst.msk [vmem:[#allocation3 + $0x10] sm:$0xff] %vm720_vm5, %v677_v19 }
 0x13d   : > { %627 = vst.msk [vmem:[#allocation3 + $0x18] sm:$0xff] %vm623_vm4, %v582_v36  ;;  %971 = vrot.lane.b32.xlu1 %v12148_v2, %s11769_s8 }
 0x13e   : > { %876 = vrot.lane.b32.xlu0 %v12360_v6, %s11768_s6 }
 0x13f   : > { %v1061_v41 = vpop.permute.xlu1 %1060 }
 0x140   : > { %v966_v40 = vpop.permute.xlu0 %965  ;;  %1109 = vst.msk [vmem:[#allocation3] sm:$0xff] %vm1108_vm9, %v1061_v41 }
 0x141   : > { %1013 = vst.msk [vmem:[#allocation3 + $0x8] sm:$0xff] %vm1011_vm8, %v966_v40  ;;  %2720 = vrot.lane.b32.xlu1 %v12343_v63, %s11764_s21 }
 0x142   : > { %2626 = vrot.lane.b32.xlu0 %v12341_v62, %s11765_s23 }
 0x143   : > { %v2810_v44 = vpop.permute.xlu1 %2809 }
 0x144   : > { %v2715_v42 = vpop.permute.xlu0 %2714  ;;  %2855 = vst.msk [vmem:[#allocation3 + $0x90] sm:$0xff] %vm720_vm5, %v2810_v44 }
 0x145   : > { %2759 = vst.msk [vmem:[#allocation3 + $0x98] sm:$0xff] %vm623_vm4, %v2715_v42  ;;  %3102 = vrot.lane.b32.xlu1 %v12158_v5, %s11769_s8 }
 0x146   : > { %3007 = vrot.lane.b32.xlu0 %v12377_v26, %s11768_s6 }
 0x147   : > { %v3191_v49 = vpop.permute.xlu1 %3190 }
 0x148   : > { %v3097_v50 = vpop.permute.xlu0 %3096  ;;  %3238 = vst.msk [vmem:[#allocation3 + $0x80] sm:$0xff] %vm1108_vm9, %v3191_v49 }
 0x149   : > { %3143 = vst.msk [vmem:[#allocation3 + $0x88] sm:$0xff] %vm1011_vm8, %v3097_v50  ;;  %684 = vrot.lane.b32.xlu1 %v12148_v2, %s11767_s20 }
 0x14a   : > { %589 = vrot.lane.b32.xlu0 %v12360_v6, %s11764_s21 }
 0x14b   : > { %v774_v54 = vpop.permute.xlu1 %773 }
 0x14c   : > { %v679_v53 = vpop.permute.xlu0 %678  ;;  %820 = vst.msk [vmem:[#allocation3 + $0x10] sm:$0xff] %vm817_vm6, %v774_v54  ;;  %v387_v54 = vld [vmem:[#allocation2 + $0x15f] sm:$0x1] }
 0x14d   : > { %724 = vst.msk [vmem:[#allocation3 + $0x18] sm:$0xff] %vm720_vm5, %v679_v53  ;;  %1068 = vrot.lane.b32.xlu1 %v12429_v51, %s11770_s28 }
 0x14e   : > { %973 = vrot.lane.b32.xlu0 %v12170_v7, %s11769_s8  ;;  %405 = vst.msk [vmem:[#allocation2 + $0x161] sm:$0x1] %vm354_vm1, %v387_v54 }
 0x14f   : > { %v1158_v57 = vpop.permute.xlu1 %1157 }
 0x150   : > { %v1063_v2 = vpop.permute.xlu0 %1062  ;;  %1206 = vst.msk [vmem:[#allocation3] sm:$0xff] %vm1205_vm10, %v1158_v57 }
 0x151   : > { %1110 = vst.msk [vmem:[#allocation3 + $0x8] sm:$0xff] %vm1108_vm9, %v1063_v2  ;;  %2817 = vrot.lane.b32.xlu1 %v12158_v5, %s11767_s20 }
 0x152   : > { %2722 = vrot.lane.b32.xlu0 %v12377_v26, %s11764_s21 }
 0x153   : > { %v2906_v60 = vpop.permute.xlu1 %2905 }
 0x154   : > { %v2812_v59 = vpop.permute.xlu0 %2811  ;;  %2951 = vst.msk [vmem:[#allocation3 + $0x90] sm:$0xff] %vm817_vm6, %v2906_v60 }
 0x155   : > { %2856 = vst.msk [vmem:[#allocation3 + $0x98] sm:$0xff] %vm720_vm5, %v2812_v59  ;;  %3198 = vrot.lane.b32.xlu1 %v12449_v58, %s11770_s28 }
 0x156   : > { %3104 = vrot.lane.b32.xlu0 %v12183_v10, %s11769_s8 }
 0x157   : > { %v3287_v61 = vpop.permute.xlu1 %3286  ;;  %v1222_v62 = vld [vmem:[#allocation3] sm:$0xff] }
 0x158   : > { %v3193_v5 = vpop.permute.xlu0 %3192  ;;  %3334 = vst.msk [vmem:[#allocation3 + $0x80] sm:$0xff] %vm1205_vm10, %v3287_v61  ;;  %v1244_v63 = vsel %vm1242_vm11, %v1222_v62, 0 }
 0x159   : > { %3239 = vst.msk [vmem:[#allocation3 + $0x88] sm:$0xff] %vm1108_vm9, %v3193_v5  ;;  %781 = vrot.lane.b32.xlu1 %v12429_v51, %s11766_s14  ;;  %v12468_v0 = vand.u32 4294901760, %v1244_v63 }
 0x15a   : > { %686 = vrot.lane.b32.xlu0 %v12170_v7, %s11767_s20 }
 0x15b   : > { %v776_v4 = vpop.permute.xlu1 %775  ;;  %v12475_v6 = vsub.f32 %v1244_v63, %v12468_v0  ;;  %v12550_v63 = vld [vmem:[#allocation2 + $0x12a] sm:$0xff] }
 0x15c   : > { %v487_v47 = vpop.permute.xlu0 %486  ;;  %821 = vst.msk [vmem:[#allocation3 + $0x18] sm:$0xff] %vm817_vm6, %v776_v4 }
 0x15d   : > { %531 = vst.msk [vmem:[#allocation3 + $0x20] sm:$0xff] %vm526_vm3, %v487_v47  ;;  %1165 = vrot.lane.b32.xlu1 %v12472_v3, %s11771_s30  ;;  %v16070_v7 = vand.u32 4294901760, %v12475_v6 }
 0x15e   : > { %1070 = vrot.lane.b32.xlu0 %v12470_v1, %s11770_s28 }
 0x15f   : > { %v1160_v9 = vpop.permute.xlu1 %1159  ;;  %v1368_v11 = vsub.f32 %v12475_v6, %v16070_v7  ;;  %v3350_v12 = vld [vmem:[#allocation3 + $0x80] sm:$0xff] }
 0x160   : > { %v871_v8 = vpop.permute.xlu0 %870  ;;  %1207 = vst.msk [vmem:[#allocation3 + $0x8] sm:$0xff] %vm1205_vm10, %v1160_v9  ;;  %v3367_v13 = vsel %vm1242_vm11, %v3350_v12, 0 }
 0x161   : > { %917 = vst.msk [vmem:[#allocation3 + $0x10] sm:$0xff] %vm914_vm7, %v871_v8  ;;  %2913 = vrot.lane.b32.xlu1 %v12449_v58, %s11766_s14  ;;  %v1369_v17 = vand.u32 4294901760, %v1368_v11  ;;  %v12494_v26 = vand.u32 4294901760, %v3367_v13 }
 0x162   : > { %2819 = vrot.lane.b32.xlu0 %v12183_v10, %s11767_s20  ;;  %v379_v10 = vld [vmem:[#allocation2 + $0x9f] sm:$0x1] }
 0x163   : > { %10085 = vmatprep.mubr.f32.mxu0 %v1369_v17  ;;  %v2908_v32 = vpop.permute.xlu1 %2907  ;;  %v12501_v33 = vsub.f32 %v3367_v13, %v12494_v26  ;;  %397 = vst.msk [vmem:[#allocation2 + $0xa1] sm:$0x1] %vm354_vm1, %v379_v10 }
 0x164   : > { %v2621_v29 = vpop.permute.xlu0 %2620  ;;  %2952 = vst.msk [vmem:[#allocation3 + $0x98] sm:$0xff] %vm817_vm6, %v2908_v32 }
 0x165   : > { %2664 = vst.msk [vmem:[#allocation3 + $0xa0] sm:$0xff] %vm526_vm3, %v2621_v29  ;;  %3294 = vrot.lane.b32.xlu1 %v12498_v28, %s11771_s30  ;;  %v16068_v34 = vand.u32 4294901760, %v12501_v33 }
 0x166   : > { %3200 = vrot.lane.b32.xlu0 %v12496_v21, %s11770_s28 }
 0x167   : > { %v3289_v19 = vpop.permute.xlu1 %3288  ;;  %v3487_v39 = vsub.f32 %v12501_v33, %v16068_v34  ;;  %v1223_v40 = vld [vmem:[#allocation3 + $0x8] sm:$0xff] }
 0x168   : > { %v3002_v36 = vpop.permute.xlu0 %3001  ;;  %3335 = vst.msk [vmem:[#allocation3 + $0x88] sm:$0xff] %vm1205_vm10, %v3289_v19  ;;  %v1247_v41 = vsel %vm1242_vm11, %v1223_v40, 0 }
 0x169   : > { %3047 = vst.msk [vmem:[#allocation3 + $0x90] sm:$0xff] %vm914_vm7, %v3002_v36  ;;  %783 = vrot.lane.b32.xlu1 %v12470_v1, %s11766_s14  ;;  %v3488_v42 = vand.u32 4294901760, %v3487_v39  ;;  %v12521_v44 = vand.u32 4294901760, %v1247_v41 }
 0x16a   : > { %494 = vrot.lane.b32.xlu0 %v12429_v51, %s11765_s23  ;;  %v271_v51 = vld [vmem:[%s12007_s9 + $0x60] sm:$0xff] }
 0x16b   : > { %10289 = vmatprep.mubr.f32.mxu1 %v3488_v42  ;;  %v584_v49 = vpop.permute.xlu1 %583  ;;  %v12526_v53 = vsub.f32 %v1247_v41, %v12521_v44  ;;  %305 = vst.msk [vmem:[#allocation2 + $0xa9] sm:$0xff] %vm292_vm0, %v271_v51  ;;  %v272_v42 = vld [vmem:[%s12007_s9 + $0x68] sm:$0xff] }
 0x16c   : > { %v489_v50 = vpop.permute.xlu0 %488  ;;  %628 = vst.msk [vmem:[#allocation3 + $0x20] sm:$0xff] %vm623_vm4, %v584_v49 }
 0x16d   : > { %532 = vst.msk [vmem:[#allocation3 + $0x28] sm:$0xff] %vm526_vm3, %v489_v50  ;;  %1167 = vrot.lane.b32.xlu1 %v12523_v48, %s11771_s30  ;;  %v16066_v52 = vand.u32 4294901760, %v12526_v53  ;;  %v12609_v50 = vld [vmem:[#allocation2 + $0x79] sm:$0xff] }
 0x16e   : > { %878 = vrot.lane.b32.xlu0 %v12472_v3, %s11768_s6  ;;  %306 = vst.msk [vmem:[#allocation2 + $0xb1] sm:$0xff] %vm292_vm0, %v272_v42  ;;  %v12680_v42 = vld [vmem:[#allocation2 + $0x141] sm:$0xff] }
 0x16f   : > { %v968_v57 = vpop.permute.xlu1 %967  ;;  %v1378_v59 = vsub.f32 %v12526_v53, %v16066_v52  ;;  %v3351_v60 = vld [vmem:[#allocation3 + $0x88] sm:$0xff] }
 0x170   : > { %v873_v2 = vpop.permute.xlu0 %872  ;;  %1014 = vst.msk [vmem:[#allocation3 + $0x10] sm:$0xff] %vm1011_vm8, %v968_v57  ;;  %v3370_v5 = vsel %vm1242_vm11, %v3351_v60, 0  ;;  %v12629_v57 = vld [vmem:[#allocation2 + $0x139] sm:$0xff] }
 0x171   : > { %918 = vst.msk [vmem:[#allocation3 + $0x18] sm:$0xff] %vm914_vm7, %v873_v2  ;;  %2915 = vrot.lane.b32.xlu1 %v12496_v21, %s11766_s14  ;;  %v1379_v61 = vand.u32 4294901760, %v1378_v59  ;;  %v12548_v62 = vand.u32 4294901760, %v3370_v5  ;;  %v288_v2 = vld [vmem:[%s12007_s9 + $0xe8] sm:$0xff] }
 0x172   : > { %2628 = vrot.lane.b32.xlu0 %v12449_v58, %s11765_s23  ;;  %v343_v9 = vld [vmem:[#allocation2 + $0xaa] sm:$0x1]  ;;  %v287_v58 = vld [vmem:[%s12007_s9 + $0xe0] sm:$0xff]  ;;  %322 = vst.msk [vmem:[#allocation2 + $0x171] sm:$0xff] %vm292_vm0, %v288_v2 }
 0x173   : > { %10086 = vmatmul.mubr.f32.vlgmr.msra.gmra.mrb[0].mxu0 %v1379_v61  ;;  %v2717_v4 = vpop.permute.xlu1 %2716  ;;  %v12553_v8 = vsub.f32 %v3370_v5, %v12548_v62  ;;  %362 = vst.msk [vmem:[#allocation2 + $0xa8] sm:$0x1] %vm354_vm1, %v343_v9 }
 0x174   : > { %v2623_v47 = vpop.permute.xlu0 %2622  ;;  %2760 = vst.msk [vmem:[#allocation3 + $0xa0] sm:$0xff] %vm623_vm4, %v2717_v4 }
 0x175   : > { %2665 = vst.msk [vmem:[#allocation3 + $0xa8] sm:$0xff] %vm526_vm3, %v2623_v47  ;;  %3296 = vrot.lane.b32.xlu1 %v12550_v63, %s11771_s30  ;;  %v16065_v11 = vand.u32 4294901760, %v12553_v8  ;;  %v12613_v51 = vld [vmem:[#allocation2 + $0xb0] sm:$0xff] }
 0x176   : > { %3009 = vrot.lane.b32.xlu0 %v12498_v28, %s11768_s6  ;;  %321 = vst.msk [vmem:[#allocation2 + $0x169] sm:$0xff] %vm292_vm0, %v287_v58  ;;  %445 = vst.msk [vmem:[#allocation3 + $0x78] sm:$0xff] %vm292_vm0, %v12613_v51  ;;  %v12654_v58 = vld [vmem:[#allocation2 + $0x81] sm:$0xff]  ;;  %v380_v2 = vld [vmem:[#allocation2 + $0xb7] sm:$0x1] }
 0x177   : > { %v3099_v13 = vpop.permute.xlu1 %3098  ;;  %v3497_v17 = vsub.f32 %v12553_v8, %v16065_v11  ;;  %398 = vst.msk [vmem:[#allocation2 + $0xb9] sm:$0x1] %vm354_vm1, %v380_v2 }
 0x178   : > { %v3004_v12 = vpop.permute.xlu0 %3003  ;;  %3144 = vst.msk [vmem:[#allocation3 + $0x90] sm:$0xff] %vm1011_vm8, %v3099_v13 }
 0x179   : > { %3048 = vst.msk [vmem:[#allocation3 + $0x98] sm:$0xff] %vm914_vm7, %v3004_v12  ;;  %591 = vrot.lane.b32.xlu1 %v12472_v3, %s11764_s21  ;;  %v3498_v29 = vand.u32 4294901760, %v3497_v17  ;;  %v12656_v12 = vld [vmem:[#allocation2 + $0x7a] sm:$0xff] }
 0x17a   : > { %496 = vrot.lane.b32.xlu0 %v12470_v1, %s11765_s23  ;;  %v12576_v36 = vld [vmem:[#allocation2 + $0xa8] sm:$0xff] }
 0x17b   : > { %10290 = vmatmul.mubr.f32.vlgmr.msra.gmra.mrb[0].mxu1 %v3498_v29  ;;  %v681_v10 = vpop.permute.xlu1 %680  ;;  %444 = vst.msk [vmem:[#allocation3 + $0x70] sm:$0xff] %vm292_vm0, %v12576_v36 }
 0x17c   : > { %v586_v32 = vpop.permute.xlu0 %585  ;;  %725 = vst.msk [vmem:[#allocation3 + $0x20] sm:$0xff] %vm720_vm5, %v681_v10 }
 0x17d   : > { %629 = vst.msk [vmem:[#allocation3 + $0x28] sm:$0xff] %vm623_vm4, %v586_v32  ;;  %v351_v19 = vld [vmem:[#allocation2 + $0x16a] sm:$0x1]  ;;  %975 = vrot.lane.b32.xlu1 %v12264_v35, %s11769_s8  ;;  %v12633_v5 = vld [vmem:[#allocation2 + $0x170] sm:$0xff] }
 0x17e   : > { %880 = vrot.lane.b32.xlu0 %v12523_v48, %s11768_s6  ;;  %370 = vst.msk [vmem:[#allocation2 + $0x168] sm:$0x1] %vm354_vm1, %v351_v19  ;;  %v12635_v61 = vld [vmem:[#allocation2 + $0x169] sm:$0xff] }
 0x17f   : > { %v1065_v3 = vpop.permute.xlu1 %1064  ;;  %334 = vst.msk [vmem:[#allocation2 + $0x199] sm:$0xff] %vm292_vm0, %v12635_v61  ;;  %2579 = vst.msk [vmem:[#allocation3 + $0xf8] sm:$0xff] %vm292_vm0, %v12633_v5 }
 0x180   : > { %v970_v1 = vpop.permute.xlu0 %969  ;;  %1111 = vst.msk [vmem:[#allocation3 + $0x10] sm:$0xff] %vm1108_vm9, %v1065_v3 }
 0x181   : > { %1015 = vst.msk [vmem:[#allocation3 + $0x18] sm:$0xff] %vm1011_vm8, %v970_v1  ;;  %2724 = vrot.lane.b32.xlu1 %v12498_v28, %s11764_s21 }
 0x182   : > { %2630 = vrot.lane.b32.xlu0 %v12496_v21, %s11765_s23 }
 0x183   : > { %v2814_v40 = vpop.permute.xlu1 %2813 }
 0x184   : > { %v2719_v39 = vpop.permute.xlu0 %2718  ;;  %2857 = vst.msk [vmem:[#allocation3 + $0xa0] sm:$0xff] %vm720_vm5, %v2814_v40 }
 0x185   : > { %2761 = vst.msk [vmem:[#allocation3 + $0xa8] sm:$0xff] %vm623_vm4, %v2719_v39  ;;  %v12593_v41 = vld [vmem:[#allocation2 + $0x168] sm:$0xff]  ;;  %3106 = vrot.lane.b32.xlu1 %v12275_v38, %s11769_s8 }
 0x186   : > { %3011 = vrot.lane.b32.xlu0 %v12550_v63, %s11768_s6  ;;  %2578 = vst.msk [vmem:[#allocation3 + $0xf0] sm:$0xff] %vm292_vm0, %v12593_v41 }
 0x187   : > { %v3195_v28 = vpop.permute.xlu1 %3194 }
 0x188   : > { %v3101_v21 = vpop.permute.xlu0 %3100  ;;  %3240 = vst.msk [vmem:[#allocation3 + $0x90] sm:$0xff] %vm1108_vm9, %v3195_v28 }
 0x189   : > { %3145 = vst.msk [vmem:[#allocation3 + $0x98] sm:$0xff] %vm1011_vm8, %v3101_v21  ;;  %688 = vrot.lane.b32.xlu1 %v12264_v35, %s11767_s20  ;;  %v12682_v21 = vld [vmem:[#allocation2 + $0x13a] sm:$0xff] }
 0x18a   : > { %593 = vrot.lane.b32.xlu0 %v12523_v48, %s11764_s21 }
 0x18b   : > { %v778_v54 = vpop.permute.xlu1 %777 }
 0x18c   : > { %v683_v49 = vpop.permute.xlu0 %682  ;;  %822 = vst.msk [vmem:[#allocation3 + $0x20] sm:$0xff] %vm817_vm6, %v778_v54 }
 0x18d   : > { %726 = vst.msk [vmem:[#allocation3 + $0x28] sm:$0xff] %vm720_vm5, %v683_v49  ;;  %1072 = vrot.lane.b32.xlu1 %v12609_v50, %s11770_s28 }
 0x18e   : > { %977 = vrot.lane.b32.xlu0 %v12291_v46, %s11769_s8 }
 0x18f   : > { %v1162_v48 = vpop.permute.xlu1 %1161 }
 0x190   : > { %v1067_v35 = vpop.permute.xlu0 %1066  ;;  %1208 = vst.msk [vmem:[#allocation3 + $0x10] sm:$0xff] %vm1205_vm10, %v1162_v48 }
 0x191   : > { %1112 = vst.msk [vmem:[#allocation3 + $0x18] sm:$0xff] %vm1108_vm9, %v1067_v35  ;;  %2821 = vrot.lane.b32.xlu1 %v12275_v38, %s11767_s20 }
 0x192   : > { %2726 = vrot.lane.b32.xlu0 %v12550_v63, %s11764_s21 }
 0x193   : > { %v2910_v60 = vpop.permute.xlu1 %2909 }
 0x194   : > { %v2816_v59 = vpop.permute.xlu0 %2815  ;;  %2953 = vst.msk [vmem:[#allocation3 + $0xa0] sm:$0xff] %vm817_vm6, %v2910_v60 }
 0x195   : > { %2858 = vst.msk [vmem:[#allocation3 + $0xa8] sm:$0xff] %vm720_vm5, %v2816_v59  ;;  %3202 = vrot.lane.b32.xlu1 %v12629_v57, %s11770_s28 }
 0x196   : > { %3108 = vrot.lane.b32.xlu0 %v12308_v55, %s11769_s8 }
 0x197   : > { %v3291_v63 = vpop.permute.xlu1 %3290  ;;  %v1224_v47 = vld [vmem:[#allocation3 + $0x10] sm:$0xff] }
 0x198   : > { %v3197_v38 = vpop.permute.xlu0 %3196  ;;  %3336 = vst.msk [vmem:[#allocation3 + $0x90] sm:$0xff] %vm1205_vm10, %v3291_v63  ;;  %v1250_v4 = vsel %vm1242_vm11, %v1224_v47, 0 }
 0x199   : > { %3241 = vst.msk [vmem:[#allocation3 + $0x98] sm:$0xff] %vm1108_vm9, %v3197_v38  ;;  %785 = vrot.lane.b32.xlu1 %v12609_v50, %s11766_s14  ;;  %v12652_v9 = vand.u32 4294901760, %v1250_v4 }
 0x19a   : > { %690 = vrot.lane.b32.xlu0 %v12291_v46, %s11767_s20 }
 0x19b   : > { %v780_v17 = vpop.permute.xlu1 %779  ;;  %v12659_v29 = vsub.f32 %v1250_v4, %v12652_v9 }
 0x19c   : > { %v491_v13 = vpop.permute.xlu0 %490  ;;  %823 = vst.msk [vmem:[#allocation3 + $0x28] sm:$0xff] %vm817_vm6, %v780_v17 }
 0x19d   : > { %533 = vst.msk [vmem:[#allocation3 + $0x30] sm:$0xff] %vm526_vm3, %v491_v13  ;;  %1169 = vrot.lane.b32.xlu1 %v12656_v12, %s11771_s30  ;;  %v16064_v46 = vand.u32 4294901760, %v12659_v29  ;;  %v12711_v13 = vld [vmem:[#allocation2 + $0x82] sm:$0xff] }
 0x19e   : > { %1074 = vrot.lane.b32.xlu0 %v12654_v58, %s11770_s28 }
 0x19f   : > { %v1164_v10 = vpop.permute.xlu1 %1163  ;;  %v1388_v19 = vsub.f32 %v12659_v29, %v16064_v46  ;;  %v3352_v1 = vld [vmem:[#allocation3 + $0x90] sm:$0xff] }
 0x1a0   : > { %v875_v32 = vpop.permute.xlu0 %874  ;;  %1209 = vst.msk [vmem:[#allocation3 + $0x18] sm:$0xff] %vm1205_vm10, %v1164_v10  ;;  %v3373_v3 = vsel %vm1242_vm11, %v3352_v1, 0 }
 0x1a1   : > { %919 = vst.msk [vmem:[#allocation3 + $0x20] sm:$0xff] %vm914_vm7, %v875_v32  ;;  %2917 = vrot.lane.b32.xlu1 %v12629_v57, %s11766_s14  ;;  %v1389_v39 = vand.u32 4294901760, %v1388_v19  ;;  %v12678_v40 = vand.u32 4294901760, %v3373_v3  ;;  %v388_v19 = vld [vmem:[#allocation2 + $0x177] sm:$0x1] }
 0x1a2   : > { %2823 = vrot.lane.b32.xlu0 %v12308_v55, %s11767_s20  ;;  %v12689_v55 = vld [vmem:[#allocation2 + $0x171] sm:$0xff]  ;;  %406 = vst.msk [vmem:[#allocation2 + $0x179] sm:$0x1] %vm354_vm1, %v388_v19 }
 0x1a3   : > { %v2912_v49 = vpop.permute.xlu1 %2911  ;;  %10088 = vmatprep.mubr.f32.mxu0 %v1389_v39  ;;  %v12685_v54 = vsub.f32 %v3373_v3, %v12678_v40  ;;  %335 = vst.msk [vmem:[#allocation2 + $0x1a1] sm:$0xff] %vm292_vm0, %v12689_v55 }
 0x1a4   : > { %v2625_v28 = vpop.permute.xlu0 %2624  ;;  %2954 = vst.msk [vmem:[#allocation3 + $0xa8] sm:$0xff] %vm817_vm6, %v2912_v49 }
 0x1a5   : > { %2666 = vst.msk [vmem:[#allocation3 + $0xb0] sm:$0xff] %vm526_vm3, %v2625_v28  ;;  %3298 = vrot.lane.b32.xlu1 %v12682_v21, %s11771_s30  ;;  %v16061_v35 = vand.u32 4294901760, %v12685_v54 }
 0x1a6   : > { %3204 = vrot.lane.b32.xlu0 %v12680_v42, %s11770_s28 }
 0x1a7   : > { %v3293_v59 = vpop.permute.xlu1 %3292  ;;  %v3507_v60 = vsub.f32 %v12685_v54, %v16061_v35  ;;  %v1225_v38 = vld [vmem:[#allocation3 + $0x18] sm:$0xff] }
 0x1a8   : > { %v3006_v48 = vpop.permute.xlu0 %3005  ;;  %3337 = vst.msk [vmem:[#allocation3 + $0x98] sm:$0xff] %vm1205_vm10, %v3293_v59  ;;  %v1253_v63 = vsel %vm1242_vm11, %v1225_v38, 0  ;;  %v3261_v59 = vld [vmem:[#allocation2 + $0x142] sm:$0xff] }
 0x1a9   : > { %3049 = vst.msk [vmem:[#allocation3 + $0xa0] sm:$0xff] %vm914_vm7, %v3006_v48  ;;  %787 = vrot.lane.b32.xlu1 %v12654_v58, %s11766_s14  ;;  %v3508_v47 = vand.u32 4294901760, %v3507_v60  ;;  %v12709_v4 = vand.u32 4294901760, %v1253_v63 }
 0x1aa   : > { %498 = vrot.lane.b32.xlu0 %v12609_v50, %s11765_s23 }
 0x1ab   : > { %10292 = vmatprep.mubr.f32.mxu1 %v3508_v47  ;;  %v588_v32 = vpop.permute.xlu1 %587  ;;  %v12714_v10 = vsub.f32 %v1253_v63, %v12709_v4  ;;  %v289_v47 = vld [vmem:[%s12007_s9 + $0xf0] sm:$0xff] }
 0x1ac   : > { %v493_v17 = vpop.permute.xlu0 %492  ;;  %630 = vst.msk [vmem:[#allocation3 + $0x30] sm:$0xff] %vm623_vm4, %v588_v32 }
 0x1ad   : > { %534 = vst.msk [vmem:[#allocation3 + $0x38] sm:$0xff] %vm526_vm3, %v493_v17  ;;  %1171 = vrot.lane.b32.xlu1 %v12711_v13, %s11771_s30  ;;  %v16060_v50 = vand.u32 4294901760, %v12714_v10 }
 0x1ae   : > { %882 = vrot.lane.b32.xlu0 %v12656_v12, %s11768_s6  ;;  %323 = vst.msk [vmem:[#allocation2 + $0x181] sm:$0xff] %vm292_vm0, %v289_v47 }
 0x1af   : > { %v972_v3 = vpop.permute.xlu1 %971  ;;  %v1398_v39 = vsub.f32 %v12714_v10, %v16060_v50  ;;  %v3353_v28 = vld [vmem:[#allocation3 + $0x98] sm:$0xff] }
 0x1b0   : > { %v877_v1 = vpop.permute.xlu0 %876  ;;  %1016 = vst.msk [vmem:[#allocation3 + $0x20] sm:$0xff] %vm1011_vm8, %v972_v3  ;;  %v3376_v49 = vsel %vm1242_vm11, %v3353_v28, 0 }
 0x1b1   : > { %920 = vst.msk [vmem:[#allocation3 + $0x28] sm:$0xff] %vm914_vm7, %v877_v1  ;;  %2919 = vrot.lane.b32.xlu1 %v12680_v42, %s11766_s14  ;;  %v1399_v2 = vand.u32 4294901760, %v1398_v39  ;;  %v12734_v48 = vand.u32 4294901760, %v3376_v49 }
 0x1b2   : > { %2632 = vrot.lane.b32.xlu0 %v12629_v57, %s11765_s23 }
 0x1b3   : > { %v2721_v38 = vpop.permute.xlu1 %2720  ;;  %10089 = vmatmul.mubr.f32.gmra.mrb[2].mxu0 %v1399_v2  ;;  %v12737_v63 = vsub.f32 %v3376_v49, %v12734_v48 }
 0x1b4   : > { %v2627_v60 = vpop.permute.xlu0 %2626  ;;  %2762 = vst.msk [vmem:[#allocation3 + $0xb0] sm:$0xff] %vm623_vm4, %v2721_v38 }
 0x1b5   : > { %2667 = vst.msk [vmem:[#allocation3 + $0xb8] sm:$0xff] %vm526_vm3, %v2627_v60  ;;  %3300 = vrot.lane.b32.xlu1 %v3261_v59, %s11771_s30  ;;  %v16056_v57 = vand.u32 4294901760, %v12737_v63  ;;  %v352_v28 = vld [vmem:[#allocation2 + $0x182] sm:$0x1] }
 0x1b6   : > { %3013 = vrot.lane.b32.xlu0 %v12682_v21, %s11768_s6  ;;  %371 = vst.msk [vmem:[#allocation2 + $0x180] sm:$0x1] %vm354_vm1, %v352_v28 }
 0x1b7   : > { %v3103_v32 = vpop.permute.xlu1 %3102  ;;  %v3517_v19 = vsub.f32 %v12737_v63, %v16056_v57 }
 0x1b8   : > { %v3008_v17 = vpop.permute.xlu0 %3007  ;;  %3146 = vst.msk [vmem:[#allocation3 + $0xa0] sm:$0xff] %vm1011_vm8, %v3103_v32 }
 0x1b9   : > { %3050 = vst.msk [vmem:[#allocation3 + $0xa8] sm:$0xff] %vm914_vm7, %v3008_v17  ;;  %595 = vrot.lane.b32.xlu1 %v12656_v12, %s11764_s21  ;;  %v3518_v1 = vand.u32 4294901760, %v3517_v19  ;;  %v290_v17 = vld [vmem:[%s12007_s9 + $0xf8] sm:$0xff] }
 0x1ba   : > { %500 = vrot.lane.b32.xlu0 %v12654_v58, %s11765_s23  ;;  %324 = vst.msk [vmem:[#allocation2 + $0x189] sm:$0xff] %vm292_vm0, %v290_v17 }
 0x1bb   : > { %10293 = vmatmul.mubr.f32.gmra.mrb[2].mxu1 %v3518_v1  ;;  %v685_v39 = vpop.permute.xlu1 %684 }
 0x1bc   : > { %v590_v3 = vpop.permute.xlu0 %589  ;;  %727 = vst.msk [vmem:[#allocation3 + $0x30] sm:$0xff] %vm720_vm5, %v685_v39 }
 0x1bd   : > { %631 = vst.msk [vmem:[#allocation3 + $0x38] sm:$0xff] %vm623_vm4, %v590_v3  ;;  %979 = vrot.lane.b32.xlu1 %v12396_v37, %s11769_s8 }
 0x1be   : > { %884 = vrot.lane.b32.xlu0 %v12711_v13, %s11768_s6 }
 0x1bf   : > { %v1069_v49 = vpop.permute.xlu1 %1068 }
 0x1c0   : > { %v974_v58 = vpop.permute.xlu0 %973  ;;  %1113 = vst.msk [vmem:[#allocation3 + $0x20] sm:$0xff] %vm1108_vm9, %v1069_v49  ;;  %v12814_v49 = vld [vmem:[#allocation2 + $0x92] sm:$0xff] }
 0x1c1   : > { %1017 = vst.msk [vmem:[#allocation3 + $0x28] sm:$0xff] %vm1011_vm8, %v974_v58  ;;  %2728 = vrot.lane.b32.xlu1 %v12682_v21, %s11764_s21  ;;  %v12812_v58 = vld [vmem:[#allocation2 + $0x99] sm:$0xff]  ;;  %v3266_v46 = vld [vmem:[#allocation2 + $0x182] sm:$0xff] }
 0x1c2   : > { %2634 = vrot.lane.b32.xlu0 %v12680_v42, %s11765_s23  ;;  %v12780_v42 = vld [vmem:[#allocation2 + $0x91] sm:$0xff] }
 0x1c3   : > { %v2818_v2 = vpop.permute.xlu1 %2817 }
 0x1c4   : > { %v2723_v12 = vpop.permute.xlu0 %2722  ;;  %2859 = vst.msk [vmem:[#allocation3 + $0xb0] sm:$0xff] %vm720_vm5, %v2818_v2 }
 0x1c5   : > { %2763 = vst.msk [vmem:[#allocation3 + $0xb8] sm:$0xff] %vm623_vm4, %v2723_v12  ;;  %3110 = vrot.lane.b32.xlu1 %v12413_v45, %s11769_s8 }
 0x1c6   : > { %3015 = vrot.lane.b32.xlu0 %v3261_v59, %s11768_s6 }
 0x1c7   : > { %v3199_v38 = vpop.permute.xlu1 %3198 }
 0x1c8   : > { %v3105_v60 = vpop.permute.xlu0 %3104  ;;  %3242 = vst.msk [vmem:[#allocation3 + $0xa0] sm:$0xff] %vm1108_vm9, %v3199_v38 }
 0x1c9   : > { %3147 = vst.msk [vmem:[#allocation3 + $0xa8] sm:$0xff] %vm1011_vm8, %v3105_v60  ;;  %692 = vrot.lane.b32.xlu1 %v12396_v37, %s11767_s20  ;;  %v12795_v37 = vld [vmem:[#allocation2 + $0x151] sm:$0xff] }
 0x1ca   : > { %597 = vrot.lane.b32.xlu0 %v12711_v13, %s11764_s21 }
 0x1cb   : > { %v782_v47 = vpop.permute.xlu1 %781 }
 0x1cc   : > { %v687_v21 = vpop.permute.xlu0 %686  ;;  %824 = vst.msk [vmem:[#allocation3 + $0x30] sm:$0xff] %vm817_vm6, %v782_v47 }
 0x1cd   : > { %728 = vst.msk [vmem:[#allocation3 + $0x38] sm:$0xff] %vm720_vm5, %v687_v21  ;;  %1076 = vrot.lane.b32.xlu1 %v12780_v42, %s11770_s28 }
 0x1ce   : > { %981 = vrot.lane.b32.xlu0 %v12433_v56, %s11769_s8 }
 0x1cf   : > { %v1166_v32 = vpop.permute.xlu1 %1165 }
 0x1d0   : > { %v1071_v13 = vpop.permute.xlu0 %1070  ;;  %1210 = vst.msk [vmem:[#allocation3 + $0x20] sm:$0xff] %vm1205_vm10, %v1166_v32 }
 0x1d1   : > { %1114 = vst.msk [vmem:[#allocation3 + $0x28] sm:$0xff] %vm1108_vm9, %v1071_v13  ;;  %2825 = vrot.lane.b32.xlu1 %v12413_v45, %s11767_s20 }
 0x1d2   : > { %2730 = vrot.lane.b32.xlu0 %v3261_v59, %s11764_s21 }
 0x1d3   : > { %v2914_v1 = vpop.permute.xlu1 %2913 }
 0x1d4   : > { %v2820_v19 = vpop.permute.xlu0 %2819  ;;  %2955 = vst.msk [vmem:[#allocation3 + $0xb0] sm:$0xff] %vm817_vm6, %v2914_v1  ;;  %v12838_v1 = vld [vmem:[#allocation2 + $0x159] sm:$0xff] }
 0x1d5   : > { %2860 = vst.msk [vmem:[#allocation3 + $0xb8] sm:$0xff] %vm720_vm5, %v2820_v19  ;;  %3206 = vrot.lane.b32.xlu1 %v12795_v37, %s11770_s28 }
 0x1d6   : > { %3112 = vrot.lane.b32.xlu0 %v12453_v43, %s11769_s8 }
 0x1d7   : > { %v3295_v39 = vpop.permute.xlu1 %3294  ;;  %v1226_v59 = vld [vmem:[#allocation3 + $0x20] sm:$0xff] }
 0x1d8   : > { %v3201_v3 = vpop.permute.xlu0 %3200  ;;  %3338 = vst.msk [vmem:[#allocation3 + $0xa0] sm:$0xff] %vm1205_vm10, %v3295_v39  ;;  %v1256_v45 = vsel %vm1242_vm11, %v1226_v59, 0 }
 0x1d9   : > { %3243 = vst.msk [vmem:[#allocation3 + $0xa8] sm:$0xff] %vm1108_vm9, %v3201_v3  ;;  %789 = vrot.lane.b32.xlu1 %v12780_v42, %s11766_s14  ;;  %v12810_v28 = vand.u32 4294901760, %v1256_v45  ;;  %v12840_v3 = vld [vmem:[#allocation2 + $0x152] sm:$0xff] }
 0x1da   : > { %694 = vrot.lane.b32.xlu0 %v12433_v56, %s11767_s20 }
 0x1db   : > { %v784_v2 = vpop.permute.xlu1 %783  ;;  %v12817_v60 = vsub.f32 %v1256_v45, %v12810_v28 }
 0x1dc   : > { %v495_v12 = vpop.permute.xlu0 %494  ;;  %825 = vst.msk [vmem:[#allocation3 + $0x38] sm:$0xff] %vm817_vm6, %v784_v2 }
 0x1dd   : > { %535 = vst.msk [vmem:[#allocation3 + $0x40] sm:$0xff] %vm526_vm3, %v495_v12  ;;  %1173 = vrot.lane.b32.xlu1 %v12814_v49, %s11771_s30  ;;  %v16055_v56 = vand.u32 4294901760, %v12817_v60 }
 0x1de   : > { %1078 = vrot.lane.b32.xlu0 %v12812_v58, %s11770_s28 }
 0x1df   : > { %v1168_v21 = vpop.permute.xlu1 %1167  ;;  %v1408_v47 = vsub.f32 %v12817_v60, %v16055_v56  ;;  %v3354_v17 = vld [vmem:[#allocation3 + $0xa0] sm:$0xff] }
 0x1e0   : > { %v879_v38 = vpop.permute.xlu0 %878  ;;  %1211 = vst.msk [vmem:[#allocation3 + $0x28] sm:$0xff] %vm1205_vm10, %v1168_v21  ;;  %v3379_v13 = vsel %vm1242_vm11, %v3354_v17, 0  ;;  %v389_v17 = vld [vmem:[#allocation2 + $0x18f] sm:$0x1] }
 0x1e1   : > { %921 = vst.msk [vmem:[#allocation3 + $0x30] sm:$0xff] %vm914_vm7, %v879_v38  ;;  %2921 = vrot.lane.b32.xlu1 %v12795_v37, %s11766_s14  ;;  %v1409_v32 = vand.u32 4294901760, %v1408_v47  ;;  %v12836_v19 = vand.u32 4294901760, %v3379_v13 }
 0x1e2   : > { %2827 = vrot.lane.b32.xlu0 %v12453_v43, %s11767_s20  ;;  %407 = vst.msk [vmem:[#allocation2 + $0x191] sm:$0x1] %vm354_vm1, %v389_v17 }
 0x1e3   : > { %v2916_v59 = vpop.permute.xlu1 %2915  ;;  %10091 = vmatprep.mubr.f32.mxu0 %v1409_v32  ;;  %v12843_v45 = vsub.f32 %v3379_v13, %v12836_v19 }
 0x1e4   : > { %v2629_v39 = vpop.permute.xlu0 %2628  ;;  %2956 = vst.msk [vmem:[#allocation3 + $0xb8] sm:$0xff] %vm817_vm6, %v2916_v59 }
 0x1e5   : > { %2668 = vst.msk [vmem:[#allocation3 + $0xc0] sm:$0xff] %vm526_vm3, %v2629_v39  ;;  %3302 = vrot.lane.b32.xlu1 %v12840_v3, %s11771_s30  ;;  %v16053_v43 = vand.u32 4294901760, %v12843_v45  ;;  %v12865_v39 = vld [vmem:[#allocation2 + $0x9a] sm:$0xff] }
 0x1e6   : > { %3208 = vrot.lane.b32.xlu0 %v12838_v1, %s11770_s28 }
 0x1e7   : > { %v3297_v2 = vpop.permute.xlu1 %3296  ;;  %v3527_v38 = vsub.f32 %v12843_v45, %v16053_v43  ;;  %v1227_v21 = vld [vmem:[#allocation3 + $0x28] sm:$0xff] }
 0x1e8   : > { %v3010_v12 = vpop.permute.xlu0 %3009  ;;  %3339 = vst.msk [vmem:[#allocation3 + $0xa8] sm:$0xff] %vm1205_vm10, %v3297_v2  ;;  %v1259_v47 = vsel %vm1242_vm11, %v1227_v21, 0 }
 0x1e9   : > { %3051 = vst.msk [vmem:[#allocation3 + $0xb0] sm:$0xff] %vm914_vm7, %v3010_v12  ;;  %791 = vrot.lane.b32.xlu1 %v12812_v58, %s11766_s14  ;;  %v3528_v13 = vand.u32 4294901760, %v3527_v38  ;;  %v12862_v32 = vand.u32 4294901760, %v1259_v47 }
 0x1ea   : > { %502 = vrot.lane.b32.xlu0 %v12780_v42, %s11765_s23 }
 0x1eb   : > { %10295 = vmatprep.mubr.f32.mxu1 %v3528_v13  ;;  %v592_v12 = vpop.permute.xlu1 %591  ;;  %v12868_v2 = vsub.f32 %v1259_v47, %v12862_v32 }
 0x1ec   : > { %v497_v59 = vpop.permute.xlu0 %496  ;;  %632 = vst.msk [vmem:[#allocation3 + $0x40] sm:$0xff] %vm623_vm4, %v592_v12 }
 0x1ed   : > { %536 = vst.msk [vmem:[#allocation3 + $0x48] sm:$0xff] %vm526_vm3, %v497_v59  ;;  %1175 = vrot.lane.b32.xlu1 %v12865_v39, %s11771_s30  ;;  %v16054_v42 = vand.u32 4294901760, %v12868_v2  ;;  %v353_v59 = vld [vmem:[#allocation2 + $0x19a] sm:$0x1] }
 0x1ee   : > { %886 = vrot.lane.b32.xlu0 %v12814_v49, %s11768_s6  ;;  %372 = vst.msk [vmem:[#allocation2 + $0x198] sm:$0x1] %vm354_vm1, %v353_v59 }
 0x1ef   : > { %v976_v21 = vpop.permute.xlu1 %975  ;;  %v1418_v17 = vsub.f32 %v12868_v2, %v16054_v42  ;;  %v3355_v47 = vld [vmem:[#allocation3 + $0xa8] sm:$0xff] }
 0x1f0   : > { %v881_v38 = vpop.permute.xlu0 %880  ;;  %1018 = vst.msk [vmem:[#allocation3 + $0x30] sm:$0xff] %vm1011_vm8, %v976_v21  ;;  %v3382_v13 = vsel %vm1242_vm11, %v3355_v47, 0  ;;  %v3263_v42 = vld [vmem:[#allocation2 + $0x15a] sm:$0xff] }
 0x1f1   : > { %922 = vst.msk [vmem:[#allocation3 + $0x38] sm:$0xff] %vm914_vm7, %v881_v38  ;;  %2923 = vrot.lane.b32.xlu1 %v12838_v1, %s11766_s14  ;;  %v1419_v12 = vand.u32 4294901760, %v1418_v17  ;;  %v12887_v43 = vand.u32 4294901760, %v3382_v13 }
 0x1f2   : > { %2636 = vrot.lane.b32.xlu0 %v12795_v37, %s11765_s23 }
 0x1f3   : > { %v2725_v57 = vpop.permute.xlu1 %2724  ;;  %10092 = vmatmul.mubr.f32.gmra.mrb[4].mxu0 %v1419_v12  ;;  %v12891_v38 = vsub.f32 %v3382_v13, %v12887_v43 }
 0x1f4   : > { %v2631_v56 = vpop.permute.xlu0 %2630  ;;  %2764 = vst.msk [vmem:[#allocation3 + $0xc0] sm:$0xff] %vm623_vm4, %v2725_v57 }
 0x1f5   : > { %2669 = vst.msk [vmem:[#allocation3 + $0xc8] sm:$0xff] %vm526_vm3, %v2631_v56  ;;  %3304 = vrot.lane.b32.xlu1 %v3263_v42, %s11771_s30  ;;  %v16059_v37 = vand.u32 4294901760, %v12891_v38 }
 0x1f6   : > { %3017 = vrot.lane.b32.xlu0 %v12840_v3, %s11768_s6 }
 0x1f7   : > { %v3107_v17 = vpop.permute.xlu1 %3106  ;;  %v3537_v47 = vsub.f32 %v12891_v38, %v16059_v37  ;;  %v3265_v37 = vld [vmem:[#allocation2 + $0x172] sm:$0xff] }
 0x1f8   : > { %v3012_v21 = vpop.permute.xlu0 %3011  ;;  %3148 = vst.msk [vmem:[#allocation3 + $0xb0] sm:$0xff] %vm1011_vm8, %v3107_v17 }
 0x1f9   : > { %3052 = vst.msk [vmem:[#allocation3 + $0xb8] sm:$0xff] %vm914_vm7, %v3012_v21  ;;  %599 = vrot.lane.b32.xlu1 %v12814_v49, %s11764_s21  ;;  %v3538_v57 = vand.u32 4294901760, %v3537_v47  ;;  %v390_v21 = vld [vmem:[#allocation2 + $0x1a7] sm:$0x1] }
 0x1fa   : > { %504 = vrot.lane.b32.xlu0 %v12812_v58, %s11765_s23  ;;  %408 = vst.msk [vmem:[#allocation2 + $0x1a9] sm:$0x1] %vm354_vm1, %v390_v21  ;;  %v12962_v21 = vld [vmem:[#allocation2 + $0xaa] sm:$0xff] }
 0x1fb   : > { %10296 = vmatmul.mubr.f32.gmra.mrb[4].mxu1 %v3538_v57  ;;  %v689_v13 = vpop.permute.xlu1 %688 }
 0x1fc   : > { %v594_v56 = vpop.permute.xlu0 %593  ;;  %729 = vst.msk [vmem:[#allocation3 + $0x40] sm:$0xff] %vm720_vm5, %v689_v13 }
 0x1fd   : > { %633 = vst.msk [vmem:[#allocation3 + $0x48] sm:$0xff] %vm623_vm4, %v594_v56  ;;  %983 = vrot.lane.b32.xlu1 %v12576_v36, %s11769_s8 }
 0x1fe   : > { %888 = vrot.lane.b32.xlu0 %v12865_v39, %s11768_s6 }
 0x1ff   : > { %v1073_v12 = vpop.permute.xlu1 %1072 }
 0x200   : > { %v978_v59 = vpop.permute.xlu0 %977  ;;  %1115 = vst.msk [vmem:[#allocation3 + $0x30] sm:$0xff] %vm1108_vm9, %v1073_v12 }
 0x201   : > { %1019 = vst.msk [vmem:[#allocation3 + $0x38] sm:$0xff] %vm1011_vm8, %v978_v59  ;;  %2732 = vrot.lane.b32.xlu1 %v12840_v3, %s11764_s21 }
 0x202   : > { %2638 = vrot.lane.b32.xlu0 %v12838_v1, %s11765_s23  ;;  %v12932_v1 = vld [vmem:[#allocation2 + $0xa9] sm:$0xff] }
 0x203   : > { %v2822_v49 = vpop.permute.xlu1 %2821 }
 0x204   : > { %v2727_v58 = vpop.permute.xlu0 %2726  ;;  %2861 = vst.msk [vmem:[#allocation3 + $0xc0] sm:$0xff] %vm720_vm5, %v2822_v49  ;;  %v12960_v49 = vld [vmem:[#allocation2 + $0xb1] sm:$0xff] }
 0x205   : > { %2765 = vst.msk [vmem:[#allocation3 + $0xc8] sm:$0xff] %vm623_vm4, %v2727_v58  ;;  %3114 = vrot.lane.b32.xlu1 %v12593_v41, %s11769_s8 }
 0x206   : > { %3019 = vrot.lane.b32.xlu0 %v3263_v42, %s11768_s6 }
 0x207   : > { %v3203_v47 = vpop.permute.xlu1 %3202 }
 0x208   : > { %v3109_v17 = vpop.permute.xlu0 %3108  ;;  %3244 = vst.msk [vmem:[#allocation3 + $0xb0] sm:$0xff] %vm1108_vm9, %v3203_v47 }
 0x209   : > { %3149 = vst.msk [vmem:[#allocation3 + $0xb8] sm:$0xff] %vm1011_vm8, %v3109_v17  ;;  %696 = vrot.lane.b32.xlu1 %v12576_v36, %s11767_s20 }
 0x20a   : > { %601 = vrot.lane.b32.xlu0 %v12865_v39, %s11764_s21 }
 0x20b   : > { %v786_v57 = vpop.permute.xlu1 %785 }
 0x20c   : > { %v691_v3 = vpop.permute.xlu0 %690  ;;  %826 = vst.msk [vmem:[#allocation3 + $0x40] sm:$0xff] %vm817_vm6, %v786_v57 }
 0x20d   : > { %730 = vst.msk [vmem:[#allocation3 + $0x48] sm:$0xff] %vm720_vm5, %v691_v3  ;;  %1080 = vrot.lane.b32.xlu1 %v12932_v1, %s11770_s28 }
 0x20e   : > { %985 = vrot.lane.b32.xlu0 %v12613_v51, %s11769_s8 }
 0x20f   : > { %v1170_v13 = vpop.permute.xlu1 %1169 }
 0x210   : > { %v1075_v56 = vpop.permute.xlu0 %1074  ;;  %1212 = vst.msk [vmem:[#allocation3 + $0x30] sm:$0xff] %vm1205_vm10, %v1170_v13 }
 0x211   : > { %1116 = vst.msk [vmem:[#allocation3 + $0x38] sm:$0xff] %vm1108_vm9, %v1075_v56  ;;  %2829 = vrot.lane.b32.xlu1 %v12593_v41, %s11767_s20 }
 0x212   : > { %2734 = vrot.lane.b32.xlu0 %v3263_v42, %s11764_s21 }
 0x213   : > { %v2918_v39 = vpop.permute.xlu1 %2917 }
 0x214   : > { %v2824_v36 = vpop.permute.xlu0 %2823  ;;  %2957 = vst.msk [vmem:[#allocation3 + $0xc0] sm:$0xff] %vm817_vm6, %v2918_v39 }
 0x215   : > { %2862 = vst.msk [vmem:[#allocation3 + $0xc8] sm:$0xff] %vm720_vm5, %v2824_v36  ;;  %3210 = vrot.lane.b32.xlu1 %v12635_v61, %s11770_s28 }
 0x216   : > { %3116 = vrot.lane.b32.xlu0 %v12633_v5, %s11769_s8 }
 0x217   : > { %v3299_v12 = vpop.permute.xlu1 %3298  ;;  %v1228_v58 = vld [vmem:[#allocation3 + $0x30] sm:$0xff] }
 0x218   : > { %v3205_v59 = vpop.permute.xlu0 %3204  ;;  %3340 = vst.msk [vmem:[#allocation3 + $0xb0] sm:$0xff] %vm1205_vm10, %v3299_v12  ;;  %v1262_v41 = vsel %vm1242_vm11, %v1228_v58, 0  ;;  %v12986_v58 = vld [vmem:[#allocation2 + $0x16a] sm:$0xff] }
 0x219   : > { %3245 = vst.msk [vmem:[#allocation3 + $0xb8] sm:$0xff] %vm1108_vm9, %v3205_v59  ;;  %793 = vrot.lane.b32.xlu1 %v12932_v1, %s11766_s14  ;;  %v12958_v42 = vand.u32 4294901760, %v1262_v41 }
 0x21a   : > { %698 = vrot.lane.b32.xlu0 %v12613_v51, %s11767_s20 }
 0x21b   : > { %v788_v47 = vpop.permute.xlu1 %787  ;;  %v12965_v3 = vsub.f32 %v1262_v41, %v12958_v42 }
 0x21c   : > { %v499_v17 = vpop.permute.xlu0 %498  ;;  %827 = vst.msk [vmem:[#allocation3 + $0x48] sm:$0xff] %vm817_vm6, %v788_v47 }
 0x21d   : > { %537 = vst.msk [vmem:[#allocation3 + $0x50] sm:$0xff] %vm526_vm3, %v499_v17  ;;  %1177 = vrot.lane.b32.xlu1 %v12962_v21, %s11771_s30  ;;  %v16057_v51 = vand.u32 4294901760, %v12965_v3 }
 0x21e   : > { %1082 = vrot.lane.b32.xlu0 %v12960_v49, %s11770_s28 }
 0x21f   : > { %v1172_v56 = vpop.permute.xlu1 %1171  ;;  %v1428_v13 = vsub.f32 %v12965_v3, %v16057_v51  ;;  %v3356_v36 = vld [vmem:[#allocation3 + $0xb0] sm:$0xff] }
 0x220   : > { %v883_v57 = vpop.permute.xlu0 %882  ;;  %1213 = vst.msk [vmem:[#allocation3 + $0x38] sm:$0xff] %vm1205_vm10, %v1172_v56  ;;  %v3385_v39 = vsel %vm1242_vm11, %v3356_v36, 0 }
 0x221   : > { %923 = vst.msk [vmem:[#allocation3 + $0x40] sm:$0xff] %vm914_vm7, %v883_v57  ;;  %2925 = vrot.lane.b32.xlu1 %v12635_v61, %s11766_s14  ;;  %v1429_v59 = vand.u32 4294901760, %v1428_v13  ;;  %v12984_v12 = vand.u32 4294901760, %v3385_v39 }
 0x222   : > { %2831 = vrot.lane.b32.xlu0 %v12633_v5, %s11767_s20 }
 0x223   : > { %v2920_v17 = vpop.permute.xlu1 %2919  ;;  %10094 = vmatprep.mubr.f32.mxu0 %v1429_v59  ;;  %v12989_v47 = vsub.f32 %v3385_v39, %v12984_v12 }
 0x224   : > { %v2633_v41 = vpop.permute.xlu0 %2632  ;;  %2958 = vst.msk [vmem:[#allocation3 + $0xc8] sm:$0xff] %vm817_vm6, %v2920_v17  ;;  %v13010_v17 = vld [vmem:[#allocation2 + $0xb2] sm:$0xff] }
 0x225   : > { %16271 = vst [vmem:[#allocation18_spill] sm:$0xff] %v12989_v47  ;;  %2670 = vst.msk [vmem:[#allocation3 + $0xd0] sm:$0xff] %vm526_vm3, %v2633_v41  ;;  %3306 = vrot.lane.b32.xlu1 %v12986_v58, %s11771_s30  ;;  %v16058_v5 = vand.u32 4294901760, %v12989_v47 }
 0x226   : > { %3212 = vrot.lane.b32.xlu0 %v12689_v55, %s11770_s28 }
 0x227   : > { %v3301_v56 = vpop.permute.xlu1 %3300  ;;  %v3547_v13 = vsub.f32 %v12989_v47, %v16058_v5  ;;  %v1229_v36 = vld [vmem:[#allocation3 + $0x38] sm:$0xff] }
 0x228   : > { %v3014_v57 = vpop.permute.xlu0 %3013  ;;  %3341 = vst.msk [vmem:[#allocation3 + $0xb8] sm:$0xff] %vm1205_vm10, %v3301_v56  ;;  %v1265_v39 = vsel %vm1242_vm11, %v1229_v36, 0 }
 0x229   : > { %3053 = vst.msk [vmem:[#allocation3 + $0xc0] sm:$0xff] %vm914_vm7, %v3014_v57  ;;  %795 = vrot.lane.b32.xlu1 %v12960_v49, %s11766_s14  ;;  %v3548_v59 = vand.u32 4294901760, %v3547_v13  ;;  %v13008_v41 = vand.u32 4294901760, %v1265_v39 }
 0x22a   : > { %506 = vrot.lane.b32.xlu0 %v12932_v1, %s11765_s23 }
 0x22b   : > { %10298 = vmatprep.mubr.f32.mxu1 %v3548_v59  ;;  %v596_v5 = vpop.permute.xlu1 %595  ;;  %v13013_v57 = vsub.f32 %v1265_v39, %v13008_v41 }
 0x22c   : > { %v501_v51 = vpop.permute.xlu0 %500  ;;  %634 = vst.msk [vmem:[#allocation3 + $0x50] sm:$0xff] %vm623_vm4, %v596_v5 }
 0x22d   : > { %16272 = vst [vmem:[#allocation19_spill] sm:$0xff] %v13013_v57  ;;  %538 = vst.msk [vmem:[#allocation3 + $0x58] sm:$0xff] %vm526_vm3, %v501_v51  ;;  %1179 = vrot.lane.b32.xlu1 %v13010_v17, %s11771_s30  ;;  %v16062_v1 = vand.u32 4294901760, %v13013_v57 }
 0x22e   : > { %890 = vrot.lane.b32.xlu0 %v12962_v21, %s11768_s6 }
 0x22f   : > { %v980_v13 = vpop.permute.xlu1 %979  ;;  %v1438_v36 = vsub.f32 %v13013_v57, %v16062_v1  ;;  %v3357_v39 = vld [vmem:[#allocation3 + $0xb8] sm:$0xff] }
 0x230   : > { %v885_v56 = vpop.permute.xlu0 %884  ;;  %1020 = vst.msk [vmem:[#allocation3 + $0x40] sm:$0xff] %vm1011_vm8, %v980_v13  ;;  %v3388_v51 = vsel %vm1242_vm11, %v3357_v39, 0 }
 0x231   : > { %924 = vst.msk [vmem:[#allocation3 + $0x48] sm:$0xff] %vm914_vm7, %v885_v56  ;;  %2927 = vrot.lane.b32.xlu1 %v12689_v55, %s11766_s14  ;;  %v1439_v5 = vand.u32 4294901760, %v1438_v36  ;;  %v13032_v59 = vand.u32 4294901760, %v3388_v51 }
 0x232   : > { %2640 = vrot.lane.b32.xlu0 %v12635_v61, %s11765_s23 }
 0x233   : > { %v2729_v35 = vpop.permute.xlu1 %2728  ;;  %10095 = vmatmul.mubr.f32.gmra.mrb[6].mxu0 %v1439_v5  ;;  %v13035_v1 = vsub.f32 %v3388_v51, %v13032_v59 }
 0x234   : > { %v2635_v50 = vpop.permute.xlu0 %2634  ;;  %2766 = vst.msk [vmem:[#allocation3 + $0xd0] sm:$0xff] %vm623_vm4, %v2729_v35 }
 0x235   : > { %16273 = vst [vmem:[#allocation20_spill] sm:$0xff] %v13035_v1  ;;  %2671 = vst.msk [vmem:[#allocation3 + $0xd8] sm:$0xff] %vm526_vm3, %v2635_v50  ;;  %3308 = vrot.lane.b32.xlu1 %v3265_v37, %s11771_s30  ;;  %v16063_v61 = vand.u32 4294901760, %v13035_v1  ;;  %v943_v50 = vld [vmem:[#allocation2 + $0xc0] sm:$0xff] }
 0x236   : > { %3021 = vrot.lane.b32.xlu0 %v12986_v58, %s11768_s6 }
 0x237   : > { %v3111_v13 = vpop.permute.xlu1 %3110  ;;  %v3557_v36 = vsub.f32 %v13035_v1, %v16063_v61  ;;  %v3171_v61 = vld [vmem:[#allocation2 + $0x189] sm:$0xff] }
 0x238   : > { %v3016_v56 = vpop.permute.xlu0 %3015  ;;  %3150 = vst.msk [vmem:[#allocation3 + $0xc0] sm:$0xff] %vm1011_vm8, %v3111_v13 }
 0x239   : > { %3054 = vst.msk [vmem:[#allocation3 + $0xc8] sm:$0xff] %vm914_vm7, %v3016_v56  ;;  %603 = vrot.lane.b32.xlu1 %v12962_v21, %s11764_s21  ;;  %v3558_v35 = vand.u32 4294901760, %v3557_v36 }
 0x23a   : > { %508 = vrot.lane.b32.xlu0 %v12960_v49, %s11765_s23  ;;  %v3074_v49 = vld [vmem:[#allocation2 + $0x180] sm:$0xff] }
 0x23b   : > { %10299 = vmatmul.mubr.f32.gmra.mrb[6].mxu1 %v3558_v35  ;;  %v693_v51 = vpop.permute.xlu1 %692 }
 0x23c   : > { %v598_v39 = vpop.permute.xlu0 %597  ;;  %731 = vst.msk [vmem:[#allocation3 + $0x50] sm:$0xff] %vm720_vm5, %v693_v51 }
 0x23d   : > { %635 = vst.msk [vmem:[#allocation3 + $0x58] sm:$0xff] %vm623_vm4, %v598_v39  ;;  %987 = vrot.lane.b32.xlu1 %v943_v50, %s11769_s8 }
 0x23e   : > { %892 = vrot.lane.b32.xlu0 %v13010_v17, %s11768_s6 }
 0x23f   : > { %v1077_v56 = vpop.permute.xlu1 %1076 }
 0x240   : > { %v982_v5 = vpop.permute.xlu0 %981  ;;  %1117 = vst.msk [vmem:[#allocation3 + $0x40] sm:$0xff] %vm1108_vm9, %v1077_v56 }
 0x241   : > { %1021 = vst.msk [vmem:[#allocation3 + $0x48] sm:$0xff] %vm1011_vm8, %v982_v5  ;;  %2736 = vrot.lane.b32.xlu1 %v12986_v58, %s11764_s21  ;;  %v1040_v58 = vld [vmem:[#allocation2 + $0xc1] sm:$0xff] }
 0x242   : > { %2642 = vrot.lane.b32.xlu0 %v12689_v55, %s11765_s23  ;;  %v944_v55 = vld [vmem:[#allocation2 + $0xc8] sm:$0xff] }
 0x243   : > { %v2826_v13 = vpop.permute.xlu1 %2825 }
 0x244   : > { %v2731_v21 = vpop.permute.xlu0 %2730  ;;  %2863 = vst.msk [vmem:[#allocation3 + $0xd0] sm:$0xff] %vm720_vm5, %v2826_v13 }
 0x245   : > { %2767 = vst.msk [vmem:[#allocation3 + $0xd8] sm:$0xff] %vm623_vm4, %v2731_v21  ;;  %3118 = vrot.lane.b32.xlu1 %v3074_v49, %s11769_s8 }
 0x246   : > { %3023 = vrot.lane.b32.xlu0 %v3265_v37, %s11768_s6 }
 0x247   : > { %v3207_v35 = vpop.permute.xlu1 %3206 }
 0x248   : > { %v3113_v36 = vpop.permute.xlu0 %3112  ;;  %3246 = vst.msk [vmem:[#allocation3 + $0xc0] sm:$0xff] %vm1108_vm9, %v3207_v35 }
 0x249   : > { %3151 = vst.msk [vmem:[#allocation3 + $0xc8] sm:$0xff] %vm1011_vm8, %v3113_v36  ;;  %700 = vrot.lane.b32.xlu1 %v943_v50, %s11767_s20  ;;  %v3170_v50 = vld [vmem:[#allocation2 + $0x181] sm:$0xff] }
 0x24a   : > { %605 = vrot.lane.b32.xlu0 %v13010_v17, %s11764_s21  ;;  %v3075_v17 = vld [vmem:[#allocation2 + $0x188] sm:$0xff] }
 0x24b   : > { %v790_v51 = vpop.permute.xlu1 %789 }
 0x24c   : > { %v695_v39 = vpop.permute.xlu0 %694  ;;  %828 = vst.msk [vmem:[#allocation3 + $0x50] sm:$0xff] %vm817_vm6, %v790_v51  ;;  %v1041_v51 = vld [vmem:[#allocation2 + $0xc9] sm:$0xff] }
 0x24d   : > { %732 = vst.msk [vmem:[#allocation3 + $0x58] sm:$0xff] %vm720_vm5, %v695_v39  ;;  %1084 = vrot.lane.b32.xlu1 %v1040_v58, %s11770_s28 }
 0x24e   : > { %989 = vrot.lane.b32.xlu0 %v944_v55, %s11769_s8 }
 0x24f   : > { %v1174_v56 = vpop.permute.xlu1 %1173 }
 0x250   : > { %v1079_v5 = vpop.permute.xlu0 %1078  ;;  %1214 = vst.msk [vmem:[#allocation3 + $0x40] sm:$0xff] %vm1205_vm10, %v1174_v56 }
 0x251   : > { %1118 = vst.msk [vmem:[#allocation3 + $0x48] sm:$0xff] %vm1108_vm9, %v1079_v5  ;;  %2833 = vrot.lane.b32.xlu1 %v3074_v49, %s11767_s20  ;;  %v1137_v5 = vld [vmem:[#allocation2 + $0xc2] sm:$0xff] }
 0x252   : > { %2738 = vrot.lane.b32.xlu0 %v3265_v37, %s11764_s21 }
 0x253   : > { %v2922_v13 = vpop.permute.xlu1 %2921 }
 0x254   : > { %v2828_v21 = vpop.permute.xlu0 %2827  ;;  %2959 = vst.msk [vmem:[#allocation3 + $0xd0] sm:$0xff] %vm817_vm6, %v2922_v13 }
 0x255   : > { %2864 = vst.msk [vmem:[#allocation3 + $0xd8] sm:$0xff] %vm720_vm5, %v2828_v21  ;;  %3214 = vrot.lane.b32.xlu1 %v3170_v50, %s11770_s28 }
 0x256   : > { %3120 = vrot.lane.b32.xlu0 %v3075_v17, %s11769_s8 }
 0x257   : > { %v3303_v35 = vpop.permute.xlu1 %3302  ;;  %v1230_v39 = vld [vmem:[#allocation3 + $0x40] sm:$0xff] }
 0x258   : > { %v3209_v36 = vpop.permute.xlu0 %3208  ;;  %3342 = vst.msk [vmem:[#allocation3 + $0xc0] sm:$0xff] %vm1205_vm10, %v3303_v35  ;;  %v1268_v37 = vsel %vm1242_vm11, %v1230_v39, 0 }
 0x259   : > { %3247 = vst.msk [vmem:[#allocation3 + $0xc8] sm:$0xff] %vm1108_vm9, %v3209_v36  ;;  %797 = vrot.lane.b32.xlu1 %v1040_v58, %s11766_s14  ;;  %v13089_v49 = vand.u32 4294901760, %v1268_v37 }
 0x25a   : > { %702 = vrot.lane.b32.xlu0 %v944_v55, %s11767_s20 }
 0x25b   : > { %v792_v21 = vpop.permute.xlu1 %791  ;;  %v13092_v13 = vsub.f32 %v1268_v37, %v13089_v49 }
 0x25c   : > { %v503_v56 = vpop.permute.xlu0 %502  ;;  %829 = vst.msk [vmem:[#allocation3 + $0x58] sm:$0xff] %vm817_vm6, %v792_v21 }
 0x25d   : > { %16274 = vst [vmem:[#allocation21_spill] sm:$0xff] %v13092_v13  ;;  %539 = vst.msk [vmem:[#allocation3 + $0x60] sm:$0xff] %vm526_vm3, %v503_v56  ;;  %1181 = vrot.lane.b32.xlu1 %v1137_v5, %s11771_s30  ;;  %v16067_v55 = vand.u32 4294901760, %v13092_v13 }
 0x25e   : > { %1086 = vrot.lane.b32.xlu0 %v1041_v51, %s11770_s28 }
 0x25f   : > { %v1176_v36 = vpop.permute.xlu1 %1175  ;;  %v1448_v35 = vsub.f32 %v13092_v13, %v16067_v55  ;;  %v3358_v39 = vld [vmem:[#allocation3 + $0xc0] sm:$0xff] }
 0x260   : > { %v887_v58 = vpop.permute.xlu0 %886  ;;  %1215 = vst.msk [vmem:[#allocation3 + $0x48] sm:$0xff] %vm1205_vm10, %v1176_v36  ;;  %v3391_v37 = vsel %vm1242_vm11, %v3358_v39, 0 }
 0x261   : > { %925 = vst.msk [vmem:[#allocation3 + $0x50] sm:$0xff] %vm914_vm7, %v887_v58  ;;  %2929 = vrot.lane.b32.xlu1 %v3170_v50, %s11766_s14  ;;  %v1449_v56 = vand.u32 4294901760, %v1448_v35  ;;  %v13107_v21 = vand.u32 4294901760, %v3391_v37 }
 0x262   : > { %2835 = vrot.lane.b32.xlu0 %v3075_v17, %s11767_s20 }
 0x263   : > { %v2924_v52 = vpop.permute.xlu1 %2923  ;;  %10097 = vmatprep.mubr.f32.mxu0 %v1449_v56  ;;  %v13110_v55 = vsub.f32 %v3391_v37, %v13107_v21  ;;  %v1138_v37 = vld [vmem:[#allocation2 + $0xca] sm:$0xff] }
 0x264   : > { %v2637_v11 = vpop.permute.xlu0 %2636  ;;  %2960 = vst.msk [vmem:[#allocation3 + $0xd8] sm:$0xff] %vm817_vm6, %v2924_v52 }
 0x265   : > { %16275 = vst [vmem:[#allocation22_spill] sm:$0xff] %v13110_v55  ;;  %2672 = vst.msk [vmem:[#allocation3 + $0xe0] sm:$0xff] %vm526_vm3, %v2637_v11  ;;  %3310 = vrot.lane.b32.xlu1 %v3266_v46, %s11771_s30  ;;  %v16069_v17 = vand.u32 4294901760, %v13110_v55 }
 0x266   : > { %3216 = vrot.lane.b32.xlu0 %v3171_v61, %s11770_s28 }
 0x267   : > { %v3305_v58 = vpop.permute.xlu1 %3304  ;;  %v3567_v36 = vsub.f32 %v13110_v55, %v16069_v17  ;;  %v1231_v35 = vld [vmem:[#allocation3 + $0x48] sm:$0xff] }
 0x268   : > { %v3018_v50 = vpop.permute.xlu0 %3017  ;;  %3343 = vst.msk [vmem:[#allocation3 + $0xc8] sm:$0xff] %vm1205_vm10, %v3305_v58  ;;  %v1271_v11 = vsel %vm1242_vm11, %v1231_v35, 0 }
 0x269   : > { %3055 = vst.msk [vmem:[#allocation3 + $0xd0] sm:$0xff] %vm914_vm7, %v3018_v50  ;;  %894 = vrot.lane.b32.xlu1 %v1137_v5, %s11768_s6  ;;  %v3568_v52 = vand.u32 4294901760, %v3567_v36  ;;  %v13125_v39 = vand.u32 4294901760, %v1271_v11  ;;  %v3267_v5 = vld [vmem:[#allocation2 + $0x18a] sm:$0xff] }
 0x26a   : > { %799 = vrot.lane.b32.xlu0 %v1041_v51, %s11766_s14 }
 0x26b   : > { %16276 = vst [vmem:[#allocation23_spill] sm:$0xff] %v13125_v39  ;;  %10301 = vmatprep.mubr.f32.mxu1 %v3568_v52  ;;  %v600_v34 = vpop.permute.xlu1 %599  ;;  %v13128_v17 = vsub.f32 %v1271_v11, %v13125_v39  ;;  %v945_v52 = vld [vmem:[#allocation2 + $0xd8] sm:$0xff] }
 0x26c   : > { %v505_v56 = vpop.permute.xlu0 %504  ;;  %636 = vst.msk [vmem:[#allocation3 + $0x60] sm:$0xff] %vm623_vm4, %v600_v34 }
 0x26d   : > { %16277 = vst [vmem:[#allocation24_spill] sm:$0xff] %v13128_v17  ;;  %540 = vst.msk [vmem:[#allocation3 + $0x68] sm:$0xff] %vm526_vm3, %v505_v56  ;;  %2931 = vrot.lane.b32.xlu1 %v3171_v61, %s11766_s14  ;;  %v16071_v51 = vand.u32 4294901760, %v13128_v17 }
 0x26e   : > { %1183 = vrot.lane.b32.xlu0 %v1138_v37, %s11771_s30 }
 0x26f   : > { %v984_v58 = vpop.permute.xlu1 %983  ;;  %v1458_v36 = vsub.f32 %v13128_v17, %v16071_v51  ;;  %v3359_v35 = vld [vmem:[#allocation3 + $0xc8] sm:$0xff] }
 0x270   : > { %v889_v50 = vpop.permute.xlu0 %888  ;;  %1022 = vst.msk [vmem:[#allocation3 + $0x50] sm:$0xff] %vm1011_vm8, %v984_v58  ;;  %v3394_v34 = vsel %vm1242_vm11, %v3359_v35, 0  ;;  %v11560_v58 = vld [vmem:[#allocation8 + $0x8] sm:$0xff] }
 0x271   : > { %926 = vst.msk [vmem:[#allocation3 + $0x58] sm:$0xff] %vm914_vm7, %v889_v50  ;;  %3312 = vrot.lane.b32.xlu1 %v3267_v5, %s11771_s30  ;;  %v1459_v61 = vand.u32 4294901760, %v1458_v36  ;;  %v13143_v11 = vand.u32 4294901760, %v3394_v34  ;;  %v11559_v50 = vld [vmem:[#allocation8] sm:$0xff]  ;;  %v13156_v36 = vsub.f32 %v11560_v58, %v1299_v18 }
 0x272   : > { %3025 = vrot.lane.b32.xlu0 %v3266_v46, %s11768_s6  ;;  %v13152_v46 = vsub.f32 %v11559_v50, %v1296_v16  ;;  %v1042_v50 = vld [vmem:[#allocation2 + $0xd9] sm:$0xff] }
 0x273   : > { %16278 = vst [vmem:[#allocation25_spill] sm:$0xff] %v13143_v11  ;;  %v2733_v7 = vpop.permute.xlu1 %2732  ;;  %10098 = vmatmul.mubr.f32.gmra.mrb[8].mxu0 %v1459_v61  ;;  %v13146_v51 = vsub.f32 %v3394_v34, %v13143_v11  ;;  %v3076_v34 = vld [vmem:[#allocation2 + $0x198] sm:$0xff] }
 0x274   : > { %v2639_v56 = vpop.permute.xlu0 %2638  ;;  %2768 = vst.msk [vmem:[#allocation3 + $0xe0] sm:$0xff] %vm623_vm4, %v2733_v7  ;;  %v16073_v61 = vand.u32 4294901760, %v13152_v46  ;;  %v16074_v7 = vand.u32 4294901760, %v13156_v36 }
 0x275   : > { %16279 = vst [vmem:[#allocation26_spill] sm:$0xff] %v13146_v51  ;;  %2673 = vst.msk [vmem:[#allocation3 + $0xe8] sm:$0xff] %vm526_vm3, %v2639_v56  ;;  %991 = vrot.lane.b32.xlu1 %v945_v52, %s11769_s8  ;;  %v16072_v35 = vand.u32 4294901760, %v13146_v51  ;;  %v946_v52 = vld [vmem:[#allocation2 + $0xe0] sm:$0xff] }
 0x276   : > { %896 = vrot.lane.b32.xlu0 %v1138_v37, %s11768_s6  ;;  %v1529_v15 = vsub.f32 %v13152_v46, %v16073_v61  ;;  %v1536_v18 = vsub.f32 %v13156_v36, %v16074_v7  ;;  %v3172_v7 = vld [vmem:[#allocation2 + $0x199] sm:$0xff] }
 0x277   : > { %v3115_v14 = vpop.permute.xlu1 %3114  ;;  %v3577_v16 = vsub.f32 %v13146_v51, %v16072_v35 }
 0x278   : > { %v3020_v56 = vpop.permute.xlu0 %3019  ;;  %3152 = vst.msk [vmem:[#allocation3 + $0xd0] sm:$0xff] %vm1011_vm8, %v3115_v14  ;;  %v1530_v58 = vand.u32 4294901760, %v1529_v15  ;;  %v1537_v35 = vand.u32 4294901760, %v1536_v18  ;;  %v11561_v15 = vld [vmem:[#allocation8 + $0x10] sm:$0xff]  ;;  %v11562_v18 = vld [vmem:[#allocation8 + $0x18] sm:$0xff] }
 0x279   : > { %3056 = vst.msk [vmem:[#allocation3 + $0xd8] sm:$0xff] %vm914_vm7, %v3020_v56  ;;  %3122 = vrot.lane.b32.xlu1 %v3076_v34, %s11769_s8  ;;  %v3578_v37 = vand.u32 4294901760, %v3577_v16 }
 0x27a   : > { %3027 = vrot.lane.b32.xlu0 %v3267_v5, %s11768_s6  ;;  %v10899_v61 = vpack.c.bf16 %v1537_v35, %v1530_v58  ;;  %v3077_v5 = vld [vmem:[#allocation2 + $0x1a0] sm:$0xff]  ;;  %v13184_v35 = vsub.f32 %v11561_v15, %v1302_v24 }
 0x27b   : > { %10302 = vmatmul.mubr.f32.gmra.mrb[8].mxu1 %v3578_v37  ;;  %v697_v14 = vpop.permute.xlu1 %696  ;;  %v13188_v37 = vsub.f32 %v11562_v18, %v1305_v25  ;;  %v3173_v24 = vld [vmem:[#allocation2 + $0x1a1] sm:$0xff] }
 0x27c   : > { %v602_v56 = vpop.permute.xlu0 %601  ;;  %733 = vst.msk [vmem:[#allocation3 + $0x60] sm:$0xff] %vm720_vm5, %v697_v14  ;;  %10900 = vmatprep.subr.bf16.mxu0 %v10899_v61  ;;  %10948 = vmatprep.subr.bf16.mxu1 %v10899_v61  ;;  %16280 = vst [vmem:[#allocation27_spill] sm:$0xff] %v13184_v35  ;;  %v3268_v25 = vld [vmem:[#allocation2 + $0x19a] sm:$0xff]  ;;  %v1140_v18 = vld [vmem:[#allocation2 + $0xe2] sm:$0xff] }
 0x27d   : > { %637 = vst.msk [vmem:[#allocation3 + $0x68] sm:$0xff] %vm623_vm4, %v602_v56  ;;  %1088 = vrot.lane.b32.xlu1 %v1042_v50, %s11770_s28  ;;  %10902 = vmatpush3.bf16.msra.mxu0 %v10899_v61  ;;  %16281 = vst [vmem:[#allocation28_spill] sm:$0xff] %v13188_v37  ;;  %v16076_v50 = vand.u32 4294901760, %v13184_v35  ;;  %v16075_v58 = vand.u32 4294901760, %v13188_v37 }
 0x27e   : > { %993 = vrot.lane.b32.xlu0 %v946_v52, %s11769_s8  ;;  %10950 = vmatpush3.bf16.msra.mxu1 %v10899_v61  ;;  %v1043_v52 = vld [vmem:[#allocation2 + $0xe1] sm:$0xff] }
 0x27f   : > { %v1081_v16 = vpop.permute.xlu1 %1080  ;;  %v1139_v61 = vld [vmem:[#allocation2 + $0xda] sm:$0xff]  ;;  %v1543_v22 = vsub.f32 %v13184_v35, %v16076_v50  ;;  %v1550_v23 = vsub.f32 %v13188_v37, %v16075_v58 }
 0x280   : > { %v986_v34 = vpop.permute.xlu0 %985  ;;  %1119 = vst.msk [vmem:[#allocation3 + $0x50] sm:$0xff] %vm1108_vm9, %v1081_v16 }
 0x281   : > { %1023 = vst.msk [vmem:[#allocation3 + $0x58] sm:$0xff] %vm1011_vm8, %v986_v34  ;;  %3218 = vrot.lane.b32.xlu1 %v3172_v7, %s11770_s28  ;;  %v1544_v7 = vand.u32 4294901760, %v1543_v22 }
 0x282   : > { %3124 = vrot.lane.b32.xlu0 %v3077_v5, %s11769_s8  ;;  %v1551_v5 = vand.u32 4294901760, %v1550_v23 }
 0x283   : > { %v2830_v14 = vpop.permute.xlu1 %2829 }
 0x284   : > { %v2735_v56 = vpop.permute.xlu0 %2734  ;;  %2865 = vst.msk [vmem:[#allocation3 + $0xe0] sm:$0xff] %vm720_vm5, %v2830_v14  ;;  %v10903_v15 = vpack.c.bf16 %v1551_v5, %v1544_v7  ;;  %v13210_v14 = vsub.f32 %v12242_v30, %v12247_v31 }
 0x285   : > { %2769 = vst.msk [vmem:[#allocation3 + $0xe8] sm:$0xff] %vm623_vm4, %v2735_v56  ;;  %1185 = vrot.lane.b32.xlu1 %v1139_v61, %s11771_s30  ;;  %v3269_v56 = vld [vmem:[#allocation2 + $0x1a2] sm:$0xff] }
 0x286   : > { %1090 = vrot.lane.b32.xlu0 %v1043_v52, %s11770_s28  ;;  %10904 = vmatprep.subr.bf16.mxu0 %v10903_v15  ;;  %v13217_v22 = vand.u32 4294901760, %v13210_v14 }
 0x287   : > { %v3211_v16 = vpop.permute.xlu1 %3210  ;;  %10952 = vmatprep.subr.bf16.mxu1 %v10903_v15  ;;  %10906 = vmatpush3.bf16.msra.mxu0 %v10903_v15 }
 0x288   : > { %v3117_v34 = vpop.permute.xlu0 %3116  ;;  %3248 = vst.msk [vmem:[#allocation3 + $0xd0] sm:$0xff] %vm1108_vm9, %v3211_v16  ;;  %10954 = vmatpush3.bf16.msra.mxu1 %v10903_v15  ;;  %16282 = vst [vmem:[#allocation29_spill] sm:$0xff] %v13217_v22 }
 0x289   : > { %3153 = vst.msk [vmem:[#allocation3 + $0xd8] sm:$0xff] %vm1011_vm8, %v3117_v34  ;;  %3314 = vrot.lane.b32.xlu1 %v3268_v25, %s11771_s30  ;;  %v1557_v25 = vsub.f32 %v13210_v14, %v13217_v22  ;;  %v13227_v34 = vpack.c.bf16 %v13156_v36, %v13152_v46 }
 0x28a   : > { %3220 = vrot.lane.b32.xlu0 %v3173_v24, %s11770_s28 }
 0x28b   : > { %v794_v61 = vpop.permute.xlu1 %793  ;;  %v1558_v30 = vand.u32 4294901760, %v1557_v25 }
 0x28c   : > { %v699_v52 = vpop.permute.xlu0 %698  ;;  %830 = vst.msk [vmem:[#allocation3 + $0x60] sm:$0xff] %vm817_vm6, %v794_v61 }
 0x28d   : > { %734 = vst.msk [vmem:[#allocation3 + $0x68] sm:$0xff] %vm720_vm5, %v699_v52  ;;  %3316 = vrot.lane.b32.xlu1 %v3269_v56, %s11771_s30  ;;  %10117 = vmatprep.subr.mxu0 %v1558_v30 }
 0x28e   : > { %1187 = vrot.lane.b32.xlu0 %v1140_v18, %s11771_s30  ;;  %10321 = vmatprep.subr.mxu1 %v1558_v30 }
 0x28f   : > { %v1178_v24 = vpop.permute.xlu1 %1177  ;;  %10118 = vmatpush3.msra.mxu0 %v1558_v30  ;;  %10322 = vmatpush3.msra.mxu1 %v1558_v30 }
 0x290   : > { %v1083_v23 = vpop.permute.xlu0 %1082  ;;  %1216 = vst.msk [vmem:[#allocation3 + $0x50] sm:$0xff] %vm1205_vm10, %v1178_v24  ;;  %10908 = vmatprep.subr.bf16.mxu0 %v13227_v34  ;;  %10956 = vmatprep.subr.bf16.mxu1 %v13227_v34 }
 0x291   : > { %1120 = vst.msk [vmem:[#allocation3 + $0x58] sm:$0xff] %vm1108_vm9, %v1083_v23 }
 0x293   : > { %v2926_v5 = vpop.permute.xlu1 %2925 }
 0x294   : > { %v2832_v7 = vpop.permute.xlu0 %2831  ;;  %2961 = vst.msk [vmem:[#allocation3 + $0xe0] sm:$0xff] %vm817_vm6, %v2926_v5 }
 0x295   : > { %2866 = vst.msk [vmem:[#allocation3 + $0xe8] sm:$0xff] %vm720_vm5, %v2832_v7 }
 0x297   : > { %v3307_v15 = vpop.permute.xlu1 %3306  ;;  %v1232_v18 = vld [vmem:[#allocation3 + $0x50] sm:$0xff] }
 0x298   : > { %v3213_v16 = vpop.permute.xlu0 %3212  ;;  %3344 = vst.msk [vmem:[#allocation3 + $0xd0] sm:$0xff] %vm1205_vm10, %v3307_v15  ;;  %v1274_v56 = vsel %vm1242_vm11, %v1232_v18, 0  ;;  %v13250_v18 = vpack.c.bf16 %v13188_v37, %v13184_v35 }
 0x299   : > { %3249 = vst.msk [vmem:[#allocation3 + $0xd8] sm:$0xff] %vm1108_vm9, %v3213_v16  ;;  %v13234_v52 = vand.u32 4294901760, %v1274_v56 }
 0x29b   : > { %16283 = vst [vmem:[#allocation30_spill] sm:$0xff] %v13234_v52  ;;  %v796_v23 = vpop.permute.xlu1 %795  ;;  %v13237_v24 = vsub.f32 %v1274_v56, %v13234_v52 }
 0x29c   : > { %v507_v61 = vpop.permute.xlu0 %506  ;;  %831 = vst.msk [vmem:[#allocation3 + $0x68] sm:$0xff] %vm817_vm6, %v796_v23 }
 0x29d   : > { %16284 = vst [vmem:[#allocation31_spill] sm:$0xff] %v13237_v24  ;;  %541 = vst.msk [vmem:[#allocation3 + $0x70] sm:$0xff] %vm526_vm3, %v507_v61  ;;  %v16077_v25 = vand.u32 4294901760, %v13237_v24 }
 0x29f   : > { %v1180_v7 = vpop.permute.xlu1 %1179  ;;  %v1468_v5 = vsub.f32 %v13237_v24, %v16077_v25  ;;  %v3360_v16 = vld [vmem:[#allocation3 + $0xd0] sm:$0xff] }
 0x2a0   : > { %v891_v30 = vpop.permute.xlu0 %890  ;;  %1217 = vst.msk [vmem:[#allocation3 + $0x58] sm:$0xff] %vm1205_vm10, %v1180_v7  ;;  %v3397_v15 = vsel %vm1242_vm11, %v3360_v16, 0 }
 0x2a1   : > { %927 = vst.msk [vmem:[#allocation3 + $0x60] sm:$0xff] %vm914_vm7, %v891_v30  ;;  %v1469_v56 = vand.u32 4294901760, %v1468_v5  ;;  %v13252_v61 = vand.u32 4294901760, %v3397_v15 }
 0x2a3   : > { %16285 = vst [vmem:[#allocation32_spill] sm:$0xff] %v13252_v61  ;;  %v2928_v58 = vpop.permute.xlu1 %2927  ;;  %10100 = vmatprep.mubr.f32.mxu0 %v1469_v56  ;;  %v13255_v50 = vsub.f32 %v3397_v15, %v13252_v61 }
 0x2a4   : > { %v2641_v23 = vpop.permute.xlu0 %2640  ;;  %2962 = vst.msk [vmem:[#allocation3 + $0xe8] sm:$0xff] %vm817_vm6, %v2928_v58 }
 0x2a5   : > { %16286 = vst [vmem:[#allocation33_spill] sm:$0xff] %v13255_v50  ;;  %2674 = vst.msk [vmem:[#allocation3 + $0xf0] sm:$0xff] %vm526_vm3, %v2641_v23  ;;  %v16081_v30 = vand.u32 4294901760, %v13255_v50 }
 0x2a7   : > { %v3309_v16 = vpop.permute.xlu1 %3308  ;;  %v3587_v5 = vsub.f32 %v13255_v50, %v16081_v30  ;;  %v1233_v25 = vld [vmem:[#allocation3 + $0x58] sm:$0xff] }
 0x2a8   : > { %v3022_v7 = vpop.permute.xlu0 %3021  ;;  %3345 = vst.msk [vmem:[#allocation3 + $0xd8] sm:$0xff] %vm1205_vm10, %v3309_v16  ;;  %v1277_v15 = vsel %vm1242_vm11, %v1233_v25, 0 }
 0x2a9   : > { %3057 = vst.msk [vmem:[#allocation3 + $0xe0] sm:$0xff] %vm914_vm7, %v3022_v7  ;;  %v3588_v56 = vand.u32 4294901760, %v3587_v5  ;;  %v13266_v22 = vand.u32 4294901760, %v1277_v15 }
 0x2ab   : > { %16287 = vst [vmem:[#allocation34_spill] sm:$0xff] %v13266_v22  ;;  %10304 = vmatprep.mubr.f32.mxu1 %v3588_v56  ;;  %v604_v58 = vpop.permute.xlu1 %603  ;;  %v13269_v37 = vsub.f32 %v1277_v15, %v13266_v22 }
 0x2ac   : > { %v509_v23 = vpop.permute.xlu0 %508  ;;  %638 = vst.msk [vmem:[#allocation3 + $0x70] sm:$0xff] %vm623_vm4, %v604_v58 }
 0x2ad   : > { %16288 = vst [vmem:[#allocation35_spill] sm:$0xff] %v13269_v37  ;;  %542 = vst.msk [vmem:[#allocation3 + $0x78] sm:$0xff] %vm526_vm3, %v509_v23  ;;  %v16085_v30 = vand.u32 4294901760, %v13269_v37 }
 0x2af   : > { %v988_v35 = vpop.permute.xlu1 %987  ;;  %v1478_v25 = vsub.f32 %v13269_v37, %v16085_v30  ;;  %v3361_v16 = vld [vmem:[#allocation3 + $0xd8] sm:$0xff] }
 0x2b0   : > { %v893_v7 = vpop.permute.xlu0 %892  ;;  %1024 = vst.msk [vmem:[#allocation3 + $0x60] sm:$0xff] %vm1011_vm8, %v988_v35  ;;  %v3400_v5 = vsel %vm1242_vm11, %v3361_v16, 0 }
 0x2b1   : > { %928 = vst.msk [vmem:[#allocation3 + $0x68] sm:$0xff] %vm914_vm7, %v893_v7  ;;  %v1479_v15 = vand.u32 4294901760, %v1478_v25  ;;  %v13280_v56 = vand.u32 4294901760, %v3400_v5 }
 0x2b3   : > { %16289 = vst [vmem:[#allocation36_spill] sm:$0xff] %v13280_v56  ;;  %v2737_v58 = vpop.permute.xlu1 %2736  ;;  %10101 = vmatmul.mubr.f32.gmra.mrb[10].mxu0 %v1479_v15  ;;  %v13283_v50 = vsub.f32 %v3400_v5, %v13280_v56 }
 0x2b4   : > { %v2643_v23 = vpop.permute.xlu0 %2642  ;;  %2770 = vst.msk [vmem:[#allocation3 + $0xf0] sm:$0xff] %vm623_vm4, %v2737_v58 }
 0x2b5   : > { %16290 = vst [vmem:[#allocation37_spill] sm:$0xff] %v13283_v50  ;;  %2675 = vst.msk [vmem:[#allocation3 + $0xf8] sm:$0xff] %vm526_vm3, %v2643_v23  ;;  %v16088_v30 = vand.u32 4294901760, %v13283_v50 }
 0x2b7   : > { %v3119_v37 = vpop.permute.xlu1 %3118  ;;  %v3597_v35 = vsub.f32 %v13283_v50, %v16088_v30 }
 0x2b8   : > { %v3024_v7 = vpop.permute.xlu0 %3023  ;;  %3154 = vst.msk [vmem:[#allocation3 + $0xe0] sm:$0xff] %vm1011_vm8, %v3119_v37 }
 0x2b9   : > { %3058 = vst.msk [vmem:[#allocation3 + $0xe8] sm:$0xff] %vm914_vm7, %v3024_v7  ;;  %v3598_v25 = vand.u32 4294901760, %v3597_v35 }
 0x2bb   : > { %10305 = vmatmul.mubr.f32.gmra.mrb[10].mxu1 %v3598_v25  ;;  %v701_v5 = vpop.permute.xlu1 %700 }
 0x2bc   : > { %v606_v16 = vpop.permute.xlu0 %605  ;;  %735 = vst.msk [vmem:[#allocation3 + $0x70] sm:$0xff] %vm720_vm5, %v701_v5 }
 0x2bd   : > { %639 = vst.msk [vmem:[#allocation3 + $0x78] sm:$0xff] %vm623_vm4, %v606_v16 }
 0x2bf   : > { %v1085_v23 = vpop.permute.xlu1 %1084 }
 0x2c0   : > { %v990_v15 = vpop.permute.xlu0 %989  ;;  %1121 = vst.msk [vmem:[#allocation3 + $0x60] sm:$0xff] %vm1108_vm9, %v1085_v23 }
 0x2c1   : > { %1025 = vst.msk [vmem:[#allocation3 + $0x68] sm:$0xff] %vm1011_vm8, %v990_v15 }
 0x2c3   : > { %v2834_v30 = vpop.permute.xlu1 %2833 }
 0x2c4   : > { %v2739_v58 = vpop.permute.xlu0 %2738  ;;  %2867 = vst.msk [vmem:[#allocation3 + $0xf0] sm:$0xff] %vm720_vm5, %v2834_v30 }
 0x2c5   : > { %2771 = vst.msk [vmem:[#allocation3 + $0xf8] sm:$0xff] %vm623_vm4, %v2739_v58 }
 0x2c7   : > { %v3215_v7 = vpop.permute.xlu1 %3214 }
 0x2c8   : > { %v3121_v37 = vpop.permute.xlu0 %3120  ;;  %3250 = vst.msk [vmem:[#allocation3 + $0xe0] sm:$0xff] %vm1108_vm9, %v3215_v7 }
 0x2c9   : > { %3155 = vst.msk [vmem:[#allocation3 + $0xe8] sm:$0xff] %vm1011_vm8, %v3121_v37 }
 0x2cb   : > { %v798_v25 = vpop.permute.xlu1 %797 }
 0x2cc   : > { %v703_v35 = vpop.permute.xlu0 %702  ;;  %832 = vst.msk [vmem:[#allocation3 + $0x70] sm:$0xff] %vm817_vm6, %v798_v25 }
 0x2cd   : > { %736 = vst.msk [vmem:[#allocation3 + $0x78] sm:$0xff] %vm720_vm5, %v703_v35 }
 0x2cf   : > { %v1182_v5 = vpop.permute.xlu1 %1181 }
 0x2d0   : > { %v1087_v16 = vpop.permute.xlu0 %1086  ;;  %1218 = vst.msk [vmem:[#allocation3 + $0x60] sm:$0xff] %vm1205_vm10, %v1182_v5 }
 0x2d1   : > { %1122 = vst.msk [vmem:[#allocation3 + $0x68] sm:$0xff] %vm1108_vm9, %v1087_v16 }
 0x2d3   : > { %v2930_v30 = vpop.permute.xlu1 %2929 }
 0x2d4   : > { %v2836_v15 = vpop.permute.xlu0 %2835  ;;  %2963 = vst.msk [vmem:[#allocation3 + $0xf0] sm:$0xff] %vm817_vm6, %v2930_v30 }
 0x2d5   : > { %2868 = vst.msk [vmem:[#allocation3 + $0xf8] sm:$0xff] %vm720_vm5, %v2836_v15 }
 0x2d7   : > { %v3311_v58 = vpop.permute.xlu1 %3310  ;;  %v1234_v37 = vld [vmem:[#allocation3 + $0x60] sm:$0xff] }
 0x2d8   : > { %v3217_v23 = vpop.permute.xlu0 %3216  ;;  %3346 = vst.msk [vmem:[#allocation3 + $0xe0] sm:$0xff] %vm1205_vm10, %v3311_v58  ;;  %v1280_v7 = vsel %vm1242_vm11, %v1234_v37, 0 }
 0x2d9   : > { %3251 = vst.msk [vmem:[#allocation3 + $0xe8] sm:$0xff] %vm1108_vm9, %v3217_v23  ;;  %v13310_v35 = vand.u32 4294901760, %v1280_v7 }
 0x2db   : > { %16291 = vst [vmem:[#allocation38_spill] sm:$0xff] %v13310_v35  ;;  %v895_v16 = vpop.permute.xlu1 %894  ;;  %v13313_v5 = vsub.f32 %v1280_v7, %v13310_v35 }
 0x2dc   : > { %v800_v25 = vpop.permute.xlu0 %799  ;;  %929 = vst.msk [vmem:[#allocation3 + $0x70] sm:$0xff] %vm914_vm7, %v895_v16 }
 0x2dd   : > { %16292 = vst [vmem:[#allocation39_spill] sm:$0xff] %v13313_v5  ;;  %833 = vst.msk [vmem:[#allocation3 + $0x78] sm:$0xff] %vm817_vm6, %v800_v25  ;;  %v16095_v15 = vand.u32 4294901760, %v13313_v5 }
 0x2df   : > { %v2932_v50 = vpop.permute.xlu1 %2931  ;;  %v1488_v23 = vsub.f32 %v13313_v5, %v16095_v15  ;;  %v3362_v58 = vld [vmem:[#allocation3 + $0xe0] sm:$0xff] }
 0x2e0   : > { %v1184_v30 = vpop.permute.xlu0 %1183  ;;  %2964 = vst.msk [vmem:[#allocation3 + $0xf8] sm:$0xff] %vm817_vm6, %v2932_v50  ;;  %v3403_v37 = vsel %vm1242_vm11, %v3362_v58, 0 }
 0x2e1   : > { %1219 = vst.msk [vmem:[#allocation3 + $0x68] sm:$0xff] %vm1205_vm10, %v1184_v30  ;;  %v1489_v7 = vand.u32 4294901760, %v1488_v23  ;;  %v13324_v24 = vand.u32 4294901760, %v3403_v37 }
 0x2e3   : > { %16293 = vst [vmem:[#allocation40_spill] sm:$0xff] %v13324_v24  ;;  %v3313_v16 = vpop.permute.xlu1 %3312  ;;  %10103 = vmatprep.mubr.f32.mxu0 %v1489_v7  ;;  %v13327_v51 = vsub.f32 %v3403_v37, %v13324_v24 }
 0x2e4   : > { %v3026_v25 = vpop.permute.xlu0 %3025  ;;  %3347 = vst.msk [vmem:[#allocation3 + $0xe8] sm:$0xff] %vm1205_vm10, %v3313_v16 }
 0x2e5   : > { %16294 = vst [vmem:[#allocation41_spill] sm:$0xff] %v13327_v51  ;;  %3059 = vst.msk [vmem:[#allocation3 + $0xf0] sm:$0xff] %vm914_vm7, %v3026_v25  ;;  %v16102_v15 = vand.u32 4294901760, %v13327_v51 }
 0x2e7   : > { %v992_v5 = vpop.permute.xlu1 %991  ;;  %v3607_v50 = vsub.f32 %v13327_v51, %v16102_v15 }
 0x2e8   : > { %v897_v30 = vpop.permute.xlu0 %896  ;;  %v1235_v23 = vld [vmem:[#allocation3 + $0x68] sm:$0xff]  ;;  %1026 = vst.msk [vmem:[#allocation3 + $0x70] sm:$0xff] %vm1011_vm8, %v992_v5 }
 0x2e9   : > { %930 = vst.msk [vmem:[#allocation3 + $0x78] sm:$0xff] %vm914_vm7, %v897_v30  ;;  %v1283_v58 = vsel %vm1242_vm11, %v1235_v23, 0  ;;  %v3608_v37 = vand.u32 4294901760, %v3607_v50 }
 0x2ea   : > { %v13338_v7 = vand.u32 4294901760, %v1283_v58 }
 0x2eb   : > { %10307 = vmatprep.mubr.f32.mxu1 %v3608_v37  ;;  %v3123_v16 = vpop.permute.xlu1 %3122  ;;  %v3363_v55 = vld [vmem:[#allocation3 + $0xe8] sm:$0xff] }
 0x2ec   : > { %16295 = vst [vmem:[#allocation42_spill] sm:$0xff] %v13338_v7  ;;  %v3028_v25 = vpop.permute.xlu0 %3027  ;;  %v13341_v17 = vsub.f32 %v1283_v58, %v13338_v7  ;;  %3156 = vst.msk [vmem:[#allocation3 + $0xf0] sm:$0xff] %vm1011_vm8, %v3123_v16  ;;  %v3406_v30 = vsel %vm1242_vm11, %v3363_v55, 0 }
 0x2ed   : > { %3060 = vst.msk [vmem:[#allocation3 + $0xf8] sm:$0xff] %vm914_vm7, %v3028_v25  ;;  %v13347_v15 = vand.u32 4294901760, %v3406_v30 }
 0x2ee   : > { %16296 = vst [vmem:[#allocation43_spill] sm:$0xff] %v13341_v17  ;;  %v16107_v5 = vand.u32 4294901760, %v13341_v17 }
 0x2ef   : > { %16297 = vst [vmem:[#allocation44_spill] sm:$0xff] %v13347_v15  ;;  %v1089_v23 = vpop.permute.xlu1 %1088  ;;  %v13353_v58 = vsub.f32 %v3406_v30, %v13347_v15 }
 0x2f0   : > { %v994_v50 = vpop.permute.xlu0 %993  ;;  %v1498_v37 = vsub.f32 %v13341_v17, %v16107_v5  ;;  %1123 = vst.msk [vmem:[#allocation3 + $0x70] sm:$0xff] %vm1108_vm9, %v1089_v23 }
 0x2f1   : > { %16298 = vst [vmem:[#allocation45_spill] sm:$0xff] %v13353_v58  ;;  %1027 = vst.msk [vmem:[#allocation3 + $0x78] sm:$0xff] %vm1011_vm8, %v994_v50  ;;  %v16108_v55 = vand.u32 4294901760, %v13353_v58 }
 0x2f2   : > { %v1499_v25 = vand.u32 4294901760, %v1498_v37 }
 0x2f3   : > { %v3219_v51 = vpop.permute.xlu1 %3218  ;;  %v3617_v13 = vsub.f32 %v13353_v58, %v16108_v55 }
 0x2f4   : > { %v3125_v16 = vpop.permute.xlu0 %3124  ;;  %10104 = vmatmul.mubr.f32.gmra.mrb[12].mxu0 %v1499_v25  ;;  %3252 = vst.msk [vmem:[#allocation3 + $0xf0] sm:$0xff] %vm1108_vm9, %v3219_v51 }
 0x2f5   : > { %3157 = vst.msk [vmem:[#allocation3 + $0xf8] sm:$0xff] %vm1011_vm8, %v3125_v16  ;;  %v3618_v30 = vand.u32 4294901760, %v3617_v13 }
 0x2f7   : > { %10308 = vmatmul.mubr.f32.gmra.mrb[12].mxu1 %v3618_v30  ;;  %v1186_v50 = vpop.permute.xlu1 %1185 }
 0x2f8   : > { %v1091_v5 = vpop.permute.xlu0 %1090  ;;  %1220 = vst.msk [vmem:[#allocation3 + $0x70] sm:$0xff] %vm1205_vm10, %v1186_v50 }
 0x2f9   : > { %1124 = vst.msk [vmem:[#allocation3 + $0x78] sm:$0xff] %vm1108_vm9, %v1091_v5 }
 0x2fb   : > { %v3315_v37 = vpop.permute.xlu1 %3314 }
 0x2fc   : > { %v3221_v23 = vpop.permute.xlu0 %3220  ;;  %3348 = vst.msk [vmem:[#allocation3 + $0xf0] sm:$0xff] %vm1205_vm10, %v3315_v37 }
 0x2fd   : > { %3253 = vst.msk [vmem:[#allocation3 + $0xf8] sm:$0xff] %vm1108_vm9, %v3221_v23 }
 0x2ff   : > { %v3317_v55 = vpop.permute.xlu1 %3316  ;;  %v1236_v58 = vld [vmem:[#allocation3 + $0x70] sm:$0xff] }
 0x300   : > { %v1188_v25 = vpop.permute.xlu0 %1187  ;;  %3349 = vst.msk [vmem:[#allocation3 + $0xf8] sm:$0xff] %vm1205_vm10, %v3317_v55  ;;  %v1286_v13 = vsel %vm1242_vm11, %v1236_v58, 0 }
 0x301   : > { %1221 = vst.msk [vmem:[#allocation3 + $0x78] sm:$0xff] %vm1205_vm10, %v1188_v25  ;;  %v13370_v51 = vand.u32 4294901760, %v1286_v13 }
 0x303   : > { %16299 = vst [vmem:[#allocation46_spill] sm:$0xff] %v13370_v51  ;;  %v13373_v5 = vsub.f32 %v1286_v13, %v13370_v51  ;;  %v3364_v16 = vld [vmem:[#allocation3 + $0xf0] sm:$0xff] }
 0x304   : > { %v3409_v30 = vsel %vm1242_vm11, %v3364_v16, 0 }
 0x305   : > { %16300 = vst [vmem:[#allocation47_spill] sm:$0xff] %v13373_v5  ;;  %v16119_v50 = vand.u32 4294901760, %v13373_v5  ;;  %v13377_v23 = vand.u32 4294901760, %v3409_v30 }
 0x307   : > { %16301 = vst [vmem:[#allocation48_spill] sm:$0xff] %v13377_v23  ;;  %v1508_v37 = vsub.f32 %v13373_v5, %v16119_v50  ;;  %v13383_v55 = vsub.f32 %v3409_v30, %v13377_v23  ;;  %v3365_v25 = vld [vmem:[#allocation3 + $0xf8] sm:$0xff] }
 0x308   : > { %v1237_v58 = vld [vmem:[#allocation3 + $0x78] sm:$0xff]  ;;  %v3412_v13 = vsel %vm1242_vm11, %v3365_v25, 0 }
 0x309   : > { %16302 = vst [vmem:[#allocation49_spill] sm:$0xff] %v13383_v55  ;;  %v1289_v17 = vsel %vm1242_vm11, %v1237_v58, 0  ;;  %v1509_v1 = vand.u32 4294901760, %v1508_v37  ;;  %v16122_v16 = vand.u32 4294901760, %v13383_v55  ;;  %v13390_v47 = vand.u32 4294901760, %v3412_v13 }
 0x30a   : > { %v13388_v57 = vand.u32 4294901760, %v1289_v17 }
 0x30b   : > { %16304 = vst [vmem:[#allocation51_spill] sm:$0xff] %v13390_v47  ;;  %10106 = vmatprep.mubr.f32.mxu0 %v1509_v1  ;;  %v3627_v50 = vsub.f32 %v13383_v55, %v16122_v16  ;;  %v13399_v5 = vsub.f32 %v3412_v13, %v13390_v47  ;;  %v16311_v13 = vld [vmem:[#allocation22_spill] sm:$0xff] }
 0x30c   : > { %16303 = vst [vmem:[#allocation50_spill] sm:$0xff] %v13388_v57  ;;  %v13396_v30 = vsub.f32 %v1289_v17, %v13388_v57 }
 0x30d   : > { %v3628_v58 = vand.u32 4294901760, %v3627_v50  ;;  %v16125_v25 = vand.u32 4294901760, %v13399_v5  ;;  %v16307_v50 = vld [vmem:[#allocation18_spill] sm:$0xff] }
 0x30e   : > { %v16126_v37 = vand.u32 4294901760, %v13396_v30 }
 0x30f   : > { %10310 = vmatprep.mubr.f32.mxu1 %v3628_v58  ;;  %v3637_v16 = vsub.f32 %v13399_v5, %v16125_v25  ;;  %v16313_v58 = vld [vmem:[#allocation26_spill] sm:$0xff]  ;;  %v16318_v25 = vld [vmem:[#allocation39_spill] sm:$0xff] }
 0x310   : > { %v1518_v1 = vsub.f32 %v13396_v30, %v16126_v37  ;;  %v16319_v37 = vld [vmem:[#allocation41_spill] sm:$0xff] }
 0x311   : > { %v3638_v17 = vand.u32 4294901760, %v3637_v16  ;;  %v16312_v16 = vld [vmem:[#allocation24_spill] sm:$0xff] }
 0x312   : > { %v1519_v55 = vand.u32 4294901760, %v1518_v1  ;;  %v16314_v1 = vld [vmem:[#allocation31_spill] sm:$0xff] }
 0x313   : > { %10311 = vmatmul.mubr.f32.gmra.mrb[14].mxu1 %v3638_v17  ;;  %v16315_v17 = vld [vmem:[#allocation33_spill] sm:$0xff] }
 0x314   : > { %10107 = vmatmul.mubr.f32.gmra.mrb[14].mxu0 %v1519_v55  ;;  %10323 = vmatprep.mubr.f32.mxu1 %v12494_v26  ;;  %v16308_v55 = vld [vmem:[#allocation19_spill] sm:$0xff] }
 0x315   : > { %10119 = vmatprep.mubr.f32.mxu0 %v12468_v0 }
 0x317   : > { %10324 = vmatmul.mubr.f32.vlgmr.msra.gmra.mrb[0].mxu1 %v12548_v62 }
 0x318   : > { %10120 = vmatmul.mubr.f32.vlgmr.msra.gmra.mrb[0].mxu0 %v12521_v44  ;;  %10958 = vmatpush3.bf16.msra.mxu1 %v13227_v34 }
 0x319   : > { %10910 = vmatpush3.bf16.msra.mxu0 %v13227_v34  ;;  %10122 = vmatprep.mubr.f32.mxu0 %v12652_v9  ;;  %v16306_v34 = vand.u32 4294901760, %v13156_v36  ;;  %v16310_v36 = vld [vmem:[#allocation21_spill] sm:$0xff] }
 0x31a   : > { %10326 = vmatprep.mubr.f32.mxu1 %v12678_v40  ;;  %10912 = vmatprep.subr.bf16.mxu0 %v13250_v18 }
 0x31b   : > { %10960 = vmatprep.subr.bf16.mxu1 %v13250_v18  ;;  %10327 = vmatmul.mubr.f32.gmra.mrb[2].mxu1 %v12734_v48 }
 0x31c   : > { %10123 = vmatmul.mubr.f32.gmra.mrb[2].mxu0 %v12709_v4  ;;  %10329 = vmatprep.mubr.f32.mxu1 %v12836_v19 }
 0x31d   : > { %10125 = vmatprep.mubr.f32.mxu0 %v12810_v28  ;;  %10914 = vmatpush3.bf16.msra.mxu0 %v13250_v18 }
 0x31e   : > { %10962 = vmatpush3.bf16.msra.mxu1 %v13250_v18  ;;  %10151 = vmatprep.subr.mxu0 %v13210_v14 }
 0x31f   : > { %10355 = vmatprep.subr.mxu1 %v13210_v14  ;;  %10330 = vmatmul.mubr.f32.gmra.mrb[4].mxu1 %v12887_v43 }
 0x320   : > { %10126 = vmatmul.mubr.f32.gmra.mrb[4].mxu0 %v12862_v32  ;;  %10332 = vmatprep.mubr.f32.mxu1 %v12984_v12 }
 0x321   : > { %10128 = vmatprep.mubr.f32.mxu0 %v12958_v42  ;;  %10152 = vmatpush3.msra.mxu0 %v13210_v14 }
 0x322   : > { %10356 = vmatpush3.msra.mxu1 %v13210_v14  ;;  %10916 = vmatprep.subr.bf16.mxu0 %v12213_v20  ;;  %v16305_v14 = vand.u32 4294901760, %v13152_v46  ;;  %v16309_v46 = vld [vmem:[#allocation20_spill] sm:$0xff] }
 0x323   : > { %10964 = vmatprep.subr.bf16.mxu1 %v12213_v20  ;;  %10333 = vmatmul.mubr.f32.gmra.mrb[6].mxu1 %v13032_v59 }
 0x324   : > { %10129 = vmatmul.mubr.f32.gmra.mrb[6].mxu0 %v13008_v41  ;;  %10335 = vmatprep.mubr.f32.mxu1 %v13107_v21  ;;  %v10923_v18 = vpack.c.bf16 %v16306_v34, %v16305_v14  ;;  %v16316_v14 = vld [vmem:[#allocation35_spill] sm:$0xff]  ;;  %v16317_v34 = vld [vmem:[#allocation37_spill] sm:$0xff] }
 0x325   : > { %10131 = vmatprep.mubr.f32.mxu0 %v13089_v49 }
 0x327   : > { %10336 = vmatmul.mubr.f32.gmra.mrb[8].mxu1 %v13143_v11  ;;  %v16331_v11 = vand.u32 4294901760, %v12553_v8 }
 0x328   : > { %10132 = vmatmul.mubr.f32.gmra.mrb[8].mxu0 %v13125_v39  ;;  %10338 = vmatprep.mubr.f32.mxu1 %v13252_v61  ;;  %v16332_v39 = vand.u32 4294901760, %v12659_v29 }
 0x329   : > { %10134 = vmatprep.mubr.f32.mxu0 %v13234_v52  ;;  %v16330_v52 = vand.u32 4294901760, %v12526_v53 }
 0x32b   : > { %10339 = vmatmul.mubr.f32.gmra.mrb[10].mxu1 %v13280_v56  ;;  %v16328_v56 = vld [vmem:[#allocation28_spill] sm:$0xff] }
 0x32c   : > { %10135 = vmatmul.mubr.f32.gmra.mrb[10].mxu0 %v13266_v22  ;;  %10341 = vmatprep.mubr.f32.mxu1 %v13324_v24  ;;  %v16326_v24 = vld [vmem:[#allocation27_spill] sm:$0xff]  ;;  %v16329_v22 = vand.u32 4294901760, %v16328_v56  ;;  %v16352_v56 = vand.u32 4294901760, %v16317_v34 }
 0x32d   : > { %10137 = vmatprep.mubr.f32.mxu0 %v13310_v35  ;;  %v16327_v35 = vand.u32 4294901760, %v16326_v24  ;;  %v16350_v24 = vand.u32 4294901760, %v16315_v17 }
 0x32f   : > { %10342 = vmatmul.mubr.f32.gmra.mrb[12].mxu1 %v13347_v15  ;;  %v16324_v15 = vand.u32 4294901760, %v12475_v6  ;;  %v10927_v61 = vpack.c.bf16 %v16329_v22, %v16327_v35  ;;  %v16335_v22 = vand.u32 4294901760, %v12737_v63  ;;  %v16353_v35 = vand.u32 4294901760, %v16318_v25 }
 0x330   : > { %10138 = vmatmul.mubr.f32.gmra.mrb[12].mxu0 %v13338_v7  ;;  %10344 = vmatprep.mubr.f32.mxu1 %v13377_v23  ;;  %v16322_v23 = vld [vmem:[#allocation47_spill] sm:$0xff]  ;;  %v16325_v7 = vand.u32 4294901760, %v12501_v33 }
 0x331   : > { %10140 = vmatprep.mubr.f32.mxu0 %v13370_v51  ;;  %v16323_v51 = vld [vmem:[#allocation49_spill] sm:$0xff] }
 0x333   : > { %10345 = vmatmul.mubr.f32.gmra.mrb[14].mxu1 %v13390_v47  ;;  %v16320_v47 = vld [vmem:[#allocation43_spill] sm:$0xff] }
 0x334   : > { %10141 = vmatmul.mubr.f32.gmra.mrb[14].mxu0 %v13388_v57  ;;  %10357 = vmatprep.mubr.f32.mxu1 %v12501_v33  ;;  %v16321_v57 = vld [vmem:[#allocation45_spill] sm:$0xff]  ;;  %v16334_v33 = vand.u32 4294901760, %v12714_v10 }
 0x335   : > { %10153 = vmatprep.mubr.f32.mxu0 %v12475_v6  ;;  %v16333_v6 = vand.u32 4294901760, %v12685_v54 }
 0x337   : > { %10358 = vmatmul.mubr.f32.vlgmr.msra.gmra.mrb[0].mxu1 %v12553_v8  ;;  %v16337_v8 = vand.u32 4294901760, %v12843_v45 }
 0x338   : > { %10154 = vmatmul.mubr.f32.vlgmr.msra.gmra.mrb[0].mxu0 %v12526_v53  ;;  %10966 = vmatpush3.bf16.msra.mxu1 %v12213_v20  ;;  %v16336_v53 = vand.u32 4294901760, %v12817_v60 }
 0x339   : > { %10918 = vmatpush3.bf16.msra.mxu0 %v12213_v20  ;;  %10156 = vmatprep.mubr.f32.mxu0 %v12659_v29  ;;  %v16338_v29 = vld [vmem:[#allocation29_spill] sm:$0xff] }
 0x33a   : > { %10360 = vmatprep.mubr.f32.mxu1 %v12685_v54  ;;  %10920 = vmatprep.subr.bf16.mxu0 %v12232_v27  ;;  %v16339_v54 = vand.u32 4294901760, %v12868_v2 }
 0x33b   : > { %10968 = vmatprep.subr.bf16.mxu1 %v12232_v27  ;;  %10361 = vmatmul.mubr.f32.gmra.mrb[2].mxu1 %v12737_v63  ;;  %v16341_v63 = vand.u32 4294901760, %v12965_v3 }
 0x33c   : > { %10157 = vmatmul.mubr.f32.gmra.mrb[2].mxu0 %v12714_v10  ;;  %10363 = vmatprep.mubr.f32.mxu1 %v12843_v45  ;;  %v16340_v10 = vand.u32 4294901760, %v12891_v38  ;;  %v16343_v45 = vand.u32 4294901760, %v16308_v55 }
 0x33d   : > { %10159 = vmatprep.mubr.f32.mxu0 %v12817_v60  ;;  %10922 = vmatpush3.bf16.msra.mxu0 %v12232_v27  ;;  %v16342_v60 = vand.u32 4294901760, %v16307_v50 }
 0x33e   : > { %10970 = vmatpush3.bf16.msra.mxu1 %v12232_v27  ;;  %10185 = vmatprep.subr.mxu0 %v12247_v31 }
 0x33f   : > { %10389 = vmatprep.subr.mxu1 %v12247_v31  ;;  %10364 = vmatmul.mubr.f32.gmra.mrb[4].mxu1 %v12891_v38  ;;  %v16345_v38 = vand.u32 4294901760, %v16310_v36 }
 0x340   : > { %10160 = vmatmul.mubr.f32.gmra.mrb[4].mxu0 %v12868_v2  ;;  %10366 = vmatprep.mubr.f32.mxu1 %v16307_v50  ;;  %v16344_v2 = vand.u32 4294901760, %v16309_v46  ;;  %v16357_v50 = vand.u32 4294901760, %v16322_v23 }
 0x341   : > { %10162 = vmatprep.mubr.f32.mxu0 %v12965_v3  ;;  %10186 = vmatpush3.msra.mxu0 %v12247_v31  ;;  %v16346_v3 = vand.u32 4294901760, %v16311_v13 }
 0x342   : > { %10390 = vmatpush3.msra.mxu1 %v12247_v31  ;;  %10924 = vmatprep.subr.bf16.mxu0 %v10923_v18 }
 0x343   : > { %10972 = vmatprep.subr.bf16.mxu1 %v10923_v18  ;;  %10367 = vmatmul.mubr.f32.gmra.mrb[6].mxu1 %v16309_v46  ;;  %v16359_v46 = vand.u32 4294901760, %v13396_v30 }
 0x344   : > { %10163 = vmatmul.mubr.f32.gmra.mrb[6].mxu0 %v16308_v55  ;;  %10369 = vmatprep.mubr.f32.mxu1 %v16311_v13  ;;  %v16358_v55 = vand.u32 4294901760, %v16323_v51  ;;  %v16372_v13 = vld [vmem:[#allocation48_spill] sm:$0xff] }
 0x345   : > { %10165 = vmatprep.mubr.f32.mxu0 %v16310_v36  ;;  %v16371_v36 = vld [vmem:[#allocation46_spill] sm:$0xff] }
 0x347   : > { %10370 = vmatmul.mubr.f32.gmra.mrb[8].mxu1 %v16313_v58 }
 0x348   : > { %10166 = vmatmul.mubr.f32.gmra.mrb[8].mxu0 %v16312_v16  ;;  %10372 = vmatprep.mubr.f32.mxu1 %v16315_v17 }
 0x349   : > { %10168 = vmatprep.mubr.f32.mxu0 %v16314_v1 }
 0x34b   : > { %10373 = vmatmul.mubr.f32.gmra.mrb[10].mxu1 %v16317_v34 }
 0x34c   : > { %10169 = vmatmul.mubr.f32.gmra.mrb[10].mxu0 %v16316_v14  ;;  %10375 = vmatprep.mubr.f32.mxu1 %v16319_v37 }
 0x34d   : > { %10171 = vmatprep.mubr.f32.mxu0 %v16318_v25  ;;  %v16360_v25 = vand.u32 4294901760, %v13399_v5 }
 0x34f   : > { %10376 = vmatmul.mubr.f32.gmra.mrb[12].mxu1 %v16321_v57 }
 0x350   : > { %10172 = vmatmul.mubr.f32.gmra.mrb[12].mxu0 %v16320_v47  ;;  %10378 = vmatprep.mubr.f32.mxu1 %v16323_v51  ;;  %v16365_v51 = vld [vmem:[#allocation34_spill] sm:$0xff] }
 0x351   : > { %10174 = vmatprep.mubr.f32.mxu0 %v16322_v23  ;;  %v16368_v23 = vld [vmem:[#allocation40_spill] sm:$0xff] }
 0x353   : > { %10379 = vmatmul.mubr.f32.gmra.mrb[14].mxu1 %v13399_v5  ;;  %v16366_v5 = vld [vmem:[#allocation36_spill] sm:$0xff] }
 0x354   : > { %10175 = vmatmul.mubr.f32.gmra.mrb[14].mxu0 %v13396_v30  ;;  %10391 = vmatprep.mubr.f32.mxu1 %v16325_v7  ;;  %v16355_v7 = vand.u32 4294901760, %v16320_v47  ;;  %v16363_v47 = vld [vmem:[#allocation30_spill] sm:$0xff] }
 0x355   : > { %10187 = vmatprep.mubr.f32.mxu0 %v16324_v15  ;;  %v16354_v15 = vand.u32 4294901760, %v16319_v37  ;;  %v16369_v30 = vld [vmem:[#allocation42_spill] sm:$0xff]  ;;  %v16370_v37 = vld [vmem:[#allocation44_spill] sm:$0xff] }
 0x357   : > { %10392 = vmatmul.mubr.f32.vlgmr.msra.gmra.mrb[0].mxu1 %v16331_v11  ;;  %v16348_v11 = vand.u32 4294901760, %v16313_v58  ;;  %v16374_v58 = vld [vmem:[#allocation51_spill] sm:$0xff] }
 0x358   : > { %10188 = vmatmul.mubr.f32.vlgmr.msra.gmra.mrb[0].mxu0 %v16330_v52  ;;  %10974 = vmatpush3.bf16.msra.mxu1 %v10923_v18  ;;  %v16349_v52 = vand.u32 4294901760, %v16314_v1 }
 0x359   : > { %10926 = vmatpush3.bf16.msra.mxu0 %v10923_v18  ;;  %10190 = vmatprep.mubr.f32.mxu0 %v16332_v39  ;;  %v16347_v39 = vand.u32 4294901760, %v16312_v16  ;;  %v16356_v18 = vand.u32 4294901760, %v16321_v57  ;;  %v16364_v57 = vld [vmem:[#allocation32_spill] sm:$0xff]  ;;  %v16373_v16 = vld [vmem:[#allocation50_spill] sm:$0xff] }
 0x35a   : > { %10394 = vmatprep.mubr.f32.mxu1 %v16333_v6  ;;  %10928 = vmatprep.subr.bf16.mxu0 %v10927_v61 }
 0x35b   : > { %10976 = vmatprep.subr.bf16.mxu1 %v10927_v61  ;;  %10395 = vmatmul.mubr.f32.gmra.mrb[2].mxu1 %v16335_v22 }
 0x35c   : > { %10191 = vmatmul.mubr.f32.gmra.mrb[2].mxu0 %v16334_v33  ;;  %10397 = vmatprep.mubr.f32.mxu1 %v16337_v8 }
 0x35d   : > { %10193 = vmatprep.mubr.f32.mxu0 %v16336_v53  ;;  %10930 = vmatpush3.bf16.msra.mxu0 %v10927_v61 }
 0x35e   : > { %10978 = vmatpush3.bf16.msra.mxu1 %v10927_v61  ;;  %10219 = vmatprep.subr.mxu0 %v16338_v29  ;;  %v16351_v61 = vand.u32 4294901760, %v16316_v14 }
 0x35f   : > { %10423 = vmatprep.subr.mxu1 %v16338_v29  ;;  %10398 = vmatmul.mubr.f32.gmra.mrb[4].mxu1 %v16340_v10 }
 0x360   : > { %10194 = vmatmul.mubr.f32.gmra.mrb[4].mxu0 %v16339_v54  ;;  %10400 = vmatprep.mubr.f32.mxu1 %v16342_v60 }
 0x361   : > { %10196 = vmatprep.mubr.f32.mxu0 %v16341_v63  ;;  %10220 = vmatpush3.msra.mxu0 %v16338_v29 }
 0x362   : > { %10424 = vmatpush3.msra.mxu1 %v16338_v29  ;;  %10932 = vmatprep.subr.bf16.mxu0 %v12213_v20 }
 0x363   : > { %10980 = vmatprep.subr.bf16.mxu1 %v12213_v20  ;;  %10401 = vmatmul.mubr.f32.gmra.mrb[6].mxu1 %v16344_v2 }
 0x364   : > { %10197 = vmatmul.mubr.f32.gmra.mrb[6].mxu0 %v16343_v45  ;;  %10403 = vmatprep.mubr.f32.mxu1 %v16346_v3 }
 0x365   : > { %10199 = vmatprep.mubr.f32.mxu0 %v16345_v38 }
 0x367   : > { %10404 = vmatmul.mubr.f32.gmra.mrb[8].mxu1 %v16348_v11 }
 0x368   : > { %10200 = vmatmul.mubr.f32.gmra.mrb[8].mxu0 %v16347_v39  ;;  %10406 = vmatprep.mubr.f32.mxu1 %v16350_v24 }
 0x369   : > { %10202 = vmatprep.mubr.f32.mxu0 %v16349_v52 }
 0x36b   : > { %10407 = vmatmul.mubr.f32.gmra.mrb[10].mxu1 %v16352_v56 }
 0x36c   : > { %10203 = vmatmul.mubr.f32.gmra.mrb[10].mxu0 %v16351_v61  ;;  %10409 = vmatprep.mubr.f32.mxu1 %v16354_v15 }
 0x36d   : > { %10205 = vmatprep.mubr.f32.mxu0 %v16353_v35 }
 0x36f   : > { %10410 = vmatmul.mubr.f32.gmra.mrb[12].mxu1 %v16356_v18 }
 0x370   : > { %10206 = vmatmul.mubr.f32.gmra.mrb[12].mxu0 %v16355_v7  ;;  %10412 = vmatprep.mubr.f32.mxu1 %v16358_v55 }
 0x371   : > { %10208 = vmatprep.mubr.f32.mxu0 %v16357_v50 }
 0x373   : > { %10413 = vmatmul.mubr.f32.gmra.mrb[14].mxu1 %v16360_v25 }
 0x374   : > { %10209 = vmatmul.mubr.f32.gmra.mrb[14].mxu0 %v16359_v46  ;;  %10425 = vmatprep.mubr.f32.mxu1 %v12494_v26 }
 0x375   : > { %10221 = vmatprep.mubr.f32.mxu0 %v12468_v0 }
 0x377   : > { %10426 = vmatmul.mubr.f32.vlgmr.msra.gmra.mrb[0].mxu1 %v12548_v62 }
 0x378   : > { %10222 = vmatmul.mubr.f32.vlgmr.msra.gmra.mrb[0].mxu0 %v12521_v44  ;;  %10982 = vmatpush3.bf16.msra.mxu1 %v12213_v20 }
 0x379   : > { %10934 = vmatpush3.bf16.msra.mxu0 %v12213_v20  ;;  %10224 = vmatprep.mubr.f32.mxu0 %v12652_v9  ;;  %v16361_v20 = vld [vmem:[#allocation23_spill] sm:$0xff] }
 0x37a   : > { %10428 = vmatprep.mubr.f32.mxu1 %v12678_v40  ;;  %10936 = vmatprep.subr.bf16.mxu0 %v12232_v27 }
 0x37b   : > { %10984 = vmatprep.subr.bf16.mxu1 %v12232_v27  ;;  %10429 = vmatmul.mubr.f32.gmra.mrb[2].mxu1 %v12734_v48 }
 0x37c   : > { %10225 = vmatmul.mubr.f32.gmra.mrb[2].mxu0 %v12709_v4  ;;  %10431 = vmatprep.mubr.f32.mxu1 %v12836_v19 }
 0x37d   : > { %10227 = vmatprep.mubr.f32.mxu0 %v12810_v28  ;;  %10938 = vmatpush3.bf16.msra.mxu0 %v12232_v27 }
 0x37e   : > { %10986 = vmatpush3.bf16.msra.mxu1 %v12232_v27  ;;  %10253 = vmatprep.subr.mxu0 %v12247_v31  ;;  %v16362_v27 = vld [vmem:[#allocation25_spill] sm:$0xff] }
 0x37f   : > { %10457 = vmatprep.subr.mxu1 %v12247_v31  ;;  %10432 = vmatmul.mubr.f32.gmra.mrb[4].mxu1 %v12887_v43 }
 0x380   : > { %10228 = vmatmul.mubr.f32.gmra.mrb[4].mxu0 %v12862_v32  ;;  %10434 = vmatprep.mubr.f32.mxu1 %v12984_v12 }
 0x381   : > { %10230 = vmatprep.mubr.f32.mxu0 %v12958_v42  ;;  %10254 = vmatpush3.msra.mxu0 %v12247_v31 }
 0x382   : > { %10458 = vmatpush3.msra.mxu1 %v12247_v31  ;;  %v16367_v31 = vld [vmem:[#allocation38_spill] sm:$0xff] }
 0x383   : > { %10435 = vmatmul.mubr.f32.gmra.mrb[6].mxu1 %v13032_v59 }
 0x384   : > { %10231 = vmatmul.mubr.f32.gmra.mrb[6].mxu0 %v13008_v41  ;;  %10437 = vmatprep.mubr.f32.mxu1 %v13107_v21 }
 0x385   : > { %10233 = vmatprep.mubr.f32.mxu0 %v13089_v49 }
 0x387   : > { %10438 = vmatmul.mubr.f32.gmra.mrb[8].mxu1 %v16362_v27 }
 0x388   : > { %10234 = vmatmul.mubr.f32.gmra.mrb[8].mxu0 %v16361_v20  ;;  %10440 = vmatprep.mubr.f32.mxu1 %v16364_v57 }
 0x389   : > { %10236 = vmatprep.mubr.f32.mxu0 %v16363_v47 }
 0x38b   : > { %10441 = vmatmul.mubr.f32.gmra.mrb[10].mxu1 %v16366_v5 }
 0x38c   : > { %10237 = vmatmul.mubr.f32.gmra.mrb[10].mxu0 %v16365_v51  ;;  %10443 = vmatprep.mubr.f32.mxu1 %v16368_v23 }
 0x38d   : > { %10239 = vmatprep.mubr.f32.mxu0 %v16367_v31 }
 0x38f   : > { %10444 = vmatmul.mubr.f32.gmra.mrb[12].mxu1 %v16370_v37 }
 0x390   : > { %10240 = vmatmul.mubr.f32.gmra.mrb[12].mxu0 %v16369_v30  ;;  %10446 = vmatprep.mubr.f32.mxu1 %v16372_v13 }
 0x391   : > { %10242 = vmatprep.mubr.f32.mxu0 %v16371_v36 }
 0x393   : > { %10447 = vmatmul.mubr.f32.gmra.mrb[14].mxu1 %v16374_v58 }
 0x394   : > { %10243 = vmatmul.mubr.f32.gmra.mrb[14].mxu0 %v16373_v16  ;;  %10459 = vmatprep.mubr.f32.mxu1 %v12494_v26 }
 0x395   : > { %10255 = vmatprep.mubr.f32.mxu0 %v12468_v0  ;;  %v1238_v0 = vlaneseq }
 0x397   : > { %10460 = vmatmul.mubr.f32.vlgmr.msra.gmra.mrb[0].mxu1 %v12548_v62  ;;  %v13647_v26 = vshrl.u32 %v1238_v0, 7  ;;  %v13650_v62 = vld [vmem:[#allocation11] sm:$0x3f] }
 0x398   : > { %10256 = vmatmul.mubr.f32.vlgmr.msra.gmra.mrb[0].mxu0 %v12521_v44  ;;  %10462 = vmatprep.mubr.f32.mxu1 %v12678_v40 }
 0x399   : > { %10258 = vmatprep.mubr.f32.mxu0 %v12652_v9  ;;  %16375 = vst [vmem:[#allocation18_spill] sm:$0xff] %v13647_v26  ;;  %v1240_v44 = vsub.s32 0, %v13647_v26 }
 0x39b   : > { %10463 = vmatmul.mubr.f32.gmra.mrb[2].mxu1 %v12734_v48  ;;  %v13653_v9 = vrot.slane %v13650_v62, %v1240_v44 }
 0x39c   : > { %10259 = vmatmul.mubr.f32.gmra.mrb[2].mxu0 %v12709_v4  ;;  %10465 = vmatprep.mubr.f32.mxu1 %v12836_v19 }
 0x39d   : > { %10261 = vmatprep.mubr.f32.mxu0 %v12810_v28 }
 0x39f   : > { %10466 = vmatmul.mubr.f32.gmra.mrb[4].mxu1 %v12887_v43 }
 0x3a0   : > { %10262 = vmatmul.mubr.f32.gmra.mrb[4].mxu0 %v12862_v32  ;;  %10468 = vmatprep.mubr.f32.mxu1 %v12984_v12 }
 0x3a1   : > { %10264 = vmatprep.mubr.f32.mxu0 %v12958_v42 }
 0x3a3   : > { %10469 = vmatmul.mubr.f32.gmra.mrb[6].mxu1 %v13032_v59 }
 0x3a4   : > { %10265 = vmatmul.mubr.f32.gmra.mrb[6].mxu0 %v13008_v41  ;;  %10471 = vmatprep.mubr.f32.mxu1 %v13107_v21 }
 0x3a5   : > { %10267 = vmatprep.mubr.f32.mxu0 %v13089_v49 }
 0x3a7   : > { %10472 = vmatmul.mubr.f32.gmra.mrb[8].mxu1 %v16362_v27 }
 0x3a8   : > { %10268 = vmatmul.mubr.f32.gmra.mrb[8].mxu0 %v16361_v20  ;;  %10474 = vmatprep.mubr.f32.mxu1 %v16364_v57 }
 0x3a9   : > { %10270 = vmatprep.mubr.f32.mxu0 %v16363_v47 }
 0x3ab   : > { %10475 = vmatmul.mubr.f32.gmra.mrb[10].mxu1 %v16366_v5 }
 0x3ac   : > { %10271 = vmatmul.mubr.f32.gmra.mrb[10].mxu0 %v16365_v51  ;;  %10477 = vmatprep.mubr.f32.mxu1 %v16368_v23 }
 0x3ad   : > { %10273 = vmatprep.mubr.f32.mxu0 %v16367_v31 }
 0x3af   : > { %10478 = vmatmul.mubr.f32.gmra.mrb[12].mxu1 %v16370_v37 }
 0x3b0   : > { %10274 = vmatmul.mubr.f32.gmra.mrb[12].mxu0 %v16369_v30  ;;  %10480 = vmatprep.mubr.f32.mxu1 %v16372_v13 }
 0x3b1   : > { %10276 = vmatprep.mubr.f32.mxu0 %v16371_v36 }
 0x3b3   : > { %10481 = vmatmul.mubr.f32.gmra.mrb[14].mxu1 %v16374_v58 }
 0x3b4   : > { %10277 = vmatmul.mubr.f32.gmra.mrb[14].mxu0 %v16373_v16 }
 0x46a   : > { %v10461_v4 = vpop.f32.mrb[0].mxu1 }
 0x46b   : > { %v10257_v40 = vpop.f32.mrb[0].mxu0  ;;  %v11099_v28 = vadd.f32 %v10461_v4, %v13653_v9  ;;  %v4463_v43 = vpop.f32.mrb[1].mxu1 }
 0x46c   : > { %v11083_v48 = vadd.f32 %v10257_v40, %v13653_v9  ;;  %v2344_v19 = vpop.f32.mrb[1].mxu0  ;;  %v11100_v42 = vadd.f32 %v4463_v43, %v13653_v9 }
 0x46d   : > { %v11084_v32 = vadd.f32 %v2344_v19, %v13653_v9  ;;  %4558 = vst.msk [vmem:[#allocation4 + $0x88] sm:$0xff] %vm292_vm0, %v11099_v28  ;;  %v4574_v59 = vsel %vm292_vm0, %v11099_v28, 0.0  ;;  %v4612_v49 = vmul.f32 %v11099_v28, %v11099_v28 }
 0x46e   : > { %2439 = vst.msk [vmem:[#allocation4 + $0x8] sm:$0xff] %vm292_vm0, %v11083_v48  ;;  %v2455_v12 = vsel %vm292_vm0, %v11083_v48, 0.0  ;;  %v2493_v41 = vmul.f32 %v11083_v48, %v11083_v48  ;;  %4557 = vst.msk [vmem:[#allocation4 + $0x80] sm:$0xff] %vm292_vm0, %v11100_v42  ;;  %v4573_v17 = vsel %vm292_vm0, %v11100_v42, 0.0  ;;  %v4611_v14 = vmul.f32 %v11100_v42, %v11100_v42  ;;  %v10464_v6 = vpop.f32.mrb[2].mxu1 }
 0x46f   : > { %2438 = vst.msk [vmem:[#allocation4] sm:$0xff] %vm292_vm0, %v11084_v32  ;;  %v2454_v21 = vsel %vm292_vm0, %v11084_v32, 0.0  ;;  %v2492_v1 = vmul.f32 %v11084_v32, %v11084_v32  ;;  %v10260_v34 = vpop.f32.mrb[2].mxu0  ;;  %v4628_v22 = vsel %vm292_vm0, %v4612_v49, 0.0  ;;  %v4575_v8 = vadd.f32 %v4574_v59, %v4573_v17  ;;  %v4475_v54 = vpop.f32.mrb[3].mxu1 }
 0x470   : > { %v2509_v33 = vsel %vm292_vm0, %v2493_v41, 0.0  ;;  %v2456_v53 = vadd.f32 %v2455_v12, %v2454_v21  ;;  %v2356_v29 = vpop.f32.mrb[3].mxu0  ;;  %v4627_v63 = vsel %vm292_vm0, %v4611_v14, 0.0  ;;  %v11085_v60 = vadd.f32 %v10260_v34, %v13653_v9 }
 0x471   : > { %v2508_v10 = vsel %vm292_vm0, %v2492_v1, 0.0  ;;  %v11101_v45 = vadd.f32 %v10464_v6, %v13653_v9  ;;  %v4629_v38 = vadd.f32 %v4628_v22, %v4627_v63  ;;  %v11086_v3 = vadd.f32 %v2356_v29, %v13653_v9 }
 0x472   : > { %v2510_v2 = vadd.f32 %v2509_v33, %v2508_v10  ;;  %v11102_v39 = vadd.f32 %v4475_v54, %v13653_v9  ;;  %2441 = vst.msk [vmem:[#allocation4 + $0x18] sm:$0xff] %vm292_vm0, %v11085_v60  ;;  %v2495_v11 = vmul.f32 %v11085_v60, %v11085_v60  ;;  %v10467_v61 = vpop.f32.mrb[4].mxu1  ;;  %v2459_v55 = vsel %vm292_vm0, %v11085_v60, 0.0 }
 0x473   : > { %4560 = vst.msk [vmem:[#allocation4 + $0x98] sm:$0xff] %vm292_vm0, %v11101_v45  ;;  %v4614_v52 = vmul.f32 %v11101_v45, %v11101_v45  ;;  %v10263_v24 = vpop.f32.mrb[4].mxu0  ;;  %2440 = vst.msk [vmem:[#allocation4 + $0x10] sm:$0xff] %vm292_vm0, %v11086_v3  ;;  %v2457_v56 = vsel %vm292_vm0, %v11086_v3, 0.0  ;;  %v2494_v35 = vmul.f32 %v11086_v3, %v11086_v3  ;;  %v4487_v50 = vpop.f32.mrb[5].mxu1  ;;  %v11103_v57 = vadd.f32 %v10467_v61, %v13653_v9 }
 0x474   : > { %4559 = vst.msk [vmem:[#allocation4 + $0x90] sm:$0xff] %vm292_vm0, %v11102_v39  ;;  %v4576_v15 = vsel %vm292_vm0, %v11102_v39, 0.0  ;;  %v4613_v7 = vmul.f32 %v11102_v39, %v11102_v39  ;;  %v2368_v18 = vpop.f32.mrb[5].mxu0  ;;  %v2458_v46 = vadd.f32 %v2457_v56, %v2456_v53  ;;  %v11087_v47 = vadd.f32 %v10263_v24, %v13653_v9 }
 0x475   : > { %v4577_v25 = vadd.f32 %v4576_v15, %v4575_v8  ;;  %v2511_v20 = vsel %vm292_vm0, %v2494_v35, 0.0  ;;  %v11088_v31 = vadd.f32 %v2368_v18, %v13653_v9  ;;  %v2513_v36 = vsel %vm292_vm0, %v2495_v11, 0.0  ;;  %4562 = vst.msk [vmem:[#allocation4 + $0xa8] sm:$0xff] %vm292_vm0, %v11103_v57 }
 0x476   : > { %v4630_v27 = vsel %vm292_vm0, %v4613_v7, 0.0  ;;  %v2512_v51 = vadd.f32 %v2511_v20, %v2510_v2  ;;  %v2460_v23 = vadd.f32 %v2459_v55, %v2458_v46  ;;  %v10470_v37 = vpop.f32.mrb[6].mxu1  ;;  %v4578_v13 = vsel %vm292_vm0, %v11101_v45, 0.0  ;;  %2443 = vst.msk [vmem:[#allocation4 + $0x28] sm:$0xff] %vm292_vm0, %v11087_v47 }
 0x477   : > { %v4631_v5 = vadd.f32 %v4630_v27, %v4629_v38  ;;  %v10266_v30 = vpop.f32.mrb[6].mxu0  ;;  %v4632_v16 = vsel %vm292_vm0, %v4614_v52, 0.0  ;;  %v2463_v58 = vsel %vm292_vm0, %v11087_v47, 0.0  ;;  %v4499_v44 = vpop.f32.mrb[7].mxu1  ;;  %2442 = vst.msk [vmem:[#allocation4 + $0x20] sm:$0xff] %vm292_vm0, %v11088_v31  ;;  %v2461_v40 = vsel %vm292_vm0, %v11088_v31, 0.0 }
 0x478   : > { %v2380_v0 = vpop.f32.mrb[7].mxu0  ;;  %v2496_v4 = vmul.f32 %v11088_v31, %v11088_v31  ;;  %v2514_v48 = vadd.f32 %v2513_v36, %v2512_v51  ;;  %v11104_v28 = vadd.f32 %v4487_v50, %v13653_v9  ;;  %v2497_v19 = vmul.f32 %v11087_v47, %v11087_v47 }
 0x479   : > { %v4616_v43 = vmul.f32 %v11103_v57, %v11103_v57  ;;  %v2462_v32 = vadd.f32 %v2461_v40, %v2460_v23  ;;  %v4579_v42 = vadd.f32 %v4578_v13, %v4577_v25  ;;  %v4633_v49 = vadd.f32 %v4632_v16, %v4631_v5 }
 0x47a   : > { %v2515_v12 = vsel %vm292_vm0, %v2496_v4, 0.0  ;;  %4561 = vst.msk [vmem:[#allocation4 + $0xa0] sm:$0xff] %vm292_vm0, %v11104_v28  ;;  %v4580_v41 = vsel %vm292_vm0, %v11104_v28, 0.0  ;;  %v4615_v59 = vmul.f32 %v11104_v28, %v11104_v28  ;;  %v10473_v1 = vpop.f32.mrb[8].mxu1  ;;  %v11089_v34 = vadd.f32 %v10266_v30, %v13653_v9 }
 0x47b   : > { %v10269_v21 = vpop.f32.mrb[8].mxu0  ;;  %v2516_v17 = vadd.f32 %v2515_v12, %v2514_v48  ;;  %v4581_v14 = vadd.f32 %v4580_v41, %v4579_v42  ;;  %v11105_v6 = vadd.f32 %v10470_v37, %v13653_v9  ;;  %v4511_v22 = vpop.f32.mrb[9].mxu1  ;;  %v11090_v8 = vadd.f32 %v2380_v0, %v13653_v9 }
 0x47c   : > { %v2392_v33 = vpop.f32.mrb[9].mxu0  ;;  %v4634_v53 = vsel %vm292_vm0, %v4615_v59, 0.0  ;;  %v2464_v29 = vadd.f32 %v2463_v58, %v2462_v32  ;;  %v11106_v54 = vadd.f32 %v4499_v44, %v13653_v9  ;;  %v2517_v10 = vsel %vm292_vm0, %v2497_v19, 0.0  ;;  %2445 = vst.msk [vmem:[#allocation4 + $0x38] sm:$0xff] %vm292_vm0, %v11089_v34 }
 0x47d   : > { %v4582_v63 = vsel %vm292_vm0, %v11103_v57, 0.0  ;;  %v4636_v60 = vsel %vm292_vm0, %v4616_v43, 0.0  ;;  %v4635_v45 = vadd.f32 %v4634_v53, %v4633_v49  ;;  %4564 = vst.msk [vmem:[#allocation4 + $0xb8] sm:$0xff] %vm292_vm0, %v11105_v6  ;;  %v2499_v2 = vmul.f32 %v11089_v34, %v11089_v34  ;;  %2444 = vst.msk [vmem:[#allocation4 + $0x30] sm:$0xff] %vm292_vm0, %v11090_v8 }
 0x47e   : > { %v2465_v38 = vsel %vm292_vm0, %v11090_v8, 0.0  ;;  %v2498_v3 = vmul.f32 %v11090_v8, %v11090_v8  ;;  %v2518_v39 = vadd.f32 %v2517_v10, %v2516_v17  ;;  %4563 = vst.msk [vmem:[#allocation4 + $0xb0] sm:$0xff] %vm292_vm0, %v11106_v54  ;;  %v10476_v52 = vpop.f32.mrb[10].mxu1  ;;  %v4618_v24 = vmul.f32 %v11105_v6, %v11105_v6 }
 0x47f   : > { %v10272_v11 = vpop.f32.mrb[10].mxu0  ;;  %v2466_v61 = vadd.f32 %v2465_v38, %v2464_v29  ;;  %v4583_v56 = vadd.f32 %v4582_v63, %v4581_v14  ;;  %v4584_v35 = vsel %vm292_vm0, %v11106_v54, 0.0  ;;  %v4523_v7 = vpop.f32.mrb[11].mxu1  ;;  %v2467_v18 = vsel %vm292_vm0, %v11089_v34, 0.0 }
 0x480   : > { %v2404_v15 = vpop.f32.mrb[11].mxu0  ;;  %v2519_v50 = vsel %vm292_vm0, %v2498_v3, 0.0  ;;  %v4617_v55 = vmul.f32 %v11106_v54, %v11106_v54  ;;  %v4637_v46 = vadd.f32 %v4636_v60, %v4635_v45  ;;  %v11091_v27 = vadd.f32 %v10269_v21, %v13653_v9 }
 0x481   : > { %v2520_v25 = vadd.f32 %v2519_v50, %v2518_v39  ;;  %v4585_v20 = vadd.f32 %v4584_v35, %v4583_v56  ;;  %v11107_v47 = vadd.f32 %v10473_v1, %v13653_v9  ;;  %v11092_v51 = vadd.f32 %v2392_v33, %v13653_v9 }
 0x482   : > { %v4638_v57 = vsel %vm292_vm0, %v4617_v55, 0.0  ;;  %v2468_v5 = vadd.f32 %v2467_v18, %v2466_v61  ;;  %v11108_v31 = vadd.f32 %v4511_v22, %v13653_v9  ;;  %v10479_v30 = vpop.f32.mrb[12].mxu1  ;;  %v2521_v37 = vsel %vm292_vm0, %v2499_v2, 0.0  ;;  %2447 = vst.msk [vmem:[#allocation4 + $0x48] sm:$0xff] %vm292_vm0, %v11091_v27 }
 0x483   : > { %v10275_v23 = vpop.f32.mrb[12].mxu0  ;;  %v4586_v36 = vsel %vm292_vm0, %v11105_v6, 0.0  ;;  %v4640_v13 = vsel %vm292_vm0, %v4618_v24, 0.0  ;;  %v4639_v16 = vadd.f32 %v4638_v57, %v4637_v46  ;;  %4566 = vst.msk [vmem:[#allocation4 + $0xc8] sm:$0xff] %vm292_vm0, %v11107_v47  ;;  %v4535_v0 = vpop.f32.mrb[13].mxu1  ;;  %v2501_v44 = vmul.f32 %v11091_v27, %v11091_v27  ;;  %2446 = vst.msk [vmem:[#allocation4 + $0x40] sm:$0xff] %vm292_vm0, %v11092_v51 }
 0x484   : > { %v2416_v58 = vpop.f32.mrb[13].mxu0  ;;  %v2469_v40 = vsel %vm292_vm0, %v11092_v51, 0.0  ;;  %v2500_v4 = vmul.f32 %v11092_v51, %v11092_v51  ;;  %v2522_v48 = vadd.f32 %v2521_v37, %v2520_v25  ;;  %4565 = vst.msk [vmem:[#allocation4 + $0xc0] sm:$0xff] %vm292_vm0, %v11108_v31  ;;  %v4620_v28 = vmul.f32 %v11107_v47, %v11107_v47 }
 0x485   : > { %v2470_v19 = vadd.f32 %v2469_v40, %v2468_v5  ;;  %v4587_v43 = vadd.f32 %v4586_v36, %v4585_v20  ;;  %v4588_v32 = vsel %vm292_vm0, %v11108_v31, 0.0  ;;  %v2471_v42 = vsel %vm292_vm0, %v11091_v27, 0.0 }
 0x486   : > { %v2523_v12 = vsel %vm292_vm0, %v2500_v4, 0.0  ;;  %v4619_v41 = vmul.f32 %v11108_v31, %v11108_v31  ;;  %v4641_v59 = vadd.f32 %v4640_v13, %v4639_v16  ;;  %v10482_v21 = vpop.f32.mrb[14].mxu1  ;;  %v11093_v14 = vadd.f32 %v10272_v11, %v13653_v9 }
 0x487   : > { %v10278_v49 = vpop.f32.mrb[14].mxu0  ;;  %v2524_v1 = vadd.f32 %v2523_v12, %v2522_v48  ;;  %v4589_v17 = vadd.f32 %v4588_v32, %v4587_v43  ;;  %v11109_v34 = vadd.f32 %v10476_v52, %v13653_v9  ;;  %v4547_v33 = vpop.f32.mrb[15].mxu1  ;;  %v11094_v53 = vadd.f32 %v2404_v15, %v13653_v9 }
 0x488   : > { %v2428_v6 = vpop.f32.mrb[15].mxu0  ;;  %v4642_v22 = vsel %vm292_vm0, %v4619_v41, 0.0  ;;  %v2472_v8 = vadd.f32 %v2471_v42, %v2470_v19  ;;  %v11110_v29 = vadd.f32 %v4523_v7, %v13653_v9  ;;  %v2525_v54 = vsel %vm292_vm0, %v2501_v44, 0.0  ;;  %2449 = vst.msk [vmem:[#allocation4 + $0x58] sm:$0xff] %vm292_vm0, %v11093_v14 }
 0x489   : > { %v4590_v10 = vsel %vm292_vm0, %v11107_v47, 0.0  ;;  %v4644_v63 = vsel %vm292_vm0, %v4620_v28, 0.0  ;;  %v4643_v60 = vadd.f32 %v4642_v22, %v4641_v59  ;;  %4568 = vst.msk [vmem:[#allocation4 + $0xd8] sm:$0xff] %vm292_vm0, %v11109_v34  ;;  %v2503_v45 = vmul.f32 %v11093_v14, %v11093_v14  ;;  %2448 = vst.msk [vmem:[#allocation4 + $0x50] sm:$0xff] %vm292_vm0, %v11094_v53 }
 0x48a   : > { %v2473_v2 = vsel %vm292_vm0, %v11094_v53, 0.0  ;;  %v2502_v38 = vmul.f32 %v11094_v53, %v11094_v53  ;;  %v2526_v3 = vadd.f32 %v2525_v54, %v2524_v1  ;;  %4567 = vst.msk [vmem:[#allocation4 + $0xd0] sm:$0xff] %vm292_vm0, %v11110_v29  ;;  %v4622_v39 = vmul.f32 %v11109_v34, %v11109_v34 }
 0x48b   : > { %v2474_v11 = vadd.f32 %v2473_v2, %v2472_v8  ;;  %v4591_v52 = vadd.f32 %v4590_v10, %v4589_v17  ;;  %v4592_v24 = vsel %vm292_vm0, %v11110_v29, 0.0  ;;  %v2475_v61 = vsel %vm292_vm0, %v11093_v14, 0.0 }
 0x48c   : > { %v2527_v56 = vsel %vm292_vm0, %v2502_v38, 0.0  ;;  %v4621_v35 = vmul.f32 %v11110_v29, %v11110_v29  ;;  %v4645_v15 = vadd.f32 %v4644_v63, %v4643_v60  ;;  %v11095_v50 = vadd.f32 %v10275_v23, %v13653_v9 }
 0x48d   : > { %v2528_v7 = vadd.f32 %v2527_v56, %v2526_v3  ;;  %v4593_v18 = vadd.f32 %v4592_v24, %v4591_v52  ;;  %v11111_v55 = vadd.f32 %v10479_v30, %v13653_v9  ;;  %v11096_v25 = vadd.f32 %v2416_v58, %v13653_v9 }
 0x48e   : > { %v4646_v46 = vsel %vm292_vm0, %v4621_v35, 0.0  ;;  %v2476_v20 = vadd.f32 %v2475_v61, %v2474_v11  ;;  %v11112_v27 = vadd.f32 %v4535_v0, %v13653_v9  ;;  %v2529_v47 = vsel %vm292_vm0, %v2503_v45, 0.0  ;;  %2451 = vst.msk [vmem:[#allocation4 + $0x68] sm:$0xff] %vm292_vm0, %v11095_v50 }
 0x48f   : > { %v4594_v57 = vsel %vm292_vm0, %v11109_v34, 0.0  ;;  %v4648_v51 = vsel %vm292_vm0, %v4622_v39, 0.0  ;;  %v4647_v5 = vadd.f32 %v4646_v46, %v4645_v15  ;;  %4570 = vst.msk [vmem:[#allocation4 + $0xe8] sm:$0xff] %vm292_vm0, %v11111_v55  ;;  %v2505_v31 = vmul.f32 %v11095_v50, %v11095_v50  ;;  %2450 = vst.msk [vmem:[#allocation4 + $0x60] sm:$0xff] %vm292_vm0, %v11096_v25 }
 0x490   : > { %v2477_v23 = vsel %vm292_vm0, %v11096_v25, 0.0  ;;  %v2504_v30 = vmul.f32 %v11096_v25, %v11096_v25  ;;  %v2530_v37 = vadd.f32 %v2529_v47, %v2528_v7  ;;  %4569 = vst.msk [vmem:[#allocation4 + $0xe0] sm:$0xff] %vm292_vm0, %v11112_v27  ;;  %v4624_v36 = vmul.f32 %v11111_v55, %v11111_v55 }
 0x491   : > { %v2478_v13 = vadd.f32 %v2477_v23, %v2476_v20  ;;  %v4595_v16 = vadd.f32 %v4594_v57, %v4593_v18  ;;  %v4596_v58 = vsel %vm292_vm0, %v11112_v27, 0.0  ;;  %v2479_v0 = vsel %vm292_vm0, %v11095_v50, 0.0 }
 0x492   : > { %v2531_v44 = vsel %vm292_vm0, %v2504_v30, 0.0  ;;  %v4623_v40 = vmul.f32 %v11112_v27, %v11112_v27  ;;  %v4649_v4 = vadd.f32 %v4648_v51, %v4647_v5  ;;  %v11097_v19 = vadd.f32 %v10278_v49, %v13653_v9 }
 0x493   : > { %v2532_v48 = vadd.f32 %v2531_v44, %v2530_v37  ;;  %v4597_v28 = vadd.f32 %v4596_v58, %v4595_v16  ;;  %v11113_v43 = vadd.f32 %v10482_v21, %v13653_v9  ;;  %v11098_v42 = vadd.f32 %v2428_v6, %v13653_v9 }
 0x494   : > { %v4650_v32 = vsel %vm292_vm0, %v4623_v40, 0.0  ;;  %v2480_v12 = vadd.f32 %v2479_v0, %v2478_v13  ;;  %v11114_v41 = vadd.f32 %v4547_v33, %v13653_v9  ;;  %v2533_v59 = vsel %vm292_vm0, %v2505_v31, 0.0  ;;  %2453 = vst.msk [vmem:[#allocation4 + $0x78] sm:$0xff] %vm292_vm0, %v11097_v19 }
 0x495   : > { %v4598_v1 = vsel %vm292_vm0, %v11111_v55, 0.0  ;;  %v4652_v17 = vsel %vm292_vm0, %v4624_v36, 0.0  ;;  %v4651_v14 = vadd.f32 %v4650_v32, %v4649_v4  ;;  %4572 = vst.msk [vmem:[#allocation4 + $0xf8] sm:$0xff] %vm292_vm0, %v11113_v43  ;;  %v2507_v49 = vmul.f32 %v11097_v19, %v11097_v19  ;;  %2452 = vst.msk [vmem:[#allocation4 + $0x70] sm:$0xff] %vm292_vm0, %v11098_v42 }
 0x496   : > { %v2481_v21 = vsel %vm292_vm0, %v11098_v42, 0.0  ;;  %v2506_v34 = vmul.f32 %v11098_v42, %v11098_v42  ;;  %v2534_v6 = vadd.f32 %v2533_v59, %v2532_v48  ;;  %4571 = vst.msk [vmem:[#allocation4 + $0xf0] sm:$0xff] %vm292_vm0, %v11114_v41  ;;  %v2483_v9 = vsel %vm292_vm0, %v11097_v19, 0.0  ;;  %v13788_v42 = vld [vmem:[#allocation4 + $0x8] sm:$0xff]  ;;  %v13794_v59 = vld [vmem:[#allocation4 + $0x10] sm:$0xff] }
 0x497   : > { %v2482_v33 = vadd.f32 %v2481_v21, %v2480_v12  ;;  %v4599_v22 = vadd.f32 %v4598_v1, %v4597_v28  ;;  %v4600_v53 = vsel %vm292_vm0, %v11114_v41, 0.0  ;;  %v4626_v8 = vmul.f32 %v11113_v43, %v11113_v43  ;;  %v13790_v12 = vld [vmem:[#allocation4] sm:$0xff] }
 0x498   : > { %v2535_v29 = vsel %vm292_vm0, %v2506_v34, 0.0  ;;  %v4625_v54 = vmul.f32 %v11114_v41, %v11114_v41  ;;  %v4653_v10 = vadd.f32 %v4652_v17, %v4651_v14  ;;  %v2537_v2 = vsel %vm292_vm0, %v2507_v49, 0.0  ;;  %v13792_v41 = vld [vmem:[#allocation4 + $0x18] sm:$0xff]  ;;  %v13798_v17 = vld [vmem:[#allocation4 + $0x28] sm:$0xff]  ;;  %v13800_v14 = vld [vmem:[#allocation4 + $0x20] sm:$0xff] }
 0x499   : > { %v2484_v63 = vadd.f32 %v2483_v9, %v2482_v33  ;;  %v2536_v60 = vadd.f32 %v2535_v29, %v2534_v6  ;;  %v4601_v45 = vadd.f32 %v4600_v53, %v4599_v22  ;;  %v4602_v38 = vsel %vm292_vm0, %v11113_v43, 0.0  ;;  %v13802_v49 = vld [vmem:[#allocation4 + $0x38] sm:$0xff]  ;;  %v13812_v33 = vld [vmem:[#allocation4 + $0x80] sm:$0xff]  ;;  %v13814_v22 = vld [vmem:[#allocation4 + $0x30] sm:$0xff] }
 0x49a   : > { %v4654_v3 = vsel %vm292_vm0, %v4625_v54, 0.0  ;;  %v4656_v61 = vsel %vm292_vm0, %v4626_v8, 0.0  ;;  %v4774_v32 = vsub.s32 2, %v13647_v26  ;;  %v4738_v34 = vsub.s32 1, %v13647_v26  ;;  %v13816_v53 = vld [vmem:[#allocation4 + $0x48] sm:$0xff]  ;;  %v13818_v8 = vld [vmem:[#allocation4 + $0x40] sm:$0xff] }
 0x49b   : > { %v2485_v39 = vrot.slane %v2484_v63, 4  ;;  %v2538_v11 = vadd.f32 %v2537_v2, %v2536_v60  ;;  %v4603_v52 = vadd.f32 %v4602_v38, %v4601_v45  ;;  %v4655_v24 = vadd.f32 %v4654_v3, %v4653_v10  ;;  %v13828_v60 = vld [vmem:[#allocation4 + $0x88] sm:$0xff]  ;;  %v13830_v45 = vld [vmem:[#allocation4 + $0x98] sm:$0xff]  ;;  %v4681_v38 = vld [vmem:[#allocation4 + $0x50] sm:$0xff] }
 0x49c   : > { %v13808_v6 = vrot.slane %v13650_v62, %v4774_v32  ;;  %v13832_v2 = vld [vmem:[#allocation4 + $0x58] sm:$0xff]  ;;  %v13834_v3 = vld [vmem:[#allocation4 + $0x60] sm:$0xff] }
 0x49d   : > { %v2486_v56 = vadd.f32 %v2485_v39, %v2484_v63  ;;  %v2539_v35 = vrot.slane %v2538_v11, 4  ;;  %v4604_v15 = vrot.slane %v4603_v52, 4  ;;  %v4657_v7 = vadd.f32 %v4656_v61, %v4655_v24  ;;  %v13796_v1 = vld [vmem:[#allocation4 + $0xf0] sm:$0xff]  ;;  %v4684_v61 = vld [vmem:[#allocation4 + $0x68] sm:$0xff] }
 0x49f   : > { %v2487_v18 = vrot.slane %v2486_v56, 2  ;;  %v2540_v50 = vadd.f32 %v2539_v35, %v2538_v11  ;;  %v4605_v55 = vadd.f32 %v4604_v15, %v4603_v52  ;;  %v4658_v46 = vrot.slane %v4657_v7, 4  ;;  %v4685_v35 = vld [vmem:[#allocation4 + $0x70] sm:$0xff] }
 0x4a1   : > { %v2488_v25 = vadd.f32 %v2487_v18, %v2486_v56  ;;  %v2541_v20 = vrot.slane %v2540_v50, 2  ;;  %v4606_v27 = vrot.slane %v4605_v55, 2  ;;  %v4659_v47 = vadd.f32 %v4658_v46, %v4657_v7  ;;  %v4686_v56 = vld [vmem:[#allocation4 + $0x78] sm:$0xff]  ;;  %v4689_v46 = vld [vmem:[#allocation4 + $0x90] sm:$0xff] }
 0x4a3   : > { %v2489_v57 = vrot.slane %v2488_v25, 1  ;;  %v2542_v51 = vadd.f32 %v2541_v20, %v2540_v50  ;;  %v4607_v5 = vadd.f32 %v4606_v27, %v4605_v55  ;;  %v4660_v31 = vrot.slane %v4659_v47, 2  ;;  %v4691_v20 = vld [vmem:[#allocation4 + $0xa0] sm:$0xff] }
 0x4a5   : > { %v2490_v23 = vadd.f32 %v2489_v57, %v2488_v25  ;;  %v2543_v30 = vrot.slane %v2542_v51, 1  ;;  %v4608_v37 = vrot.slane %v4607_v5, 1  ;;  %v4661_v36 = vadd.f32 %v4660_v31, %v4659_v47  ;;  %v4692_v25 = vld [vmem:[#allocation4 + $0xa8] sm:$0xff]  ;;  %v4693_v31 = vld [vmem:[#allocation4 + $0xb0] sm:$0xff] }
 0x4a7   : > { %v2544_v13 = vadd.f32 %v2543_v30, %v2542_v51  ;;  %v4609_v16 = vadd.f32 %v4608_v37, %v4607_v5  ;;  %v4662_v58 = vrot.slane %v4661_v36, 1  ;;  %v4694_v5 = vld [vmem:[#allocation4 + $0xb8] sm:$0xff] }
 0x4a9   : > { %v4610_v0 = vadd.f32 %v4609_v16, %v2490_v23  ;;  %v4663_v44 = vadd.f32 %v4662_v58, %v4661_v36  ;;  %v4696_v23 = vld [vmem:[#allocation4 + $0xc8] sm:$0xff]  ;;  %v4695_v16 = vld [vmem:[#allocation4 + $0xc0] sm:$0xff]  ;;  %v4698_v58 = vld [vmem:[#allocation4 + $0xd8] sm:$0xff] }
 0x4ab   : > { %v4664_v40 = vadd.f32 %v4663_v44, %v2544_v13  ;;  %v13783_v4 = vmul.f32 0.00390625, %v4610_v0  ;;  %v4697_v0 = vld [vmem:[#allocation4 + $0xd0] sm:$0xff] }
 0x4ad   : > { %v4666_v48 = vmul.f32 0.00390625, %v4664_v40  ;;  %v4667_v28 = vmul.f32 %v13783_v4, %v13783_v4  ;;  %v4733_v21 = vsub.f32 %v13796_v1, %v13783_v4  ;;  %v4703_v9 = vsub.f32 %v13790_v12, %v13783_v4 }
 0x4ae   : > { %v4704_v29 = vsub.f32 %v13788_v42, %v13783_v4  ;;  %v4705_v54 = vsub.f32 %v13794_v59, %v13783_v4  ;;  %v4706_v10 = vsub.f32 %v13792_v41, %v13783_v4  ;;  %v4707_v63 = vsub.f32 %v13800_v14, %v13783_v4 }
 0x4af   : > { %v4668_v19 = vsub.f32 %v4666_v48, %v4667_v28  ;;  %v4708_v39 = vsub.f32 %v13798_v17, %v13783_v4  ;;  %v4709_v11 = vsub.f32 %v13814_v22, %v13783_v4  ;;  %v4710_v52 = vsub.f32 %v13802_v49, %v13783_v4 }
 0x4b0   : > { %v4711_v24 = vsub.f32 %v13818_v8, %v13783_v4  ;;  %v4712_v15 = vsub.f32 %v13816_v53, %v13783_v4  ;;  %v4713_v7 = vsub.f32 %v4681_v38, %v13783_v4  ;;  %v4714_v18 = vsub.f32 %v13832_v2, %v13783_v4 }
 0x4b1   : > { %v4669_v43 = vadd.f32 1e-05, %v4668_v19  ;;  %v4715_v50 = vsub.f32 %v13834_v3, %v13783_v4  ;;  %v4716_v27 = vsub.f32 %v4684_v61, %v13783_v4  ;;  %v4717_v47 = vsub.f32 %v4685_v35, %v13783_v4  ;;  %v4699_v19 = vld [vmem:[#allocation4 + $0xe0] sm:$0xff] }
 0x4b2   : > { %v4718_v57 = vsub.f32 %v4686_v56, %v13783_v4  ;;  %v4719_v51 = vsub.f32 %v13812_v33, %v13783_v4  ;;  %v4720_v37 = vsub.f32 %v13828_v60, %v13783_v4  ;;  %v4721_v36 = vsub.f32 %v4689_v46, %v13783_v4 }
 0x4b3   : > { %11555 = vrsqrt.f32 %v4669_v43  ;;  %v4722_v13 = vsub.f32 %v13830_v45, %v13783_v4  ;;  %v4723_v44 = vsub.f32 %v4691_v20, %v13783_v4  ;;  %v4724_v40 = vsub.f32 %v4692_v25, %v13783_v4  ;;  %v4702_v43 = vld [vmem:[#allocation4 + $0xf8] sm:$0xff] }
 0x4b4   : > { %v4725_v48 = vsub.f32 %v4693_v31, %v13783_v4  ;;  %v4726_v28 = vsub.f32 %v4694_v5, %v13783_v4  ;;  %v4727_v42 = vsub.f32 %v4695_v16, %v13783_v4  ;;  %v4728_v12 = vsub.f32 %v4696_v23, %v13783_v4 }
 0x4b5   : > { %v4729_v41 = vsub.f32 %v4697_v0, %v13783_v4  ;;  %v4730_v59 = vsub.f32 %v4698_v58, %v13783_v4  ;;  %v4731_v1 = vsub.f32 %v4699_v19, %v13783_v4  ;;  %v4734_v14 = vsub.f32 %v4702_v43, %v13783_v4 }
 0x4bd   : > { %v11556_v55 = vpop.eup %11555 }
 0x4be   : > { %v4735_v30 = vmul.f32 %v11556_v55, %v13650_v62  ;;  %v4700_v62 = vld [vmem:[#allocation4 + $0xe8] sm:$0xff] }
 0x4bf   : > { %v4732_v17 = vsub.f32 %v4700_v62, %v13783_v4 }
 0x4c0   : > { %v4739_v32 = vrot.slane %v4735_v30, %v4738_v34 }
 0x4c2   : > { %v4770_v49 = vmul.f32 %v4739_v32, %v4733_v21  ;;  %v4755_v33 = vmul.f32 %v4739_v32, %v4718_v57  ;;  %v4740_v22 = vmul.f32 %v4739_v32, %v4703_v9  ;;  %v4741_v53 = vmul.f32 %v4739_v32, %v4704_v29 }
 0x4c3   : > { %v4742_v8 = vmul.f32 %v4739_v32, %v4705_v54  ;;  %v4743_v34 = vmul.f32 %v4739_v32, %v4706_v10  ;;  %v4744_v60 = vmul.f32 %v4739_v32, %v4707_v63  ;;  %v4745_v45 = vmul.f32 %v4739_v32, %v4708_v39 }
 0x4c4   : > { %v4806_v2 = vadd.f32 %v13808_v6, %v4770_v49  ;;  %v4791_v38 = vadd.f32 %v13808_v6, %v4755_v33  ;;  %v4746_v3 = vmul.f32 %v4739_v32, %v4709_v11  ;;  %v4747_v61 = vmul.f32 %v4739_v32, %v4710_v52 }
 0x4c5   : > { %v4748_v56 = vmul.f32 %v4739_v32, %v4711_v24  ;;  %v4749_v35 = vmul.f32 %v4739_v32, %v4712_v15  ;;  %v4750_v55 = vmul.f32 %v4739_v32, %v4713_v7  ;;  %v4751_v46 = vmul.f32 %v4739_v32, %v4714_v18 }
 0x4c6   : > { %v4838_v25 = vmax.f32 %v4806_v2, 0.0  ;;  %v4823_v4 = vmax.f32 %v4791_v38, 0.0  ;;  %v4752_v21 = vmul.f32 %v4739_v32, %v4715_v50  ;;  %v4753_v20 = vmul.f32 %v4739_v32, %v4716_v27 }
 0x4c7   : > { %v4754_v9 = vmul.f32 %v4739_v32, %v4717_v47  ;;  %v4756_v29 = vmul.f32 %v4739_v32, %v4719_v51  ;;  %v4757_v54 = vmul.f32 %v4739_v32, %v4720_v37  ;;  %v4758_v10 = vmul.f32 %v4739_v32, %v4721_v36 }
 0x4c8   : > { %4870 = vst.msk [vmem:[#allocation2 + $0x181] sm:$0xff] %vm292_vm0, %v4838_v25  ;;  %4855 = vst.msk [vmem:[#allocation2 + $0xc9] sm:$0xff] %vm292_vm0, %v4823_v4  ;;  %v4759_v63 = vmul.f32 %v4739_v32, %v4722_v13  ;;  %v4760_v39 = vmul.f32 %v4739_v32, %v4723_v44  ;;  %v4761_v11 = vmul.f32 %v4739_v32, %v4724_v40 }
 0x4c9   : > { %v4762_v52 = vmul.f32 %v4739_v32, %v4725_v48  ;;  %v4763_v24 = vmul.f32 %v4739_v32, %v4726_v28  ;;  %v4764_v15 = vmul.f32 %v4739_v32, %v4727_v42  ;;  %v4765_v7 = vmul.f32 %v4739_v32, %v4728_v12 }
 0x4ca   : > { %v4766_v18 = vmul.f32 %v4739_v32, %v4729_v41  ;;  %v4767_v57 = vmul.f32 %v4739_v32, %v4730_v59  ;;  %v4768_v5 = vmul.f32 %v4739_v32, %v4731_v1  ;;  %v4769_v50 = vmul.f32 %v4739_v32, %v4732_v17 }
 0x4cb   : > { %v4771_v27 = vmul.f32 %v4739_v32, %v4734_v14  ;;  %v4790_v47 = vadd.f32 %v13808_v6, %v4754_v9  ;;  %v4776_v51 = vadd.f32 %v13808_v6, %v4740_v22  ;;  %v4777_v31 = vadd.f32 %v13808_v6, %v4741_v53 }
 0x4cc   : > { %v4778_v23 = vadd.f32 %v13808_v6, %v4742_v8  ;;  %v4779_v30 = vadd.f32 %v13808_v6, %v4743_v34  ;;  %v4780_v37 = vadd.f32 %v13808_v6, %v4744_v60  ;;  %v4781_v36 = vadd.f32 %v13808_v6, %v4745_v45 }
 0x4cd   : > { %v4782_v13 = vadd.f32 %v13808_v6, %v4746_v3  ;;  %v4822_v16 = vmax.f32 %v4790_v47, 0.0  ;;  %v4783_v58 = vadd.f32 %v13808_v6, %v4747_v61  ;;  %v4784_v0 = vadd.f32 %v13808_v6, %v4748_v56 }
 0x4ce   : > { %v4785_v44 = vadd.f32 %v13808_v6, %v4749_v35  ;;  %v4786_v40 = vadd.f32 %v13808_v6, %v4750_v55  ;;  %v4787_v48 = vadd.f32 %v13808_v6, %v4751_v46  ;;  %v4788_v28 = vadd.f32 %v13808_v6, %v4752_v21 }
 0x4cf   : > { %v13892_v62 = vadd.f32 %v13808_v6, %v4753_v20  ;;  %v7112_v19 = vld [vmem:[#allocation2 + $0xc9] sm:$0xff]  ;;  %4854 = vst.msk [vmem:[#allocation2 + $0xc1] sm:$0xff] %vm292_vm0, %v4822_v16  ;;  %v13896_v43 = vadd.f32 %v13808_v6, %v4756_v29  ;;  %v13899_v32 = vadd.f32 %v13808_v6, %v4757_v54  ;;  %v13902_v42 = vadd.f32 %v13808_v6, %v4758_v10  ;;  %v4896_v59 = vld [vmem:[#allocation2 + $0x182] sm:$0x1] }
 0x4d0   : > { %v13905_v12 = vadd.f32 %v13808_v6, %v4759_v63  ;;  %v4924_v41 = vld [vmem:[#allocation2 + $0xcf] sm:$0x1]  ;;  %7145 = vrot.lane.b32.xlu0 %v7112_v19, %s11765_s23  ;;  %v13909_v1 = vadd.f32 %v13808_v6, %v4760_v39  ;;  %v13912_v17 = vadd.f32 %v13808_v6, %v4761_v11  ;;  %v13915_v14 = vadd.f32 %v13808_v6, %v4762_v52 }
 0x4d1   : > { %v13918_v49 = vadd.f32 %v13808_v6, %v4763_v24  ;;  %4942 = vst.msk [vmem:[#allocation2 + $0xd1] sm:$0x1] %vm354_vm1, %v4924_v41  ;;  %4914 = vst.msk [vmem:[#allocation2 + $0x180] sm:$0x1] %vm354_vm1, %v4896_v59  ;;  %v13923_v33 = vadd.f32 %v13808_v6, %v4764_v15  ;;  %v13926_v22 = vadd.f32 %v13808_v6, %v4765_v7  ;;  %v4808_v2 = vmax.f32 %v4776_v51, 0.0 }
 0x4d2   : > { %v13929_v53 = vadd.f32 %v13808_v6, %v4766_v18  ;;  %v13932_v8 = vadd.f32 %v13808_v6, %v4767_v57  ;;  %v13935_v34 = vadd.f32 %v13808_v6, %v4768_v5  ;;  %v13938_v60 = vadd.f32 %v13808_v6, %v4769_v50 }
 0x4d3   : > { %v13941_v45 = vadd.f32 %v13808_v6, %v4771_v27  ;;  %v4809_v38 = vmax.f32 %v4777_v31, 0.0  ;;  %v4810_v3 = vmax.f32 %v4778_v23, 0.0  ;;  %v4811_v61 = vmax.f32 %v4779_v30, 0.0  ;;  %4840 = vst.msk [vmem:[#allocation2 + $0x19] sm:$0xff] %vm292_vm0, %v4808_v2 }
 0x4d4   : > { %v4812_v56 = vmax.f32 %v4780_v37, 0.0  ;;  %v4813_v35 = vmax.f32 %v4781_v36, 0.0  ;;  %v4814_v55 = vmax.f32 %v4782_v13, 0.0  ;;  %v4815_v46 = vmax.f32 %v4783_v58, 0.0 }
 0x4d5   : > { %v4816_v25 = vmax.f32 %v4784_v0, 0.0  ;;  %v4817_v4 = vmax.f32 %v4785_v44, 0.0  ;;  %v4818_v21 = vmax.f32 %v4786_v40, 0.0  ;;  %v4819_v20 = vmax.f32 %v4787_v48, 0.0  ;;  %4841 = vst.msk [vmem:[#allocation2 + $0x21] sm:$0xff] %vm292_vm0, %v4809_v38  ;;  %4842 = vst.msk [vmem:[#allocation2 + $0x31] sm:$0xff] %vm292_vm0, %v4810_v3 }
 0x4d6   : > { %v4820_v9 = vmax.f32 %v4788_v28, 0.0  ;;  %4843 = vst.msk [vmem:[#allocation2 + $0x39] sm:$0xff] %vm292_vm0, %v4811_v61  ;;  %4844 = vst.msk [vmem:[#allocation2 + $0x49] sm:$0xff] %vm292_vm0, %v4812_v56  ;;  %v7111_v6 = vld [vmem:[#allocation2 + $0xc1] sm:$0xff]  ;;  %v4821_v29 = vmax.f32 %v13892_v62, 0.0  ;;  %v4824_v54 = vmax.f32 %v13896_v43, 0.0 }
 0x4d7   : > { %v4825_v10 = vmax.f32 %v13899_v32, 0.0  ;;  %v4826_v63 = vmax.f32 %v13902_v42, 0.0  ;;  %4845 = vst.msk [vmem:[#allocation2 + $0x51] sm:$0xff] %vm292_vm0, %v4813_v35  ;;  %4846 = vst.msk [vmem:[#allocation2 + $0x61] sm:$0xff] %vm292_vm0, %v4814_v55  ;;  %7143 = vrot.lane.b32.xlu1 %v7111_v6, %s11765_s23  ;;  %v4827_v39 = vmax.f32 %v13905_v12, 0.0  ;;  %v4828_v11 = vmax.f32 %v13909_v1, 0.0 }
 0x4d8   : > { %4847 = vst.msk [vmem:[#allocation2 + $0x69] sm:$0xff] %vm292_vm0, %v4815_v46  ;;  %4848 = vst.msk [vmem:[#allocation2 + $0x79] sm:$0xff] %vm292_vm0, %v4816_v25  ;;  %v4829_v52 = vmax.f32 %v13912_v17, 0.0  ;;  %v4830_v24 = vmax.f32 %v13915_v14, 0.0  ;;  %v7080_v15 = vld [vmem:[#allocation2 + $0xc8] sm:$0xff]  ;;  %v4831_v7 = vmax.f32 %v13918_v49, 0.0 }
 0x4d9   : > { %4849 = vst.msk [vmem:[#allocation2 + $0x81] sm:$0xff] %vm292_vm0, %v4817_v4  ;;  %4850 = vst.msk [vmem:[#allocation2 + $0x91] sm:$0xff] %vm292_vm0, %v4818_v21  ;;  %v4832_v18 = vmax.f32 %v13923_v33, 0.0  ;;  %v4833_v57 = vmax.f32 %v13926_v22, 0.0  ;;  %v4834_v5 = vmax.f32 %v13929_v53, 0.0  ;;  %v4835_v27 = vmax.f32 %v13932_v8, 0.0 }
 0x4da   : > { %4851 = vst.msk [vmem:[#allocation2 + $0x99] sm:$0xff] %vm292_vm0, %v4819_v20  ;;  %4852 = vst.msk [vmem:[#allocation2 + $0xa9] sm:$0xff] %vm292_vm0, %v4820_v9  ;;  %v4888_v50 = vld [vmem:[#allocation2 + $0xc2] sm:$0x1]  ;;  %v4836_v47 = vmax.f32 %v13935_v34, 0.0  ;;  %v4837_v51 = vmax.f32 %v13938_v60, 0.0 }
 0x4db   : > { %4853 = vst.msk [vmem:[#allocation2 + $0xb1] sm:$0xff] %vm292_vm0, %v4821_v29  ;;  %4856 = vst.msk [vmem:[#allocation2 + $0xd9] sm:$0xff] %vm292_vm0, %v4824_v54  ;;  %v4839_v31 = vmax.f32 %v13941_v45, 0.0  ;;  %v7207_v23 = vld [vmem:[#allocation2 + $0xc2] sm:$0xff]  ;;  %v4881_v30 = vld [vmem:[#allocation2 + $0x1a] sm:$0x1] }
 0x4dc   : > { %4857 = vst.msk [vmem:[#allocation2 + $0xe1] sm:$0xff] %vm292_vm0, %v4825_v10  ;;  %4858 = vst.msk [vmem:[#allocation2 + $0xf1] sm:$0xff] %vm292_vm0, %v4826_v63  ;;  %7239 = vrot.lane.b32.xlu1 %v7207_v23, %s11764_s21  ;;  %v5182_v37 = vld [vmem:[#allocation2 + $0x20] sm:$0xff]  ;;  %v13996_v13 = vld [vmem:[#allocation2 + $0x31] sm:$0xff] }
 0x4dd   : > { %7096 = vst.msk [vmem:[#allocation3 + $0x88] sm:$0xff] %vm292_vm0, %v7080_v15  ;;  %4859 = vst.msk [vmem:[#allocation2 + $0xf9] sm:$0xff] %vm292_vm0, %v4827_v39  ;;  %5215 = vrot.lane.b32.xlu0 %v5182_v37, %s11767_s20  ;;  %v13994_v36 = vld [vmem:[#allocation2 + $0x38] sm:$0xff]  ;;  %v4882_v62 = vld [vmem:[#allocation2 + $0x32] sm:$0x1] }
 0x4de   : > { %4860 = vst.msk [vmem:[#allocation2 + $0x109] sm:$0xff] %vm292_vm0, %v4828_v11  ;;  %4861 = vst.msk [vmem:[#allocation2 + $0x111] sm:$0xff] %vm292_vm0, %v4829_v52  ;;  %v13998_v16 = vld [vmem:[#allocation2 + $0x39] sm:$0xff]  ;;  %v14005_v0 = vld [vmem:[#allocation2 + $0x50] sm:$0xff] }
 0x4df   : > { %4862 = vst.msk [vmem:[#allocation2 + $0x121] sm:$0xff] %vm292_vm0, %v4830_v24  ;;  %4863 = vst.msk [vmem:[#allocation2 + $0x129] sm:$0xff] %vm292_vm0, %v4831_v7  ;;  %v5277_v58 = vld [vmem:[#allocation2 + $0x19] sm:$0xff]  ;;  %v4917_v19 = vld [vmem:[#allocation2 + $0x27] sm:$0x1] }
 0x4e0   : > { %4906 = vst.msk [vmem:[#allocation2 + $0xc0] sm:$0x1] %vm354_vm1, %v4888_v50  ;;  %4899 = vst.msk [vmem:[#allocation2 + $0x18] sm:$0x1] %vm354_vm1, %v4881_v30  ;;  %5309 = vrot.lane.b32.xlu1 %v5277_v58, %s11766_s14  ;;  %v4918_v12 = vld [vmem:[#allocation2 + $0x3f] sm:$0x1] }
 0x4e1   : > { %4864 = vst.msk [vmem:[#allocation2 + $0x139] sm:$0xff] %vm292_vm0, %v4832_v18  ;;  %4865 = vst.msk [vmem:[#allocation2 + $0x141] sm:$0xff] %vm292_vm0, %v4833_v57  ;;  %v4883_v1 = vld [vmem:[#allocation2 + $0x4a] sm:$0x1]  ;;  %v5278_v17 = vld [vmem:[#allocation2 + $0x21] sm:$0xff] }
 0x4e2   : > { %4866 = vst.msk [vmem:[#allocation2 + $0x151] sm:$0xff] %vm292_vm0, %v4834_v5  ;;  %4867 = vst.msk [vmem:[#allocation2 + $0x159] sm:$0xff] %vm292_vm0, %v4835_v27  ;;  %v7399_v48 = vld [vmem:[#allocation2 + $0xd9] sm:$0xff]  ;;  %v4919_v53 = vld [vmem:[#allocation2 + $0x57] sm:$0x1] }
 0x4e3   : > { %4868 = vst.msk [vmem:[#allocation2 + $0x169] sm:$0xff] %vm292_vm0, %v4836_v47  ;;  %4869 = vst.msk [vmem:[#allocation2 + $0x171] sm:$0xff] %vm292_vm0, %v4837_v51  ;;  %v7304_v44 = vld [vmem:[#allocation2 + $0xe0] sm:$0xff]  ;;  %v4889_v28 = vld [vmem:[#allocation2 + $0xda] sm:$0x1] }
 0x4e4   : > { %4871 = vst.msk [vmem:[#allocation2 + $0x189] sm:$0xff] %vm292_vm0, %v4839_v31  ;;  %4976 = vst.msk [vmem:[#allocation3 + $0x18] sm:$0xff] %vm292_vm0, %v5182_v37  ;;  %v14012_v40 = vld [vmem:[#allocation2 + $0xf8] sm:$0xff]  ;;  %7337 = vrot.lane.b32.xlu0 %v7304_v44, %s11767_s20  ;;  %v4890_v43 = vld [vmem:[#allocation2 + $0xf2] sm:$0x1]  ;;  %7431 = vrot.lane.b32.xlu1 %v7399_v48, %s11766_s14 }
 0x4e5   : > { %4874 = vst.msk [vmem:[#allocation2 + $0x1] sm:$0xff] %vm292_vm0, %v13996_v13  ;;  %4875 = vst.msk [vmem:[#allocation2 + $0x9] sm:$0xff] %vm292_vm0, %v13998_v16  ;;  %v4925_v42 = vld [vmem:[#allocation2 + $0xe7] sm:$0x1]  ;;  %v4926_v41 = vld [vmem:[#allocation2 + $0xff] sm:$0x1] }
 0x4e6   : > { %4978 = vst.msk [vmem:[#allocation3 + $0x28] sm:$0xff] %vm292_vm0, %v13994_v36  ;;  %4980 = vst.msk [vmem:[#allocation3 + $0x38] sm:$0xff] %vm292_vm0, %v14005_v0  ;;  %v4891_v14 = vld [vmem:[#allocation2 + $0x10a] sm:$0x1]  ;;  %v14033_v49 = vld [vmem:[#allocation2 + $0x110] sm:$0xff] }
 0x4e7   : > { %7098 = vst.msk [vmem:[#allocation3 + $0x98] sm:$0xff] %vm292_vm0, %v7304_v44  ;;  %7100 = vst.msk [vmem:[#allocation3 + $0xa8] sm:$0xff] %vm292_vm0, %v14012_v40  ;;  %v14020_v32 = vld [vmem:[#allocation2 + $0x18] sm:$0xff]  ;;  %v7079_v59 = vld [vmem:[#allocation2 + $0xc0] sm:$0xff] }
 0x4e8   : > { %4907 = vst.msk [vmem:[#allocation2 + $0xd8] sm:$0x1] %vm354_vm1, %v4889_v28  ;;  %4900 = vst.msk [vmem:[#allocation2 + $0x30] sm:$0x1] %vm354_vm1, %v4882_v62  ;;  %5025 = vrot.lane.b32.xlu0 %v5277_v58, %s11765_s23  ;;  %5311 = vrot.lane.b32.xlu1 %v5278_v17, %s11766_s14  ;;  %v5373_v22 = vld [vmem:[#allocation2 + $0x1a] sm:$0xff]  ;;  %v14060_v56 = vld [vmem:[#allocation2 + $0x68] sm:$0xff] }
 0x4e9   : > { %4935 = vst.msk [vmem:[#allocation2 + $0x29] sm:$0x1] %vm354_vm1, %v4917_v19  ;;  %4908 = vst.msk [vmem:[#allocation2 + $0xf0] sm:$0x1] %vm354_vm1, %v4890_v43  ;;  %v4927_v34 = vld [vmem:[#allocation2 + $0x117] sm:$0x1] }
 0x4ea   : > { %4943 = vst.msk [vmem:[#allocation2 + $0xe9] sm:$0x1] %vm354_vm1, %v4925_v42  ;;  %4936 = vst.msk [vmem:[#allocation2 + $0x41] sm:$0x1] %vm354_vm1, %v4918_v12  ;;  %v4884_v60 = vld [vmem:[#allocation2 + $0x62] sm:$0x1] }
 0x4eb   : > { %4975 = vst.msk [vmem:[#allocation3 + $0x10] sm:$0xff] %vm292_vm0, %v14020_v32  ;;  %7095 = vst.msk [vmem:[#allocation3 + $0x80] sm:$0xff] %vm292_vm0, %v7079_v59  ;;  %v4892_v38 = vld [vmem:[#allocation2 + $0x122] sm:$0x1]  ;;  %v14063_v35 = vld [vmem:[#allocation2 + $0x128] sm:$0xff] }
 0x4ec   : > { %4944 = vst.msk [vmem:[#allocation2 + $0x101] sm:$0x1] %vm354_vm1, %v4926_v41  ;;  %4901 = vst.msk [vmem:[#allocation2 + $0x48] sm:$0x1] %vm354_vm1, %v4883_v1  ;;  %v4916_v33 = vld [vmem:[#allocation2 + $0xf] sm:$0x1]  ;;  %5405 = vrot.lane.b32.xlu0 %v5373_v22, %s11768_s6  ;;  %7147 = vrot.lane.b32.xlu1 %v7399_v48, %s11765_s23 }
 0x4ed   : > { %4909 = vst.msk [vmem:[#allocation2 + $0x108] sm:$0x1] %vm354_vm1, %v4891_v14  ;;  %4934 = vst.msk [vmem:[#allocation2 + $0x11] sm:$0x1] %vm354_vm1, %v4916_v33  ;;  %v7400_v3 = vld [vmem:[#allocation2 + $0xe1] sm:$0xff]  ;;  %v14105_v7 = vld [vmem:[#allocation2 + $0x98] sm:$0xff] }
 0x4ee   : > { %7102 = vst.msk [vmem:[#allocation3 + $0xb8] sm:$0xff] %vm292_vm0, %v14033_v49  ;;  %4982 = vst.msk [vmem:[#allocation3 + $0x48] sm:$0xff] %vm292_vm0, %v14060_v56  ;;  %v7495_v55 = vld [vmem:[#allocation2 + $0xda] sm:$0xff]  ;;  %v4880_v25 = vld [vmem:[#allocation2 + $0x2] sm:$0x1] }
 0x4ef   : > { %v14041_v8 = vld [vmem:[#allocation2 + $0xd8] sm:$0xff]  ;;  %4937 = vst.msk [vmem:[#allocation2 + $0x59] sm:$0x1] %vm354_vm1, %v4919_v53  ;;  %v14044_v45 = vld [vmem:[#allocation2 + $0x30] sm:$0xff]  ;;  %4945 = vst.msk [vmem:[#allocation2 + $0x119] sm:$0x1] %vm354_vm1, %v4927_v34 }
 0x4f0   : > { %v14046_v2 = vld [vmem:[#allocation2 + $0xf0] sm:$0xff]  ;;  %7097 = vst.msk [vmem:[#allocation3 + $0x90] sm:$0xff] %vm292_vm0, %v14041_v8  ;;  %4977 = vst.msk [vmem:[#allocation3 + $0x20] sm:$0xff] %vm292_vm0, %v14044_v45  ;;  %7433 = vrot.lane.b32.xlu0 %v7400_v3, %s11766_s14  ;;  %7527 = vrot.lane.b32.xlu1 %v7495_v55, %s11768_s6  ;;  %v4958_v4 = vld [vmem:[#allocation2 + $0x8] sm:$0xff] }
 0x4f1   : > { %4902 = vst.msk [vmem:[#allocation2 + $0x60] sm:$0x1] %vm354_vm1, %v4884_v60  ;;  %4910 = vst.msk [vmem:[#allocation2 + $0x120] sm:$0x1] %vm354_vm1, %v4892_v38  ;;  %v4920_v20 = vld [vmem:[#allocation2 + $0x6f] sm:$0x1] }
 0x4f2   : > { %7099 = vst.msk [vmem:[#allocation3 + $0xa0] sm:$0xff] %vm292_vm0, %v14046_v2  ;;  %7104 = vst.msk [vmem:[#allocation3 + $0xc8] sm:$0xff] %vm292_vm0, %v14063_v35  ;;  %v4928_v9 = vld [vmem:[#allocation2 + $0x12f] sm:$0x1]  ;;  %v4885_v6 = vld [vmem:[#allocation2 + $0x7a] sm:$0x1] }
 0x4f3   : > { %v14057_v61 = vld [vmem:[#allocation2 + $0x48] sm:$0xff]  ;;  %4898 = vst.msk [vmem:[#allocation2] sm:$0x1] %vm354_vm1, %v4880_v25  ;;  %4938 = vst.msk [vmem:[#allocation2 + $0x71] sm:$0x1] %vm354_vm1, %v4920_v20  ;;  %v14090_v10 = vld [vmem:[#allocation2 + $0x80] sm:$0xff] }
 0x4f4   : > { %4979 = vst.msk [vmem:[#allocation3 + $0x30] sm:$0xff] %vm292_vm0, %v14057_v61  ;;  %v14069_v46 = vld [vmem:[#allocation2 + $0x108] sm:$0xff]  ;;  %4974 = vst.msk [vmem:[#allocation3 + $0x8] sm:$0xff] %vm292_vm0, %v4958_v4  ;;  %5027 = vrot.lane.b32.xlu0 %v5278_v17, %s11765_s23  ;;  %v4893_v29 = vld [vmem:[#allocation2 + $0x13a] sm:$0x1]  ;;  %5121 = vrot.lane.b32.xlu1 %v5373_v22, %s11764_s21 }
 0x4f5   : > { %7101 = vst.msk [vmem:[#allocation3 + $0xb0] sm:$0xff] %vm292_vm0, %v14069_v46  ;;  %v14092_v63 = vld [vmem:[#allocation2 + $0x140] sm:$0xff]  ;;  %4984 = vst.msk [vmem:[#allocation3 + $0x58] sm:$0xff] %vm292_vm0, %v14090_v10  ;;  %v4886_v24 = vld [vmem:[#allocation2 + $0x92] sm:$0x1] }
 0x4f6   : > { %4946 = vst.msk [vmem:[#allocation2 + $0x131] sm:$0x1] %vm354_vm1, %v4928_v9  ;;  %4903 = vst.msk [vmem:[#allocation2 + $0x78] sm:$0x1] %vm354_vm1, %v4885_v6  ;;  %v4921_v11 = vld [vmem:[#allocation2 + $0x87] sm:$0x1] }
 0x4f7   : > { %4911 = vst.msk [vmem:[#allocation2 + $0x138] sm:$0x1] %vm354_vm1, %v4893_v29  ;;  %v4929_v52 = vld [vmem:[#allocation2 + $0x147] sm:$0x1]  ;;  %4939 = vst.msk [vmem:[#allocation2 + $0x89] sm:$0x1] %vm354_vm1, %v4921_v11 }
 0x4f8   : > { %v14079_v21 = vld [vmem:[#allocation2 + $0x60] sm:$0xff]  ;;  %7149 = vrot.lane.b32.xlu0 %v7400_v3, %s11765_s23  ;;  %7106 = vst.msk [vmem:[#allocation3 + $0xd8] sm:$0xff] %vm292_vm0, %v14092_v63  ;;  %7243 = vrot.lane.b32.xlu1 %v7495_v55, %s11764_s21  ;;  %v4894_v15 = vld [vmem:[#allocation2 + $0x152] sm:$0x1]  ;;  %v14109_v18 = vld [vmem:[#allocation2 + $0x158] sm:$0xff] }
 0x4f9   : > { %4981 = vst.msk [vmem:[#allocation3 + $0x40] sm:$0xff] %vm292_vm0, %v14079_v21  ;;  %v14085_v54 = vld [vmem:[#allocation2 + $0x120] sm:$0xff]  ;;  %4986 = vst.msk [vmem:[#allocation3 + $0x68] sm:$0xff] %vm292_vm0, %v14105_v7  ;;  %v4922_v50 = vld [vmem:[#allocation2 + $0x9f] sm:$0x1] }
 0x4fa   : > { %7103 = vst.msk [vmem:[#allocation3 + $0xc0] sm:$0xff] %vm292_vm0, %v14085_v54  ;;  %v4957_v39 = vld [vmem:[#allocation2] sm:$0xff]  ;;  %7108 = vst.msk [vmem:[#allocation3 + $0xe8] sm:$0xff] %vm292_vm0, %v14109_v18  ;;  %v4930_v27 = vld [vmem:[#allocation2 + $0x15f] sm:$0x1] }
 0x4fb   : > { %4973 = vst.msk [vmem:[#allocation3] sm:$0xff] %vm292_vm0, %v4957_v39  ;;  %v4887_v47 = vld [vmem:[#allocation2 + $0xaa] sm:$0x1]  ;;  %v14133_v31 = vld [vmem:[#allocation2 + $0xb0] sm:$0xff]  ;;  %v4932_v19 = vld [vmem:[#allocation2 + $0x18f] sm:$0x1] }
 0x4fc   : > { %4947 = vst.msk [vmem:[#allocation2 + $0x149] sm:$0x1] %vm354_vm1, %v4929_v52  ;;  %4904 = vst.msk [vmem:[#allocation2 + $0x90] sm:$0x1] %vm354_vm1, %v4886_v24  ;;  %5503 = vrot.lane.b32.xlu0 %v13994_v36, %s11769_s8  ;;  %5597 = vrot.lane.b32.xlu1 %v13996_v13, %s11770_s28  ;;  %v4895_v51 = vld [vmem:[#allocation2 + $0x16a] sm:$0x1] }
 0x4fd   : > { %4912 = vst.msk [vmem:[#allocation2 + $0x150] sm:$0x1] %vm354_vm1, %v4894_v15  ;;  %v14117_v57 = vld [vmem:[#allocation2 + $0x78] sm:$0xff]  ;;  %4940 = vst.msk [vmem:[#allocation2 + $0xa1] sm:$0x1] %vm354_vm1, %v4922_v50  ;;  %v14135_v23 = vld [vmem:[#allocation2 + $0x170] sm:$0xff] }
 0x4fe   : > { %v14119_v5 = vld [vmem:[#allocation2 + $0x138] sm:$0xff]  ;;  %4983 = vst.msk [vmem:[#allocation3 + $0x50] sm:$0xff] %vm292_vm0, %v14117_v57  ;;  %v14137_v37 = vld [vmem:[#allocation2 + $0x169] sm:$0xff]  ;;  %4988 = vst.msk [vmem:[#allocation3 + $0x78] sm:$0xff] %vm292_vm0, %v14133_v31 }
 0x4ff   : > { %7105 = vst.msk [vmem:[#allocation3 + $0xd0] sm:$0xff] %vm292_vm0, %v14119_v5  ;;  %v7687_v30 = vld [vmem:[#allocation2 + $0xf1] sm:$0xff]  ;;  %7110 = vst.msk [vmem:[#allocation3 + $0xf8] sm:$0xff] %vm292_vm0, %v14135_v23  ;;  %v7688_v59 = vld [vmem:[#allocation2 + $0xf9] sm:$0xff] }
 0x500   : > { %7625 = vrot.lane.b32.xlu0 %v14012_v40, %s11769_s8  ;;  %4948 = vst.msk [vmem:[#allocation2 + $0x161] sm:$0x1] %vm354_vm1, %v4930_v27  ;;  %4905 = vst.msk [vmem:[#allocation2 + $0xa8] sm:$0x1] %vm354_vm1, %v4887_v47  ;;  %7719 = vrot.lane.b32.xlu1 %v7687_v30, %s11770_s28  ;;  %v14150_v48 = vld [vmem:[#allocation2 + $0x171] sm:$0xff]  ;;  %v4989_v17 = vld [vmem:[#allocation2 + $0x1] sm:$0xff] }
 0x501   : > { %4913 = vst.msk [vmem:[#allocation2 + $0x168] sm:$0x1] %vm354_vm1, %v4895_v51  ;;  %v4923_v28 = vld [vmem:[#allocation2 + $0xb7] sm:$0x1]  ;;  %4950 = vst.msk [vmem:[#allocation2 + $0x191] sm:$0x1] %vm354_vm1, %v4932_v19 }
 0x502   : > { %4878 = vst.msk [vmem:[#allocation2 + $0x199] sm:$0xff] %vm292_vm0, %v14137_v37  ;;  %v4931_v62 = vld [vmem:[#allocation2 + $0x177] sm:$0x1]  ;;  %4879 = vst.msk [vmem:[#allocation2 + $0x1a1] sm:$0xff] %vm292_vm0, %v14150_v48  ;;  %v7208_v14 = vld [vmem:[#allocation2 + $0xca] sm:$0xff] }
 0x503   : > { %v14144_v58 = vld [vmem:[#allocation2 + $0x90] sm:$0xff]  ;;  %4941 = vst.msk [vmem:[#allocation2 + $0xb9] sm:$0x1] %vm354_vm1, %v4923_v28  ;;  %4949 = vst.msk [vmem:[#allocation2 + $0x179] sm:$0x1] %vm354_vm1, %v4931_v62  ;;  %v5374_v33 = vld [vmem:[#allocation2 + $0x22] sm:$0xff] }
 0x504   : > { %v14146_v44 = vld [vmem:[#allocation2 + $0x150] sm:$0xff]  ;;  %4985 = vst.msk [vmem:[#allocation3 + $0x60] sm:$0xff] %vm292_vm0, %v14144_v58  ;;  %5219 = vrot.lane.b32.xlu0 %v13994_v36, %s11767_s20  ;;  %5313 = vrot.lane.b32.xlu1 %v13996_v13, %s11766_s14  ;;  %v5662_v22 = vld [vmem:[#allocation2 + $0x3a] sm:$0xff]  ;;  %v14237_v3 = vld [vmem:[#allocation10 + $0x10] sm:$0xff] }
 0x505   : > { %7107 = vst.msk [vmem:[#allocation3 + $0xe0] sm:$0xff] %vm292_vm0, %v14146_v44  ;;  %v5661_v36 = vld [vmem:[#allocation2 + $0x32] sm:$0xff]  ;;  %v14225_v34 = vld [vmem:[#allocation10 + $0x8] sm:$0xff]  ;;  %v5835_v4 = vand.u32 4294901760, %v14237_v3  ;;  %v7689_v51 = vld [vmem:[#allocation2 + $0x109] sm:$0xff] }
 0x506   : > { %v7783_v1 = vld [vmem:[#allocation2 + $0xf2] sm:$0xff]  ;;  %v7784_v38 = vld [vmem:[#allocation2 + $0xfa] sm:$0xff]  ;;  %v5663_v19 = vld [vmem:[#allocation2 + $0x4a] sm:$0xff] }
 0x507   : > { %v14164_v43 = vld [vmem:[#allocation2 + $0xa8] sm:$0xff]  ;;  %v14239_v55 = vld [vmem:[#allocation10 + $0x18] sm:$0xff]  ;;  %v4956_v6 = vld [vmem:[#allocation10 + $0x20] sm:$0xf] }
 0x508   : > { %v14166_v42 = vld [vmem:[#allocation2 + $0x168] sm:$0xff]  ;;  %5599 = vrot.lane.b32.xlu0 %v13998_v16, %s11770_s28  ;;  %4987 = vst.msk [vmem:[#allocation3 + $0x70] sm:$0xff] %vm292_vm0, %v14164_v43  ;;  %5693 = vrot.lane.b32.xlu1 %v5661_v36, %s11771_s30  ;;  %v5838_v20 = vand.u32 4294901760, %v14239_v55  ;;  %v14260_v39 = vsel %vm1291_vm2, %v4956_v6, 0 }
 0x509   : > { %7109 = vst.msk [vmem:[#allocation3 + $0xf0] sm:$0xff] %vm292_vm0, %v14166_v42  ;;  %v4897_v12 = vld [vmem:[#allocation2 + $0x19a] sm:$0x1]  ;;  %v4933_v41 = vld [vmem:[#allocation2 + $0x1a7] sm:$0x1]  ;;  %v14265_v11 = vand.u32 4294901760, %v14260_v39 }
 0x50a   : > { %4915 = vst.msk [vmem:[#allocation2 + $0x198] sm:$0x1] %vm354_vm1, %v4897_v12  ;;  %4951 = vst.msk [vmem:[#allocation2 + $0x1a9] sm:$0x1] %vm354_vm1, %v4933_v41  ;;  %v14254_v9 = vpack.c.bf16 %v5838_v20, %v5835_v4  ;;  %v5568_v12 = vld [vmem:[#allocation2 + $0x51] sm:$0xff]  ;;  %v5580_v3 = vld [vmem:[#allocation2 + $0xe1] sm:$0xff] }
 0x50c   : > { %7341 = vrot.lane.b32.xlu0 %v14012_v40, %s11767_s20  ;;  %7435 = vrot.lane.b32.xlu1 %v7687_v30, %s11766_s14  ;;  %v14195_v40 = vld [vmem:[#allocation2 + $0x49] sm:$0xff] }
 0x510   : > { %7721 = vrot.lane.b32.xlu0 %v7688_v59, %s11770_s28  ;;  %7815 = vrot.lane.b32.xlu1 %v7783_v1, %s11771_s30 }
 0x514   : > { %5029 = vrot.lane.b32.xlu0 %v13996_v13, %s11765_s23  ;;  %5315 = vrot.lane.b32.xlu1 %v13998_v16, %s11766_s14  ;;  %v5085_v13 = vld [vmem:[#allocation2 + $0x2] sm:$0xff] }
 0x518   : > { %5409 = vrot.lane.b32.xlu0 %v5661_v36, %s11768_s6  ;;  %7437 = vrot.lane.b32.xlu1 %v7688_v59, %s11766_s14 }
 0x51c   : > { %7151 = vrot.lane.b32.xlu0 %v7687_v30, %s11765_s23  ;;  %5125 = vrot.lane.b32.xlu1 %v5661_v36, %s11764_s21 }
 0x520   : > { %7531 = vrot.lane.b32.xlu0 %v7783_v1, %s11768_s6  ;;  %7247 = vrot.lane.b32.xlu1 %v7783_v1, %s11764_s21  ;;  %v7785_v1 = vld [vmem:[#allocation2 + $0x10a] sm:$0xff] }
 0x524   : > { %5031 = vrot.lane.b32.xlu0 %v13998_v16, %s11765_s23  ;;  %5601 = vrot.lane.b32.xlu1 %v14195_v40, %s11770_s28  ;;  %v4990_v16 = vld [vmem:[#allocation2 + $0x9] sm:$0xff] }
 0x528   : > { %7153 = vrot.lane.b32.xlu0 %v7688_v59, %s11765_s23  ;;  %5117 = vrot.lane.b32.xlu1 %v5085_v13, %s11764_s21 }
 0x52c   : > { %5507 = vrot.lane.b32.xlu0 %v14005_v0, %s11769_s8  ;;  %5213 = vrot.lane.b32.xlu1 %v14020_v32, %s11767_s20  ;;  %v7496_v32 = vld [vmem:[#allocation2 + $0xe2] sm:$0xff] }
 0x530   : > { %5021 = vrot.lane.b32.xlu0 %v4989_v17, %s11765_s23  ;;  %7335 = vrot.lane.b32.xlu1 %v14041_v8, %s11767_s20  ;;  %v14223_v8 = vld [vmem:[#allocation10] sm:$0xff] }
 0x531   : > { %v5829_v60 = vand.u32 4294901760, %v14223_v8  ;;  %v7690_v17 = vld [vmem:[#allocation2 + $0x111] sm:$0xff] }
 0x534   : > { %5023 = vrot.lane.b32.xlu0 %v4990_v16, %s11765_s23  ;;  %5501 = vrot.lane.b32.xlu1 %v14044_v45, %s11769_s8 }
 0x538   : > { %7241 = vrot.lane.b32.xlu0 %v7208_v14, %s11764_s21  ;;  %7623 = vrot.lane.b32.xlu1 %v14046_v2, %s11769_s8 }
 0x53c   : > { %5407 = vrot.lane.b32.xlu0 %v5374_v33, %s11768_s6  ;;  %5217 = vrot.lane.b32.xlu1 %v14044_v45, %s11767_s20  ;;  %v5832_v45 = vand.u32 4294901760, %v14225_v34 }
 0x540   : > { %7529 = vrot.lane.b32.xlu0 %v7496_v32, %s11768_s6  ;;  %7339 = vrot.lane.b32.xlu1 %v14046_v2, %s11767_s20  ;;  %v14235_v2 = vpack.c.bf16 %v5832_v45, %v5829_v60 }
 0x542   : > { %v7146_v53 = vpop.permute.xlu0 %7145  ;;  %11036 = vmatprep.subr.bf16.mxu1 %v14235_v2  ;;  %10988 = vmatprep.subr.bf16.mxu0 %v14235_v2 }
 0x543   : > { %7192 = vst.msk [vmem:[#allocation3 + $0x88] sm:$0xff] %vm526_vm3, %v7146_v53  ;;  %11038 = vmatpush3.bf16.msra.mxu1 %v14235_v2  ;;  %10990 = vmatpush3.bf16.msra.mxu0 %v14235_v2 }
 0x544   : > { %5123 = vrot.lane.b32.xlu0 %v5374_v33, %s11764_s21  ;;  %5695 = vrot.lane.b32.xlu1 %v5662_v22, %s11771_s30  ;;  %v5664_v33 = vld [vmem:[#allocation2 + $0x52] sm:$0xff] }
 0x545   : > { %11040 = vmatprep.subr.bf16.mxu1 %v14254_v9  ;;  %10992 = vmatprep.subr.bf16.mxu0 %v14254_v9 }
 0x547   : > { %11042 = vmatpush3.bf16.msra.mxu1 %v14254_v9  ;;  %10994 = vmatpush3.bf16.msra.mxu0 %v14254_v9 }
 0x548   : > { %7245 = vrot.lane.b32.xlu0 %v7496_v32, %s11764_s21  ;;  %7817 = vrot.lane.b32.xlu1 %v7784_v38, %s11771_s30 }
 0x549   : > { %v7144_v25 = vpop.permute.xlu1 %7143  ;;  %10695 = vmatprep.subr.mxu1 %v14265_v11  ;;  %10491 = vmatprep.subr.mxu0 %v14265_v11 }
 0x54a   : > { %7191 = vst.msk [vmem:[#allocation3 + $0x80] sm:$0xff] %vm526_vm3, %v7144_v25 }
 0x54b   : > { %10696 = vmatpush3.msra.mxu1 %v14265_v11  ;;  %10492 = vmatpush3.msra.mxu0 %v14265_v11 }
 0x54c   : > { %5411 = vrot.lane.b32.xlu0 %v5662_v22, %s11768_s6  ;;  %5505 = vrot.lane.b32.xlu1 %v14057_v61, %s11769_s8 }
 0x54e   : > { %v7240_v29 = vpop.permute.xlu1 %7239 }
 0x54f   : > { %7287 = vst.msk [vmem:[#allocation3 + $0x80] sm:$0xff] %vm623_vm4, %v7240_v29  ;;  %v14268_v52 = vpop.permute.xlu0 %5215 }
 0x550   : > { %7533 = vrot.lane.b32.xlu0 %v7784_v38, %s11768_s6  ;;  %7627 = vrot.lane.b32.xlu1 %v14069_v46, %s11769_s8 }
 0x552   : > { %v14276_v24 = vpop.permute.xlu1 %5309 }
 0x554   : > { %5127 = vrot.lane.b32.xlu0 %v5662_v22, %s11764_s21  ;;  %5221 = vrot.lane.b32.xlu1 %v14057_v61, %s11767_s20  ;;  %v5086_v61 = vld [vmem:[#allocation2 + $0xa] sm:$0xff] }
 0x556   : > { %v14279_v15 = vpop.permute.xlu0 %7337  ;;  %v14285_v50 = vpop.permute.xlu1 %7431 }
 0x558   : > { %7249 = vrot.lane.b32.xlu0 %v7784_v38, %s11764_s21  ;;  %7343 = vrot.lane.b32.xlu1 %v14069_v46, %s11767_s20 }
 0x55a   : > { %v5026_v27 = vpop.permute.xlu0 %5025  ;;  %v14292_v47 = vpop.permute.xlu1 %5311 }
 0x55b   : > { %5071 = vst.msk [vmem:[#allocation3 + $0x10] sm:$0xff] %vm526_vm3, %v5026_v27 }
 0x55c   : > { %7629 = vrot.lane.b32.xlu0 %v14033_v49, %s11769_s8  ;;  %7723 = vrot.lane.b32.xlu1 %v7689_v51, %s11770_s28 }
 0x55e   : > { %v14294_v30 = vpop.permute.xlu0 %5405  ;;  %v7148_v28 = vpop.permute.xlu1 %7147 }
 0x55f   : > { %7193 = vst.msk [vmem:[#allocation3 + $0x90] sm:$0xff] %vm526_vm3, %v7148_v28 }
 0x560   : > { %5119 = vrot.lane.b32.xlu0 %v5086_v61, %s11764_s21  ;;  %5317 = vrot.lane.b32.xlu1 %v14195_v40, %s11766_s14 }
 0x562   : > { %v14299_v62 = vpop.permute.xlu0 %7433  ;;  %v14305_v46 = vpop.permute.xlu1 %7527 }
 0x564   : > { %5223 = vrot.lane.b32.xlu0 %v14005_v0, %s11767_s20  ;;  %5697 = vrot.lane.b32.xlu1 %v5663_v19, %s11771_s30 }
 0x566   : > { %v5028_v36 = vpop.permute.xlu0 %5027  ;;  %v5122_v41 = vpop.permute.xlu1 %5121 }
 0x567   : > { %5072 = vst.msk [vmem:[#allocation3 + $0x18] sm:$0xff] %vm526_vm3, %v5028_v36 }
 0x568   : > { %5603 = vrot.lane.b32.xlu0 %v5568_v12, %s11770_s28  ;;  %5167 = vst.msk [vmem:[#allocation3 + $0x10] sm:$0xff] %vm623_vm4, %v5122_v41  ;;  %7439 = vrot.lane.b32.xlu1 %v7689_v51, %s11766_s14 }
 0x56a   : > { %v7150_v59 = vpop.permute.xlu0 %7149  ;;  %v7244_v0 = vpop.permute.xlu1 %7243 }
 0x56b   : > { %7194 = vst.msk [vmem:[#allocation3 + $0x98] sm:$0xff] %vm526_vm3, %v7150_v59 }
 0x56c   : > { %7345 = vrot.lane.b32.xlu0 %v14033_v49, %s11767_s20  ;;  %7289 = vst.msk [vmem:[#allocation3 + $0x90] sm:$0xff] %vm623_vm4, %v7244_v0  ;;  %7819 = vrot.lane.b32.xlu1 %v7785_v1, %s11771_s30  ;;  %v14376_v0 = vld [vmem:[#allocation2 + $0x61] sm:$0xff] }
 0x56e   : > { %v14316_v13 = vpop.permute.xlu0 %5503  ;;  %v14320_v16 = vpop.permute.xlu1 %5597 }
 0x570   : > { %7725 = vrot.lane.b32.xlu0 %v7690_v17, %s11770_s28  ;;  %5319 = vrot.lane.b32.xlu1 %v5568_v12, %s11766_s14 }
 0x572   : > { %v14322_v14 = vpop.permute.xlu0 %7625  ;;  %v14327_v49 = vpop.permute.xlu1 %7719 }
 0x574   : > { %5033 = vrot.lane.b32.xlu0 %v14195_v40, %s11765_s23  ;;  %5699 = vrot.lane.b32.xlu1 %v5664_v33, %s11771_s30  ;;  %v7786_v40 = vld [vmem:[#allocation2 + $0x112] sm:$0xff] }
 0x576   : > { %v14329_v32 = vpop.permute.xlu0 %5219  ;;  %v14333_v22 = vpop.permute.xlu1 %5313 }
 0x578   : > { %5413 = vrot.lane.b32.xlu0 %v5663_v19, %s11768_s6  ;;  %7441 = vrot.lane.b32.xlu1 %v7690_v17, %s11766_s14 }
 0x57a   : > { %v14335_v53 = vpop.permute.xlu0 %5599  ;;  %v14339_v38 = vpop.permute.xlu1 %5693 }
 0x57c   : > { %7155 = vrot.lane.b32.xlu0 %v7689_v51, %s11765_s23  ;;  %7821 = vrot.lane.b32.xlu1 %v7786_v40, %s11771_s30 }
 0x57e   : > { %v14341_v25 = vpop.permute.xlu0 %7341  ;;  %v14345_v6 = vpop.permute.xlu1 %7435 }
 0x580   : > { %7535 = vrot.lane.b32.xlu0 %v7785_v1, %s11768_s6  ;;  %5129 = vrot.lane.b32.xlu1 %v5663_v19, %s11764_s21 }
 0x582   : > { %v14347_v29 = vpop.permute.xlu0 %7721  ;;  %v14351_v27 = vpop.permute.xlu1 %7815 }
 0x584   : > { %5035 = vrot.lane.b32.xlu0 %v5568_v12, %s11765_s23  ;;  %5509 = vrot.lane.b32.xlu1 %v14079_v21, %s11769_s8 }
 0x586   : > { %v5030_v51 = vpop.permute.xlu0 %5029  ;;  %v14357_v61 = vpop.permute.xlu1 %5315 }
 0x587   : > { %5073 = vst.msk [vmem:[#allocation3 + $0x20] sm:$0xff] %vm526_vm3, %v5030_v51 }
 0x588   : > { %5415 = vrot.lane.b32.xlu0 %v5664_v33, %s11768_s6  ;;  %7251 = vrot.lane.b32.xlu1 %v7785_v1, %s11764_s21 }
 0x58a   : > { %v14359_v28 = vpop.permute.xlu0 %5409  ;;  %v14363_v19 = vpop.permute.xlu1 %7437 }
 0x58c   : > { %7157 = vrot.lane.b32.xlu0 %v7690_v17, %s11765_s23  ;;  %7631 = vrot.lane.b32.xlu1 %v14085_v54, %s11769_s8 }
 0x58e   : > { %v7152_v36 = vpop.permute.xlu0 %7151  ;;  %v5126_v12 = vpop.permute.xlu1 %5125 }
 0x58f   : > { %7195 = vst.msk [vmem:[#allocation3 + $0xa0] sm:$0xff] %vm526_vm3, %v7152_v36 }
 0x590   : > { %7537 = vrot.lane.b32.xlu0 %v7786_v40, %s11768_s6  ;;  %5169 = vst.msk [vmem:[#allocation3 + $0x20] sm:$0xff] %vm623_vm4, %v5126_v12  ;;  %5225 = vrot.lane.b32.xlu1 %v14079_v21, %s11767_s20 }
 0x592   : > { %v14370_v41 = vpop.permute.xlu0 %7531  ;;  %v7248_v59 = vpop.permute.xlu1 %7247 }
 0x593   : > { %7291 = vst.msk [vmem:[#allocation3 + $0xa0] sm:$0xff] %vm623_vm4, %v7248_v59 }
 0x594   : > { %5131 = vrot.lane.b32.xlu0 %v5664_v33, %s11764_s21  ;;  %5605 = vrot.lane.b32.xlu1 %v14376_v0, %s11770_s28  ;;  %v14389_v33 = vld [vmem:[#allocation2 + $0x121] sm:$0xff] }
 0x596   : > { %v5032_v1 = vpop.permute.xlu0 %5031  ;;  %v14383_v17 = vpop.permute.xlu1 %5601 }
 0x597   : > { %5074 = vst.msk [vmem:[#allocation3 + $0x28] sm:$0xff] %vm526_vm3, %v5032_v1 }
 0x598   : > { %5511 = vrot.lane.b32.xlu0 %v14060_v56, %s11769_s8  ;;  %7347 = vrot.lane.b32.xlu1 %v14085_v54, %s11767_s20 }
 0x59a   : > { %v7154_v51 = vpop.permute.xlu0 %7153  ;;  %v5118_v21 = vpop.permute.xlu1 %5117 }
 0x59b   : > { %7196 = vst.msk [vmem:[#allocation3 + $0xa8] sm:$0xff] %vm526_vm3, %v7154_v51 }
 0x59c   : > { %7253 = vrot.lane.b32.xlu0 %v7786_v40, %s11764_s21  ;;  %7727 = vrot.lane.b32.xlu1 %v14389_v33, %s11770_s28  ;;  %v14405_v40 = vld [vmem:[#allocation2 + $0x62] sm:$0xff] }
 0x59e   : > { %v14391_v36 = vpop.permute.xlu0 %5507  ;;  %v5214_v12 = vpop.permute.xlu1 %5213 }
 0x5a0   : > { %7633 = vrot.lane.b32.xlu0 %v14063_v35, %s11769_s8  ;;  %5321 = vrot.lane.b32.xlu1 %v14376_v0, %s11766_s14 }
 0x5a2   : > { %v5022_v59 = vpop.permute.xlu0 %5021  ;;  %v7336_v54 = vpop.permute.xlu1 %7335 }
 0x5a3   : > { %5069 = vst.msk [vmem:[#allocation3] sm:$0xff] %vm526_vm3, %v5022_v59 }
 0x5a4   : > { %5165 = vst.msk [vmem:[#allocation3] sm:$0xff] %vm623_vm4, %v5118_v21  ;;  %5227 = vrot.lane.b32.xlu0 %v14060_v56, %s11767_s20  ;;  %5701 = vrot.lane.b32.xlu1 %v14405_v40, %s11771_s30  ;;  %v14418_v56 = vld [vmem:[#allocation2 + $0x69] sm:$0xff] }
 0x5a5   : > { %5261 = vst.msk [vmem:[#allocation3] sm:$0xff] %vm720_vm5, %v5214_v12  ;;  %7383 = vst.msk [vmem:[#allocation3 + $0x80] sm:$0xff] %vm720_vm5, %v7336_v54 }
 0x5a6   : > { %5357 = vst.msk [vmem:[#allocation3] sm:$0xff] %vm817_vm6, %v14276_v24  ;;  %v5024_v1 = vpop.permute.xlu0 %5023  ;;  %7479 = vst.msk [vmem:[#allocation3 + $0x80] sm:$0xff] %vm817_vm6, %v14285_v50  ;;  %v5502_v24 = vpop.permute.xlu1 %5501 }
 0x5a7   : > { %5453 = vst.msk [vmem:[#allocation3] sm:$0xff] %vm914_vm7, %v14294_v30  ;;  %7575 = vst.msk [vmem:[#allocation3 + $0x80] sm:$0xff] %vm914_vm7, %v14305_v46  ;;  %v14437_v46 = vld [vmem:[#allocation2 + $0x122] sm:$0xff] }
 0x5a8   : > { %5070 = vst.msk [vmem:[#allocation3 + $0x8] sm:$0xff] %vm526_vm3, %v5024_v1  ;;  %5607 = vrot.lane.b32.xlu0 %v14418_v56, %s11770_s28  ;;  %7443 = vrot.lane.b32.xlu1 %v14389_v33, %s11766_s14 }
 0x5a9   : > { %5549 = vst.msk [vmem:[#allocation3] sm:$0xff] %vm1011_vm8, %v5502_v24  ;;  %v14510_v24 = vld [vmem:[#allocation2 + $0x12a] sm:$0xff] }
 0x5aa   : > { %v7242_v50 = vpop.permute.xlu0 %7241  ;;  %5645 = vst.msk [vmem:[#allocation3] sm:$0xff] %vm1108_vm9, %v14320_v16  ;;  %v7624_v30 = vpop.permute.xlu1 %7623 }
 0x5ab   : > { %7288 = vst.msk [vmem:[#allocation3 + $0x88] sm:$0xff] %vm623_vm4, %v7242_v50 }
 0x5ac   : > { %5741 = vst.msk [vmem:[#allocation3] sm:$0xff] %vm1205_vm10, %v14339_v38  ;;  %7349 = vrot.lane.b32.xlu0 %v14063_v35, %s11767_s20  ;;  %7823 = vrot.lane.b32.xlu1 %v14437_v46, %s11771_s30  ;;  %v14447_v35 = vld [vmem:[#allocation2 + $0x129] sm:$0xff] }
 0x5ad   : > { %7384 = vst.msk [vmem:[#allocation3 + $0x88] sm:$0xff] %vm720_vm5, %v14279_v15 }
 0x5ae   : > { %7480 = vst.msk [vmem:[#allocation3 + $0x88] sm:$0xff] %vm817_vm6, %v14299_v62  ;;  %v14439_v16 = vpop.permute.xlu0 %5407  ;;  %v5218_v15 = vpop.permute.xlu1 %5217 }
 0x5af   : > { %7671 = vst.msk [vmem:[#allocation3 + $0x80] sm:$0xff] %vm1011_vm8, %v7624_v30 }
 0x5b0   : > { %7767 = vst.msk [vmem:[#allocation3 + $0x80] sm:$0xff] %vm1108_vm9, %v14327_v49  ;;  %7729 = vrot.lane.b32.xlu0 %v14447_v35, %s11770_s28  ;;  %5323 = vrot.lane.b32.xlu1 %v14418_v56, %s11766_s14 }
 0x5b1   : > { %7863 = vst.msk [vmem:[#allocation3 + $0x80] sm:$0xff] %vm1205_vm10, %v14351_v27 }
 0x5b2   : > { %5263 = vst.msk [vmem:[#allocation3 + $0x10] sm:$0xff] %vm720_vm5, %v5218_v15  ;;  %v7530_v62 = vpop.permute.xlu0 %7529  ;;  %v7340_v27 = vpop.permute.xlu1 %7339 }
 0x5b3   : > { %5359 = vst.msk [vmem:[#allocation3 + $0x10] sm:$0xff] %vm817_vm6, %v14333_v22  ;;  %v5757_v49 = vld [vmem:[#allocation3] sm:$0xff] }
 0x5b4   : > { %7576 = vst.msk [vmem:[#allocation3 + $0x88] sm:$0xff] %vm914_vm7, %v7530_v62  ;;  %5455 = vst.msk [vmem:[#allocation3 + $0x10] sm:$0xff] %vm914_vm7, %v14359_v28  ;;  %v5778_v38 = vsel %vm1242_vm11, %v5757_v49, 0  ;;  %5037 = vrot.lane.b32.xlu0 %v14376_v0, %s11765_s23  ;;  %v14469_v22 = vld [vmem:[#allocation2 + $0x6a] sm:$0xff] }
 0x5b5   : > { %7672 = vst.msk [vmem:[#allocation3 + $0x88] sm:$0xff] %vm1011_vm8, %v14322_v14  ;;  %v14464_v51 = vand.u32 4294901760, %v5778_v38  ;;  %5703 = vrot.lane.b32.xlu1 %v14469_v22, %s11771_s30 }
 0x5b6   : > { %7768 = vst.msk [vmem:[#allocation3 + $0x88] sm:$0xff] %vm1108_vm9, %v14347_v29  ;;  %v5124_v21 = vpop.permute.xlu0 %5123 }
 0x5b7   : > { %7385 = vst.msk [vmem:[#allocation3 + $0x90] sm:$0xff] %vm720_vm5, %v7340_v27  ;;  %v14476_v14 = vsub.f32 %v5778_v38, %v14464_v51 }
 0x5b8   : > { %7481 = vst.msk [vmem:[#allocation3 + $0x90] sm:$0xff] %vm817_vm6, %v14345_v6  ;;  %v7879_v28 = vld [vmem:[#allocation3 + $0x80] sm:$0xff]  ;;  %5417 = vrot.lane.b32.xlu0 %v14405_v40, %s11768_s6  ;;  %v14486_v6 = vpop.permute.xlu1 %5695 }
 0x5b9   : > { %5168 = vst.msk [vmem:[#allocation3 + $0x18] sm:$0xff] %vm623_vm4, %v5124_v21  ;;  %v7896_v29 = vsel %vm1242_vm11, %v7879_v28, 0  ;;  %v16170_v0 = vand.u32 4294901760, %v14476_v14  ;;  %7445 = vrot.lane.b32.xlu1 %v14447_v35, %s11766_s14 }
 0x5ba   : > { %7577 = vst.msk [vmem:[#allocation3 + $0x90] sm:$0xff] %vm914_vm7, %v14370_v41  ;;  %v14489_v12 = vand.u32 4294901760, %v7896_v29  ;;  %v7246_v59 = vpop.permute.xlu0 %7245 }
 0x5bb   : > { %5264 = vst.msk [vmem:[#allocation3 + $0x18] sm:$0xff] %vm720_vm5, %v14329_v32  ;;  %v5901_v32 = vsub.f32 %v14476_v14, %v16170_v0 }
 0x5bc   : > { %5360 = vst.msk [vmem:[#allocation3 + $0x18] sm:$0xff] %vm817_vm6, %v14357_v61  ;;  %v14499_v41 = vsub.f32 %v7896_v29, %v14489_v12  ;;  %7159 = vrot.lane.b32.xlu0 %v14389_v33, %s11765_s23  ;;  %v7818_v61 = vpop.permute.xlu1 %7817 }
 0x5bd   : > { %7290 = vst.msk [vmem:[#allocation3 + $0x98] sm:$0xff] %vm623_vm4, %v7246_v59  ;;  %v5902_v54 = vand.u32 4294901760, %v5901_v32  ;;  %7825 = vrot.lane.b32.xlu1 %v14510_v24, %s11771_s30 }
 0x5be   : > { %7386 = vst.msk [vmem:[#allocation3 + $0x98] sm:$0xff] %vm720_vm5, %v14341_v25  ;;  %v16173_v1 = vand.u32 4294901760, %v14499_v41  ;;  %v5412_v50 = vpop.permute.xlu0 %5411 }
 0x5bf   : > { %7482 = vst.msk [vmem:[#allocation3 + $0x98] sm:$0xff] %vm817_vm6, %v14363_v19  ;;  %10493 = vmatprep.mubr.f32.mxu0 %v5902_v54 }
 0x5c0   : > { %7864 = vst.msk [vmem:[#allocation3 + $0x88] sm:$0xff] %vm1205_vm10, %v7818_v61  ;;  %v8016_v25 = vsub.f32 %v14499_v41, %v16173_v1  ;;  %7539 = vrot.lane.b32.xlu0 %v14437_v46, %s11768_s6  ;;  %v5506_v19 = vpop.permute.xlu1 %5505  ;;  %v14569_v61 = vld [vmem:[#allocation2 + $0x79] sm:$0xff] }
 0x5c1   : > { %5456 = vst.msk [vmem:[#allocation3 + $0x18] sm:$0xff] %vm914_vm7, %v5412_v50  ;;  %5133 = vrot.lane.b32.xlu1 %v14405_v40, %s11764_s21 }
 0x5c2   : > { %5552 = vst.msk [vmem:[#allocation3 + $0x18] sm:$0xff] %vm1011_vm8, %v14391_v36  ;;  %v8017_v33 = vand.u32 4294901760, %v8016_v25  ;;  %5551 = vst.msk [vmem:[#allocation3 + $0x10] sm:$0xff] %vm1011_vm8, %v5506_v19  ;;  %v7534_v30 = vpop.permute.xlu0 %7533 }
 0x5c3   : > { %5647 = vst.msk [vmem:[#allocation3 + $0x10] sm:$0xff] %vm1108_vm9, %v14383_v17 }
 0x5c4   : > { %10697 = vmatprep.mubr.f32.mxu1 %v8017_v33  ;;  %7578 = vst.msk [vmem:[#allocation3 + $0x98] sm:$0xff] %vm914_vm7, %v7534_v30  ;;  %5039 = vrot.lane.b32.xlu0 %v14418_v56, %s11765_s23  ;;  %v7628_v36 = vpop.permute.xlu1 %7627 }
 0x5c5   : > { %7673 = vst.msk [vmem:[#allocation3 + $0x90] sm:$0xff] %vm1011_vm8, %v7628_v36  ;;  %5513 = vrot.lane.b32.xlu1 %v14117_v57, %s11769_s8 }
 0x5c6   : > { %v5128_v49 = vpop.permute.xlu0 %5127 }
 0x5c7   : > { %v7880_v15 = vld [vmem:[#allocation3 + $0x88] sm:$0xff]  ;;  %5170 = vst.msk [vmem:[#allocation3 + $0x28] sm:$0xff] %vm623_vm4, %v5128_v49 }
 0x5c8   : > { %v7899_v62 = vsel %vm1242_vm11, %v7880_v15, 0  ;;  %5419 = vrot.lane.b32.xlu0 %v14469_v22, %s11768_s6  ;;  %v5222_v40 = vpop.permute.xlu1 %5221  ;;  %v14617_v15 = vld [vmem:[#allocation2 + $0x7a] sm:$0xff] }
 0x5c9   : > { %v14534_v17 = vand.u32 4294901760, %v7899_v62  ;;  %5265 = vst.msk [vmem:[#allocation3 + $0x20] sm:$0xff] %vm720_vm5, %v5222_v40  ;;  %7255 = vrot.lane.b32.xlu1 %v14437_v46, %s11764_s21 }
 0x5ca   : > { %v7250_v38 = vpop.permute.xlu0 %7249 }
 0x5cb   : > { %v14540_v56 = vsub.f32 %v7899_v62, %v14534_v17  ;;  %7292 = vst.msk [vmem:[#allocation3 + $0xa8] sm:$0xff] %vm623_vm4, %v7250_v38 }
 0x5cc   : > { %7161 = vrot.lane.b32.xlu0 %v14447_v35, %s11765_s23  ;;  %v7344_v21 = vpop.permute.xlu1 %7343 }
 0x5cd   : > { %v16169_v27 = vand.u32 4294901760, %v14540_v56  ;;  %7387 = vst.msk [vmem:[#allocation3 + $0xa0] sm:$0xff] %vm720_vm5, %v7344_v21  ;;  %7635 = vrot.lane.b32.xlu1 %v14119_v5, %s11769_s8 }
 0x5ce   : > { %v7630_v29 = vpop.permute.xlu0 %7629 }
 0x5cf   : > { %v8026_v28 = vsub.f32 %v14540_v56, %v16169_v27  ;;  %7674 = vst.msk [vmem:[#allocation3 + $0x98] sm:$0xff] %vm1011_vm8, %v7630_v29 }
 0x5d0   : > { %7541 = vrot.lane.b32.xlu0 %v14510_v24, %s11768_s6  ;;  %v7724_v46 = vpop.permute.xlu1 %7723 }
 0x5d1   : > { %v8027_v59 = vand.u32 4294901760, %v8026_v28  ;;  %7769 = vst.msk [vmem:[#allocation3 + $0x90] sm:$0xff] %vm1108_vm9, %v7724_v46  ;;  %5229 = vrot.lane.b32.xlu1 %v14117_v57, %s11767_s20 }
 0x5d2   : > { %v5120_v35 = vpop.permute.xlu0 %5119 }
 0x5d3   : > { %10698 = vmatmul.mubr.f32.vlgmr.msra.gmra.mrb[16].mxu1 %v8027_v59  ;;  %5166 = vst.msk [vmem:[#allocation3 + $0x8] sm:$0xff] %vm623_vm4, %v5120_v35 }
 0x5d4   : > { %5262 = vst.msk [vmem:[#allocation3 + $0x8] sm:$0xff] %vm720_vm5, %v14268_v52  ;;  %5135 = vrot.lane.b32.xlu0 %v14469_v22, %s11764_s21  ;;  %v5318_v32 = vpop.permute.xlu1 %5317 }
 0x5d5   : > { %5358 = vst.msk [vmem:[#allocation3 + $0x8] sm:$0xff] %vm817_vm6, %v14292_v47  ;;  %5361 = vst.msk [vmem:[#allocation3 + $0x20] sm:$0xff] %vm817_vm6, %v5318_v32  ;;  %5609 = vrot.lane.b32.xlu1 %v14569_v61, %s11770_s28 }
 0x5d6   : > { %5454 = vst.msk [vmem:[#allocation3 + $0x8] sm:$0xff] %vm914_vm7, %v14439_v16  ;;  %v5224_v57 = vpop.permute.xlu0 %5223 }
 0x5d7   : > { %5550 = vst.msk [vmem:[#allocation3 + $0x8] sm:$0xff] %vm1011_vm8, %v14316_v13 }
 0x5d8   : > { %5266 = vst.msk [vmem:[#allocation3 + $0x28] sm:$0xff] %vm720_vm5, %v5224_v57  ;;  %5515 = vrot.lane.b32.xlu0 %v14090_v10, %s11769_s8  ;;  %v5698_v52 = vpop.permute.xlu1 %5697 }
 0x5d9   : > { %5646 = vst.msk [vmem:[#allocation3 + $0x8] sm:$0xff] %vm1108_vm9, %v14335_v53  ;;  %7351 = vrot.lane.b32.xlu1 %v14119_v5, %s11767_s20  ;;  %v14591_v53 = vld [vmem:[#allocation2 + $0x139] sm:$0xff] }
 0x5da   : > { %5742 = vst.msk [vmem:[#allocation3 + $0x8] sm:$0xff] %vm1205_vm10, %v14486_v6  ;;  %5743 = vst.msk [vmem:[#allocation3 + $0x10] sm:$0xff] %vm1205_vm10, %v5698_v52  ;;  %v5604_v47 = vpop.permute.xlu0 %5603 }
 0x5db   : > { %5648 = vst.msk [vmem:[#allocation3 + $0x18] sm:$0xff] %vm1108_vm9, %v5604_v47 }
 0x5dc   : > { %7257 = vrot.lane.b32.xlu0 %v14510_v24, %s11764_s21  ;;  %v7440_v13 = vpop.permute.xlu1 %7439 }
 0x5dd   : > { %7483 = vst.msk [vmem:[#allocation3 + $0xa0] sm:$0xff] %vm817_vm6, %v7440_v13  ;;  %7731 = vrot.lane.b32.xlu1 %v14591_v53, %s11770_s28  ;;  %v14647_v13 = vld [vmem:[#allocation2 + $0x13a] sm:$0xff] }
 0x5de   : > { %v7346_v16 = vpop.permute.xlu0 %7345 }
 0x5df   : > { %7388 = vst.msk [vmem:[#allocation3 + $0xa8] sm:$0xff] %vm720_vm5, %v7346_v16 }
 0x5e0   : > { %7637 = vrot.lane.b32.xlu0 %v14092_v63, %s11769_s8  ;;  %v7820_v5 = vpop.permute.xlu1 %7819 }
 0x5e1   : > { %v5758_v22 = vld [vmem:[#allocation3 + $0x8] sm:$0xff]  ;;  %v5759_v6 = vld [vmem:[#allocation3 + $0x10] sm:$0xff]  ;;  %7865 = vst.msk [vmem:[#allocation3 + $0x90] sm:$0xff] %vm1205_vm10, %v7820_v5  ;;  %5325 = vrot.lane.b32.xlu1 %v14569_v61, %s11766_s14 }
 0x5e2   : > { %v5781_v54 = vsel %vm1242_vm11, %v5758_v22, 0  ;;  %v5784_v24 = vsel %vm1242_vm11, %v5759_v6, 0  ;;  %v7726_v50 = vpop.permute.xlu0 %7725  ;;  %v14653_v22 = vld [vmem:[#allocation2 + $0x141] sm:$0xff] }
 0x5e3   : > { %v14603_v25 = vand.u32 4294901760, %v5781_v54  ;;  %v14605_v19 = vand.u32 4294901760, %v5784_v24  ;;  %7770 = vst.msk [vmem:[#allocation3 + $0x98] sm:$0xff] %vm1108_vm9, %v7726_v50 }
 0x5e4   : > { %5231 = vrot.lane.b32.xlu0 %v14090_v10, %s11767_s20  ;;  %v5320_v33 = vpop.permute.xlu1 %5319  ;;  %v14624_v10 = vld [vmem:[#allocation2 + $0x81] sm:$0xff] }
 0x5e5   : > { %v14611_v30 = vsub.f32 %v5781_v54, %v14603_v25  ;;  %v14614_v36 = vsub.f32 %v5784_v24, %v14605_v19  ;;  %5362 = vst.msk [vmem:[#allocation3 + $0x28] sm:$0xff] %vm817_vm6, %v5320_v33  ;;  %5705 = vrot.lane.b32.xlu1 %v14617_v15, %s11771_s30 }
 0x5e6   : > { %v5034_v62 = vpop.permute.xlu0 %5033 }
 0x5e7   : > { %v16166_v49 = vand.u32 4294901760, %v14611_v30  ;;  %v16164_v40 = vand.u32 4294901760, %v14614_v36  ;;  %5075 = vst.msk [vmem:[#allocation3 + $0x30] sm:$0xff] %vm526_vm3, %v5034_v62 }
 0x5e8   : > { %5611 = vrot.lane.b32.xlu0 %v14624_v10, %s11770_s28  ;;  %v5700_v38 = vpop.permute.xlu1 %5699  ;;  %v7881_v29 = vld [vmem:[#allocation3 + $0x90] sm:$0xff] }
 0x5e9   : > { %v5911_v21 = vsub.f32 %v14611_v30, %v16166_v49  ;;  %v5921_v28 = vsub.f32 %v14614_v36, %v16164_v40  ;;  %5744 = vst.msk [vmem:[#allocation3 + $0x18] sm:$0xff] %vm1205_vm10, %v5700_v38  ;;  %v7902_v59 = vsel %vm1242_vm11, %v7881_v29, 0  ;;  %7447 = vrot.lane.b32.xlu1 %v14591_v53, %s11766_s14 }
 0x5ea   : > { %v5414_v46 = vpop.permute.xlu0 %5413  ;;  %v14638_v57 = vand.u32 4294901760, %v7902_v59 }
 0x5eb   : > { %v5912_v35 = vand.u32 4294901760, %v5911_v21  ;;  %v5922_v32 = vand.u32 4294901760, %v5921_v28  ;;  %5457 = vst.msk [vmem:[#allocation3 + $0x20] sm:$0xff] %vm914_vm7, %v5414_v46  ;;  %v5668_v28 = vld [vmem:[#allocation2 + $0x82] sm:$0xff] }
 0x5ec   : > { %7353 = vrot.lane.b32.xlu0 %v14092_v63, %s11767_s20  ;;  %v7442_v52 = vpop.permute.xlu1 %7441  ;;  %v14644_v47 = vsub.f32 %v7902_v59, %v14638_v57 }
 0x5ed   : > { %10494 = vmatmul.mubr.f32.vlgmr.msra.gmra.mrb[16].mxu0 %v5912_v35  ;;  %7484 = vst.msk [vmem:[#allocation3 + $0xa8] sm:$0xff] %vm817_vm6, %v7442_v52  ;;  %7827 = vrot.lane.b32.xlu1 %v14647_v13, %s11771_s30 }
 0x5ee   : > { %10496 = vmatprep.mubr.f32.mxu0 %v5922_v32  ;;  %v7156_v16 = vpop.permute.xlu0 %7155  ;;  %v16167_v5 = vand.u32 4294901760, %v14644_v47 }
 0x5ef   : > { %7197 = vst.msk [vmem:[#allocation3 + $0xb0] sm:$0xff] %vm526_vm3, %v7156_v16 }
 0x5f0   : > { %7733 = vrot.lane.b32.xlu0 %v14653_v22, %s11770_s28  ;;  %v7822_v63 = vpop.permute.xlu1 %7821  ;;  %v8036_v6 = vsub.f32 %v14644_v47, %v16167_v5  ;;  %v5760_v54 = vld [vmem:[#allocation3 + $0x18] sm:$0xff] }
 0x5f1   : > { %7866 = vst.msk [vmem:[#allocation3 + $0x98] sm:$0xff] %vm1205_vm10, %v7822_v63  ;;  %v5787_v24 = vsel %vm1242_vm11, %v5760_v54, 0  ;;  %5327 = vrot.lane.b32.xlu1 %v14624_v10, %s11766_s14 }
 0x5f2   : > { %v7536_v50 = vpop.permute.xlu0 %7535  ;;  %v8037_v33 = vand.u32 4294901760, %v8036_v6  ;;  %v14664_v62 = vand.u32 4294901760, %v5787_v24 }
 0x5f3   : > { %7579 = vst.msk [vmem:[#allocation3 + $0xa0] sm:$0xff] %vm914_vm7, %v7536_v50 }
 0x5f4   : > { %5041 = vrot.lane.b32.xlu0 %v14569_v61, %s11765_s23  ;;  %10700 = vmatprep.mubr.f32.mxu1 %v8037_v33  ;;  %v5130_v38 = vpop.permute.xlu1 %5129  ;;  %v14670_v21 = vsub.f32 %v5787_v24, %v14664_v62  ;;  %v7790_v24 = vld [vmem:[#allocation2 + $0x142] sm:$0xff] }
 0x5f5   : > { %5171 = vst.msk [vmem:[#allocation3 + $0x30] sm:$0xff] %vm623_vm4, %v5130_v38  ;;  %5707 = vrot.lane.b32.xlu1 %v5668_v28, %s11771_s30 }
 0x5f6   : > { %v5036_v29 = vpop.permute.xlu0 %5035  ;;  %v16156_v59 = vand.u32 4294901760, %v14670_v21 }
 0x5f7   : > { %5076 = vst.msk [vmem:[#allocation3 + $0x38] sm:$0xff] %vm526_vm3, %v5036_v29 }
 0x5f8   : > { %5421 = vrot.lane.b32.xlu0 %v14617_v15, %s11768_s6  ;;  %v5510_v46 = vpop.permute.xlu1 %5509  ;;  %v5931_v61 = vsub.f32 %v14670_v21, %v16156_v59  ;;  %v7882_v35 = vld [vmem:[#allocation3 + $0x98] sm:$0xff] }
 0x5f9   : > { %5553 = vst.msk [vmem:[#allocation3 + $0x20] sm:$0xff] %vm1011_vm8, %v5510_v46  ;;  %v7905_v32 = vsel %vm1242_vm11, %v7882_v35, 0  ;;  %7449 = vrot.lane.b32.xlu1 %v14653_v22, %s11766_s14 }
 0x5fa   : > { %v5416_v52 = vpop.permute.xlu0 %5415  ;;  %v5932_v16 = vand.u32 4294901760, %v5931_v61  ;;  %v14685_v63 = vand.u32 4294901760, %v7905_v32 }
 0x5fb   : > { %5458 = vst.msk [vmem:[#allocation3 + $0x28] sm:$0xff] %vm914_vm7, %v5416_v52 }
 0x5fc   : > { %7163 = vrot.lane.b32.xlu0 %v14591_v53, %s11765_s23  ;;  %v7252_v6 = vpop.permute.xlu1 %7251  ;;  %10497 = vmatmul.mubr.f32.gmra.mrb[18].mxu0 %v5932_v16  ;;  %v14691_v54 = vsub.f32 %v7905_v32, %v14685_v63 }
 0x5fd   : > { %7293 = vst.msk [vmem:[#allocation3 + $0xb0] sm:$0xff] %vm623_vm4, %v7252_v6  ;;  %7829 = vrot.lane.b32.xlu1 %v7790_v24, %s11771_s30  ;;  %v14730_v6 = vld [vmem:[#allocation2 + $0x91] sm:$0xff] }
 0x5fe   : > { %v7158_v50 = vpop.permute.xlu0 %7157  ;;  %v16162_v33 = vand.u32 4294901760, %v14691_v54 }
 0x5ff   : > { %7198 = vst.msk [vmem:[#allocation3 + $0xb8] sm:$0xff] %vm526_vm3, %v7158_v50 }
 0x600   : > { %7543 = vrot.lane.b32.xlu0 %v14647_v13, %s11768_s6  ;;  %v7632_v38 = vpop.permute.xlu1 %7631  ;;  %v8046_v53 = vsub.f32 %v14691_v54, %v16162_v33 }
 0x601   : > { %7675 = vst.msk [vmem:[#allocation3 + $0xa0] sm:$0xff] %vm1011_vm8, %v7632_v38  ;;  %5137 = vrot.lane.b32.xlu1 %v14617_v15, %s11764_s21 }
 0x602   : > { %v7538_v29 = vpop.permute.xlu0 %7537  ;;  %v8047_v46 = vand.u32 4294901760, %v8046_v53  ;;  %v14743_v53 = vld [vmem:[#allocation2 + $0x151] sm:$0xff] }
 0x603   : > { %7580 = vst.msk [vmem:[#allocation3 + $0xa8] sm:$0xff] %vm914_vm7, %v7538_v29 }
 0x604   : > { %5043 = vrot.lane.b32.xlu0 %v14624_v10, %s11765_s23  ;;  %10701 = vmatmul.mubr.f32.gmra.mrb[18].mxu1 %v8047_v46  ;;  %v5226_v61 = vpop.permute.xlu1 %5225 }
 0x605   : > { %5267 = vst.msk [vmem:[#allocation3 + $0x30] sm:$0xff] %vm720_vm5, %v5226_v61  ;;  %5517 = vrot.lane.b32.xlu1 %v14144_v58, %s11769_s8 }
 0x606   : > { %v5132_v35 = vpop.permute.xlu0 %5131 }
 0x607   : > { %5172 = vst.msk [vmem:[#allocation3 + $0x38] sm:$0xff] %vm623_vm4, %v5132_v35 }
 0x608   : > { %5423 = vrot.lane.b32.xlu0 %v5668_v28, %s11768_s6  ;;  %v5606_v32 = vpop.permute.xlu1 %5605 }
 0x609   : > { %5649 = vst.msk [vmem:[#allocation3 + $0x20] sm:$0xff] %vm1108_vm9, %v5606_v32  ;;  %7259 = vrot.lane.b32.xlu1 %v14647_v13, %s11764_s21 }
 0x60a   : > { %v5512_v15 = vpop.permute.xlu0 %5511 }
 0x60b   : > { %5554 = vst.msk [vmem:[#allocation3 + $0x28] sm:$0xff] %vm1011_vm8, %v5512_v15 }
 0x60c   : > { %7165 = vrot.lane.b32.xlu0 %v14653_v22, %s11765_s23  ;;  %v7348_v10 = vpop.permute.xlu1 %7347 }
 0x60d   : > { %7389 = vst.msk [vmem:[#allocation3 + $0xb0] sm:$0xff] %vm720_vm5, %v7348_v10  ;;  %7639 = vrot.lane.b32.xlu1 %v14146_v44, %s11769_s8  ;;  %v14763_v10 = vld [vmem:[#allocation2 + $0x92] sm:$0xff] }
 0x60e   : > { %v7254_v52 = vpop.permute.xlu0 %7253 }
 0x60f   : > { %7294 = vst.msk [vmem:[#allocation3 + $0xb8] sm:$0xff] %vm623_vm4, %v7254_v52 }
 0x610   : > { %7545 = vrot.lane.b32.xlu0 %v7790_v24, %s11768_s6  ;;  %v7728_v16 = vpop.permute.xlu1 %7727 }
 0x611   : > { %7771 = vst.msk [vmem:[#allocation3 + $0xa0] sm:$0xff] %vm1108_vm9, %v7728_v16  ;;  %5233 = vrot.lane.b32.xlu1 %v14144_v58, %s11767_s20 }
 0x612   : > { %v7634_v13 = vpop.permute.xlu0 %7633 }
 0x613   : > { %7676 = vst.msk [vmem:[#allocation3 + $0xa8] sm:$0xff] %vm1011_vm8, %v7634_v13  ;;  %v14769_v13 = vld [vmem:[#allocation2 + $0x99] sm:$0xff] }
 0x614   : > { %5139 = vrot.lane.b32.xlu0 %v5668_v28, %s11764_s21  ;;  %v5322_v22 = vpop.permute.xlu1 %5321 }
 0x615   : > { %5363 = vst.msk [vmem:[#allocation3 + $0x30] sm:$0xff] %vm817_vm6, %v5322_v22  ;;  %5613 = vrot.lane.b32.xlu1 %v14730_v6, %s11770_s28 }
 0x616   : > { %v5228_v50 = vpop.permute.xlu0 %5227 }
 0x617   : > { %5268 = vst.msk [vmem:[#allocation3 + $0x38] sm:$0xff] %vm720_vm5, %v5228_v50 }
 0x618   : > { %5519 = vrot.lane.b32.xlu0 %v14105_v7, %s11769_s8  ;;  %v5702_v38 = vpop.permute.xlu1 %5701 }
 0x619   : > { %5745 = vst.msk [vmem:[#allocation3 + $0x20] sm:$0xff] %vm1205_vm10, %v5702_v38  ;;  %7355 = vrot.lane.b32.xlu1 %v14146_v44, %s11767_s20 }
 0x61a   : > { %v5608_v58 = vpop.permute.xlu0 %5607 }
 0x61b   : > { %5650 = vst.msk [vmem:[#allocation3 + $0x28] sm:$0xff] %vm1108_vm9, %v5608_v58 }
 0x61c   : > { %7261 = vrot.lane.b32.xlu0 %v7790_v24, %s11764_s21  ;;  %v7444_v28 = vpop.permute.xlu1 %7443 }
 0x61d   : > { %7485 = vst.msk [vmem:[#allocation3 + $0xb0] sm:$0xff] %vm817_vm6, %v7444_v28  ;;  %7735 = vrot.lane.b32.xlu1 %v14743_v53, %s11770_s28 }
 0x61e   : > { %v7350_v29 = vpop.permute.xlu0 %7349 }
 0x61f   : > { %7390 = vst.msk [vmem:[#allocation3 + $0xb8] sm:$0xff] %vm720_vm5, %v7350_v29 }
 0x620   : > { %7641 = vrot.lane.b32.xlu0 %v14109_v18, %s11769_s8  ;;  %v7824_v46 = vpop.permute.xlu1 %7823  ;;  %v5761_v44 = vld [vmem:[#allocation3 + $0x20] sm:$0xff] }
 0x621   : > { %7867 = vst.msk [vmem:[#allocation3 + $0xa0] sm:$0xff] %vm1205_vm10, %v7824_v46  ;;  %v5790_v24 = vsel %vm1242_vm11, %v5761_v44, 0  ;;  %5329 = vrot.lane.b32.xlu1 %v14730_v6, %s11766_s14 }
 0x622   : > { %v7730_v61 = vpop.permute.xlu0 %7729  ;;  %v14754_v35 = vand.u32 4294901760, %v5790_v24 }
 0x623   : > { %7772 = vst.msk [vmem:[#allocation3 + $0xa8] sm:$0xff] %vm1108_vm9, %v7730_v61 }
 0x624   : > { %5235 = vrot.lane.b32.xlu0 %v14105_v7, %s11767_s20  ;;  %v5324_v32 = vpop.permute.xlu1 %5323  ;;  %v14760_v15 = vsub.f32 %v5790_v24, %v14754_v35  ;;  %v14789_v24 = vld [vmem:[#allocation2 + $0x152] sm:$0xff] }
 0x625   : > { %5364 = vst.msk [vmem:[#allocation3 + $0x38] sm:$0xff] %vm817_vm6, %v5324_v32  ;;  %5709 = vrot.lane.b32.xlu1 %v14763_v10, %s11771_s30 }
 0x626   : > { %v5038_v52 = vpop.permute.xlu0 %5037  ;;  %v16155_v16 = vand.u32 4294901760, %v14760_v15 }
 0x627   : > { %5077 = vst.msk [vmem:[#allocation3 + $0x40] sm:$0xff] %vm526_vm3, %v5038_v52  ;;  %v14795_v52 = vld [vmem:[#allocation2 + $0x159] sm:$0xff] }
 0x628   : > { %5615 = vrot.lane.b32.xlu0 %v14769_v13, %s11770_s28  ;;  %v5704_v7 = vpop.permute.xlu1 %5703  ;;  %v5941_v22 = vsub.f32 %v14760_v15, %v16155_v16  ;;  %v7883_v50 = vld [vmem:[#allocation3 + $0xa0] sm:$0xff] }
 0x629   : > { %5746 = vst.msk [vmem:[#allocation3 + $0x28] sm:$0xff] %vm1205_vm10, %v5704_v7  ;;  %v7908_v38 = vsel %vm1242_vm11, %v7883_v50, 0  ;;  %7451 = vrot.lane.b32.xlu1 %v14743_v53, %s11766_s14 }
 0x62a   : > { %v5418_v58 = vpop.permute.xlu0 %5417  ;;  %v5942_v28 = vand.u32 4294901760, %v5941_v22  ;;  %v14780_v29 = vand.u32 4294901760, %v7908_v38 }
 0x62b   : > { %5459 = vst.msk [vmem:[#allocation3 + $0x30] sm:$0xff] %vm914_vm7, %v5418_v58 }
 0x62c   : > { %7357 = vrot.lane.b32.xlu0 %v14109_v18, %s11767_s20  ;;  %v7446_v46 = vpop.permute.xlu1 %7445  ;;  %10499 = vmatprep.mubr.f32.mxu0 %v5942_v28  ;;  %v14786_v44 = vsub.f32 %v7908_v38, %v14780_v29 }
 0x62d   : > { %7486 = vst.msk [vmem:[#allocation3 + $0xb8] sm:$0xff] %vm817_vm6, %v7446_v46  ;;  %7831 = vrot.lane.b32.xlu1 %v14789_v24, %s11771_s30 }
 0x62e   : > { %v7160_v61 = vpop.permute.xlu0 %7159  ;;  %v16161_v32 = vand.u32 4294901760, %v14786_v44 }
 0x62f   : > { %7199 = vst.msk [vmem:[#allocation3 + $0xc0] sm:$0xff] %vm526_vm3, %v7160_v61 }
 0x630   : > { %7737 = vrot.lane.b32.xlu0 %v14795_v52, %s11770_s28  ;;  %v7826_v18 = vpop.permute.xlu1 %7825  ;;  %v8056_v7 = vsub.f32 %v14786_v44, %v16161_v32  ;;  %v5762_v22 = vld [vmem:[#allocation3 + $0x28] sm:$0xff] }
 0x631   : > { %7868 = vst.msk [vmem:[#allocation3 + $0xa8] sm:$0xff] %vm1205_vm10, %v7826_v18  ;;  %v5793_v50 = vsel %vm1242_vm11, %v5762_v22, 0  ;;  %5331 = vrot.lane.b32.xlu1 %v14769_v13, %s11766_s14  ;;  %v5670_v18 = vld [vmem:[#allocation2 + $0x9a] sm:$0xff] }
 0x632   : > { %v7540_v38 = vpop.permute.xlu0 %7539  ;;  %v8057_v58 = vand.u32 4294901760, %v8056_v7  ;;  %v14806_v28 = vand.u32 4294901760, %v5793_v50 }
 0x633   : > { %7581 = vst.msk [vmem:[#allocation3 + $0xb0] sm:$0xff] %vm914_vm7, %v7540_v38 }
 0x634   : > { %5045 = vrot.lane.b32.xlu0 %v14730_v6, %s11765_s23  ;;  %10703 = vmatprep.mubr.f32.mxu1 %v8057_v58  ;;  %v5134_v46 = vpop.permute.xlu1 %5133  ;;  %v14812_v61 = vsub.f32 %v5793_v50, %v14806_v28 }
 0x635   : > { %5173 = vst.msk [vmem:[#allocation3 + $0x40] sm:$0xff] %vm623_vm4, %v5134_v46  ;;  %5711 = vrot.lane.b32.xlu1 %v5670_v18, %s11771_s30 }
 0x636   : > { %16376 = vst [vmem:[#allocation19_spill] sm:$0xff] %v14812_v61  ;;  %v5040_v22 = vpop.permute.xlu0 %5039  ;;  %v16157_v7 = vand.u32 4294901760, %v14812_v61 }
 0x637   : > { %5078 = vst.msk [vmem:[#allocation3 + $0x48] sm:$0xff] %vm526_vm3, %v5040_v22 }
 0x638   : > { %5425 = vrot.lane.b32.xlu0 %v14763_v10, %s11768_s6  ;;  %v5514_v38 = vpop.permute.xlu1 %5513  ;;  %v5951_v6 = vsub.f32 %v14812_v61, %v16157_v7  ;;  %v7884_v50 = vld [vmem:[#allocation3 + $0xa8] sm:$0xff] }
 0x639   : > { %5555 = vst.msk [vmem:[#allocation3 + $0x30] sm:$0xff] %vm1011_vm8, %v5514_v38  ;;  %v7911_v58 = vsel %vm1242_vm11, %v7884_v50, 0  ;;  %7453 = vrot.lane.b32.xlu1 %v14795_v52, %s11766_s14  ;;  %v7792_v38 = vld [vmem:[#allocation2 + $0x15a] sm:$0xff] }
 0x63a   : > { %v5420_v46 = vpop.permute.xlu0 %5419  ;;  %v5952_v16 = vand.u32 4294901760, %v5951_v6  ;;  %v14827_v59 = vand.u32 4294901760, %v7911_v58 }
 0x63b   : > { %5460 = vst.msk [vmem:[#allocation3 + $0x38] sm:$0xff] %vm914_vm7, %v5420_v46 }
 0x63c   : > { %7167 = vrot.lane.b32.xlu0 %v14743_v53, %s11765_s23  ;;  %v7256_v22 = vpop.permute.xlu1 %7255  ;;  %10500 = vmatmul.mubr.f32.gmra.mrb[20].mxu0 %v5952_v16  ;;  %v14833_v7 = vsub.f32 %v7911_v58, %v14827_v59 }
 0x63d   : > { %7295 = vst.msk [vmem:[#allocation3 + $0xc0] sm:$0xff] %vm623_vm4, %v7256_v22  ;;  %7833 = vrot.lane.b32.xlu1 %v7792_v38, %s11771_s30 }
 0x63e   : > { %v7162_v50 = vpop.permute.xlu0 %7161  ;;  %v16159_v6 = vand.u32 4294901760, %v14833_v7 }
 0x63f   : > { %7200 = vst.msk [vmem:[#allocation3 + $0xc8] sm:$0xff] %vm526_vm3, %v7162_v50 }
 0x640   : > { %7547 = vrot.lane.b32.xlu0 %v14789_v24, %s11768_s6  ;;  %v7636_v46 = vpop.permute.xlu1 %7635  ;;  %v8066_v53 = vsub.f32 %v14833_v7, %v16159_v6 }
 0x641   : > { %7677 = vst.msk [vmem:[#allocation3 + $0xb0] sm:$0xff] %vm1011_vm8, %v7636_v46  ;;  %5141 = vrot.lane.b32.xlu1 %v14763_v10, %s11764_s21 }
 0x642   : > { %v7542_v16 = vpop.permute.xlu0 %7541  ;;  %v8067_v58 = vand.u32 4294901760, %v8066_v53 }
 0x643   : > { %7582 = vst.msk [vmem:[#allocation3 + $0xb8] sm:$0xff] %vm914_vm7, %v7542_v16 }
 0x644   : > { %5047 = vrot.lane.b32.xlu0 %v14769_v13, %s11765_s23  ;;  %10704 = vmatmul.mubr.f32.gmra.mrb[20].mxu1 %v8067_v58  ;;  %v5230_v22 = vpop.permute.xlu1 %5229  ;;  %v14872_v58 = vld [vmem:[#allocation2 + $0xa9] sm:$0xff] }
 0x645   : > { %5269 = vst.msk [vmem:[#allocation3 + $0x40] sm:$0xff] %vm720_vm5, %v5230_v22  ;;  %5521 = vrot.lane.b32.xlu1 %v14164_v43, %s11769_s8 }
 0x646   : > { %v5136_v50 = vpop.permute.xlu0 %5135 }
 0x647   : > { %5174 = vst.msk [vmem:[#allocation3 + $0x48] sm:$0xff] %vm623_vm4, %v5136_v50 }
 0x648   : > { %5427 = vrot.lane.b32.xlu0 %v5670_v18, %s11768_s6  ;;  %v5610_v46 = vpop.permute.xlu1 %5609 }
 0x649   : > { %5651 = vst.msk [vmem:[#allocation3 + $0x30] sm:$0xff] %vm1108_vm9, %v5610_v46  ;;  %7263 = vrot.lane.b32.xlu1 %v14789_v24, %s11764_s21 }
 0x64a   : > { %v5516_v10 = vpop.permute.xlu0 %5515 }
 0x64b   : > { %5556 = vst.msk [vmem:[#allocation3 + $0x38] sm:$0xff] %vm1011_vm8, %v5516_v10 }
 0x64c   : > { %7169 = vrot.lane.b32.xlu0 %v14795_v52, %s11765_s23  ;;  %v7352_v13 = vpop.permute.xlu1 %7351 }
 0x64d   : > { %7391 = vst.msk [vmem:[#allocation3 + $0xc0] sm:$0xff] %vm720_vm5, %v7352_v13  ;;  %7643 = vrot.lane.b32.xlu1 %v14166_v42, %s11769_s8 }
 0x64e   : > { %v7258_v53 = vpop.permute.xlu0 %7257 }
 0x64f   : > { %7296 = vst.msk [vmem:[#allocation3 + $0xc8] sm:$0xff] %vm623_vm4, %v7258_v53 }
 0x650   : > { %7549 = vrot.lane.b32.xlu0 %v7792_v38, %s11768_s6  ;;  %v7732_v16 = vpop.permute.xlu1 %7731 }
 0x651   : > { %7773 = vst.msk [vmem:[#allocation3 + $0xb0] sm:$0xff] %vm1108_vm9, %v7732_v16  ;;  %5237 = vrot.lane.b32.xlu1 %v14164_v43, %s11767_s20 }
 0x652   : > { %v7638_v24 = vpop.permute.xlu0 %7637 }
 0x653   : > { %7678 = vst.msk [vmem:[#allocation3 + $0xb8] sm:$0xff] %vm1011_vm8, %v7638_v24 }
 0x654   : > { %5143 = vrot.lane.b32.xlu0 %v5670_v18, %s11764_s21  ;;  %v5326_v52 = vpop.permute.xlu1 %5325 }
 0x655   : > { %5365 = vst.msk [vmem:[#allocation3 + $0x40] sm:$0xff] %vm817_vm6, %v5326_v52  ;;  %5617 = vrot.lane.b32.xlu1 %v14872_v58, %s11770_s28  ;;  %v14903_v52 = vld [vmem:[#allocation2 + $0xaa] sm:$0xff] }
 0x656   : > { %v5232_v22 = vpop.permute.xlu0 %5231 }
 0x657   : > { %5270 = vst.msk [vmem:[#allocation3 + $0x48] sm:$0xff] %vm720_vm5, %v5232_v22 }
 0x658   : > { %5523 = vrot.lane.b32.xlu0 %v14133_v31, %s11769_s8  ;;  %v5706_v50 = vpop.permute.xlu1 %5705 }
 0x659   : > { %5747 = vst.msk [vmem:[#allocation3 + $0x30] sm:$0xff] %vm1205_vm10, %v5706_v50  ;;  %7359 = vrot.lane.b32.xlu1 %v14166_v42, %s11767_s20 }
 0x65a   : > { %v5612_v43 = vpop.permute.xlu0 %5611 }
 0x65b   : > { %5652 = vst.msk [vmem:[#allocation3 + $0x38] sm:$0xff] %vm1108_vm9, %v5612_v43  ;;  %v14909_v43 = vld [vmem:[#allocation2 + $0xb1] sm:$0xff] }
 0x65c   : > { %7265 = vrot.lane.b32.xlu0 %v7792_v38, %s11764_s21  ;;  %v7448_v18 = vpop.permute.xlu1 %7447 }
 0x65d   : > { %7487 = vst.msk [vmem:[#allocation3 + $0xc0] sm:$0xff] %vm817_vm6, %v7448_v18  ;;  %7739 = vrot.lane.b32.xlu1 %v14137_v37, %s11770_s28 }
 0x65e   : > { %v7354_v46 = vpop.permute.xlu0 %7353 }
 0x65f   : > { %7392 = vst.msk [vmem:[#allocation3 + $0xc8] sm:$0xff] %vm720_vm5, %v7354_v46 }
 0x660   : > { %7645 = vrot.lane.b32.xlu0 %v14135_v23, %s11769_s8  ;;  %v7828_v10 = vpop.permute.xlu1 %7827  ;;  %v5763_v13 = vld [vmem:[#allocation3 + $0x30] sm:$0xff] }
 0x661   : > { %7869 = vst.msk [vmem:[#allocation3 + $0xb0] sm:$0xff] %vm1205_vm10, %v7828_v10  ;;  %v5796_v42 = vsel %vm1242_vm11, %v5763_v13, 0  ;;  %5333 = vrot.lane.b32.xlu1 %v14872_v58, %s11766_s14 }
 0x662   : > { %v7734_v53 = vpop.permute.xlu0 %7733  ;;  %v14894_v38 = vand.u32 4294901760, %v5796_v42 }
 0x663   : > { %7774 = vst.msk [vmem:[#allocation3 + $0xb8] sm:$0xff] %vm1108_vm9, %v7734_v53 }
 0x664   : > { %5239 = vrot.lane.b32.xlu0 %v14133_v31, %s11767_s20  ;;  %v5328_v16 = vpop.permute.xlu1 %5327  ;;  %v14900_v24 = vsub.f32 %v5796_v42, %v14894_v38 }
 0x665   : > { %5366 = vst.msk [vmem:[#allocation3 + $0x48] sm:$0xff] %vm817_vm6, %v5328_v16  ;;  %5713 = vrot.lane.b32.xlu1 %v14903_v52, %s11771_s30 }
 0x666   : > { %16377 = vst [vmem:[#allocation20_spill] sm:$0xff] %v14900_v24  ;;  %v5042_v22 = vpop.permute.xlu0 %5041  ;;  %v16158_v50 = vand.u32 4294901760, %v14900_v24 }
 0x667   : > { %5079 = vst.msk [vmem:[#allocation3 + $0x50] sm:$0xff] %vm526_vm3, %v5042_v22 }
 0x668   : > { %5619 = vrot.lane.b32.xlu0 %v14909_v43, %s11770_s28  ;;  %v5708_v31 = vpop.permute.xlu1 %5707  ;;  %v5961_v18 = vsub.f32 %v14900_v24, %v16158_v50  ;;  %v7885_v46 = vld [vmem:[#allocation3 + $0xb0] sm:$0xff] }
 0x669   : > { %5748 = vst.msk [vmem:[#allocation3 + $0x38] sm:$0xff] %vm1205_vm10, %v5708_v31  ;;  %v7914_v10 = vsel %vm1242_vm11, %v7885_v46, 0  ;;  %7455 = vrot.lane.b32.xlu1 %v14137_v37, %s11766_s14  ;;  %v14929_v31 = vld [vmem:[#allocation2 + $0x16a] sm:$0xff] }
 0x66a   : > { %v5422_v13 = vpop.permute.xlu0 %5421  ;;  %v5962_v42 = vand.u32 4294901760, %v5961_v18  ;;  %v14920_v53 = vand.u32 4294901760, %v7914_v10 }
 0x66b   : > { %5461 = vst.msk [vmem:[#allocation3 + $0x40] sm:$0xff] %vm914_vm7, %v5422_v13 }
 0x66c   : > { %7361 = vrot.lane.b32.xlu0 %v14135_v23, %s11767_s20  ;;  %v7450_v16 = vpop.permute.xlu1 %7449  ;;  %10502 = vmatprep.mubr.f32.mxu0 %v5962_v42  ;;  %v14926_v22 = vsub.f32 %v7914_v10, %v14920_v53 }
 0x66d   : > { %7488 = vst.msk [vmem:[#allocation3 + $0xc8] sm:$0xff] %vm817_vm6, %v7450_v16  ;;  %7835 = vrot.lane.b32.xlu1 %v14929_v31, %s11771_s30 }
 0x66e   : > { %v7164_v46 = vpop.permute.xlu0 %7163  ;;  %v16160_v18 = vand.u32 4294901760, %v14926_v22 }
 0x66f   : > { %7201 = vst.msk [vmem:[#allocation3 + $0xd0] sm:$0xff] %vm526_vm3, %v7164_v46 }
 0x670   : > { %7741 = vrot.lane.b32.xlu0 %v14150_v48, %s11770_s28  ;;  %v7830_v23 = vpop.permute.xlu1 %7829  ;;  %v8076_v10 = vsub.f32 %v14926_v22, %v16160_v18  ;;  %v5764_v13 = vld [vmem:[#allocation3 + $0x38] sm:$0xff] }
 0x671   : > { %7870 = vst.msk [vmem:[#allocation3 + $0xb8] sm:$0xff] %vm1205_vm10, %v7830_v23  ;;  %v5799_v42 = vsel %vm1242_vm11, %v5764_v13, 0  ;;  %5335 = vrot.lane.b32.xlu1 %v14909_v43, %s11766_s14  ;;  %v5672_v23 = vld [vmem:[#allocation2 + $0xb2] sm:$0xff] }
 0x672   : > { %v7544_v16 = vpop.permute.xlu0 %7543  ;;  %v8077_v50 = vand.u32 4294901760, %v8076_v10  ;;  %v14944_v6 = vand.u32 4294901760, %v5799_v42 }
 0x673   : > { %7583 = vst.msk [vmem:[#allocation3 + $0xc0] sm:$0xff] %vm914_vm7, %v7544_v16 }
 0x674   : > { %5049 = vrot.lane.b32.xlu0 %v14872_v58, %s11765_s23  ;;  %10706 = vmatprep.mubr.f32.mxu1 %v8077_v50  ;;  %v5138_v46 = vpop.permute.xlu1 %5137  ;;  %v14950_v18 = vsub.f32 %v5799_v42, %v14944_v6 }
 0x675   : > { %5175 = vst.msk [vmem:[#allocation3 + $0x50] sm:$0xff] %vm623_vm4, %v5138_v46  ;;  %5715 = vrot.lane.b32.xlu1 %v5672_v23, %s11771_s30 }
 0x676   : > { %16378 = vst [vmem:[#allocation21_spill] sm:$0xff] %v14950_v18  ;;  %v5044_v13 = vpop.permute.xlu0 %5043  ;;  %v16163_v10 = vand.u32 4294901760, %v14950_v18 }
 0x677   : > { %5080 = vst.msk [vmem:[#allocation3 + $0x58] sm:$0xff] %vm526_vm3, %v5044_v13 }
 0x678   : > { %5429 = vrot.lane.b32.xlu0 %v14903_v52, %s11768_s6  ;;  %v5518_v16 = vpop.permute.xlu1 %5517  ;;  %v5971_v58 = vsub.f32 %v14950_v18, %v16163_v10  ;;  %v7886_v50 = vld [vmem:[#allocation3 + $0xb8] sm:$0xff] }
 0x679   : > { %5557 = vst.msk [vmem:[#allocation3 + $0x40] sm:$0xff] %vm1011_vm8, %v5518_v16  ;;  %v7917_v42 = vsel %vm1242_vm11, %v7886_v50, 0  ;;  %7457 = vrot.lane.b32.xlu1 %v14150_v48, %s11766_s14  ;;  %v7794_v16 = vld [vmem:[#allocation2 + $0x172] sm:$0xff] }
 0x67a   : > { %v5424_v46 = vpop.permute.xlu0 %5423  ;;  %v5972_v32 = vand.u32 4294901760, %v5971_v58  ;;  %v14965_v33 = vand.u32 4294901760, %v7917_v42 }
 0x67b   : > { %5462 = vst.msk [vmem:[#allocation3 + $0x48] sm:$0xff] %vm914_vm7, %v5424_v46 }
 0x67c   : > { %7171 = vrot.lane.b32.xlu0 %v14137_v37, %s11765_s23  ;;  %v7260_v13 = vpop.permute.xlu1 %7259  ;;  %10503 = vmatmul.mubr.f32.gmra.mrb[22].mxu0 %v5972_v32  ;;  %v14971_v10 = vsub.f32 %v7917_v42, %v14965_v33 }
 0x67d   : > { %7297 = vst.msk [vmem:[#allocation3 + $0xd0] sm:$0xff] %vm623_vm4, %v7260_v13  ;;  %7837 = vrot.lane.b32.xlu1 %v7794_v16, %s11771_s30 }
 0x67e   : > { %16379 = vst [vmem:[#allocation22_spill] sm:$0xff] %v14971_v10  ;;  %v7166_v50 = vpop.permute.xlu0 %7165  ;;  %v16165_v58 = vand.u32 4294901760, %v14971_v10 }
 0x67f   : > { %7202 = vst.msk [vmem:[#allocation3 + $0xd8] sm:$0xff] %vm526_vm3, %v7166_v50  ;;  %v5481_v50 = vld [vmem:[#allocation2 + $0xc0] sm:$0xff] }
 0x680   : > { %7551 = vrot.lane.b32.xlu0 %v14929_v31, %s11768_s6  ;;  %v7640_v46 = vpop.permute.xlu1 %7639  ;;  %v8086_v37 = vsub.f32 %v14971_v10, %v16165_v58 }
 0x681   : > { %7679 = vst.msk [vmem:[#allocation3 + $0xc0] sm:$0xff] %vm1011_vm8, %v7640_v46  ;;  %5145 = vrot.lane.b32.xlu1 %v14903_v52, %s11764_s21 }
 0x682   : > { %v7546_v32 = vpop.permute.xlu0 %7545  ;;  %v8087_v42 = vand.u32 4294901760, %v8086_v37  ;;  %v7603_v37 = vld [vmem:[#allocation2 + $0x180] sm:$0xff] }
 0x683   : > { %7584 = vst.msk [vmem:[#allocation3 + $0xc8] sm:$0xff] %vm914_vm7, %v7546_v32 }
 0x684   : > { %5051 = vrot.lane.b32.xlu0 %v14909_v43, %s11765_s23  ;;  %10707 = vmatmul.mubr.f32.gmra.mrb[22].mxu1 %v8087_v42  ;;  %v5234_v13 = vpop.permute.xlu1 %5233  ;;  %v5577_v42 = vld [vmem:[#allocation2 + $0xc1] sm:$0xff] }
 0x685   : > { %5271 = vst.msk [vmem:[#allocation3 + $0x50] sm:$0xff] %vm720_vm5, %v5234_v13  ;;  %5525 = vrot.lane.b32.xlu1 %v5481_v50, %s11769_s8 }
 0x686   : > { %v5140_v40 = vpop.permute.xlu0 %5139 }
 0x687   : > { %5176 = vst.msk [vmem:[#allocation3 + $0x58] sm:$0xff] %vm623_vm4, %v5140_v40 }
 0x688   : > { %5431 = vrot.lane.b32.xlu0 %v5672_v23, %s11768_s6  ;;  %v5614_v46 = vpop.permute.xlu1 %5613 }
 0x689   : > { %5653 = vst.msk [vmem:[#allocation3 + $0x40] sm:$0xff] %vm1108_vm9, %v5614_v46  ;;  %7267 = vrot.lane.b32.xlu1 %v14929_v31, %s11764_s21  ;;  %v5482_v46 = vld [vmem:[#allocation2 + $0xc8] sm:$0xff] }
 0x68a   : > { %v5520_v52 = vpop.permute.xlu0 %5519 }
 0x68b   : > { %5558 = vst.msk [vmem:[#allocation3 + $0x48] sm:$0xff] %vm1011_vm8, %v5520_v52 }
 0x68c   : > { %7173 = vrot.lane.b32.xlu0 %v14150_v48, %s11765_s23  ;;  %v7356_v43 = vpop.permute.xlu1 %7355 }
 0x68d   : > { %7393 = vst.msk [vmem:[#allocation3 + $0xd0] sm:$0xff] %vm720_vm5, %v7356_v43  ;;  %7647 = vrot.lane.b32.xlu1 %v7603_v37, %s11769_s8  ;;  %v7699_v43 = vld [vmem:[#allocation2 + $0x181] sm:$0xff] }
 0x68e   : > { %v7262_v32 = vpop.permute.xlu0 %7261 }
 0x68f   : > { %7298 = vst.msk [vmem:[#allocation3 + $0xd8] sm:$0xff] %vm623_vm4, %v7262_v32 }
 0x690   : > { %7553 = vrot.lane.b32.xlu0 %v7794_v16, %s11768_s6  ;;  %v7736_v40 = vpop.permute.xlu1 %7735 }
 0x691   : > { %7775 = vst.msk [vmem:[#allocation3 + $0xc0] sm:$0xff] %vm1108_vm9, %v7736_v40  ;;  %5241 = vrot.lane.b32.xlu1 %v5481_v50, %s11767_s20  ;;  %v7604_v40 = vld [vmem:[#allocation2 + $0x188] sm:$0xff] }
 0x692   : > { %v7642_v31 = vpop.permute.xlu0 %7641 }
 0x693   : > { %7680 = vst.msk [vmem:[#allocation3 + $0xc8] sm:$0xff] %vm1011_vm8, %v7642_v31 }
 0x694   : > { %5147 = vrot.lane.b32.xlu0 %v5672_v23, %s11764_s21  ;;  %v5330_v48 = vpop.permute.xlu1 %5329 }
 0x695   : > { %5367 = vst.msk [vmem:[#allocation3 + $0x50] sm:$0xff] %vm817_vm6, %v5330_v48  ;;  %5621 = vrot.lane.b32.xlu1 %v5577_v42, %s11770_s28 }
 0x696   : > { %v5236_v13 = vpop.permute.xlu0 %5235 }
 0x697   : > { %5272 = vst.msk [vmem:[#allocation3 + $0x58] sm:$0xff] %vm720_vm5, %v5236_v13 }
 0x698   : > { %5527 = vrot.lane.b32.xlu0 %v5482_v46, %s11769_s8  ;;  %v5710_v52 = vpop.permute.xlu1 %5709 }
 0x699   : > { %5749 = vst.msk [vmem:[#allocation3 + $0x40] sm:$0xff] %vm1205_vm10, %v5710_v52  ;;  %7363 = vrot.lane.b32.xlu1 %v7603_v37, %s11767_s20 }
 0x69a   : > { %v5616_v50 = vpop.permute.xlu0 %5615 }
 0x69b   : > { %5654 = vst.msk [vmem:[#allocation3 + $0x48] sm:$0xff] %vm1108_vm9, %v5616_v50 }
 0x69c   : > { %7269 = vrot.lane.b32.xlu0 %v7794_v16, %s11764_s21  ;;  %v7452_v23 = vpop.permute.xlu1 %7451 }
 0x69d   : > { %7489 = vst.msk [vmem:[#allocation3 + $0xd0] sm:$0xff] %vm817_vm6, %v7452_v23  ;;  %7743 = vrot.lane.b32.xlu1 %v7699_v43, %s11770_s28  ;;  %v5673_v23 = vld [vmem:[#allocation2 + $0xc2] sm:$0xff] }
 0x69e   : > { %v7358_v32 = vpop.permute.xlu0 %7357 }
 0x69f   : > { %7394 = vst.msk [vmem:[#allocation3 + $0xd8] sm:$0xff] %vm720_vm5, %v7358_v32 }
 0x6a0   : > { %7649 = vrot.lane.b32.xlu0 %v7604_v40, %s11769_s8  ;;  %v7832_v31 = vpop.permute.xlu1 %7831  ;;  %v5765_v48 = vld [vmem:[#allocation3 + $0x40] sm:$0xff] }
 0x6a1   : > { %7871 = vst.msk [vmem:[#allocation3 + $0xc0] sm:$0xff] %vm1205_vm10, %v7832_v31  ;;  %v5802_v37 = vsel %vm1242_vm11, %v5765_v48, 0  ;;  %5337 = vrot.lane.b32.xlu1 %v5577_v42, %s11766_s14  ;;  %v5578_v42 = vld [vmem:[#allocation2 + $0xc9] sm:$0xff] }
 0x6a2   : > { %v7738_v13 = vpop.permute.xlu0 %7737  ;;  %v15021_v16 = vand.u32 4294901760, %v5802_v37 }
 0x6a3   : > { %7776 = vst.msk [vmem:[#allocation3 + $0xc8] sm:$0xff] %vm1108_vm9, %v7738_v13 }
 0x6a4   : > { %5243 = vrot.lane.b32.xlu0 %v5482_v46, %s11767_s20  ;;  %v5332_v52 = vpop.permute.xlu1 %5331  ;;  %v15026_v50 = vsub.f32 %v5802_v37, %v15021_v16 }
 0x6a5   : > { %5368 = vst.msk [vmem:[#allocation3 + $0x58] sm:$0xff] %vm817_vm6, %v5332_v52  ;;  %5717 = vrot.lane.b32.xlu1 %v5673_v23, %s11771_s30 }
 0x6a6   : > { %16380 = vst [vmem:[#allocation24_spill] sm:$0xff] %v15026_v50  ;;  %v5046_v32 = vpop.permute.xlu0 %5045  ;;  %v16168_v31 = vand.u32 4294901760, %v15026_v50 }
 0x6a7   : > { %5081 = vst.msk [vmem:[#allocation3 + $0x60] sm:$0xff] %vm526_vm3, %v5046_v32 }
 0x6a8   : > { %5623 = vrot.lane.b32.xlu0 %v5578_v42, %s11770_s28  ;;  %v5712_v48 = vpop.permute.xlu1 %5711  ;;  %v5981_v46 = vsub.f32 %v15026_v50, %v16168_v31  ;;  %v7887_v37 = vld [vmem:[#allocation3 + $0xc0] sm:$0xff] }
 0x6a9   : > { %5750 = vst.msk [vmem:[#allocation3 + $0x48] sm:$0xff] %vm1205_vm10, %v5712_v48  ;;  %v7920_v13 = vsel %vm1242_vm11, %v7887_v37, 0  ;;  %7459 = vrot.lane.b32.xlu1 %v7699_v43, %s11766_s14  ;;  %v7795_v48 = vld [vmem:[#allocation2 + $0x182] sm:$0xff] }
 0x6aa   : > { %v5426_v52 = vpop.permute.xlu0 %5425  ;;  %v5982_v58 = vand.u32 4294901760, %v5981_v46  ;;  %v15039_v49 = vand.u32 4294901760, %v7920_v13  ;;  %v7700_v46 = vld [vmem:[#allocation2 + $0x189] sm:$0xff] }
 0x6ab   : > { %5463 = vst.msk [vmem:[#allocation3 + $0x50] sm:$0xff] %vm914_vm7, %v5426_v52 }
 0x6ac   : > { %7365 = vrot.lane.b32.xlu0 %v7604_v40, %s11767_s20  ;;  %v7454_v32 = vpop.permute.xlu1 %7453  ;;  %10505 = vmatprep.mubr.f32.mxu0 %v5982_v58  ;;  %v15044_v5 = vsub.f32 %v7920_v13, %v15039_v49 }
 0x6ad   : > { %7490 = vst.msk [vmem:[#allocation3 + $0xd8] sm:$0xff] %vm817_vm6, %v7454_v32  ;;  %7839 = vrot.lane.b32.xlu1 %v7795_v48, %s11771_s30 }
 0x6ae   : > { %16381 = vst [vmem:[#allocation26_spill] sm:$0xff] %v15044_v5  ;;  %v7168_v31 = vpop.permute.xlu0 %7167  ;;  %v16171_v43 = vand.u32 4294901760, %v15044_v5 }
 0x6af   : > { %7203 = vst.msk [vmem:[#allocation3 + $0xe0] sm:$0xff] %vm526_vm3, %v7168_v31 }
 0x6b0   : > { %7745 = vrot.lane.b32.xlu0 %v7700_v46, %s11770_s28  ;;  %v7834_v37 = vpop.permute.xlu1 %7833  ;;  %v8096_v58 = vsub.f32 %v15044_v5, %v16171_v43  ;;  %v5766_v40 = vld [vmem:[#allocation3 + $0x48] sm:$0xff] }
 0x6b1   : > { %7872 = vst.msk [vmem:[#allocation3 + $0xc8] sm:$0xff] %vm1205_vm10, %v7834_v37  ;;  %v5805_v13 = vsel %vm1242_vm11, %v5766_v40, 0  ;;  %5433 = vrot.lane.b32.xlu1 %v5673_v23, %s11768_s6  ;;  %v5674_v23 = vld [vmem:[#allocation2 + $0xca] sm:$0xff] }
 0x6b2   : > { %v7548_v52 = vpop.permute.xlu0 %7547  ;;  %v8097_v32 = vand.u32 4294901760, %v8096_v58  ;;  %v15057_v27 = vand.u32 4294901760, %v5805_v13 }
 0x6b3   : > { %7585 = vst.msk [vmem:[#allocation3 + $0xd0] sm:$0xff] %vm914_vm7, %v7548_v52 }
 0x6b4   : > { %16382 = vst [vmem:[#allocation31_spill] sm:$0xff] %v15057_v27  ;;  %5339 = vrot.lane.b32.xlu0 %v5578_v42, %s11766_s14  ;;  %10709 = vmatprep.mubr.f32.mxu1 %v8097_v32  ;;  %v5142_v31 = vpop.permute.xlu1 %5141  ;;  %v15062_v0 = vsub.f32 %v5805_v13, %v15057_v27  ;;  %v7796_v13 = vld [vmem:[#allocation2 + $0x18a] sm:$0xff] }
 0x6b5   : > { %5177 = vst.msk [vmem:[#allocation3 + $0x60] sm:$0xff] %vm623_vm4, %v5142_v31  ;;  %7461 = vrot.lane.b32.xlu1 %v7700_v46, %s11766_s14 }
 0x6b6   : > { %16383 = vst [vmem:[#allocation33_spill] sm:$0xff] %v15062_v0  ;;  %v5048_v37 = vpop.permute.xlu0 %5047  ;;  %v16172_v40 = vand.u32 4294901760, %v15062_v0 }
 0x6b7   : > { %5082 = vst.msk [vmem:[#allocation3 + $0x68] sm:$0xff] %vm526_vm3, %v5048_v37 }
 0x6b8   : > { %5719 = vrot.lane.b32.xlu0 %v5674_v23, %s11771_s30  ;;  %v5522_v58 = vpop.permute.xlu1 %5521  ;;  %v5991_v42 = vsub.f32 %v15062_v0, %v16172_v40  ;;  %v7888_v52 = vld [vmem:[#allocation3 + $0xc8] sm:$0xff] }
 0x6b9   : > { %5559 = vst.msk [vmem:[#allocation3 + $0x50] sm:$0xff] %vm1011_vm8, %v5522_v58  ;;  %v7923_v32 = vsel %vm1242_vm11, %v7888_v52, 0  ;;  %7841 = vrot.lane.b32.xlu1 %v7796_v13, %s11771_s30  ;;  %v5483_v58 = vld [vmem:[#allocation2 + $0xd8] sm:$0xff] }
 0x6ba   : > { %v5428_v31 = vpop.permute.xlu0 %5427  ;;  %v5992_v46 = vand.u32 4294901760, %v5991_v42  ;;  %v15075_v43 = vand.u32 4294901760, %v7923_v32  ;;  %v11563_v42 = vld [vmem:[#allocation10] sm:$0xff] }
 0x6bb   : > { %5464 = vst.msk [vmem:[#allocation3 + $0x58] sm:$0xff] %vm914_vm7, %v5428_v31  ;;  %v15088_v31 = vsub.f32 %v11563_v42, %v5829_v60 }
 0x6bc   : > { %7555 = vrot.lane.b32.xlu0 %v7795_v48, %s11768_s6  ;;  %v7264_v37 = vpop.permute.xlu1 %7263  ;;  %10506 = vmatmul.mubr.f32.gmra.mrb[24].mxu0 %v5992_v46  ;;  %v15080_v40 = vsub.f32 %v7923_v32, %v15075_v43  ;;  %v11564_v48 = vld [vmem:[#allocation10 + $0x8] sm:$0xff] }
 0x6bd   : > { %7299 = vst.msk [vmem:[#allocation3 + $0xe0] sm:$0xff] %vm623_vm4, %v7264_v37  ;;  %5529 = vrot.lane.b32.xlu1 %v5483_v58, %s11769_s8  ;;  %v15092_v32 = vsub.f32 %v11564_v48, %v5832_v45  ;;  %v16175_v58 = vand.u32 4294901760, %v15088_v31  ;;  %v5579_v48 = vld [vmem:[#allocation2 + $0xd9] sm:$0xff] }
 0x6be   : > { %16384 = vst [vmem:[#allocation35_spill] sm:$0xff] %v15080_v40  ;;  %v7170_v1 = vpop.permute.xlu0 %7169  ;;  %v16174_v52 = vand.u32 4294901760, %v15080_v40 }
 0x6bf   : > { %7204 = vst.msk [vmem:[#allocation3 + $0xe8] sm:$0xff] %vm526_vm3, %v7170_v1  ;;  %v7605_v1 = vld [vmem:[#allocation2 + $0x198] sm:$0xff]  ;;  %v16178_v8 = vand.u32 4294901760, %v15092_v32  ;;  %v6062_v45 = vsub.f32 %v15088_v31, %v16175_v58 }
 0x6c0   : > { %5435 = vrot.lane.b32.xlu0 %v5674_v23, %s11768_s6  ;;  %v7644_v46 = vpop.permute.xlu1 %7643  ;;  %v8106_v37 = vsub.f32 %v15080_v40, %v16174_v52 }
 0x6c1   : > { %7681 = vst.msk [vmem:[#allocation3 + $0xd0] sm:$0xff] %vm1011_vm8, %v7644_v46  ;;  %7651 = vrot.lane.b32.xlu1 %v7605_v1, %s11769_s8  ;;  %v6069_v23 = vsub.f32 %v15092_v32, %v16178_v8  ;;  %v6063_v46 = vand.u32 4294901760, %v6062_v45  ;;  %v7606_v45 = vld [vmem:[#allocation2 + $0x1a0] sm:$0xff] }
 0x6c2   : > { %v7550_v60 = vpop.permute.xlu0 %7549  ;;  %v8107_v34 = vand.u32 4294901760, %v8106_v37 }
 0x6c3   : > { %7586 = vst.msk [vmem:[#allocation3 + $0xd8] sm:$0xff] %vm914_vm7, %v7550_v60  ;;  %v6070_v1 = vand.u32 4294901760, %v6069_v23  ;;  %v5484_v60 = vld [vmem:[#allocation2 + $0xe0] sm:$0xff]  ;;  %v11565_v23 = vld [vmem:[#allocation10 + $0x10] sm:$0xff] }
 0x6c4   : > { %7557 = vrot.lane.b32.xlu0 %v7796_v13, %s11768_s6  ;;  %10710 = vmatmul.mubr.f32.gmra.mrb[24].mxu1 %v8107_v34  ;;  %v5238_v42 = vpop.permute.xlu1 %5237  ;;  %v7701_v13 = vld [vmem:[#allocation2 + $0x199] sm:$0xff] }
 0x6c5   : > { %5273 = vst.msk [vmem:[#allocation3 + $0x60] sm:$0xff] %vm720_vm5, %v5238_v42  ;;  %5625 = vrot.lane.b32.xlu1 %v5579_v48, %s11770_s28  ;;  %v10995_v52 = vpack.c.bf16 %v6070_v1, %v6063_v46  ;;  %v15119_v42 = vsub.f32 %v11565_v23, %v5835_v4  ;;  %v11566_v48 = vld [vmem:[#allocation10 + $0x18] sm:$0xff]  ;;  %v5675_v1 = vld [vmem:[#allocation2 + $0xda] sm:$0xff] }
 0x6c6   : > { %v5144_v37 = vpop.permute.xlu0 %5143 }
 0x6c7   : > { %5178 = vst.msk [vmem:[#allocation3 + $0x68] sm:$0xff] %vm623_vm4, %v5144_v37  ;;  %10996 = vmatprep.subr.bf16.mxu0 %v10995_v52  ;;  %11044 = vmatprep.subr.bf16.mxu1 %v10995_v52  ;;  %16385 = vst [vmem:[#allocation37_spill] sm:$0xff] %v15119_v42  ;;  %v16177_v37 = vand.u32 4294901760, %v15119_v42 }
 0x6c8   : > { %5531 = vrot.lane.b32.xlu0 %v5484_v60, %s11769_s8  ;;  %v5618_v58 = vpop.permute.xlu1 %5617  ;;  %10998 = vmatpush3.bf16.msra.mxu0 %v10995_v52 }
 0x6c9   : > { %5655 = vst.msk [vmem:[#allocation3 + $0x50] sm:$0xff] %vm1108_vm9, %v5618_v58  ;;  %7747 = vrot.lane.b32.xlu1 %v7701_v13, %s11770_s28  ;;  %11046 = vmatpush3.bf16.msra.mxu1 %v10995_v52  ;;  %v15123_v58 = vsub.f32 %v11566_v48, %v5838_v20  ;;  %v6076_v55 = vsub.f32 %v15119_v42, %v16177_v37  ;;  %v7797_v13 = vld [vmem:[#allocation2 + $0x19a] sm:$0xff] }
 0x6ca   : > { %v5524_v34 = vpop.permute.xlu0 %5523  ;;  %v7702_v48 = vld [vmem:[#allocation2 + $0x1a1] sm:$0xff] }
 0x6cb   : > { %5560 = vst.msk [vmem:[#allocation3 + $0x58] sm:$0xff] %vm1011_vm8, %v5524_v34  ;;  %16386 = vst [vmem:[#allocation39_spill] sm:$0xff] %v15123_v58  ;;  %v16176_v52 = vand.u32 4294901760, %v15123_v58  ;;  %v6077_v34 = vand.u32 4294901760, %v6076_v55 }
 0x6cc   : > { %7653 = vrot.lane.b32.xlu0 %v7606_v45, %s11769_s8  ;;  %v7360_v46 = vpop.permute.xlu1 %7359 }
 0x6cd   : > { %7395 = vst.msk [vmem:[#allocation3 + $0xe0] sm:$0xff] %vm720_vm5, %v7360_v46  ;;  %5721 = vrot.lane.b32.xlu1 %v5675_v1, %s11771_s30  ;;  %v6083_v4 = vsub.f32 %v15123_v58, %v16176_v52 }
 0x6ce   : > { %v7266_v60 = vpop.permute.xlu0 %7265 }
 0x6cf   : > { %7300 = vst.msk [vmem:[#allocation3 + $0xe8] sm:$0xff] %vm623_vm4, %v7266_v60  ;;  %v6084_v45 = vand.u32 4294901760, %v6083_v4  ;;  %v15144_v60 = vsub.f32 %v14260_v39, %v14265_v11 }
 0x6d0   : > { %5627 = vrot.lane.b32.xlu0 %v5580_v3, %s11770_s28  ;;  %v7740_v20 = vpop.permute.xlu1 %7739  ;;  %v7798_v3 = vld [vmem:[#allocation2 + $0x1a2] sm:$0xff] }
 0x6d1   : > { %7777 = vst.msk [vmem:[#allocation3 + $0xd0] sm:$0xff] %vm1108_vm9, %v7740_v20  ;;  %7843 = vrot.lane.b32.xlu1 %v7797_v13, %s11771_s30  ;;  %v10999_v46 = vpack.c.bf16 %v6084_v45, %v6077_v34  ;;  %v15149_v4 = vand.u32 4294901760, %v15144_v60  ;;  %v5676_v20 = vld [vmem:[#allocation2 + $0xe2] sm:$0xff] }
 0x6d2   : > { %v7646_v23 = vpop.permute.xlu0 %7645 }
 0x6d3   : > { %7682 = vst.msk [vmem:[#allocation3 + $0xd8] sm:$0xff] %vm1011_vm8, %v7646_v23  ;;  %11000 = vmatprep.subr.bf16.mxu0 %v10999_v46  ;;  %11048 = vmatprep.subr.bf16.mxu1 %v10999_v46  ;;  %16387 = vst [vmem:[#allocation41_spill] sm:$0xff] %v15149_v4  ;;  %v6090_v13 = vsub.f32 %v15144_v60, %v15149_v4 }
 0x6d4   : > { %7749 = vrot.lane.b32.xlu0 %v7702_v48, %s11770_s28  ;;  %v5334_v1 = vpop.permute.xlu1 %5333  ;;  %11002 = vmatpush3.bf16.msra.mxu0 %v10999_v46 }
 0x6d5   : > { %5369 = vst.msk [vmem:[#allocation3 + $0x60] sm:$0xff] %vm817_vm6, %v5334_v1  ;;  %7845 = vrot.lane.b32.xlu1 %v7798_v3, %s11771_s30  ;;  %11050 = vmatpush3.bf16.msra.mxu1 %v10999_v46  ;;  %v6091_v45 = vand.u32 4294901760, %v6090_v13  ;;  %v15161_v46 = vpack.c.bf16 %v15092_v32, %v15088_v31 }
 0x6d6   : > { %v5240_v55 = vpop.permute.xlu0 %5239 }
 0x6d7   : > { %5274 = vst.msk [vmem:[#allocation3 + $0x68] sm:$0xff] %vm720_vm5, %v5240_v55  ;;  %10525 = vmatprep.subr.mxu0 %v6091_v45  ;;  %10729 = vmatprep.subr.mxu1 %v6091_v45 }
 0x6d8   : > { %5723 = vrot.lane.b32.xlu0 %v5676_v20, %s11771_s30  ;;  %v5714_v39 = vpop.permute.xlu1 %5713  ;;  %10526 = vmatpush3.msra.mxu0 %v6091_v45 }
 0x6d9   : > { %5751 = vst.msk [vmem:[#allocation3 + $0x50] sm:$0xff] %vm1205_vm10, %v5714_v39  ;;  %10730 = vmatpush3.msra.mxu1 %v6091_v45  ;;  %11004 = vmatprep.subr.bf16.mxu0 %v15161_v46 }
 0x6da   : > { %v5620_v34 = vpop.permute.xlu0 %5619  ;;  %11052 = vmatprep.subr.bf16.mxu1 %v15161_v46 }
 0x6db   : > { %5656 = vst.msk [vmem:[#allocation3 + $0x58] sm:$0xff] %vm1108_vm9, %v5620_v34 }
 0x6dc   : > { %v7456_v23 = vpop.permute.xlu1 %7455 }
 0x6dd   : > { %7491 = vst.msk [vmem:[#allocation3 + $0xe0] sm:$0xff] %vm817_vm6, %v7456_v23 }
 0x6de   : > { %v7362_v48 = vpop.permute.xlu0 %7361 }
 0x6df   : > { %7396 = vst.msk [vmem:[#allocation3 + $0xe8] sm:$0xff] %vm720_vm5, %v7362_v48 }
 0x6e0   : > { %v7836_v1 = vpop.permute.xlu1 %7835  ;;  %v5767_v3 = vld [vmem:[#allocation3 + $0x50] sm:$0xff] }
 0x6e1   : > { %7873 = vst.msk [vmem:[#allocation3 + $0xd0] sm:$0xff] %vm1205_vm10, %v7836_v1  ;;  %v5808_v55 = vsel %vm1242_vm11, %v5767_v3, 0 }
 0x6e2   : > { %v7742_v20 = vpop.permute.xlu0 %7741  ;;  %v15167_v39 = vand.u32 4294901760, %v5808_v55 }
 0x6e3   : > { %7778 = vst.msk [vmem:[#allocation3 + $0xd8] sm:$0xff] %vm1108_vm9, %v7742_v20 }
 0x6e4   : > { %16388 = vst [vmem:[#allocation43_spill] sm:$0xff] %v15167_v39  ;;  %v5336_v13 = vpop.permute.xlu1 %5335  ;;  %v15171_v34 = vsub.f32 %v5808_v55, %v15167_v39 }
 0x6e5   : > { %5370 = vst.msk [vmem:[#allocation3 + $0x68] sm:$0xff] %vm817_vm6, %v5336_v13  ;;  %v15186_v13 = vpack.c.bf16 %v15123_v58, %v15119_v42 }
 0x6e6   : > { %16389 = vst [vmem:[#allocation45_spill] sm:$0xff] %v15171_v34  ;;  %v5050_v45 = vpop.permute.xlu0 %5049  ;;  %v16179_v23 = vand.u32 4294901760, %v15171_v34 }
 0x6e7   : > { %5083 = vst.msk [vmem:[#allocation3 + $0x70] sm:$0xff] %vm526_vm3, %v5050_v45 }
 0x6e8   : > { %v5716_v48 = vpop.permute.xlu1 %5715  ;;  %v6001_v1 = vsub.f32 %v15171_v34, %v16179_v23  ;;  %v7889_v3 = vld [vmem:[#allocation3 + $0xd0] sm:$0xff] }
 0x6e9   : > { %5752 = vst.msk [vmem:[#allocation3 + $0x58] sm:$0xff] %vm1205_vm10, %v5716_v48  ;;  %v7926_v20 = vsel %vm1242_vm11, %v7889_v3, 0 }
 0x6ea   : > { %v5430_v52 = vpop.permute.xlu0 %5429  ;;  %v6002_v55 = vand.u32 4294901760, %v6001_v1  ;;  %v15181_v37 = vand.u32 4294901760, %v7926_v20 }
 0x6eb   : > { %5465 = vst.msk [vmem:[#allocation3 + $0x60] sm:$0xff] %vm914_vm7, %v5430_v52 }
 0x6ec   : > { %16390 = vst [vmem:[#allocation47_spill] sm:$0xff] %v15181_v37  ;;  %v7458_v45 = vpop.permute.xlu1 %7457  ;;  %10508 = vmatprep.mubr.f32.mxu0 %v6002_v55  ;;  %v15189_v8 = vsub.f32 %v7926_v20, %v15181_v37 }
 0x6ed   : > { %7492 = vst.msk [vmem:[#allocation3 + $0xe8] sm:$0xff] %vm817_vm6, %v7458_v45 }
 0x6ee   : > { %16391 = vst [vmem:[#allocation49_spill] sm:$0xff] %v15189_v8  ;;  %v7172_v48 = vpop.permute.xlu0 %7171  ;;  %v16185_v3 = vand.u32 4294901760, %v15189_v8 }
 0x6ef   : > { %7205 = vst.msk [vmem:[#allocation3 + $0xf0] sm:$0xff] %vm526_vm3, %v7172_v48 }
 0x6f0   : > { %v7838_v1 = vpop.permute.xlu1 %7837  ;;  %v8116_v52 = vsub.f32 %v15189_v8, %v16185_v3  ;;  %v5768_v23 = vld [vmem:[#allocation3 + $0x58] sm:$0xff] }
 0x6f1   : > { %7874 = vst.msk [vmem:[#allocation3 + $0xd8] sm:$0xff] %vm1205_vm10, %v7838_v1  ;;  %v5811_v55 = vsel %vm1242_vm11, %v5768_v23, 0 }
 0x6f2   : > { %v7552_v26 = vpop.permute.xlu0 %7551  ;;  %v8117_v20 = vand.u32 4294901760, %v8116_v52  ;;  %v15199_v4 = vand.u32 4294901760, %v5811_v55 }
 0x6f3   : > { %7587 = vst.msk [vmem:[#allocation3 + $0xe0] sm:$0xff] %vm914_vm7, %v7552_v26 }
 0x6f4   : > { %16392 = vst [vmem:[#allocation27_spill] sm:$0xff] %v15199_v4  ;;  %10712 = vmatprep.mubr.f32.mxu1 %v8117_v20  ;;  %v5146_v45 = vpop.permute.xlu1 %5145  ;;  %v15203_v48 = vsub.f32 %v5811_v55, %v15199_v4 }
 0x6f5   : > { %5179 = vst.msk [vmem:[#allocation3 + $0x70] sm:$0xff] %vm623_vm4, %v5146_v45 }
 0x6f6   : > { %16393 = vst [vmem:[#allocation28_spill] sm:$0xff] %v15203_v48  ;;  %v5052_v58 = vpop.permute.xlu0 %5051  ;;  %v16189_v3 = vand.u32 4294901760, %v15203_v48 }
 0x6f7   : > { %5084 = vst.msk [vmem:[#allocation3 + $0x78] sm:$0xff] %vm526_vm3, %v5052_v58 }
 0x6f8   : > { %v5526_v1 = vpop.permute.xlu1 %5525  ;;  %v6011_v23 = vsub.f32 %v15203_v48, %v16189_v3  ;;  %v7890_v52 = vld [vmem:[#allocation3 + $0xd8] sm:$0xff] }
 0x6f9   : > { %5561 = vst.msk [vmem:[#allocation3 + $0x60] sm:$0xff] %vm1011_vm8, %v5526_v1  ;;  %v7929_v26 = vsel %vm1242_vm11, %v7890_v52, 0 }
 0x6fa   : > { %v5432_v20 = vpop.permute.xlu0 %5431  ;;  %v6012_v55 = vand.u32 4294901760, %v6011_v23  ;;  %v15213_v42 = vand.u32 4294901760, %v7929_v26 }
 0x6fb   : > { %5466 = vst.msk [vmem:[#allocation3 + $0x68] sm:$0xff] %vm914_vm7, %v5432_v20 }
 0x6fc   : > { %16394 = vst [vmem:[#allocation29_spill] sm:$0xff] %v15213_v42  ;;  %v7268_v45 = vpop.permute.xlu1 %7267  ;;  %10509 = vmatmul.mubr.f32.gmra.mrb[26].mxu0 %v6012_v55  ;;  %v15217_v58 = vsub.f32 %v7929_v26, %v15213_v42 }
 0x6fd   : > { %7301 = vst.msk [vmem:[#allocation3 + $0xf0] sm:$0xff] %vm623_vm4, %v7268_v45 }
 0x6fe   : > { %16395 = vst [vmem:[#allocation23_spill] sm:$0xff] %v15217_v58  ;;  %v7174_v34 = vpop.permute.xlu0 %7173  ;;  %v16190_v3 = vand.u32 4294901760, %v15217_v58 }
 0x6ff   : > { %7206 = vst.msk [vmem:[#allocation3 + $0xf8] sm:$0xff] %vm526_vm3, %v7174_v34 }
 0x700   : > { %v7648_v1 = vpop.permute.xlu1 %7647  ;;  %v8126_v23 = vsub.f32 %v15217_v58, %v16190_v3 }
 0x701   : > { %7683 = vst.msk [vmem:[#allocation3 + $0xe0] sm:$0xff] %vm1011_vm8, %v7648_v1 }
 0x702   : > { %v7554_v52 = vpop.permute.xlu0 %7553  ;;  %v8127_v20 = vand.u32 4294901760, %v8126_v23 }
 0x703   : > { %7588 = vst.msk [vmem:[#allocation3 + $0xe8] sm:$0xff] %vm914_vm7, %v7554_v52 }
 0x704   : > { %10713 = vmatmul.mubr.f32.gmra.mrb[26].mxu1 %v8127_v20  ;;  %v5242_v26 = vpop.permute.xlu1 %5241 }
 0x705   : > { %5275 = vst.msk [vmem:[#allocation3 + $0x70] sm:$0xff] %vm720_vm5, %v5242_v26 }
 0x706   : > { %v5148_v55 = vpop.permute.xlu0 %5147 }
 0x707   : > { %5180 = vst.msk [vmem:[#allocation3 + $0x78] sm:$0xff] %vm623_vm4, %v5148_v55 }
 0x708   : > { %v5622_v45 = vpop.permute.xlu1 %5621 }
 0x709   : > { %5657 = vst.msk [vmem:[#allocation3 + $0x60] sm:$0xff] %vm1108_vm9, %v5622_v45 }
 0x70a   : > { %v5528_v34 = vpop.permute.xlu0 %5527 }
 0x70b   : > { %5562 = vst.msk [vmem:[#allocation3 + $0x68] sm:$0xff] %vm1011_vm8, %v5528_v34 }
 0x70c   : > { %v7364_v3 = vpop.permute.xlu1 %7363 }
 0x70d   : > { %7397 = vst.msk [vmem:[#allocation3 + $0xf0] sm:$0xff] %vm720_vm5, %v7364_v3 }
 0x70e   : > { %v7270_v1 = vpop.permute.xlu0 %7269 }
 0x70f   : > { %7302 = vst.msk [vmem:[#allocation3 + $0xf8] sm:$0xff] %vm623_vm4, %v7270_v1 }
 0x710   : > { %v7744_v23 = vpop.permute.xlu1 %7743 }
 0x711   : > { %7779 = vst.msk [vmem:[#allocation3 + $0xe0] sm:$0xff] %vm1108_vm9, %v7744_v23 }
 0x712   : > { %v7650_v52 = vpop.permute.xlu0 %7649 }
 0x713   : > { %7684 = vst.msk [vmem:[#allocation3 + $0xe8] sm:$0xff] %vm1011_vm8, %v7650_v52 }
 0x714   : > { %v5338_v20 = vpop.permute.xlu1 %5337 }
 0x715   : > { %5371 = vst.msk [vmem:[#allocation3 + $0x70] sm:$0xff] %vm817_vm6, %v5338_v20 }
 0x716   : > { %v5244_v26 = vpop.permute.xlu0 %5243 }
 0x717   : > { %5276 = vst.msk [vmem:[#allocation3 + $0x78] sm:$0xff] %vm720_vm5, %v5244_v26 }
 0x718   : > { %v5718_v55 = vpop.permute.xlu1 %5717 }
 0x719   : > { %5753 = vst.msk [vmem:[#allocation3 + $0x60] sm:$0xff] %vm1205_vm10, %v5718_v55 }
 0x71a   : > { %v5624_v45 = vpop.permute.xlu0 %5623 }
 0x71b   : > { %5658 = vst.msk [vmem:[#allocation3 + $0x68] sm:$0xff] %vm1108_vm9, %v5624_v45 }
 0x71c   : > { %v7460_v3 = vpop.permute.xlu1 %7459 }
 0x71d   : > { %7493 = vst.msk [vmem:[#allocation3 + $0xf0] sm:$0xff] %vm817_vm6, %v7460_v3 }
 0x71e   : > { %v7366_v34 = vpop.permute.xlu0 %7365 }
 0x71f   : > { %7398 = vst.msk [vmem:[#allocation3 + $0xf8] sm:$0xff] %vm720_vm5, %v7366_v34 }
 0x720   : > { %v7840_v1 = vpop.permute.xlu1 %7839  ;;  %v5769_v23 = vld [vmem:[#allocation3 + $0x60] sm:$0xff] }
 0x721   : > { %7875 = vst.msk [vmem:[#allocation3 + $0xe0] sm:$0xff] %vm1205_vm10, %v7840_v1  ;;  %v5814_v52 = vsel %vm1242_vm11, %v5769_v23, 0 }
 0x722   : > { %v7746_v20 = vpop.permute.xlu0 %7745  ;;  %v15243_v26 = vand.u32 4294901760, %v5814_v52 }
 0x723   : > { %7780 = vst.msk [vmem:[#allocation3 + $0xe8] sm:$0xff] %vm1108_vm9, %v7746_v20 }
 0x724   : > { %16396 = vst [vmem:[#allocation25_spill] sm:$0xff] %v15243_v26  ;;  %v5434_v55 = vpop.permute.xlu1 %5433  ;;  %v15247_v45 = vsub.f32 %v5814_v52, %v15243_v26 }
 0x725   : > { %5467 = vst.msk [vmem:[#allocation3 + $0x70] sm:$0xff] %vm914_vm7, %v5434_v55 }
 0x726   : > { %16397 = vst [vmem:[#allocation30_spill] sm:$0xff] %v15247_v45  ;;  %v5340_v3 = vpop.permute.xlu0 %5339  ;;  %v16199_v34 = vand.u32 4294901760, %v15247_v45 }
 0x727   : > { %5372 = vst.msk [vmem:[#allocation3 + $0x78] sm:$0xff] %vm817_vm6, %v5340_v3 }
 0x728   : > { %v7462_v48 = vpop.permute.xlu1 %7461  ;;  %v6021_v1 = vsub.f32 %v15247_v45, %v16199_v34  ;;  %v7891_v23 = vld [vmem:[#allocation3 + $0xe0] sm:$0xff] }
 0x729   : > { %7494 = vst.msk [vmem:[#allocation3 + $0xf8] sm:$0xff] %vm817_vm6, %v7462_v48  ;;  %v7932_v20 = vsel %vm1242_vm11, %v7891_v23, 0 }
 0x72a   : > { %v5720_v58 = vpop.permute.xlu0 %5719  ;;  %v6022_v52 = vand.u32 4294901760, %v6021_v1  ;;  %v15257_v0 = vand.u32 4294901760, %v7932_v20 }
 0x72b   : > { %5754 = vst.msk [vmem:[#allocation3 + $0x68] sm:$0xff] %vm1205_vm10, %v5720_v58 }
 0x72c   : > { %16398 = vst [vmem:[#allocation32_spill] sm:$0xff] %v15257_v0  ;;  %v7842_v55 = vpop.permute.xlu1 %7841  ;;  %10511 = vmatprep.mubr.f32.mxu0 %v6022_v52  ;;  %v15261_v3 = vsub.f32 %v7932_v20, %v15257_v0 }
 0x72d   : > { %7876 = vst.msk [vmem:[#allocation3 + $0xe8] sm:$0xff] %vm1205_vm10, %v7842_v55 }
 0x72e   : > { %16399 = vst [vmem:[#allocation34_spill] sm:$0xff] %v15261_v3  ;;  %v7556_v8 = vpop.permute.xlu0 %7555  ;;  %v16206_v34 = vand.u32 4294901760, %v15261_v3 }
 0x72f   : > { %7589 = vst.msk [vmem:[#allocation3 + $0xf0] sm:$0xff] %vm914_vm7, %v7556_v8 }
 0x730   : > { %v5530_v48 = vpop.permute.xlu1 %5529  ;;  %v8136_v1 = vsub.f32 %v15261_v3, %v16206_v34 }
 0x731   : > { %5563 = vst.msk [vmem:[#allocation3 + $0x70] sm:$0xff] %vm1011_vm8, %v5530_v48 }
 0x732   : > { %v5436_v58 = vpop.permute.xlu0 %5435  ;;  %v8137_v23 = vand.u32 4294901760, %v8136_v1  ;;  %v5770_v52 = vld [vmem:[#allocation3 + $0x68] sm:$0xff] }
 0x733   : > { %5468 = vst.msk [vmem:[#allocation3 + $0x78] sm:$0xff] %vm914_vm7, %v5436_v58  ;;  %v5817_v20 = vsel %vm1242_vm11, %v5770_v52, 0 }
 0x734   : > { %10715 = vmatprep.mubr.f32.mxu1 %v8137_v23  ;;  %v7652_v55 = vpop.permute.xlu1 %7651  ;;  %v15272_v45 = vand.u32 4294901760, %v5817_v20  ;;  %v7892_v40 = vld [vmem:[#allocation3 + $0xe8] sm:$0xff] }
 0x735   : > { %7685 = vst.msk [vmem:[#allocation3 + $0xf0] sm:$0xff] %vm1011_vm8, %v7652_v55  ;;  %v7935_v8 = vsel %vm1242_vm11, %v7892_v40, 0 }
 0x736   : > { %16400 = vst [vmem:[#allocation36_spill] sm:$0xff] %v15272_v45  ;;  %v7558_v50 = vpop.permute.xlu0 %7557  ;;  %v15277_v34 = vsub.f32 %v5817_v20, %v15272_v45  ;;  %v15279_v48 = vand.u32 4294901760, %v7935_v8 }
 0x737   : > { %7590 = vst.msk [vmem:[#allocation3 + $0xf8] sm:$0xff] %vm914_vm7, %v7558_v50 }
 0x738   : > { %16401 = vst [vmem:[#allocation38_spill] sm:$0xff] %v15277_v34  ;;  %16402 = vst [vmem:[#allocation40_spill] sm:$0xff] %v15279_v48  ;;  %v5626_v1 = vpop.permute.xlu1 %5625  ;;  %v16211_v58 = vand.u32 4294901760, %v15277_v34  ;;  %v15284_v23 = vsub.f32 %v7935_v8, %v15279_v48 }
 0x739   : > { %5659 = vst.msk [vmem:[#allocation3 + $0x70] sm:$0xff] %vm1108_vm9, %v5626_v1 }
 0x73a   : > { %16403 = vst [vmem:[#allocation42_spill] sm:$0xff] %v15284_v23  ;;  %v5532_v52 = vpop.permute.xlu0 %5531  ;;  %v6031_v40 = vsub.f32 %v15277_v34, %v16211_v58  ;;  %v16212_v20 = vand.u32 4294901760, %v15284_v23 }
 0x73b   : > { %5564 = vst.msk [vmem:[#allocation3 + $0x78] sm:$0xff] %vm1011_vm8, %v5532_v52 }
 0x73c   : > { %v7748_v55 = vpop.permute.xlu1 %7747  ;;  %v6032_v3 = vand.u32 4294901760, %v6031_v40  ;;  %v8146_v50 = vsub.f32 %v15284_v23, %v16212_v20 }
 0x73d   : > { %7781 = vst.msk [vmem:[#allocation3 + $0xf0] sm:$0xff] %vm1108_vm9, %v7748_v55 }
 0x73e   : > { %v7654_v8 = vpop.permute.xlu0 %7653  ;;  %10512 = vmatmul.mubr.f32.gmra.mrb[28].mxu0 %v6032_v3  ;;  %v8147_v1 = vand.u32 4294901760, %v8146_v50 }
 0x73f   : > { %7686 = vst.msk [vmem:[#allocation3 + $0xf8] sm:$0xff] %vm1011_vm8, %v7654_v8 }
 0x740   : > { %10716 = vmatmul.mubr.f32.gmra.mrb[28].mxu1 %v8147_v1  ;;  %v5722_v18 = vpop.permute.xlu1 %5721 }
 0x741   : > { %5755 = vst.msk [vmem:[#allocation3 + $0x70] sm:$0xff] %vm1205_vm10, %v5722_v18 }
 0x742   : > { %v5628_v58 = vpop.permute.xlu0 %5627 }
 0x743   : > { %5660 = vst.msk [vmem:[#allocation3 + $0x78] sm:$0xff] %vm1108_vm9, %v5628_v58 }
 0x744   : > { %v7844_v52 = vpop.permute.xlu1 %7843 }
 0x745   : > { %7877 = vst.msk [vmem:[#allocation3 + $0xf0] sm:$0xff] %vm1205_vm10, %v7844_v52 }
 0x746   : > { %v7750_v40 = vpop.permute.xlu0 %7749 }
 0x747   : > { %7782 = vst.msk [vmem:[#allocation3 + $0xf8] sm:$0xff] %vm1108_vm9, %v7750_v40 }
 0x748   : > { %v7846_v20 = vpop.permute.xlu1 %7845  ;;  %v5771_v55 = vld [vmem:[#allocation3 + $0x70] sm:$0xff] }
 0x749   : > { %7878 = vst.msk [vmem:[#allocation3 + $0xf8] sm:$0xff] %vm1205_vm10, %v7846_v20  ;;  %v5820_v3 = vsel %vm1242_vm11, %v5771_v55, 0 }
 0x74a   : > { %v5724_v50 = vpop.permute.xlu0 %5723  ;;  %v15303_v8 = vand.u32 4294901760, %v5820_v3 }
 0x74b   : > { %5756 = vst.msk [vmem:[#allocation3 + $0x78] sm:$0xff] %vm1205_vm10, %v5724_v50 }
 0x74c   : > { %16404 = vst [vmem:[#allocation44_spill] sm:$0xff] %v15303_v8  ;;  %v15307_v18 = vsub.f32 %v5820_v3, %v15303_v8  ;;  %v7893_v58 = vld [vmem:[#allocation3 + $0xf0] sm:$0xff] }
 0x74d   : > { %v7938_v1 = vsel %vm1242_vm11, %v7893_v58, 0 }
 0x74e   : > { %16405 = vst [vmem:[#allocation46_spill] sm:$0xff] %v15307_v18  ;;  %v16223_v52 = vand.u32 4294901760, %v15307_v18  ;;  %v15311_v40 = vand.u32 4294901760, %v7938_v1 }
 0x750   : > { %16406 = vst [vmem:[#allocation48_spill] sm:$0xff] %v15311_v40  ;;  %v6041_v20 = vsub.f32 %v15307_v18, %v16223_v52  ;;  %v15317_v55 = vsub.f32 %v7938_v1, %v15311_v40  ;;  %v7894_v34 = vld [vmem:[#allocation3 + $0xf8] sm:$0xff] }
 0x751   : > { %v7941_v50 = vsel %vm1242_vm11, %v7894_v34, 0 }
 0x752   : > { %v6042_v23 = vand.u32 4294901760, %v6041_v20  ;;  %v16228_v3 = vand.u32 4294901760, %v15317_v55  ;;  %v5772_v5 = vld [vmem:[#allocation3 + $0x78] sm:$0xff]  ;;  %v15321_v10 = vand.u32 4294901760, %v7941_v50 }
 0x753   : > { %v5823_v58 = vsel %vm1242_vm11, %v5772_v5, 0 }
 0x754   : > { %16407 = vst [vmem:[#allocation50_spill] sm:$0xff] %v15321_v10  ;;  %10514 = vmatprep.mubr.f32.mxu0 %v6042_v23  ;;  %v8156_v24 = vsub.f32 %v15317_v55, %v16228_v3  ;;  %v15327_v52 = vand.u32 4294901760, %v5823_v58  ;;  %v15330_v1 = vsub.f32 %v7941_v50, %v15321_v10 }
 0x756   : > { %16408 = vst [vmem:[#allocation51_spill] sm:$0xff] %v15327_v52  ;;  %v8157_v18 = vand.u32 4294901760, %v8156_v24  ;;  %v15333_v34 = vsub.f32 %v5823_v58, %v15327_v52  ;;  %v16230_v20 = vand.u32 4294901760, %v15330_v1  ;;  %v16409_v24 = vand.u32 4294901760, %v15088_v31  ;;  %v16413_v31 = vld [vmem:[#allocation22_spill] sm:$0xff]  ;;  %v16416_v58 = vld [vmem:[#allocation24_spill] sm:$0xff] }
 0x758   : > { %10718 = vmatprep.mubr.f32.mxu1 %v8157_v18  ;;  %v16229_v61 = vand.u32 4294901760, %v15333_v34  ;;  %v8166_v5 = vsub.f32 %v15330_v1, %v16230_v20  ;;  %v16412_v18 = vld [vmem:[#allocation20_spill] sm:$0xff] }
 0x759   : > { %v16423_v20 = vld [vmem:[#allocation28_spill] sm:$0xff] }
 0x75a   : > { %v6051_v23 = vsub.f32 %v15333_v34, %v16229_v61  ;;  %v8167_v3 = vand.u32 4294901760, %v8166_v5  ;;  %v16417_v5 = vld [vmem:[#allocation35_spill] sm:$0xff]  ;;  %v16422_v61 = vld [vmem:[#allocation34_spill] sm:$0xff] }
 0x75c   : > { %v6052_v50 = vand.u32 4294901760, %v6051_v23  ;;  %10719 = vmatmul.mubr.f32.gmra.mrb[30].mxu1 %v8167_v3  ;;  %v16415_v3 = vld [vmem:[#allocation21_spill] sm:$0xff] }
 0x75d   : > { %10731 = vmatprep.mubr.f32.mxu1 %v14489_v12  ;;  %v16418_v23 = vld [vmem:[#allocation49_spill] sm:$0xff] }
 0x75e   : > { %10515 = vmatmul.mubr.f32.gmra.mrb[30].mxu0 %v6052_v50  ;;  %v16419_v50 = vld [vmem:[#allocation33_spill] sm:$0xff] }
 0x75f   : > { %10527 = vmatprep.mubr.f32.mxu0 %v14464_v51 }
 0x760   : > { %10732 = vmatmul.mubr.f32.vlgmr.msra.gmra.mrb[16].mxu1 %v14534_v17 }
 0x761   : > { %11054 = vmatpush3.bf16.msra.mxu1 %v15161_v46  ;;  %10734 = vmatprep.mubr.f32.mxu1 %v14638_v57 }
 0x762   : > { %10528 = vmatmul.mubr.f32.vlgmr.msra.gmra.mrb[16].mxu0 %v14603_v25  ;;  %11056 = vmatprep.subr.bf16.mxu1 %v15186_v13 }
 0x763   : > { %11006 = vmatpush3.bf16.msra.mxu0 %v15161_v46  ;;  %10530 = vmatprep.mubr.f32.mxu0 %v14605_v19 }
 0x764   : > { %10735 = vmatmul.mubr.f32.gmra.mrb[18].mxu1 %v14685_v63  ;;  %11008 = vmatprep.subr.bf16.mxu0 %v15186_v13 }
 0x765   : > { %10737 = vmatprep.mubr.f32.mxu1 %v14780_v29  ;;  %11058 = vmatpush3.bf16.msra.mxu1 %v15186_v13 }
 0x766   : > { %10531 = vmatmul.mubr.f32.gmra.mrb[18].mxu0 %v14664_v62  ;;  %10763 = vmatprep.subr.mxu1 %v15144_v60 }
 0x767   : > { %10533 = vmatprep.mubr.f32.mxu0 %v14754_v35  ;;  %11010 = vmatpush3.bf16.msra.mxu0 %v15186_v13  ;;  %v16411_v13 = vld [vmem:[#allocation19_spill] sm:$0xff] }
 0x768   : > { %10738 = vmatmul.mubr.f32.gmra.mrb[20].mxu1 %v14827_v59  ;;  %10559 = vmatprep.subr.mxu0 %v15144_v60 }
 0x769   : > { %10740 = vmatprep.mubr.f32.mxu1 %v14920_v53  ;;  %10764 = vmatpush3.msra.mxu1 %v15144_v60 }
 0x76a   : > { %10534 = vmatmul.mubr.f32.gmra.mrb[20].mxu0 %v14806_v28  ;;  %11060 = vmatprep.subr.bf16.mxu1 %v14235_v2 }
 0x76b   : > { %10536 = vmatprep.mubr.f32.mxu0 %v14894_v38  ;;  %10560 = vmatpush3.msra.mxu0 %v15144_v60  ;;  %v16410_v60 = vand.u32 4294901760, %v15092_v32  ;;  %v16414_v32 = vld [vmem:[#allocation26_spill] sm:$0xff] }
 0x76c   : > { %10741 = vmatmul.mubr.f32.gmra.mrb[22].mxu1 %v14965_v33  ;;  %11012 = vmatprep.subr.bf16.mxu0 %v14235_v2 }
 0x76d   : > { %10743 = vmatprep.mubr.f32.mxu1 %v15039_v49  ;;  %v11019_v46 = vpack.c.bf16 %v16410_v60, %v16409_v24  ;;  %v16420_v24 = vld [vmem:[#allocation45_spill] sm:$0xff]  ;;  %v16421_v60 = vld [vmem:[#allocation23_spill] sm:$0xff] }
 0x76e   : > { %10537 = vmatmul.mubr.f32.gmra.mrb[22].mxu0 %v14944_v6 }
 0x76f   : > { %10539 = vmatprep.mubr.f32.mxu0 %v15021_v16 }
 0x770   : > { %10744 = vmatmul.mubr.f32.gmra.mrb[24].mxu1 %v15075_v43 }
 0x771   : > { %10746 = vmatprep.mubr.f32.mxu1 %v15181_v37  ;;  %v16435_v37 = vand.u32 4294901760, %v14644_v47 }
 0x772   : > { %10540 = vmatmul.mubr.f32.gmra.mrb[24].mxu0 %v15057_v27  ;;  %v16434_v27 = vand.u32 4294901760, %v14540_v56 }
 0x773   : > { %10542 = vmatprep.mubr.f32.mxu0 %v15167_v39  ;;  %v16433_v39 = vand.u32 4294901760, %v14476_v14 }
 0x774   : > { %10747 = vmatmul.mubr.f32.gmra.mrb[26].mxu1 %v15213_v42 }
 0x775   : > { %10749 = vmatprep.mubr.f32.mxu1 %v15257_v0 }
 0x776   : > { %10543 = vmatmul.mubr.f32.gmra.mrb[26].mxu0 %v15199_v4  ;;  %v16431_v4 = vld [vmem:[#allocation39_spill] sm:$0xff] }
 0x777   : > { %10545 = vmatprep.mubr.f32.mxu0 %v15243_v26  ;;  %v16432_v0 = vand.u32 4294901760, %v16431_v4  ;;  %v16453_v4 = vand.u32 4294901760, %v16419_v50 }
 0x778   : > { %10750 = vmatmul.mubr.f32.gmra.mrb[28].mxu1 %v15279_v48  ;;  %v16429_v48 = vld [vmem:[#allocation37_spill] sm:$0xff] }
 0x779   : > { %10752 = vmatprep.mubr.f32.mxu1 %v15311_v40  ;;  %v16428_v40 = vand.u32 4294901760, %v14499_v41  ;;  %v16430_v26 = vand.u32 4294901760, %v16429_v48  ;;  %v16437_v48 = vand.u32 4294901760, %v14614_v36 }
 0x77a   : > { %10546 = vmatmul.mubr.f32.gmra.mrb[28].mxu0 %v15272_v45  ;;  %v16427_v45 = vld [vmem:[#allocation46_spill] sm:$0xff] }
 0x77b   : > { %10548 = vmatprep.mubr.f32.mxu0 %v15303_v8  ;;  %v16426_v8 = vld [vmem:[#allocation38_spill] sm:$0xff]  ;;  %v11023_v42 = vpack.c.bf16 %v16432_v0, %v16430_v26  ;;  %v16438_v0 = vand.u32 4294901760, %v14691_v54  ;;  %v16455_v26 = vand.u32 4294901760, %v16421_v60 }
 0x77c   : > { %10753 = vmatmul.mubr.f32.gmra.mrb[30].mxu1 %v15321_v10  ;;  %v16425_v10 = vld [vmem:[#allocation42_spill] sm:$0xff] }
 0x77d   : > { %10765 = vmatprep.mubr.f32.mxu1 %v14499_v41  ;;  %v16436_v41 = vand.u32 4294901760, %v14611_v30 }
 0x77e   : > { %10549 = vmatmul.mubr.f32.gmra.mrb[30].mxu0 %v15327_v52  ;;  %v16424_v52 = vld [vmem:[#allocation30_spill] sm:$0xff] }
 0x77f   : > { %10561 = vmatprep.mubr.f32.mxu0 %v14476_v14  ;;  %v16439_v14 = vand.u32 4294901760, %v14786_v44 }
 0x780   : > { %10766 = vmatmul.mubr.f32.vlgmr.msra.gmra.mrb[16].mxu1 %v14540_v56  ;;  %v16440_v56 = vand.u32 4294901760, %v14670_v21 }
 0x781   : > { %11062 = vmatpush3.bf16.msra.mxu1 %v14235_v2  ;;  %10768 = vmatprep.mubr.f32.mxu1 %v14644_v47  ;;  %v16444_v47 = vand.u32 4294901760, %v14926_v22 }
 0x782   : > { %10562 = vmatmul.mubr.f32.vlgmr.msra.gmra.mrb[16].mxu0 %v14611_v30  ;;  %11064 = vmatprep.subr.bf16.mxu1 %v14254_v9  ;;  %v16442_v30 = vand.u32 4294901760, %v14760_v15 }
 0x783   : > { %11014 = vmatpush3.bf16.msra.mxu0 %v14235_v2  ;;  %10564 = vmatprep.mubr.f32.mxu0 %v14614_v36  ;;  %v16443_v36 = vand.u32 4294901760, %v14833_v7 }
 0x784   : > { %10769 = vmatmul.mubr.f32.gmra.mrb[18].mxu1 %v14691_v54  ;;  %11016 = vmatprep.subr.bf16.mxu0 %v14254_v9  ;;  %v16445_v54 = vand.u32 4294901760, %v16411_v13 }
 0x785   : > { %10771 = vmatprep.mubr.f32.mxu1 %v14786_v44  ;;  %11066 = vmatpush3.bf16.msra.mxu1 %v14254_v9  ;;  %v16448_v44 = vand.u32 4294901760, %v16414_v32 }
 0x786   : > { %10565 = vmatmul.mubr.f32.gmra.mrb[18].mxu0 %v14670_v21  ;;  %10797 = vmatprep.subr.mxu1 %v14265_v11  ;;  %v16446_v21 = vand.u32 4294901760, %v16412_v18 }
 0x787   : > { %10567 = vmatprep.mubr.f32.mxu0 %v14760_v15  ;;  %11018 = vmatpush3.bf16.msra.mxu0 %v14254_v9  ;;  %v16447_v15 = vand.u32 4294901760, %v16413_v31 }
 0x788   : > { %10772 = vmatmul.mubr.f32.gmra.mrb[20].mxu1 %v14833_v7  ;;  %10593 = vmatprep.subr.mxu0 %v14265_v11  ;;  %v16449_v7 = vand.u32 4294901760, %v16415_v3 }
 0x789   : > { %10774 = vmatprep.mubr.f32.mxu1 %v14926_v22  ;;  %10798 = vmatpush3.msra.mxu1 %v14265_v11  ;;  %v16450_v22 = vand.u32 4294901760, %v16416_v58 }
 0x78a   : > { %10568 = vmatmul.mubr.f32.gmra.mrb[20].mxu0 %v16411_v13  ;;  %11068 = vmatprep.subr.bf16.mxu1 %v11019_v46  ;;  %v16458_v13 = vand.u32 4294901760, %v16424_v52 }
 0x78b   : > { %10570 = vmatprep.mubr.f32.mxu0 %v16412_v18  ;;  %10594 = vmatpush3.msra.mxu0 %v14265_v11  ;;  %v16459_v18 = vand.u32 4294901760, %v16425_v10 }
 0x78c   : > { %10775 = vmatmul.mubr.f32.gmra.mrb[22].mxu1 %v16413_v31  ;;  %11020 = vmatprep.subr.bf16.mxu0 %v11019_v46  ;;  %v16460_v31 = vand.u32 4294901760, %v15317_v55 }
 0x78d   : > { %10777 = vmatprep.mubr.f32.mxu1 %v16414_v32  ;;  %v16461_v32 = vand.u32 4294901760, %v16426_v8 }
 0x78e   : > { %10571 = vmatmul.mubr.f32.gmra.mrb[22].mxu0 %v16415_v3  ;;  %v16462_v3 = vand.u32 4294901760, %v16427_v45 }
 0x78f   : > { %10573 = vmatprep.mubr.f32.mxu0 %v16416_v58  ;;  %v16475_v58 = vld [vmem:[#allocation44_spill] sm:$0xff] }
 0x790   : > { %10778 = vmatmul.mubr.f32.gmra.mrb[24].mxu1 %v16417_v5 }
 0x791   : > { %10780 = vmatprep.mubr.f32.mxu1 %v16418_v23 }
 0x792   : > { %10574 = vmatmul.mubr.f32.gmra.mrb[24].mxu0 %v16419_v50 }
 0x793   : > { %10576 = vmatprep.mubr.f32.mxu0 %v16420_v24 }
 0x794   : > { %10781 = vmatmul.mubr.f32.gmra.mrb[26].mxu1 %v16421_v60 }
 0x795   : > { %10783 = vmatprep.mubr.f32.mxu1 %v16422_v61 }
 0x796   : > { %10577 = vmatmul.mubr.f32.gmra.mrb[26].mxu0 %v16423_v20 }
 0x797   : > { %10579 = vmatprep.mubr.f32.mxu0 %v16424_v52  ;;  %v16464_v52 = vand.u32 4294901760, %v15333_v34 }
 0x798   : > { %10784 = vmatmul.mubr.f32.gmra.mrb[28].mxu1 %v16425_v10  ;;  %v16467_v10 = vld [vmem:[#allocation43_spill] sm:$0xff] }
 0x799   : > { %10786 = vmatprep.mubr.f32.mxu1 %v15317_v55  ;;  %v16471_v55 = vld [vmem:[#allocation25_spill] sm:$0xff] }
 0x79a   : > { %10580 = vmatmul.mubr.f32.gmra.mrb[28].mxu0 %v16426_v8  ;;  %v16469_v8 = vld [vmem:[#allocation32_spill] sm:$0xff] }
 0x79b   : > { %10582 = vmatprep.mubr.f32.mxu0 %v16427_v45  ;;  %v16468_v45 = vld [vmem:[#allocation29_spill] sm:$0xff] }
 0x79c   : > { %10787 = vmatmul.mubr.f32.gmra.mrb[30].mxu1 %v15330_v1 }
 0x79d   : > { %10799 = vmatprep.mubr.f32.mxu1 %v16428_v40  ;;  %v16456_v40 = vand.u32 4294901760, %v16422_v61  ;;  %v16463_v61 = vand.u32 4294901760, %v15330_v1  ;;  %v16472_v1 = vld [vmem:[#allocation40_spill] sm:$0xff] }
 0x79e   : > { %10583 = vmatmul.mubr.f32.gmra.mrb[30].mxu0 %v15333_v34  ;;  %v16473_v34 = vld [vmem:[#allocation48_spill] sm:$0xff] }
 0x79f   : > { %10595 = vmatprep.mubr.f32.mxu0 %v16433_v39  ;;  %v16454_v39 = vand.u32 4294901760, %v16420_v24 }
 0x7a0   : > { %10800 = vmatmul.mubr.f32.vlgmr.msra.gmra.mrb[16].mxu1 %v16434_v27  ;;  %v16441_v27 = vld [vmem:[#allocation41_spill] sm:$0xff] }
 0x7a1   : > { %11070 = vmatpush3.bf16.msra.mxu1 %v11019_v46  ;;  %10802 = vmatprep.mubr.f32.mxu1 %v16435_v37  ;;  %v16452_v37 = vand.u32 4294901760, %v16418_v23  ;;  %v16477_v23 = vld [vmem:[#allocation51_spill] sm:$0xff] }
 0x7a2   : > { %10596 = vmatmul.mubr.f32.vlgmr.msra.gmra.mrb[16].mxu0 %v16436_v41  ;;  %11072 = vmatprep.subr.bf16.mxu1 %v11023_v42 }
 0x7a3   : > { %11022 = vmatpush3.bf16.msra.mxu0 %v11019_v46  ;;  %10598 = vmatprep.mubr.f32.mxu0 %v16437_v48  ;;  %v16457_v46 = vand.u32 4294901760, %v16423_v20  ;;  %v16474_v20 = vld [vmem:[#allocation36_spill] sm:$0xff] }
 0x7a4   : > { %10803 = vmatmul.mubr.f32.gmra.mrb[18].mxu1 %v16438_v0  ;;  %11024 = vmatprep.subr.bf16.mxu0 %v11023_v42 }
 0x7a5   : > { %10805 = vmatprep.mubr.f32.mxu1 %v16439_v14  ;;  %11074 = vmatpush3.bf16.msra.mxu1 %v11023_v42 }
 0x7a6   : > { %10599 = vmatmul.mubr.f32.gmra.mrb[18].mxu0 %v16440_v56  ;;  %10831 = vmatprep.subr.mxu1 %v16441_v27 }
 0x7a7   : > { %10601 = vmatprep.mubr.f32.mxu0 %v16442_v30  ;;  %11026 = vmatpush3.bf16.msra.mxu0 %v11023_v42  ;;  %v16451_v42 = vand.u32 4294901760, %v16417_v5  ;;  %v16476_v5 = vld [vmem:[#allocation50_spill] sm:$0xff] }
 0x7a8   : > { %10806 = vmatmul.mubr.f32.gmra.mrb[20].mxu1 %v16443_v36  ;;  %10627 = vmatprep.subr.mxu0 %v16441_v27 }
 0x7a9   : > { %10808 = vmatprep.mubr.f32.mxu1 %v16444_v47  ;;  %10832 = vmatpush3.msra.mxu1 %v16441_v27 }
 0x7aa   : > { %10602 = vmatmul.mubr.f32.gmra.mrb[20].mxu0 %v16445_v54  ;;  %11076 = vmatprep.subr.bf16.mxu1 %v14235_v2 }
 0x7ab   : > { %10604 = vmatprep.mubr.f32.mxu0 %v16446_v21  ;;  %10628 = vmatpush3.msra.mxu0 %v16441_v27 }
 0x7ac   : > { %10809 = vmatmul.mubr.f32.gmra.mrb[22].mxu1 %v16447_v15  ;;  %11028 = vmatprep.subr.bf16.mxu0 %v14235_v2 }
 0x7ad   : > { %10811 = vmatprep.mubr.f32.mxu1 %v16448_v44 }
 0x7ae   : > { %10605 = vmatmul.mubr.f32.gmra.mrb[22].mxu0 %v16449_v7 }
 0x7af   : > { %10607 = vmatprep.mubr.f32.mxu0 %v16450_v22 }
 0x7b0   : > { %10812 = vmatmul.mubr.f32.gmra.mrb[24].mxu1 %v16451_v42 }
 0x7b1   : > { %10814 = vmatprep.mubr.f32.mxu1 %v16452_v37 }
 0x7b2   : > { %10608 = vmatmul.mubr.f32.gmra.mrb[24].mxu0 %v16453_v4 }
 0x7b3   : > { %10610 = vmatprep.mubr.f32.mxu0 %v16454_v39 }
 0x7b4   : > { %10815 = vmatmul.mubr.f32.gmra.mrb[26].mxu1 %v16455_v26 }
 0x7b5   : > { %10817 = vmatprep.mubr.f32.mxu1 %v16456_v40 }
 0x7b6   : > { %10611 = vmatmul.mubr.f32.gmra.mrb[26].mxu0 %v16457_v46 }
 0x7b7   : > { %10613 = vmatprep.mubr.f32.mxu0 %v16458_v13 }
 0x7b8   : > { %10818 = vmatmul.mubr.f32.gmra.mrb[28].mxu1 %v16459_v18 }
 0x7b9   : > { %10820 = vmatprep.mubr.f32.mxu1 %v16460_v31 }
 0x7ba   : > { %10614 = vmatmul.mubr.f32.gmra.mrb[28].mxu0 %v16461_v32 }
 0x7bb   : > { %10616 = vmatprep.mubr.f32.mxu0 %v16462_v3 }
 0x7bc   : > { %10821 = vmatmul.mubr.f32.gmra.mrb[30].mxu1 %v16463_v61 }
 0x7bd   : > { %10833 = vmatprep.mubr.f32.mxu1 %v14489_v12 }
 0x7be   : > { %10617 = vmatmul.mubr.f32.gmra.mrb[30].mxu0 %v16464_v52 }
 0x7bf   : > { %10629 = vmatprep.mubr.f32.mxu0 %v14464_v51 }
 0x7c0   : > { %10834 = vmatmul.mubr.f32.vlgmr.msra.gmra.mrb[16].mxu1 %v14534_v17 }
 0x7c1   : > { %11078 = vmatpush3.bf16.msra.mxu1 %v14235_v2  ;;  %10836 = vmatprep.mubr.f32.mxu1 %v14638_v57 }
 0x7c2   : > { %10630 = vmatmul.mubr.f32.vlgmr.msra.gmra.mrb[16].mxu0 %v14603_v25  ;;  %11080 = vmatprep.subr.bf16.mxu1 %v14254_v9 }
 0x7c3   : > { %11030 = vmatpush3.bf16.msra.mxu0 %v14235_v2  ;;  %10632 = vmatprep.mubr.f32.mxu0 %v14605_v19  ;;  %v16465_v2 = vld [vmem:[#allocation47_spill] sm:$0xff] }
 0x7c4   : > { %10837 = vmatmul.mubr.f32.gmra.mrb[18].mxu1 %v14685_v63  ;;  %11032 = vmatprep.subr.bf16.mxu0 %v14254_v9 }
 0x7c5   : > { %10839 = vmatprep.mubr.f32.mxu1 %v14780_v29  ;;  %11082 = vmatpush3.bf16.msra.mxu1 %v14254_v9 }
 0x7c6   : > { %10633 = vmatmul.mubr.f32.gmra.mrb[18].mxu0 %v14664_v62  ;;  %10865 = vmatprep.subr.mxu1 %v14265_v11 }
 0x7c7   : > { %10635 = vmatprep.mubr.f32.mxu0 %v14754_v35  ;;  %11034 = vmatpush3.bf16.msra.mxu0 %v14254_v9  ;;  %v16466_v9 = vld [vmem:[#allocation31_spill] sm:$0xff] }
 0x7c8   : > { %10840 = vmatmul.mubr.f32.gmra.mrb[20].mxu1 %v14827_v59  ;;  %10661 = vmatprep.subr.mxu0 %v14265_v11 }
 0x7c9   : > { %10842 = vmatprep.mubr.f32.mxu1 %v14920_v53  ;;  %10866 = vmatpush3.msra.mxu1 %v14265_v11 }
 0x7ca   : > { %10636 = vmatmul.mubr.f32.gmra.mrb[20].mxu0 %v14806_v28 }
 0x7cb   : > { %10638 = vmatprep.mubr.f32.mxu0 %v14894_v38  ;;  %10662 = vmatpush3.msra.mxu0 %v14265_v11  ;;  %v16470_v11 = vld [vmem:[#allocation27_spill] sm:$0xff] }
 0x7cc   : > { %10843 = vmatmul.mubr.f32.gmra.mrb[22].mxu1 %v14965_v33 }
 0x7cd   : > { %10845 = vmatprep.mubr.f32.mxu1 %v15039_v49 }
 0x7ce   : > { %10639 = vmatmul.mubr.f32.gmra.mrb[22].mxu0 %v14944_v6 }
 0x7cf   : > { %10641 = vmatprep.mubr.f32.mxu0 %v15021_v16 }
 0x7d0   : > { %10846 = vmatmul.mubr.f32.gmra.mrb[24].mxu1 %v15075_v43 }
 0x7d1   : > { %10848 = vmatprep.mubr.f32.mxu1 %v16465_v2 }
 0x7d2   : > { %10642 = vmatmul.mubr.f32.gmra.mrb[24].mxu0 %v16466_v9 }
 0x7d3   : > { %10644 = vmatprep.mubr.f32.mxu0 %v16467_v10 }
 0x7d4   : > { %10849 = vmatmul.mubr.f32.gmra.mrb[26].mxu1 %v16468_v45 }
 0x7d5   : > { %10851 = vmatprep.mubr.f32.mxu1 %v16469_v8 }
 0x7d6   : > { %10645 = vmatmul.mubr.f32.gmra.mrb[26].mxu0 %v16470_v11 }
 0x7d7   : > { %10647 = vmatprep.mubr.f32.mxu0 %v16471_v55 }
 0x7d8   : > { %10852 = vmatmul.mubr.f32.gmra.mrb[28].mxu1 %v16472_v1 }
 0x7d9   : > { %10854 = vmatprep.mubr.f32.mxu1 %v16473_v34 }
 0x7da   : > { %10648 = vmatmul.mubr.f32.gmra.mrb[28].mxu0 %v16474_v20 }
 0x7db   : > { %10650 = vmatprep.mubr.f32.mxu0 %v16475_v58 }
 0x7dc   : > { %10855 = vmatmul.mubr.f32.gmra.mrb[30].mxu1 %v16476_v5 }
 0x7dd   : > { %10867 = vmatprep.mubr.f32.mxu1 %v14489_v12 }
 0x7de   : > { %10651 = vmatmul.mubr.f32.gmra.mrb[30].mxu0 %v16477_v23 }
 0x7df   : > { %10663 = vmatprep.mubr.f32.mxu0 %v14464_v51  ;;  %v16478_v51 = vld [vmem:[#allocation18_spill] sm:$0xff] }
 0x7e0   : > { %10868 = vmatmul.mubr.f32.vlgmr.msra.gmra.mrb[16].mxu1 %v14534_v17  ;;  %v5775_v12 = vsub.s32 3, %v16478_v51  ;;  %v15582_v17 = vld [vmem:[#allocation11] sm:$0x3f] }
 0x7e1   : > { %10870 = vmatprep.mubr.f32.mxu1 %v14638_v57 }
 0x7e2   : > { %10664 = vmatmul.mubr.f32.vlgmr.msra.gmra.mrb[16].mxu0 %v14603_v25  ;;  %v15585_v25 = vrot.slane %v15582_v17, %v5775_v12 }
 0x7e3   : > { %10666 = vmatprep.mubr.f32.mxu0 %v14605_v19 }
 0x7e4   : > { %10871 = vmatmul.mubr.f32.gmra.mrb[18].mxu1 %v14685_v63 }
 0x7e5   : > { %10873 = vmatprep.mubr.f32.mxu1 %v14780_v29 }
 0x7e6   : > { %10667 = vmatmul.mubr.f32.gmra.mrb[18].mxu0 %v14664_v62 }
 0x7e7   : > { %10669 = vmatprep.mubr.f32.mxu0 %v14754_v35 }
 0x7e8   : > { %10874 = vmatmul.mubr.f32.gmra.mrb[20].mxu1 %v14827_v59 }
 0x7e9   : > { %10876 = vmatprep.mubr.f32.mxu1 %v14920_v53 }
 0x7ea   : > { %10670 = vmatmul.mubr.f32.gmra.mrb[20].mxu0 %v14806_v28 }
 0x7eb   : > { %10672 = vmatprep.mubr.f32.mxu0 %v14894_v38 }
 0x7ec   : > { %10877 = vmatmul.mubr.f32.gmra.mrb[22].mxu1 %v14965_v33 }
 0x7ed   : > { %10879 = vmatprep.mubr.f32.mxu1 %v15039_v49 }
 0x7ee   : > { %10673 = vmatmul.mubr.f32.gmra.mrb[22].mxu0 %v14944_v6 }
 0x7ef   : > { %10675 = vmatprep.mubr.f32.mxu0 %v15021_v16 }
 0x7f0   : > { %10880 = vmatmul.mubr.f32.gmra.mrb[24].mxu1 %v15075_v43 }
 0x7f1   : > { %10882 = vmatprep.mubr.f32.mxu1 %v16465_v2 }
 0x7f2   : > { %10676 = vmatmul.mubr.f32.gmra.mrb[24].mxu0 %v16466_v9 }
 0x7f3   : > { %10678 = vmatprep.mubr.f32.mxu0 %v16467_v10 }
 0x7f4   : > { %10883 = vmatmul.mubr.f32.gmra.mrb[26].mxu1 %v16468_v45 }
 0x7f5   : > { %10885 = vmatprep.mubr.f32.mxu1 %v16469_v8 }
 0x7f6   : > { %10679 = vmatmul.mubr.f32.gmra.mrb[26].mxu0 %v16470_v11 }
 0x7f7   : > { %10681 = vmatprep.mubr.f32.mxu0 %v16471_v55 }
 0x7f8   : > { %10886 = vmatmul.mubr.f32.gmra.mrb[28].mxu1 %v16472_v1 }
 0x7f9   : > { %10888 = vmatprep.mubr.f32.mxu1 %v16473_v34 }
 0x7fa   : > { %10682 = vmatmul.mubr.f32.gmra.mrb[28].mxu0 %v16474_v20 }
 0x7fb   : > { %10684 = vmatprep.mubr.f32.mxu0 %v16475_v58 }
 0x7fc   : > { %10889 = vmatmul.mubr.f32.gmra.mrb[30].mxu1 %v16476_v5 }
 0x7fe   : > { %10685 = vmatmul.mubr.f32.gmra.mrb[30].mxu0 %v16477_v23 }
 0x8b3   : > { %v10869_v19 = vpop.f32.mrb[16].mxu1 }
 0x8b4   : > { %v11131_v49 = vadd.f32 %v10869_v19, %v15585_v25  ;;  %v8992_v57 = vpop.f32.mrb[17].mxu1 }
 0x8b5   : > { %v10665_v62 = vpop.f32.mrb[16].mxu0  ;;  %v11132_v59 = vadd.f32 %v8992_v57, %v15585_v25 }
 0x8b6   : > { %v11115_v63 = vadd.f32 %v10665_v62, %v15585_v25  ;;  %9087 = vst.msk [vmem:[#allocation4 + $0x88] sm:$0xff] %vm292_vm0, %v11131_v49  ;;  %v9103_v33 = vsel %vm292_vm0, %v11131_v49, 0.0  ;;  %v9141_v35 = vmul.f32 %v11131_v49, %v11131_v49  ;;  %v6877_v29 = vpop.f32.mrb[17].mxu0 }
 0x8b7   : > { %v11116_v28 = vadd.f32 %v6877_v29, %v15585_v25  ;;  %9086 = vst.msk [vmem:[#allocation4 + $0x80] sm:$0xff] %vm292_vm0, %v11132_v59  ;;  %v9102_v6 = vsel %vm292_vm0, %v11132_v59, 0.0  ;;  %v9140_v38 = vmul.f32 %v11132_v59, %v11132_v59  ;;  %v10872_v53 = vpop.f32.mrb[18].mxu1 }
 0x8b8   : > { %6972 = vst.msk [vmem:[#allocation4 + $0x8] sm:$0xff] %vm292_vm0, %v11115_v63  ;;  %v6988_v16 = vsel %vm292_vm0, %v11115_v63, 0.0  ;;  %v7026_v43 = vmul.f32 %v11115_v63, %v11115_v63  ;;  %v9157_v50 = vsel %vm292_vm0, %v9141_v35, 0.0  ;;  %v9104_v24 = vadd.f32 %v9103_v33, %v9102_v6  ;;  %v9004_v60 = vpop.f32.mrb[19].mxu1 }
 0x8b9   : > { %6971 = vst.msk [vmem:[#allocation4] sm:$0xff] %vm292_vm0, %v11116_v28  ;;  %v6987_v41 = vsel %vm292_vm0, %v11116_v28, 0.0  ;;  %v7025_v48 = vmul.f32 %v11116_v28, %v11116_v28  ;;  %v9156_v0 = vsel %vm292_vm0, %v9140_v38, 0.0  ;;  %v10668_v14 = vpop.f32.mrb[18].mxu0  ;;  %v11133_v56 = vadd.f32 %v10872_v53, %v15585_v25 }
 0x8ba   : > { %v7042_v27 = vsel %vm292_vm0, %v7026_v43, 0.0  ;;  %v6989_v30 = vadd.f32 %v6988_v16, %v6987_v41  ;;  %v9158_v36 = vadd.f32 %v9157_v50, %v9156_v0  ;;  %v11117_v47 = vadd.f32 %v10668_v14, %v15585_v25  ;;  %v6889_v54 = vpop.f32.mrb[19].mxu0 }
 0x8bb   : > { %v7041_v21 = vsel %vm292_vm0, %v7025_v48, 0.0  ;;  %9089 = vst.msk [vmem:[#allocation4 + $0x98] sm:$0xff] %vm292_vm0, %v11133_v56  ;;  %v11118_v15 = vadd.f32 %v6889_v54, %v15585_v25  ;;  %v10875_v44 = vpop.f32.mrb[20].mxu1  ;;  %v9143_v22 = vmul.f32 %v11133_v56, %v11133_v56  ;;  %v11134_v42 = vadd.f32 %v9004_v60, %v15585_v25 }
 0x8bc   : > { %v7043_v7 = vadd.f32 %v7042_v27, %v7041_v21  ;;  %6974 = vst.msk [vmem:[#allocation4 + $0x18] sm:$0xff] %vm292_vm0, %v11117_v47  ;;  %v9016_v37 = vpop.f32.mrb[21].mxu1  ;;  %v7028_v4 = vmul.f32 %v11117_v47, %v11117_v47  ;;  %v11135_v46 = vadd.f32 %v10875_v44, %v15585_v25  ;;  %v9107_v3 = vsel %vm292_vm0, %v11133_v56, 0.0 }
 0x8bd   : > { %6973 = vst.msk [vmem:[#allocation4 + $0x10] sm:$0xff] %vm292_vm0, %v11118_v15  ;;  %v6990_v39 = vsel %vm292_vm0, %v11118_v15, 0.0  ;;  %v7027_v26 = vmul.f32 %v11118_v15, %v11118_v15  ;;  %v10671_v40 = vpop.f32.mrb[20].mxu0  ;;  %9088 = vst.msk [vmem:[#allocation4 + $0x90] sm:$0xff] %vm292_vm0, %v11134_v42  ;;  %v9105_v18 = vsel %vm292_vm0, %v11134_v42, 0.0  ;;  %v9142_v31 = vmul.f32 %v11134_v42, %v11134_v42 }
 0x8be   : > { %v6991_v13 = vadd.f32 %v6990_v39, %v6989_v30  ;;  %v6901_v32 = vpop.f32.mrb[21].mxu0  ;;  %v9106_v52 = vadd.f32 %v9105_v18, %v9104_v24  ;;  %v11119_v2 = vadd.f32 %v10671_v40, %v15585_v25  ;;  %9091 = vst.msk [vmem:[#allocation4 + $0xa8] sm:$0xff] %vm292_vm0, %v11135_v46  ;;  %v6992_v10 = vsel %vm292_vm0, %v11117_v47, 0.0 }
 0x8bf   : > { %v7044_v61 = vsel %vm292_vm0, %v7027_v26, 0.0  ;;  %v10878_v9 = vpop.f32.mrb[22].mxu1  ;;  %v9159_v8 = vsel %vm292_vm0, %v9142_v31, 0.0  ;;  %v11120_v11 = vadd.f32 %v6901_v32, %v15585_v25  ;;  %v7046_v1 = vsel %vm292_vm0, %v7028_v4, 0.0 }
 0x8c0   : > { %v7045_v45 = vadd.f32 %v7044_v61, %v7043_v7  ;;  %v9028_v55 = vpop.f32.mrb[23].mxu1  ;;  %v9161_v34 = vsel %vm292_vm0, %v9143_v22, 0.0  ;;  %v9160_v20 = vadd.f32 %v9159_v8, %v9158_v36  ;;  %6976 = vst.msk [vmem:[#allocation4 + $0x28] sm:$0xff] %vm292_vm0, %v11119_v2  ;;  %v6993_v58 = vadd.f32 %v6992_v10, %v6991_v13 }
 0x8c1   : > { %v10674_v5 = vpop.f32.mrb[22].mxu0  ;;  %v9145_v23 = vmul.f32 %v11135_v46, %v11135_v46  ;;  %6975 = vst.msk [vmem:[#allocation4 + $0x20] sm:$0xff] %vm292_vm0, %v11120_v11  ;;  %v6994_v12 = vsel %vm292_vm0, %v11120_v11, 0.0  ;;  %v7029_v19 = vmul.f32 %v11120_v11, %v11120_v11  ;;  %v7030_v62 = vmul.f32 %v11119_v2, %v11119_v2 }
 0x8c2   : > { %v7047_v49 = vadd.f32 %v7046_v1, %v7045_v45  ;;  %v6913_v57 = vpop.f32.mrb[23].mxu0  ;;  %v6995_v59 = vadd.f32 %v6994_v12, %v6993_v58  ;;  %v11136_v63 = vadd.f32 %v9016_v37, %v15585_v25  ;;  %v9108_v33 = vadd.f32 %v9107_v3, %v9106_v52 }
 0x8c3   : > { %v10881_v35 = vpop.f32.mrb[24].mxu1  ;;  %v7048_v29 = vsel %vm292_vm0, %v7029_v19, 0.0  ;;  %v9162_v28 = vadd.f32 %v9161_v34, %v9160_v20  ;;  %v11121_v6 = vadd.f32 %v10674_v5, %v15585_v25  ;;  %v11137_v38 = vadd.f32 %v10878_v9, %v15585_v25 }
 0x8c4   : > { %v9040_v53 = vpop.f32.mrb[25].mxu1  ;;  %v7049_v16 = vadd.f32 %v7048_v29, %v7047_v49  ;;  %9090 = vst.msk [vmem:[#allocation4 + $0xa0] sm:$0xff] %vm292_vm0, %v11136_v63  ;;  %v9109_v43 = vsel %vm292_vm0, %v11136_v63, 0.0  ;;  %v9144_v50 = vmul.f32 %v11136_v63, %v11136_v63  ;;  %v11122_v24 = vadd.f32 %v6913_v57, %v15585_v25 }
 0x8c5   : > { %v10677_v60 = vpop.f32.mrb[24].mxu0  ;;  %v6996_v41 = vsel %vm292_vm0, %v11119_v2, 0.0  ;;  %v9111_v48 = vsel %vm292_vm0, %v11135_v46, 0.0  ;;  %v9165_v0 = vsel %vm292_vm0, %v9145_v23, 0.0  ;;  %v9110_v14 = vadd.f32 %v9109_v43, %v9108_v33  ;;  %6978 = vst.msk [vmem:[#allocation4 + $0x38] sm:$0xff] %vm292_vm0, %v11121_v6  ;;  %9093 = vst.msk [vmem:[#allocation4 + $0xb8] sm:$0xff] %vm292_vm0, %v11137_v38 }
 0x8c6   : > { %v6925_v56 = vpop.f32.mrb[25].mxu0  ;;  %v7050_v27 = vsel %vm292_vm0, %v7030_v62, 0.0  ;;  %v9163_v30 = vsel %vm292_vm0, %v9144_v50, 0.0  ;;  %6977 = vst.msk [vmem:[#allocation4 + $0x30] sm:$0xff] %vm292_vm0, %v11122_v24  ;;  %v6997_v36 = vadd.f32 %v6996_v41, %v6995_v59  ;;  %v6998_v47 = vsel %vm292_vm0, %v11122_v24, 0.0 }
 0x8c7   : > { %v10884_v54 = vpop.f32.mrb[26].mxu1  ;;  %v9164_v21 = vadd.f32 %v9163_v30, %v9162_v28  ;;  %v7032_v15 = vmul.f32 %v11121_v6, %v11121_v6  ;;  %v7031_v44 = vmul.f32 %v11122_v24, %v11122_v24  ;;  %v7051_v7 = vadd.f32 %v7050_v27, %v7049_v16 }
 0x8c8   : > { %v15642_v22 = vpop.f32.mrb[27].mxu1  ;;  %v9147_v42 = vmul.f32 %v11137_v38, %v11137_v38  ;;  %v6999_v37 = vadd.f32 %v6998_v47, %v6997_v36  ;;  %v11138_v4 = vadd.f32 %v9028_v55, %v15585_v25  ;;  %v9112_v39 = vadd.f32 %v9111_v48, %v9110_v14 }
 0x8c9   : > { %v10680_v26 = vpop.f32.mrb[26].mxu0  ;;  %v7052_v40 = vsel %vm292_vm0, %v7031_v44, 0.0  ;;  %v9166_v46 = vadd.f32 %v9165_v0, %v9164_v21  ;;  %v11123_v13 = vadd.f32 %v10677_v60, %v15585_v25  ;;  %v11139_v18 = vadd.f32 %v10881_v35, %v15585_v25 }
 0x8ca   : > { %v6937_v31 = vpop.f32.mrb[27].mxu0  ;;  %v7053_v32 = vadd.f32 %v7052_v40, %v7051_v7  ;;  %9092 = vst.msk [vmem:[#allocation4 + $0xb0] sm:$0xff] %vm292_vm0, %v11138_v4  ;;  %v9113_v3 = vsel %vm292_vm0, %v11138_v4, 0.0  ;;  %v9146_v61 = vmul.f32 %v11138_v4, %v11138_v4  ;;  %v11124_v52 = vadd.f32 %v6925_v56, %v15585_v25 }
 0x8cb   : > { %v10887_v2 = vpop.f32.mrb[28].mxu1  ;;  %v7000_v9 = vsel %vm292_vm0, %v11121_v6, 0.0  ;;  %v7054_v10 = vsel %vm292_vm0, %v7032_v15, 0.0  ;;  %v9115_v45 = vsel %vm292_vm0, %v11137_v38, 0.0  ;;  %v9114_v8 = vadd.f32 %v9113_v3, %v9112_v39  ;;  %6980 = vst.msk [vmem:[#allocation4 + $0x48] sm:$0xff] %vm292_vm0, %v11123_v13  ;;  %9095 = vst.msk [vmem:[#allocation4 + $0xc8] sm:$0xff] %vm292_vm0, %v11139_v18 }
 0x8cc   : > { %v15656_v11 = vpop.f32.mrb[29].mxu1  ;;  %v9169_v55 = vsel %vm292_vm0, %v9147_v42, 0.0  ;;  %v9167_v1 = vsel %vm292_vm0, %v9146_v61, 0.0  ;;  %6979 = vst.msk [vmem:[#allocation4 + $0x40] sm:$0xff] %vm292_vm0, %v11124_v52  ;;  %v7001_v34 = vadd.f32 %v7000_v9, %v6999_v37  ;;  %v7002_v20 = vsel %vm292_vm0, %v11124_v52, 0.0 }
 0x8cd   : > { %v10683_v58 = vpop.f32.mrb[28].mxu0  ;;  %v9168_v5 = vadd.f32 %v9167_v1, %v9166_v46  ;;  %v7034_v23 = vmul.f32 %v11123_v13, %v11123_v13  ;;  %v7033_v12 = vmul.f32 %v11124_v52, %v11124_v52  ;;  %v7055_v19 = vadd.f32 %v7054_v10, %v7053_v32 }
 0x8ce   : > { %v6949_v49 = vpop.f32.mrb[29].mxu0  ;;  %v9149_v57 = vmul.f32 %v11139_v18, %v11139_v18  ;;  %v7003_v62 = vadd.f32 %v7002_v20, %v7001_v34  ;;  %v11140_v59 = vadd.f32 %v9040_v53, %v15585_v25  ;;  %v9116_v63 = vadd.f32 %v9115_v45, %v9114_v8 }
 0x8cf   : > { %v15663_v33 = vpop.f32.mrb[30].mxu1  ;;  %v7056_v35 = vsel %vm292_vm0, %v7033_v12, 0.0  ;;  %v9170_v29 = vadd.f32 %v9169_v55, %v9168_v5  ;;  %v11125_v28 = vadd.f32 %v10680_v26, %v15585_v25  ;;  %v11141_v6 = vadd.f32 %v10884_v54, %v15585_v25 }
 0x8d0   : > { %v15668_v38 = vpop.f32.mrb[31].mxu1  ;;  %v7057_v16 = vadd.f32 %v7056_v35, %v7055_v19  ;;  %9094 = vst.msk [vmem:[#allocation4 + $0xc0] sm:$0xff] %vm292_vm0, %v11140_v59  ;;  %v9117_v43 = vsel %vm292_vm0, %v11140_v59, 0.0  ;;  %v9148_v50 = vmul.f32 %v11140_v59, %v11140_v59  ;;  %v11126_v53 = vadd.f32 %v6937_v31, %v15585_v25 }
 0x8d1   : > { %v10686_v24 = vpop.f32.mrb[30].mxu0  ;;  %v7004_v60 = vsel %vm292_vm0, %v11123_v13, 0.0  ;;  %v7058_v41 = vsel %vm292_vm0, %v7034_v23, 0.0  ;;  %v9119_v48 = vsel %vm292_vm0, %v11139_v18, 0.0  ;;  %v9118_v0 = vadd.f32 %v9117_v43, %v9116_v63  ;;  %6982 = vst.msk [vmem:[#allocation4 + $0x58] sm:$0xff] %vm292_vm0, %v11125_v28  ;;  %9097 = vst.msk [vmem:[#allocation4 + $0xd8] sm:$0xff] %vm292_vm0, %v11141_v6 }
 0x8d2   : > { %v6961_v14 = vpop.f32.mrb[31].mxu0  ;;  %v9173_v56 = vsel %vm292_vm0, %v9149_v57, 0.0  ;;  %v9171_v27 = vsel %vm292_vm0, %v9148_v50, 0.0  ;;  %6981 = vst.msk [vmem:[#allocation4 + $0x50] sm:$0xff] %vm292_vm0, %v11126_v53  ;;  %v7005_v30 = vadd.f32 %v7004_v60, %v7003_v62  ;;  %v7006_v36 = vsel %vm292_vm0, %v11126_v53, 0.0 }
 0x8d3   : > { %v9172_v47 = vadd.f32 %v9171_v27, %v9170_v29  ;;  %v7036_v54 = vmul.f32 %v11125_v28, %v11125_v28  ;;  %v7035_v21 = vmul.f32 %v11126_v53, %v11126_v53  ;;  %v7059_v15 = vadd.f32 %v7058_v41, %v7057_v16 }
 0x8d4   : > { %v9151_v44 = vmul.f32 %v11141_v6, %v11141_v6  ;;  %v7007_v7 = vadd.f32 %v7006_v36, %v7005_v30  ;;  %v11142_v42 = vadd.f32 %v15642_v22, %v15585_v25  ;;  %v9120_v37 = vadd.f32 %v9119_v48, %v9118_v0 }
 0x8d5   : > { %v7060_v4 = vsel %vm292_vm0, %v7035_v21, 0.0  ;;  %v9174_v39 = vadd.f32 %v9173_v56, %v9172_v47  ;;  %v11127_v26 = vadd.f32 %v10683_v58, %v15585_v25  ;;  %v11143_v40 = vadd.f32 %v10887_v2, %v15585_v25 }
 0x8d6   : > { %v7061_v46 = vadd.f32 %v7060_v4, %v7059_v15  ;;  %9096 = vst.msk [vmem:[#allocation4 + $0xd0] sm:$0xff] %vm292_vm0, %v11142_v42  ;;  %v9121_v13 = vsel %vm292_vm0, %v11142_v42, 0.0  ;;  %v9150_v18 = vmul.f32 %v11142_v42, %v11142_v42  ;;  %v11128_v31 = vadd.f32 %v6949_v49, %v15585_v25 }
 0x8d7   : > { %v7008_v32 = vsel %vm292_vm0, %v11125_v28, 0.0  ;;  %v7062_v22 = vsel %vm292_vm0, %v7036_v54, 0.0  ;;  %v9123_v3 = vsel %vm292_vm0, %v11141_v6, 0.0  ;;  %v9122_v61 = vadd.f32 %v9121_v13, %v9120_v37  ;;  %6984 = vst.msk [vmem:[#allocation4 + $0x68] sm:$0xff] %vm292_vm0, %v11127_v26  ;;  %9099 = vst.msk [vmem:[#allocation4 + $0xe8] sm:$0xff] %vm292_vm0, %v11143_v40 }
 0x8d8   : > { %v9177_v52 = vsel %vm292_vm0, %v9151_v44, 0.0  ;;  %v9175_v2 = vsel %vm292_vm0, %v9150_v18, 0.0  ;;  %6983 = vst.msk [vmem:[#allocation4 + $0x60] sm:$0xff] %vm292_vm0, %v11128_v31  ;;  %v7009_v9 = vadd.f32 %v7008_v32, %v7007_v7  ;;  %v7010_v10 = vsel %vm292_vm0, %v11128_v31, 0.0 }
 0x8d9   : > { %v9176_v45 = vadd.f32 %v9175_v2, %v9174_v39  ;;  %v7038_v8 = vmul.f32 %v11127_v26, %v11127_v26  ;;  %v7037_v55 = vmul.f32 %v11128_v31, %v11128_v31  ;;  %v7063_v1 = vadd.f32 %v7062_v22, %v7061_v46 }
 0x8da   : > { %v9153_v34 = vmul.f32 %v11143_v40, %v11143_v40  ;;  %v7011_v20 = vadd.f32 %v7010_v10, %v7009_v9  ;;  %v11144_v58 = vadd.f32 %v15656_v11, %v15585_v25  ;;  %v9124_v5 = vadd.f32 %v9123_v3, %v9122_v61 }
 0x8db   : > { %v7064_v23 = vsel %vm292_vm0, %v7037_v55, 0.0  ;;  %v9178_v12 = vadd.f32 %v9177_v52, %v9176_v45  ;;  %v11129_v19 = vadd.f32 %v10686_v24, %v15585_v25  ;;  %v11145_v49 = vadd.f32 %v15663_v33, %v15585_v25 }
 0x8dc   : > { %v7065_v57 = vadd.f32 %v7064_v23, %v7063_v1  ;;  %9098 = vst.msk [vmem:[#allocation4 + $0xe0] sm:$0xff] %vm292_vm0, %v11144_v58  ;;  %v9125_v62 = vsel %vm292_vm0, %v11144_v58, 0.0  ;;  %v9152_v59 = vmul.f32 %v11144_v58, %v11144_v58  ;;  %v11130_v63 = vadd.f32 %v6961_v14, %v15585_v25 }
 0x8dd   : > { %v7012_v35 = vsel %vm292_vm0, %v11127_v26, 0.0  ;;  %v9127_v11 = vsel %vm292_vm0, %v11143_v40, 0.0  ;;  %v9126_v29 = vadd.f32 %v9125_v62, %v9124_v5  ;;  %6986 = vst.msk [vmem:[#allocation4 + $0x78] sm:$0xff] %vm292_vm0, %v11129_v19  ;;  %9101 = vst.msk [vmem:[#allocation4 + $0xf8] sm:$0xff] %vm292_vm0, %v11145_v49  ;;  %v7066_v28 = vsel %vm292_vm0, %v7038_v8, 0.0 }
 0x8de   : > { %v9179_v33 = vsel %vm292_vm0, %v9152_v59, 0.0  ;;  %6985 = vst.msk [vmem:[#allocation4 + $0x70] sm:$0xff] %vm292_vm0, %v11130_v63  ;;  %v7013_v6 = vadd.f32 %v7012_v35, %v7011_v20  ;;  %v7014_v16 = vsel %vm292_vm0, %v11130_v63, 0.0  ;;  %v7040_v50 = vmul.f32 %v11129_v19, %v11129_v19 }
 0x8df   : > { %v9180_v43 = vadd.f32 %v9179_v33, %v9178_v12  ;;  %v7039_v53 = vmul.f32 %v11130_v63, %v11130_v63  ;;  %v7067_v24 = vadd.f32 %v7066_v28, %v7065_v57  ;;  %v9181_v60 = vsel %vm292_vm0, %v9153_v34, 0.0  ;;  %v15734_v28 = vld [vmem:[#allocation4] sm:$0xff]  ;;  %v15736_v33 = vld [vmem:[#allocation4 + $0x18] sm:$0xff] }
 0x8e0   : > { %v7015_v41 = vadd.f32 %v7014_v16, %v7013_v6  ;;  %v11146_v48 = vadd.f32 %v15668_v38, %v15585_v25  ;;  %v9128_v0 = vadd.f32 %v9127_v11, %v9126_v29  ;;  %v7016_v14 = vsel %vm292_vm0, %v11129_v19, 0.0  ;;  %v15732_v29 = vld [vmem:[#allocation4 + $0x8] sm:$0xff]  ;;  %v15738_v6 = vld [vmem:[#allocation4 + $0x10] sm:$0xff] }
 0x8e1   : > { %v9155_v56 = vmul.f32 %v11145_v49, %v11145_v49  ;;  %v7068_v27 = vsel %vm292_vm0, %v7039_v53, 0.0  ;;  %v9182_v30 = vadd.f32 %v9181_v60, %v9180_v43  ;;  %v7070_v15 = vsel %vm292_vm0, %v7040_v50, 0.0  ;;  %v15746_v53 = vld [vmem:[#allocation4 + $0x28] sm:$0xff]  ;;  %v15750_v60 = vld [vmem:[#allocation4 + $0x38] sm:$0xff] }
 0x8e2   : > { %v7017_v36 = vadd.f32 %v7016_v14, %v7015_v41  ;;  %v7069_v47 = vadd.f32 %v7068_v27, %v7067_v24  ;;  %9100 = vst.msk [vmem:[#allocation4 + $0xf0] sm:$0xff] %vm292_vm0, %v11146_v48  ;;  %v9129_v54 = vsel %vm292_vm0, %v11146_v48, 0.0  ;;  %v9154_v21 = vmul.f32 %v11146_v48, %v11146_v48  ;;  %v15748_v24 = vld [vmem:[#allocation4 + $0x20] sm:$0xff]  ;;  %v15758_v14 = vld [vmem:[#allocation4 + $0x30] sm:$0xff] }
 0x8e3   : > { %v9130_v44 = vadd.f32 %v9129_v54, %v9128_v0  ;;  %v9131_v7 = vsel %vm292_vm0, %v11145_v49, 0.0  ;;  %v9185_v39 = vsel %vm292_vm0, %v9155_v56, 0.0  ;;  %v9303_v11 = vsub.s32 5, %v16478_v51  ;;  %v15756_v0 = vld [vmem:[#allocation4 + $0x80] sm:$0xff]  ;;  %v15760_v56 = vld [vmem:[#allocation4 + $0x48] sm:$0xff] }
 0x8e4   : > { %v7018_v25 = vrot.slane %v7017_v36, 4  ;;  %v7071_v38 = vadd.f32 %v7070_v15, %v7069_v47  ;;  %v9183_v42 = vsel %vm292_vm0, %v9154_v21, 0.0  ;;  %v9267_v50 = vsub.s32 4, %v16478_v51  ;;  %v15762_v27 = vld [vmem:[#allocation4 + $0x40] sm:$0xff]  ;;  %v15772_v54 = vld [vmem:[#allocation4 + $0x88] sm:$0xff]  ;;  %v15774_v21 = vld [vmem:[#allocation4 + $0x98] sm:$0xff] }
 0x8e5   : > { %v9132_v37 = vadd.f32 %v9131_v7, %v9130_v44  ;;  %v9184_v4 = vadd.f32 %v9183_v42, %v9182_v30  ;;  %v15743_v43 = vrot.slane %v15582_v17, %v9303_v11  ;;  %v9211_v15 = vld [vmem:[#allocation4 + $0x58] sm:$0xff]  ;;  %v9210_v44 = vld [vmem:[#allocation4 + $0x50] sm:$0xff]  ;;  %v9212_v7 = vld [vmem:[#allocation4 + $0x60] sm:$0xff] }
 0x8e6   : > { %v7019_v26 = vadd.f32 %v7018_v25, %v7017_v36  ;;  %v7072_v40 = vrot.slane %v7071_v38, 4 }
 0x8e7   : > { %v9133_v46 = vrot.slane %v9132_v37, 4  ;;  %v9186_v13 = vadd.f32 %v9185_v39, %v9184_v4  ;;  %v9213_v4 = vld [vmem:[#allocation4 + $0x68] sm:$0xff]  ;;  %v9215_v39 = vld [vmem:[#allocation4 + $0x78] sm:$0xff] }
 0x8e8   : > { %v7020_v18 = vrot.slane %v7019_v26, 2  ;;  %v7073_v31 = vadd.f32 %v7072_v40, %v7071_v38 }
 0x8e9   : > { %v9134_v32 = vadd.f32 %v9133_v46, %v9132_v37  ;;  %v9187_v22 = vrot.slane %v9186_v13, 4  ;;  %v15740_v16 = vld [vmem:[#allocation4 + $0xf0] sm:$0xff] }
 0x8ea   : > { %v7021_v3 = vadd.f32 %v7020_v18, %v7019_v26  ;;  %v7074_v61 = vrot.slane %v7073_v31, 2  ;;  %v9214_v26 = vld [vmem:[#allocation4 + $0x70] sm:$0xff] }
 0x8eb   : > { %v9135_v52 = vrot.slane %v9134_v32, 2  ;;  %v9188_v2 = vadd.f32 %v9187_v22, %v9186_v13  ;;  %v9221_v22 = vld [vmem:[#allocation4 + $0xa8] sm:$0xff] }
 0x8ec   : > { %v7022_v9 = vrot.slane %v7021_v3, 1  ;;  %v7075_v10 = vadd.f32 %v7074_v61, %v7073_v31 }
 0x8ed   : > { %v9136_v45 = vadd.f32 %v9135_v52, %v9134_v32  ;;  %v9189_v8 = vrot.slane %v9188_v2, 2  ;;  %v9218_v32 = vld [vmem:[#allocation4 + $0x90] sm:$0xff] }
 0x8ee   : > { %v7076_v55 = vrot.slane %v7075_v10, 1  ;;  %v7023_v1 = vadd.f32 %v7022_v9, %v7021_v3  ;;  %v9220_v3 = vld [vmem:[#allocation4 + $0xa0] sm:$0xff] }
 0x8ef   : > { %v9137_v34 = vrot.slane %v9136_v45, 1  ;;  %v9190_v20 = vadd.f32 %v9189_v8, %v9188_v2  ;;  %v9225_v8 = vld [vmem:[#allocation4 + $0xc8] sm:$0xff] }
 0x8f0   : > { %v7077_v58 = vadd.f32 %v7076_v55, %v7075_v10  ;;  %v9223_v10 = vld [vmem:[#allocation4 + $0xb8] sm:$0xff] }
 0x8f1   : > { %v9138_v5 = vadd.f32 %v9137_v34, %v9136_v45  ;;  %v9191_v23 = vrot.slane %v9190_v20, 1  ;;  %v9222_v45 = vld [vmem:[#allocation4 + $0xb0] sm:$0xff] }
 0x8f3   : > { %v9139_v12 = vadd.f32 %v9138_v5, %v7023_v1  ;;  %v9192_v19 = vadd.f32 %v9191_v23, %v9190_v20  ;;  %v9227_v5 = vld [vmem:[#allocation4 + $0xd8] sm:$0xff]  ;;  %v9226_v23 = vld [vmem:[#allocation4 + $0xd0] sm:$0xff] }
 0x8f5   : > { %v9193_v49 = vadd.f32 %v9192_v19, %v7077_v58  ;;  %v15727_v57 = vmul.f32 0.00390625, %v9139_v12  ;;  %v9224_v58 = vld [vmem:[#allocation4 + $0xc0] sm:$0xff] }
 0x8f7   : > { %v9195_v62 = vmul.f32 0.00390625, %v9193_v49  ;;  %v9196_v59 = vmul.f32 %v15727_v57, %v15727_v57  ;;  %v9262_v41 = vsub.f32 %v15740_v16, %v15727_v57  ;;  %v9232_v48 = vsub.f32 %v15734_v28, %v15727_v57 }
 0x8f8   : > { %v9233_v51 = vsub.f32 %v15732_v29, %v15727_v57  ;;  %v9234_v30 = vsub.f32 %v15738_v6, %v15727_v57  ;;  %v9235_v36 = vsub.f32 %v15736_v33, %v15727_v57  ;;  %v9236_v47 = vsub.f32 %v15748_v24, %v15727_v57 }
 0x8f9   : > { %v9197_v63 = vsub.f32 %v9195_v62, %v9196_v59  ;;  %v9237_v25 = vsub.f32 %v15746_v53, %v15727_v57  ;;  %v9238_v38 = vsub.f32 %v15758_v14, %v15727_v57  ;;  %v9239_v42 = vsub.f32 %v15750_v60, %v15727_v57  ;;  %v9228_v59 = vld [vmem:[#allocation4 + $0xe0] sm:$0xff] }
 0x8fa   : > { %v9240_v37 = vsub.f32 %v15762_v27, %v15727_v57  ;;  %v9241_v40 = vsub.f32 %v15760_v56, %v15727_v57  ;;  %v9242_v46 = vsub.f32 %v9210_v44, %v15727_v57  ;;  %v9243_v13 = vsub.f32 %v9211_v15, %v15727_v57  ;;  %v9367_v56 = vld [vmem:[%s12007_s9 + $0xf0] sm:$0xff] }
 0x8fb   : > { %v9198_v35 = vadd.f32 1e-05, %v9197_v63  ;;  %v9244_v18 = vsub.f32 %v9212_v7, %v15727_v57  ;;  %v9245_v61 = vsub.f32 %v9213_v4, %v15727_v57  ;;  %v9246_v52 = vsub.f32 %v9214_v26, %v15727_v57  ;;  %v9231_v63 = vld [vmem:[#allocation4 + $0xf8] sm:$0xff] }
 0x8fc   : > { %v9247_v2 = vsub.f32 %v9215_v39, %v15727_v57  ;;  %v9248_v9 = vsub.f32 %v15756_v0, %v15727_v57  ;;  %v9249_v1 = vsub.f32 %v15772_v54, %v15727_v57  ;;  %v9250_v34 = vsub.f32 %v9218_v32, %v15727_v57 }
 0x8fd   : > { %11557 = vrsqrt.f32 %v9198_v35  ;;  %v9251_v20 = vsub.f32 %v15774_v21, %v15727_v57  ;;  %v9252_v12 = vsub.f32 %v9220_v3, %v15727_v57  ;;  %v9253_v19 = vsub.f32 %v9221_v22, %v15727_v57 }
 0x8fe   : > { %v9254_v49 = vsub.f32 %v9222_v45, %v15727_v57  ;;  %v9255_v62 = vsub.f32 %v9223_v10, %v15727_v57  ;;  %v9256_v11 = vsub.f32 %v9224_v58, %v15727_v57  ;;  %v9257_v29 = vsub.f32 %v9225_v8, %v15727_v57 }
 0x8ff   : > { %v9258_v28 = vsub.f32 %v9226_v23, %v15727_v57  ;;  %v9259_v33 = vsub.f32 %v9227_v5, %v15727_v57  ;;  %v9260_v6 = vsub.f32 %v9228_v59, %v15727_v57  ;;  %v9263_v53 = vsub.f32 %v9231_v63, %v15727_v57 }
 0x907   : > { %v11558_v31 = vpop.eup %11557 }
 0x908   : > { %v9264_v55 = vmul.f32 %v15582_v17, %v11558_v31  ;;  %v9229_v17 = vld [vmem:[#allocation4 + $0xe8] sm:$0xff] }
 0x909   : > { %v9261_v16 = vsub.f32 %v9229_v17, %v15727_v57 }
 0x90a   : > { %v9268_v35 = vrot.slane %v9264_v55, %v9267_v50 }
 0x90c   : > { %v9299_v24 = vmul.f32 %v9268_v35, %v9262_v41  ;;  %v9269_v60 = vmul.f32 %v9268_v35, %v9232_v48  ;;  %v9270_v0 = vmul.f32 %v9268_v35, %v9233_v51  ;;  %v9271_v14 = vmul.f32 %v9268_v35, %v9234_v30 }
 0x90d   : > { %v9272_v50 = vmul.f32 %v9268_v35, %v9235_v36  ;;  %v9273_v27 = vmul.f32 %v9268_v35, %v9236_v47  ;;  %v9274_v54 = vmul.f32 %v9268_v35, %v9237_v25  ;;  %v9275_v21 = vmul.f32 %v9268_v35, %v9238_v38 }
 0x90e   : > { %v9335_v15 = vadd.f32 %v15743_v43, %v9299_v24  ;;  %v9276_v44 = vmul.f32 %v9268_v35, %v9239_v42  ;;  %v9277_v7 = vmul.f32 %v9268_v35, %v9240_v37  ;;  %v9278_v4 = vmul.f32 %v9268_v35, %v9241_v40  ;;  %v9344_v24 = vld [vmem:[%s12007_s9 + $0x38] sm:$0xff] }
 0x90f   : > { %v9279_v39 = vmul.f32 %v9268_v35, %v9242_v46  ;;  %v9280_v26 = vmul.f32 %v9268_v35, %v9243_v13  ;;  %v9281_v31 = vmul.f32 %v9268_v35, %v9244_v18  ;;  %v9282_v32 = vmul.f32 %v9268_v35, %v9245_v61 }
 0x910   : > { %v9399_v57 = vadd.f32 %v9367_v56, %v9335_v15  ;;  %v9283_v41 = vmul.f32 %v9268_v35, %v9246_v52  ;;  %v9284_v48 = vmul.f32 %v9268_v35, %v9247_v2  ;;  %v9285_v51 = vmul.f32 %v9268_v35, %v9248_v9  ;;  %v9355_v15 = vld [vmem:[%s12007_s9 + $0x90] sm:$0xff] }
 0x911   : > { %v9286_v30 = vmul.f32 %v9268_v35, %v9249_v1  ;;  %v9287_v22 = vmul.f32 %v9268_v35, %v9250_v34  ;;  %v9288_v36 = vmul.f32 %v9268_v35, %v9251_v20  ;;  %v9289_v47 = vmul.f32 %v9268_v35, %v9252_v12 }
 0x912   : > { %9431 = vst.msk [vmem:[%s15815_s29 + $0xf0] sm:$0xff] %vm292_vm0, %v9399_v57  ;;  %v9290_v25 = vmul.f32 %v9268_v35, %v9253_v19  ;;  %v9291_v38 = vmul.f32 %v9268_v35, %v9254_v49  ;;  %v9292_v42 = vmul.f32 %v9268_v35, %v9255_v62  ;;  %v9293_v37 = vmul.f32 %v9268_v35, %v9256_v11  ;;  %v9338_v19 = vld [vmem:[%s12007_s9 + $0x8] sm:$0xff]  ;;  %v9337_v49 = vld [vmem:[%s12007_s9] sm:$0xff]  ;;  %v9340_v62 = vld [vmem:[%s12007_s9 + $0x18] sm:$0xff] }
 0x913   : > { %v9294_v40 = vmul.f32 %v9268_v35, %v9257_v29  ;;  %v9295_v46 = vmul.f32 %v9268_v35, %v9258_v28  ;;  %v9296_v13 = vmul.f32 %v9268_v35, %v9259_v33  ;;  %v9297_v18 = vmul.f32 %v9268_v35, %v9260_v6  ;;  %v9339_v11 = vld [vmem:[%s12007_s9 + $0x10] sm:$0xff]  ;;  %v9342_v29 = vld [vmem:[%s12007_s9 + $0x28] sm:$0xff]  ;;  %v9341_v28 = vld [vmem:[%s12007_s9 + $0x20] sm:$0xff] }
 0x914   : > { %v9298_v3 = vmul.f32 %v9268_v35, %v9261_v16  ;;  %v9300_v61 = vmul.f32 %v9268_v35, %v9263_v53  ;;  %v9305_v52 = vadd.f32 %v15743_v43, %v9269_v60  ;;  %v9306_v2 = vadd.f32 %v15743_v43, %v9270_v0  ;;  %v9343_v60 = vld [vmem:[%s12007_s9 + $0x30] sm:$0xff]  ;;  %v9346_v0 = vld [vmem:[%s12007_s9 + $0x48] sm:$0xff]  ;;  %v9356_v57 = vld [vmem:[%s12007_s9 + $0x98] sm:$0xff] }
 0x915   : > { %v9307_v9 = vadd.f32 %v15743_v43, %v9271_v14  ;;  %v9308_v10 = vadd.f32 %v15743_v43, %v9272_v50  ;;  %v9309_v45 = vadd.f32 %v15743_v43, %v9273_v27  ;;  %v9310_v8 = vadd.f32 %v15743_v43, %v9274_v54  ;;  %v9354_v54 = vld [vmem:[%s12007_s9 + $0x88] sm:$0xff] }
 0x916   : > { %v9311_v55 = vadd.f32 %v15743_v43, %v9275_v21  ;;  %v9312_v1 = vadd.f32 %v15743_v43, %v9276_v44  ;;  %v9313_v34 = vadd.f32 %v15743_v43, %v9277_v7  ;;  %v9314_v20 = vadd.f32 %v15743_v43, %v9278_v4  ;;  %v9353_v21 = vld [vmem:[%s12007_s9 + $0x80] sm:$0xff]  ;;  %v9348_v7 = vld [vmem:[%s12007_s9 + $0x58] sm:$0xff]  ;;  %v9347_v4 = vld [vmem:[%s12007_s9 + $0x50] sm:$0xff] }
 0x917   : > { %v9315_v58 = vadd.f32 %v15743_v43, %v9279_v39  ;;  %v9316_v5 = vadd.f32 %v15743_v43, %v9280_v26  ;;  %v9317_v23 = vadd.f32 %v15743_v43, %v9281_v31  ;;  %v9318_v12 = vadd.f32 %v15743_v43, %v9282_v32  ;;  %v9345_v44 = vld [vmem:[%s12007_s9 + $0x40] sm:$0xff] }
 0x918   : > { %v9319_v17 = vadd.f32 %v15743_v43, %v9283_v41  ;;  %v15838_v59 = vadd.f32 %v15743_v43, %v9284_v48  ;;  %v15841_v63 = vadd.f32 %v15743_v43, %v9285_v51  ;;  %v15844_v35 = vadd.f32 %v15743_v43, %v9286_v30  ;;  %v9350_v41 = vld [vmem:[%s12007_s9 + $0x68] sm:$0xff]  ;;  %v9349_v48 = vld [vmem:[%s12007_s9 + $0x60] sm:$0xff]  ;;  %v9351_v51 = vld [vmem:[%s12007_s9 + $0x70] sm:$0xff] }
 0x919   : > { %v15850_v33 = vadd.f32 %v15743_v43, %v9287_v22  ;;  %v15853_v6 = vadd.f32 %v15743_v43, %v9288_v36  ;;  %v15856_v16 = vadd.f32 %v15743_v43, %v9289_v47  ;;  %v15859_v53 = vadd.f32 %v15743_v43, %v9290_v25  ;;  %v9358_v25 = vld [vmem:[%s12007_s9 + $0xa8] sm:$0xff] }
 0x91a   : > { %v15865_v14 = vadd.f32 %v15743_v43, %v9291_v38  ;;  %v15868_v56 = vadd.f32 %v15743_v43, %v9292_v42  ;;  %v15871_v50 = vadd.f32 %v15743_v43, %v9293_v37  ;;  %v15874_v27 = vadd.f32 %v15743_v43, %v9294_v40  ;;  %v9357_v38 = vld [vmem:[%s12007_s9 + $0xa0] sm:$0xff]  ;;  %v9352_v42 = vld [vmem:[%s12007_s9 + $0x78] sm:$0xff] }
 0x91b   : > { %v15883_v39 = vadd.f32 %v15743_v43, %v9295_v46  ;;  %v15886_v26 = vadd.f32 %v15743_v43, %v9296_v13  ;;  %v15889_v31 = vadd.f32 %v15743_v43, %v9297_v18  ;;  %v15892_v32 = vadd.f32 %v15743_v43, %v9298_v3  ;;  %v9360_v18 = vld [vmem:[%s12007_s9 + $0xb8] sm:$0xff]  ;;  %v9359_v3 = vld [vmem:[%s12007_s9 + $0xb0] sm:$0xff] }
 0x91c   : > { %v15899_v30 = vadd.f32 %v15743_v43, %v9300_v61  ;;  %v9369_v22 = vadd.f32 %v9337_v49, %v9305_v52  ;;  %v9370_v36 = vadd.f32 %v9338_v19, %v9306_v2  ;;  %v9371_v47 = vadd.f32 %v9339_v11, %v9307_v9  ;;  %v9362_v43 = vld [vmem:[%s12007_s9 + $0xc8] sm:$0xff] }
 0x91d   : > { %v9372_v37 = vadd.f32 %v9340_v62, %v9308_v10  ;;  %v9373_v40 = vadd.f32 %v9341_v28, %v9309_v45  ;;  %v9374_v46 = vadd.f32 %v9342_v29, %v9310_v8  ;;  %v9375_v13 = vadd.f32 %v9343_v60, %v9311_v55  ;;  %v9361_v10 = vld [vmem:[%s12007_s9 + $0xc0] sm:$0xff]  ;;  %v9364_v45 = vld [vmem:[%s12007_s9 + $0xd8] sm:$0xff]  ;;  %v9363_v8 = vld [vmem:[%s12007_s9 + $0xd0] sm:$0xff] }
 0x91e   : > { %v9376_v61 = vadd.f32 %v9344_v24, %v9312_v1  ;;  %v9377_v52 = vadd.f32 %v9345_v44, %v9313_v34  ;;  %v9378_v2 = vadd.f32 %v9346_v0, %v9314_v20  ;;  %v9379_v9 = vadd.f32 %v9347_v4, %v9315_v58  ;;  %9401 = vst.msk [vmem:[%s15815_s29] sm:$0xff] %vm292_vm0, %v9369_v22  ;;  %v9366_v58 = vld [vmem:[%s12007_s9 + $0xe8] sm:$0xff] }
 0x91f   : > { %9402 = vst.msk [vmem:[%s15815_s29 + $0x8] sm:$0xff] %vm292_vm0, %v9370_v36  ;;  %9403 = vst.msk [vmem:[%s15815_s29 + $0x10] sm:$0xff] %vm292_vm0, %v9371_v47  ;;  %v9380_v55 = vadd.f32 %v9348_v7, %v9316_v5  ;;  %v9381_v1 = vadd.f32 %v9349_v48, %v9317_v23  ;;  %v9382_v34 = vadd.f32 %v9350_v41, %v9318_v12  ;;  %v9365_v5 = vld [vmem:[%s12007_s9 + $0xe0] sm:$0xff]  ;;  %v9368_v23 = vld [vmem:[%s12007_s9 + $0xf8] sm:$0xff]  ;;  %s11772_s9 = smov [#allocation13]  }
 0x920   : > { %v9383_v20 = vadd.f32 %v9351_v51, %v9319_v17  ;;  %9404 = vst.msk [vmem:[%s15815_s29 + $0x18] sm:$0xff] %vm292_vm0, %v9372_v37  ;;  %9405 = vst.msk [vmem:[%s15815_s29 + $0x20] sm:$0xff] %vm292_vm0, %v9373_v40  ;;  %v9384_v12 = vadd.f32 %v9352_v42, %v15838_v59  ;;  %v9385_v19 = vadd.f32 %v9353_v21, %v15841_v63  ;;  %s11686_s23 = sshll.u32 %s11772_s9, 4  ;;  %s11687_s23 = int_to_ptr.vmem [resolvable:$false] %s11686_s23 }
 0x921   : > { %9406 = vst.msk [vmem:[%s15815_s29 + $0x28] sm:$0xff] %vm292_vm0, %v9374_v46  ;;  %9407 = vst.msk [vmem:[%s15815_s29 + $0x30] sm:$0xff] %vm292_vm0, %v9375_v13  ;;  %v9386_v49 = vadd.f32 %v9354_v54, %v15844_v35  ;;  %v9387_v62 = vadd.f32 %v9355_v15, %v15850_v33  ;;  %v9388_v17 = vadd.f32 %v9356_v57, %v15853_v6  ;;  %s11688_s14 = scalar_lea.vmem %s11687_s23, 8192  ;;  %p11689_p12 = scmp.lt.s32.totalorder %s15984_s5, %s11687_s23 }
 0x922   : > { %9408 = vst.msk [vmem:[%s15815_s29 + $0x38] sm:$0xff] %vm292_vm0, %v9376_v61  ;;  %9409 = vst.msk [vmem:[%s15815_s29 + $0x40] sm:$0xff] %vm292_vm0, %v9377_v52  ;;  %v9389_v59 = vadd.f32 %v9357_v38, %v15856_v16  ;;  %v9390_v63 = vadd.f32 %v9358_v25, %v15859_v53  ;;  %v9391_v35 = vadd.f32 %v9359_v3, %v15865_v14  ;;  %p11690_p1 = scmp.lt.s32.totalorder %s11688_s14, %s11682_s27 }
 0x923   : > { %9410 = vst.msk [vmem:[%s15815_s29 + $0x48] sm:$0xff] %vm292_vm0, %v9378_v2  ;;  %9411 = vst.msk [vmem:[%s15815_s29 + $0x50] sm:$0xff] %vm292_vm0, %v9379_v9  ;;  %v9392_v11 = vadd.f32 %v9360_v18, %v15868_v56  ;;  %v9393_v29 = vadd.f32 %v9361_v10, %v15871_v50  ;;  %v9394_v28 = vadd.f32 %v9362_v43, %v15874_v27 }
 0x924   : > { %9412 = vst.msk [vmem:[%s15815_s29 + $0x58] sm:$0xff] %vm292_vm0, %v9380_v55  ;;  %9413 = vst.msk [vmem:[%s15815_s29 + $0x60] sm:$0xff] %vm292_vm0, %v9381_v1  ;;  %v9395_v33 = vadd.f32 %v9363_v8, %v15883_v39  ;;  %v9396_v6 = vadd.f32 %v9364_v45, %v15886_v26  ;;  %v9397_v16 = vadd.f32 %v9365_v5, %v15889_v31  ;;  %p11691_p2 = por %p11690_p1, %p11689_p12 }
 0x925   : > { %9414 = vst.msk [vmem:[%s15815_s29 + $0x68] sm:$0xff] %vm292_vm0, %v9382_v34  ;;  %9415 = vst.msk [vmem:[%s15815_s29 + $0x70] sm:$0xff] %vm292_vm0, %v9383_v20  ;;  %v9398_v53 = vadd.f32 %v9366_v58, %v15892_v32  ;;  %v9400_v24 = vadd.f32 %v9368_v23, %v15899_v30 }
 0x926   : > { %9416 = vst.msk [vmem:[%s15815_s29 + $0x78] sm:$0xff] %vm292_vm0, %v9384_v12  ;;  %9417 = vst.msk [vmem:[%s15815_s29 + $0x80] sm:$0xff] %vm292_vm0, %v9385_v19  ;;  %p11692_p4 = pnand %p11691_p2, %p11685_p7 }
 0x927   : > { %9418 = vst.msk [vmem:[%s15815_s29 + $0x88] sm:$0xff] %vm292_vm0, %v9386_v49  ;;  %9419 = vst.msk [vmem:[%s15815_s29 + $0x90] sm:$0xff] %vm292_vm0, %v9387_v62 }
 0x928   : > { %9420 = vst.msk [vmem:[%s15815_s29 + $0x98] sm:$0xff] %vm292_vm0, %v9388_v17  ;;  %9421 = vst.msk [vmem:[%s15815_s29 + $0xa0] sm:$0xff] %vm292_vm0, %v9389_v59 }
 0x929   : > { %9422 = vst.msk [vmem:[%s15815_s29 + $0xa8] sm:$0xff] %vm292_vm0, %v9390_v63  ;;  %9423 = vst.msk [vmem:[%s15815_s29 + $0xb0] sm:$0xff] %vm292_vm0, %v9391_v35 }
 0x92a   : > { %9424 = vst.msk [vmem:[%s15815_s29 + $0xb8] sm:$0xff] %vm292_vm0, %v9392_v11  ;;  %9425 = vst.msk [vmem:[%s15815_s29 + $0xc0] sm:$0xff] %vm292_vm0, %v9393_v29 }
 0x92b   : > { %9426 = vst.msk [vmem:[%s15815_s29 + $0xc8] sm:$0xff] %vm292_vm0, %v9394_v28  ;;  %9427 = vst.msk [vmem:[%s15815_s29 + $0xd0] sm:$0xff] %vm292_vm0, %v9395_v33 }
 0x92c   : > { %9428 = vst.msk [vmem:[%s15815_s29 + $0xd8] sm:$0xff] %vm292_vm0, %v9396_v6  ;;  %9429 = vst.msk [vmem:[%s15815_s29 + $0xe0] sm:$0xff] %vm292_vm0, %v9397_v16 }
 0x92d   : > { %9430 = vst.msk [vmem:[%s15815_s29 + $0xe8] sm:$0xff] %vm292_vm0, %v9398_v53  ;;  %9432 = vst.msk [vmem:[%s15815_s29 + $0xf8] sm:$0xff] %vm292_vm0, %v9400_v24 }
 0x92e   : > { %11695 = shalt.err (!%p11692_p4)
}
 0x92f   : > { %s11696_s20 = scalar_lea.hbm %s15970_s26, 4096  ;;  %s11700_s28 = scalar_lea.hbm %s16049_s4, 8192 }
 0x930   : > { %p11697_p9 = scmp.ne.s32.totalorder %s15970_s26, %s11696_s20  ;;  %p11701_p8 = scmp.lt.u32.totalorder %s15970_s26, %s16049_s4 }
 0x931   : > { %p11702_p13 = scmp.lt.u32.totalorder %s11700_s28, %s11696_s20  ;;  %p11704_p10 = scmp.lt.u32.totalorder %s11696_s20, %s15970_s26 }
 0x932   : > { %p11698_p0 = pnand %p11697_p9, %p11950_p5 }
 0x933   : > { %p11703_p6 = por %p11702_p13, %p11701_p8 }
 0x934   : > { %p11699_p11 = pneg %p11698_p0 }
 0x935   : > { %p11705_p3 = por %p11704_p10, %p11703_p6 }
 0x937   : > { %p11706_p7 = pnand %p11705_p3, %p11699_p11 }
 0x939   : > { %11709 = shalt.err (!%p11706_p7)
}
 0x93a   : > { %s11773_s24 = smov 128  }
 0x93b   : > { %11481 = dma.vmem_to_hbm [thread:$0]  (%p11950_p5), %s15984_s5, 4096, %s15970_s26, %s9434_s19, %s11773_s24, %s11773_s24, %s11764_s21  }
 0x93c PF: > { %s9462_s7 = sand.u32 1, %s11744_s15   ;;  %p16479_p12 = scmp.ne.s32.totalorder %s16258_s22, 0 }
 0x93d   : > { %p16480_p1 = scmp.ge.s32.totalorder %s11756_s18, 2  ;;  %s9463_s25 = scalar_lea.sflag [#allocation7], %s9462_s7 }
 0x93f   : > { %p11498_p2 = pnand %p16480_p1, %p16479_p12 }
 0x941   : > { %11739 = dma.done.wait (!%p11498_p2), %s9463_s25, 4096  }
 0x942   : > { %11741 = vsyncadd (!%p11498_p2), %s9463_s25, 4294963200  ;;  %p19_p4 = scmp.ge.s32.totalorder %s11936_s10, 4   ;;  %s16481_s15 = smov %s11748_s16 }
 0x943   : > { %s16482_s16 = smov %s11752_s17  ;;  %s16483_s17 = smov %s11946_s12 }
 0x944   : > { %s16484_s18 = smov %s11936_s10  ;;  %21 = sbr.rel (!%p19_p4) target bundleno = 7 (0x7), region = 101 }
 0x94b   :  { %9468 = vsyncpa [#allocation6], 1 }
 0x94c   :  { %9470 = vsyncpa [#allocation6 + $0x1], 1 }
 0x94d   :  { %9471 = vsyncpa [#allocation9], 1 }
 0x94e   :  { %9472 = vsyncpa [#allocation12], 1 }
 0x94f   :  { %9473 = vsyncpa [#allocation7], 1 }
 0x950   :  { %9475 = vsyncpa [#allocation7 + $0x1], 1 }

</bundles_post_ra>
